<compile_context>
chip_gen: v7x
topology: tpu7x:2x2x1
jax: 0.10.0
libtpu: 0.0.40
codegen_flags: <defaults>
</compile_context>

<pallas_src>
import math

import jax
import jax.numpy as jnp
from jax import lax
from jax.experimental import pallas as pl
from jax.experimental.pallas import tpu as pltpu


# ----------------------------------------------------------------------------
# Helpers
# ----------------------------------------------------------------------------
def _round_up(x, m):
  return (x + m - 1) // m * m


# ----------------------------------------------------------------------------
# Fused GEMM kernel: out = [relu_mask]((A @ B) + bias [+ residual])
#   A: (tm, K) bf16,  B: (K, N) bf16 (BN scale folded),  bias: (1, N) f32
# ----------------------------------------------------------------------------
_GEMM_SINGLE_BLOCK_MAX_M = 512   # beyond this, grid over M with >=2 blocks
_GEMM_TM_MAX = 512               # M tile cap for the gridded path


def _make_gemm_kernel(has_residual: bool, apply_relu: bool, relu_cols):
  def _epilogue(acc, bias_ref, r_ref):
    out = acc + bias_ref[...]
    if r_ref is not None:
      out = out + r_ref[...].astype(jnp.float32)
    if apply_relu:
      if relu_cols is None:
        out = jnp.maximum(out, 0.0)
      else:
        # Partial ReLU (merged conv1+downsample GEMM): relu only first columns.
        col = lax.broadcasted_iota(jnp.int32, out.shape, 1)
        out = jnp.where(col < relu_cols, jnp.maximum(out, 0.0), out)
    return out

  if has_residual:

    def kernel(a_ref, b_ref, bias_ref, r_ref, o_ref):
      acc = jnp.dot(a_ref[...], b_ref[...], preferred_element_type=jnp.float32)
      o_ref[...] = _epilogue(acc, bias_ref, r_ref).astype(o_ref.dtype)

  else:

    def kernel(a_ref, b_ref, bias_ref, o_ref):
      acc = jnp.dot(a_ref[...], b_ref[...], preferred_element_type=jnp.float32)
      o_ref[...] = _epilogue(acc, bias_ref, None).astype(o_ref.dtype)

  return kernel


def fused_gemm(a, b, bias, residual=None, relu=False, relu_cols=None,
               out_dtype=jnp.bfloat16):
  """relu?((a @ b) + bias + residual?).  a:[M,K] bf16, b:[K,N] bf16, bias:[1,N]."""
  M, K = a.shape
  N = b.shape[1]

  if M <= _GEMM_SINGLE_BLOCK_MAX_M:
    tm, Mp = M, M                         # single block over the full M extent
  else:
    # >=2 blocks so both v7x TensorCores get work; tm multiple of 8, capped.
    tm = min(_GEMM_TM_MAX, _round_up((M + 1) // 2, 8))
    Mp = _round_up(M, tm)
    if Mp != M:
      a = jnp.pad(a, ((0, Mp - M), (0, 0)))
      if residual is not None:
        residual = jnp.pad(residual, ((0, Mp - M), (0, 0)))

  in_specs = [
      pl.BlockSpec((tm, K), lambda i: (i, 0)),
      pl.BlockSpec((K, N), lambda i: (0, 0)),
      pl.BlockSpec((1, N), lambda i: (0, 0)),
  ]
  args = [a, b, bias]
  if residual is not None:
    in_specs.append(pl.BlockSpec((tm, N), lambda i: (i, 0)))
    args.append(residual)

  out = pl.pallas_call(
      _make_gemm_kernel(residual is not None, relu, relu_cols),
      out_shape=jax.ShapeDtypeStruct((Mp, N), out_dtype),
      grid_spec=pltpu.PrefetchScalarGridSpec(
          num_scalar_prefetch=0,
          grid=(Mp // tm,),
          in_specs=in_specs,
          out_specs=pl.BlockSpec((tm, N), lambda i: (i, 0)),
      ),
      compiler_params=pltpu.CompilerParams(
          dimension_semantics=("parallel",)),
  )(*args)
  return out if Mp == M else out[:M]


# ----------------------------------------------------------------------------
# im2col + conv + folded BN (+ residual) (+ ReLU) on NHWC activations
# ----------------------------------------------------------------------------
def _extract_patches_nhwc(x, kh, kw, stride, padding, dilation=1):
  """NHWC x -> ([N*Ho*Wo, kh*kw*C] bf16 patches, Ho, Wo). K order=(kh,kw,cin)."""
  x = x.astype(jnp.bfloat16)        # compact cast BEFORE the kh*kw tap expansion
  n, h, w, c = x.shape
  if padding > 0:
    x = jnp.pad(x, ((0, 0), (padding, padding), (padding, padding), (0, 0)))
  hp, wp = h + 2 * padding, w + 2 * padding
  ho = (hp - dilation * (kh - 1) - 1) // stride + 1
  wo = (wp - dilation * (kw - 1) - 1) // stride + 1
  taps = []
  for dh in range(kh):
    for dw in range(kw):
      hs, ws = dh * dilation, dw * dilation
      taps.append(x[:, hs:hs + stride * (ho - 1) + 1:stride,
                    ws:ws + stride * (wo - 1) + 1:stride, :])
  patches = jnp.concatenate(taps, axis=-1)            # (N, Ho, Wo, kh*kw*C)
  return patches.reshape(n * ho * wo, kh * kw * c), ho, wo


def conv2d_bn(x, cp, *, kh, kw, stride, padding, dilation=1, relu=False,
              residual=None, out_dtype=jnp.bfloat16):
  """conv(no bias) + folded BN (+ residual) (+ ReLU).  x NHWC.

  cp = {"w": (kh*kw*cin, cout) bf16 (BN scale folded), "bias": (1, cout) f32}.
  """
  n = x.shape[0]
  a, ho, wo = _extract_patches_nhwc(x, kh, kw, stride, padding, dilation)
  res2d = None
  if residual is not None:
    res2d = residual.reshape(-1, residual.shape[-1]).astype(jnp.bfloat16)
  out2d = fused_gemm(a, cp["w"], cp["bias"], residual=res2d, relu=relu,
                     out_dtype=out_dtype)
  return out2d.reshape(n, ho, wo, -1)


# ----------------------------------------------------------------------------
# MaxPool 3x3 / stride 2 / padding 1 (NHWC)
# ----------------------------------------------------------------------------
_POOL_SINGLE_BLOCK_MAX_M = 512    # fits v5e's 16 MiB scoped-VMEM default easily
_POOL_TM_MAX = 2048


def _maxpool9_kernel(t_ref, o_ref):
  # t_ref: (9, tm, C) window taps; VPU max tree over the tap axis.
  r = jnp.maximum(t_ref[0], t_ref[1])
  for i in range(2, 9):
    r = jnp.maximum(r, t_ref[i])
  o_ref[...] = r.astype(o_ref.dtype)


def maxpool_3x3_s2_p1(x, out_dtype=jnp.bfloat16):
  """MaxPool2d(kernel_size=3, stride=2, padding=1), NHWC."""
  n, h, w, c = x.shape
  ho = (h + 2 - 3) // 2 + 1
  wo = (w + 2 - 3) // 2 + 1
  xp = jnp.pad(x, ((0, 0), (1, 1), (1, 1), (0, 0)), constant_values=-jnp.inf)
  taps = [xp[:, dh:dh + 2 * (ho - 1) + 1:2, dw:dw + 2 * (wo - 1) + 1:2, :]
          for dh in range(3) for dw in range(3)]
  t = jnp.stack(taps, axis=0).reshape(9, n * ho * wo, c)
  M = n * ho * wo

  if M <= _POOL_SINGLE_BLOCK_MAX_M:
    tm, Mp = M, M
  else:
    tm = min(_POOL_TM_MAX, _round_up((M + 1) // 2, 8))
    Mp = _round_up(M, tm)
    t = jnp.pad(t, ((0, 0), (0, Mp - M), (0, 0)), constant_values=-jnp.inf)

  out = pl.pallas_call(
      _maxpool9_kernel,
      out_shape=jax.ShapeDtypeStruct((Mp, c), out_dtype),
      grid_spec=pltpu.PrefetchScalarGridSpec(
          num_scalar_prefetch=0,
          grid=(Mp // tm,),
          in_specs=[pl.BlockSpec((9, tm, c), lambda i: (0, i, 0))],
          out_specs=pl.BlockSpec((tm, c), lambda i: (i, 0)),
      ),
      compiler_params=pltpu.CompilerParams(
          dimension_semantics=("parallel",)),
  )(t)
  if Mp != M:
    out = out[:M]
  return out.reshape(n, ho, wo, c)


# ----------------------------------------------------------------------------
# Parameters: same init scheme as the module, pre-packed for the GEMM
# ----------------------------------------------------------------------------
def _he_conv(key, cout, cin, kh, kw):
  # PyTorch init in the module: normal(0, sqrt(2 / (kh*kw*cout)))
  n = kh * kw * cout
  return jax.random.normal(key, (cout, cin, kh, kw), jnp.float32) * math.sqrt(
      2.0 / n)


def _pack_conv_bn(key, cout, cin, kh, kw, eps=1e-5):
  w = _he_conv(key, cout, cin, kh, kw)              # OIHW, like nn.Conv2d
  # BN at init: gamma=1, beta=0, running_mean=0, running_var=1 (inference fold)
  gamma = jnp.ones((cout,), jnp.float32)
  beta = jnp.zeros((cout,), jnp.float32)
  mean = jnp.zeros((cout,), jnp.float32)
  var = jnp.ones((cout,), jnp.float32)
  scale = gamma / jnp.sqrt(var + eps)
  bias = beta - mean * scale
  # K ordering (kh, kw, cin) matches _extract_patches_nhwc; fold BN scale in.
  w2d = w.transpose(2, 3, 1, 0).reshape(kh * kw * cin, cout) * scale[None, :]
  return {"w": w2d.astype(jnp.bfloat16), "bias": bias.reshape(1, cout)}


def _merge_packed(cp_a, cp_b):
  # Concatenate two packed convs along N (they share the same patch matrix).
  return {"w": jnp.concatenate([cp_a["w"], cp_b["w"]], axis=1),
          "bias": jnp.concatenate([cp_a["bias"], cp_b["bias"]], axis=1)}


def init_params(key):
  keys = iter(jax.random.split(key, 16))
  p = {"conv1": _pack_conv_bn(next(keys), 64, 3, 7, 7)}

  def plain_block(cin, cout):
    return {"conv1": _pack_conv_bn(next(keys), cout, cin, 3, 3),
            "conv2": _pack_conv_bn(next(keys), cout, cout, 3, 3)}

  def ds_block(cin, cout):
    # BasicBlock with downsample (layer2[0]): conv1 is 3x3/s2/p0, downsample is
    # Conv2d(k=3, stride=2, padding=0) + BN -> identical patch matrix, merge.
    c1 = _pack_conv_bn(next(keys), cout, cin, 3, 3)
    c2 = _pack_conv_bn(next(keys), cout, cout, 3, 3)
    ds = _pack_conv_bn(next(keys), cout, cin, 3, 3)
    return {"conv1_ds": _merge_packed(c1, ds), "conv2": c2}

  # layer1: 2 x BasicBlock(64 -> 64), stride 1, no downsample
  p["layer1"] = [plain_block(64, 64), plain_block(64, 64)]
  # layer2: BasicBlock(64 -> 128, stride 2, 3x3 s2 p0 downsample) + BasicBlock(128)
  p["layer2"] = [ds_block(64, 128), plain_block(128, 128)]
  return p


# ----------------------------------------------------------------------------
# Forward pass (ResNet(BasicBlock, [2,2,2,2], layer3=False, layer4=False))
# ----------------------------------------------------------------------------
def basic_block(x, bp, *, stride, out_dtype=jnp.bfloat16):
  # pysot-style BasicBlock (dilation=1 here): conv1 padding = 2 - stride
  pad1 = 2 - stride
  if "conv1_ds" in bp:
    # Merged conv1 + downsample GEMM (both 3x3 / stride / padding=0 on x).
    assert pad1 == 0, "merged conv1+downsample requires stride=2 (padding=0)"
    n = x.shape[0]
    a, ho, wo = _extract_patches_nhwc(x, 3, 3, stride, 0)
    w = bp["conv1_ds"]["w"]
    cout1 = w.shape[1] // 2                 # static under jit (weight shape)
    out2d = fused_gemm(a, w, bp["conv1_ds"]["bias"], relu=True,
                       relu_cols=cout1, out_dtype=jnp.bfloat16)
    out = out2d[:, :cout1].reshape(n, ho, wo, cout1)           # relu'd conv1
    residual = out2d[:, cout1:].reshape(n, ho, wo, cout1)      # downsample
  else:
    out = conv2d_bn(x, bp["conv1"], kh=3, kw=3, stride=stride, padding=pad1,
                    relu=True)
    residual = x
  # conv2: 3x3 s1 p1 + BN, then residual add, then ReLU (fused epilogue)
  return conv2d_bn(out, bp["conv2"], kh=3, kw=3, stride=1, padding=1,
                   relu=True, residual=residual, out_dtype=out_dtype)


@jax.jit
def resnet_forward(params, x_nchw):
  x = jnp.transpose(x_nchw, (0, 2, 3, 1)).astype(jnp.float32)   # NCHW -> NHWC
  # conv1 (7x7, stride 2, pad 0) + bn1 + relu; p0 is returned -> keep f32
  p0 = conv2d_bn(x, params["conv1"], kh=7, kw=7, stride=2, padding=0,
                 relu=True, out_dtype=jnp.float32)
  # maxpool 3x3, stride 2, pad 1; feeds layer1 -> bf16
  x = maxpool_3x3_s2_p1(p0, out_dtype=jnp.bfloat16)
  # layer1 (p1 returned -> f32 on the last block)
  x = basic_block(x, params["layer1"][0], stride=1, out_dtype=jnp.bfloat16)
  p1 = basic_block(x, params["layer1"][1], stride=1, out_dtype=jnp.float32)
  # layer2 (p2 returned -> f32 on the last block)
  x = basic_block(p1, params["layer2"][0], stride=2, out_dtype=jnp.bfloat16)
  p2 = basic_block(x, params["layer2"][1], stride=1, out_dtype=jnp.float32)
  # layer3 / layer4 are identity (layer3=False, layer4=False)
  p3 = p2
  to_nchw = lambda t: jnp.transpose(t, (0, 3, 1, 2))
  return to_nchw(p0), to_nchw(p1), to_nchw(p2), to_nchw(p3)


if __name__ == "__main__":
  key = jax.random.PRNGKey(0)
  pkey, xkey = jax.random.split(key)
  params = init_params(pkey)
  # small NCHW input consistent with the module (3 input channels)
  x = jax.random.normal(xkey, (2, 3, 40, 40), jnp.float32)

  p0, p1, p2, p3 = resnet_forward(params, x)
  jax.block_until_ready((p0, p1, p2, p3))

  assert p0.shape == (2, 64, 17, 17) and p0.dtype == jnp.float32
  assert p1.shape == (2, 64, 9, 9) and p1.dtype == jnp.float32
  assert p2.shape == (2, 128, 4, 4) and p2.dtype == jnp.float32
  assert p3.shape == (2, 128, 4, 4) and p3.dtype == jnp.float32
  print("KERNEL_OK")
</pallas_src>

<mosaic_0001>
module attributes {stable_mosaic.version = 11 : i64} {
  func.func @kernel(%arg0: i32, %arg1: memref<296x147xbf16, #tpu.memory_space<vmem>>, %arg2: memref<147x64xbf16, #tpu.memory_space<vmem>>, %arg3: memref<1x64xf32, #tpu.memory_space<vmem>>, %arg4: memref<296x64xf32, #tpu.memory_space<vmem>>) attributes {dimension_semantics = [#tpu.dimension_semantics<parallel>], iteration_bounds = array<i64: 2>, scalar_prefetch = 0 : i64, scratch_operands = 0 : i64, tpu.core_type = #tpu.core_type<tc>, window_params = [{transform_indices = @transform_0, window_bounds = array<i64: 296, 147>}, {pipeline_mode = #tpu.pipeline_mode<synchronous>, transform_indices = @transform_1, window_bounds = array<i64: 147, 64>}, {pipeline_mode = #tpu.pipeline_mode<synchronous>, transform_indices = @transform_2, window_bounds = array<i64: 1, 64>}, {transform_indices = @transform_3, window_bounds = array<i64: 296, 64>}]} {
    %c0 = arith.constant 0 : index
    %c0_0 = arith.constant 0 : index
    %0 = vector.load %arg1[%c0, %c0_0] : memref<296x147xbf16, #tpu.memory_space<vmem>>, vector<296x147xbf16>
    %c0_1 = arith.constant 0 : index
    %c0_2 = arith.constant 0 : index
    %1 = vector.load %arg2[%c0_1, %c0_2] : memref<147x64xbf16, #tpu.memory_space<vmem>>, vector<147x64xbf16>
    %cst = arith.constant dense<0.000000e+00> : vector<296x64xf32>
    %2 = tpu.matmul %0, %1, %cst {dimension_numbers = #tpu.dot_dimension_numbers<[1], [0], [0], [1], [0, 0, 1, 1], [], []>} : vector<296x147xbf16>, vector<147x64xbf16>, vector<296x64xf32> -> vector<296x64xf32>
    %c0_3 = arith.constant 0 : index
    %c0_4 = arith.constant 0 : index
    %3 = vector.load %arg3[%c0_3, %c0_4] : memref<1x64xf32, #tpu.memory_space<vmem>>, vector<1x64xf32>
    %4 = vector.broadcast %3 : vector<1x64xf32> to vector<296x64xf32>
    %5 = arith.addf %2, %4 : vector<296x64xf32>
    %cst_5 = arith.constant 0.000000e+00 : f32
    %6 = vector.broadcast %cst_5 : f32 to vector<296x64xf32>
    %7 = arith.maximumf %5, %6 : vector<296x64xf32>
    %c0_6 = arith.constant 0 : index
    %c0_7 = arith.constant 0 : index
    %8 = vector.load %arg4[%c0_6, %c0_7] : memref<296x64xf32, #tpu.memory_space<vmem>>, vector<296x64xf32>
    tpu.vector_store %arg4[%c0_6, %c0_7], %7 {strides = array<i32>} : memref<296x64xf32, #tpu.memory_space<vmem>>, vector<296x64xf32>,
    return
  }
  func.func @transform_0(%arg0: i32) -> (i32, i32) {
    %c0_i32 = arith.constant 0 : i32
    %c0_i32_0 = arith.constant 0 : i32
    return %arg0, %c0_i32 : i32, i32
  }
  func.func @transform_1(%arg0: i32) -> (i32, i32) {
    %c0_i32 = arith.constant 0 : i32
    %c0_i32_0 = arith.constant 0 : i32
    %c0_i32_1 = arith.constant 0 : i32
    return %c0_i32, %c0_i32_0 : i32, i32
  }
  func.func @transform_2(%arg0: i32) -> (i32, i32) {
    %c0_i32 = arith.constant 0 : i32
    %c0_i32_0 = arith.constant 0 : i32
    %c0_i32_1 = arith.constant 0 : i32
    return %c0_i32, %c0_i32_0 : i32, i32
  }
  func.func @transform_3(%arg0: i32) -> (i32, i32) {
    %c0_i32 = arith.constant 0 : i32
    %c0_i32_0 = arith.constant 0 : i32
    return %arg0, %c0_i32 : i32, i32
  }
}

module attributes {stable_mosaic.version = 11 : i64} {
  func.func @_maxpool9_kernel(%arg0: i32, %arg1: memref<9x162x64xf32, #tpu.memory_space<vmem>>, %arg2: memref<162x64xbf16, #tpu.memory_space<vmem>>) attributes {dimension_semantics = [#tpu.dimension_semantics<parallel>], iteration_bounds = array<i64: 1>, scalar_prefetch = 0 : i64, scratch_operands = 0 : i64, tpu.core_type = #tpu.core_type<tc>, window_params = [{transform_indices = @transform_0, window_bounds = array<i64: 9, 162, 64>}, {transform_indices = @transform_1, window_bounds = array<i64: 162, 64>}]} {
    %c0 = arith.constant 0 : index
    %c0_0 = arith.constant 0 : index
    %c0_1 = arith.constant 0 : index
    %0 = vector.load %arg1[%c0, %c0_0, %c0_1] : memref<9x162x64xf32, #tpu.memory_space<vmem>>, vector<1x162x64xf32>
    %1 = vector.shape_cast %0 : vector<1x162x64xf32> to vector<162x64xf32>
    %c1 = arith.constant 1 : index
    %c0_2 = arith.constant 0 : index
    %c0_3 = arith.constant 0 : index
    %2 = vector.load %arg1[%c1, %c0_2, %c0_3] : memref<9x162x64xf32, #tpu.memory_space<vmem>>, vector<1x162x64xf32>
    %3 = vector.shape_cast %2 : vector<1x162x64xf32> to vector<162x64xf32>
    %4 = arith.maximumf %1, %3 : vector<162x64xf32>
    %c2 = arith.constant 2 : index
    %c0_4 = arith.constant 0 : index
    %c0_5 = arith.constant 0 : index
    %5 = vector.load %arg1[%c2, %c0_4, %c0_5] : memref<9x162x64xf32, #tpu.memory_space<vmem>>, vector<1x162x64xf32>
    %6 = vector.shape_cast %5 : vector<1x162x64xf32> to vector<162x64xf32>
    %7 = arith.maximumf %4, %6 : vector<162x64xf32>
    %c3 = arith.constant 3 : index
    %c0_6 = arith.constant 0 : index
    %c0_7 = arith.constant 0 : index
    %8 = vector.load %arg1[%c3, %c0_6, %c0_7] : memref<9x162x64xf32, #tpu.memory_space<vmem>>, vector<1x162x64xf32>
    %9 = vector.shape_cast %8 : vector<1x162x64xf32> to vector<162x64xf32>
    %10 = arith.maximumf %7, %9 : vector<162x64xf32>
    %c4 = arith.constant 4 : index
    %c0_8 = arith.constant 0 : index
    %c0_9 = arith.constant 0 : index
    %11 = vector.load %arg1[%c4, %c0_8, %c0_9] : memref<9x162x64xf32, #tpu.memory_space<vmem>>, vector<1x162x64xf32>
    %12 = vector.shape_cast %11 : vector<1x162x64xf32> to vector<162x64xf32>
    %13 = arith.maximumf %10, %12 : vector<162x64xf32>
    %c5 = arith.constant 5 : index
    %c0_10 = arith.constant 0 : index
    %c0_11 = arith.constant 0 : index
    %14 = vector.load %arg1[%c5, %c0_10, %c0_11] : memref<9x162x64xf32, #tpu.memory_space<vmem>>, vector<1x162x64xf32>
    %15 = vector.shape_cast %14 : vector<1x162x64xf32> to vector<162x64xf32>
    %16 = arith.maximumf %13, %15 : vector<162x64xf32>
    %c6 = arith.constant 6 : index
    %c0_12 = arith.constant 0 : index
    %c0_13 = arith.constant 0 : index
    %17 = vector.load %arg1[%c6, %c0_12, %c0_13] : memref<9x162x64xf32, #tpu.memory_space<vmem>>, vector<1x162x64xf32>
    %18 = vector.shape_cast %17 : vector<1x162x64xf32> to vector<162x64xf32>
    %19 = arith.maximumf %16, %18 : vector<162x64xf32>
    %c7 = arith.constant 7 : index
    %c0_14 = arith.constant 0 : index
    %c0_15 = arith.constant 0 : index
    %20 = vector.load %arg1[%c7, %c0_14, %c0_15] : memref<9x162x64xf32, #tpu.memory_space<vmem>>, vector<1x162x64xf32>
    %21 = vector.shape_cast %20 : vector<1x162x64xf32> to vector<162x64xf32>
    %22 = arith.maximumf %19, %21 : vector<162x64xf32>
    %c8 = arith.constant 8 : index
    %c0_16 = arith.constant 0 : index
    %c0_17 = arith.constant 0 : index
    %23 = vector.load %arg1[%c8, %c0_16, %c0_17] : memref<9x162x64xf32, #tpu.memory_space<vmem>>, vector<1x162x64xf32>
    %24 = vector.shape_cast %23 : vector<1x162x64xf32> to vector<162x64xf32>
    %25 = arith.maximumf %22, %24 : vector<162x64xf32>
    %26 = arith.truncf %25 : vector<162x64xf32> to vector<162x64xbf16>
    %c0_18 = arith.constant 0 : index
    %c0_19 = arith.constant 0 : index
    %27 = vector.load %arg2[%c0_18, %c0_19] : memref<162x64xbf16, #tpu.memory_space<vmem>>, vector<162x64xbf16>
    tpu.vector_store %arg2[%c0_18, %c0_19], %26 {strides = array<i32>} : memref<162x64xbf16, #tpu.memory_space<vmem>>, vector<162x64xbf16>,
    return
  }
  func.func @transform_0(%arg0: i32) -> (i32, i32, i32) {
    %c0_i32 = arith.constant 0 : i32
    %c0_i32_0 = arith.constant 0 : i32
    %c0_i32_1 = arith.constant 0 : i32
    return %c0_i32, %arg0, %c0_i32_0 : i32, i32, i32
  }
  func.func @transform_1(%arg0: i32) -> (i32, i32) {
    %c0_i32 = arith.constant 0 : i32
    %c0_i32_0 = arith.constant 0 : i32
    return %arg0, %c0_i32 : i32, i32
  }
}

module attributes {stable_mosaic.version = 11 : i64} {
  func.func @kernel(%arg0: i32, %arg1: memref<162x576xbf16, #tpu.memory_space<vmem>>, %arg2: memref<576x64xbf16, #tpu.memory_space<vmem>>, %arg3: memref<1x64xf32, #tpu.memory_space<vmem>>, %arg4: memref<162x64xbf16, #tpu.memory_space<vmem>>) attributes {dimension_semantics = [#tpu.dimension_semantics<parallel>], iteration_bounds = array<i64: 1>, scalar_prefetch = 0 : i64, scratch_operands = 0 : i64, tpu.core_type = #tpu.core_type<tc>, window_params = [{transform_indices = @transform_0, window_bounds = array<i64: 162, 576>}, {pipeline_mode = #tpu.pipeline_mode<synchronous>, transform_indices = @transform_1, window_bounds = array<i64: 576, 64>}, {pipeline_mode = #tpu.pipeline_mode<synchronous>, transform_indices = @transform_2, window_bounds = array<i64: 1, 64>}, {transform_indices = @transform_3, window_bounds = array<i64: 162, 64>}]} {
    %c0 = arith.constant 0 : index
    %c0_0 = arith.constant 0 : index
    %0 = vector.load %arg1[%c0, %c0_0] : memref<162x576xbf16, #tpu.memory_space<vmem>>, vector<162x576xbf16>
    %c0_1 = arith.constant 0 : index
    %c0_2 = arith.constant 0 : index
    %1 = vector.load %arg2[%c0_1, %c0_2] : memref<576x64xbf16, #tpu.memory_space<vmem>>, vector<576x64xbf16>
    %cst = arith.constant dense<0.000000e+00> : vector<162x64xf32>
    %2 = tpu.matmul %0, %1, %cst {dimension_numbers = #tpu.dot_dimension_numbers<[1], [0], [0], [1], [0, 0, 1, 1], [], []>} : vector<162x576xbf16>, vector<576x64xbf16>, vector<162x64xf32> -> vector<162x64xf32>
    %c0_3 = arith.constant 0 : index
    %c0_4 = arith.constant 0 : index
    %3 = vector.load %arg3[%c0_3, %c0_4] : memref<1x64xf32, #tpu.memory_space<vmem>>, vector<1x64xf32>
    %4 = vector.broadcast %3 : vector<1x64xf32> to vector<162x64xf32>
    %5 = arith.addf %2, %4 : vector<162x64xf32>
    %cst_5 = arith.constant 0.000000e+00 : f32
    %6 = vector.broadcast %cst_5 : f32 to vector<162x64xf32>
    %7 = arith.maximumf %5, %6 : vector<162x64xf32>
    %8 = arith.truncf %7 : vector<162x64xf32> to vector<162x64xbf16>
    %c0_6 = arith.constant 0 : index
    %c0_7 = arith.constant 0 : index
    %9 = vector.load %arg4[%c0_6, %c0_7] : memref<162x64xbf16, #tpu.memory_space<vmem>>, vector<162x64xbf16>
    tpu.vector_store %arg4[%c0_6, %c0_7], %8 {strides = array<i32>} : memref<162x64xbf16, #tpu.memory_space<vmem>>, vector<162x64xbf16>,
    return
  }
  func.func @transform_0(%arg0: i32) -> (i32, i32) {
    %c0_i32 = arith.constant 0 : i32
    %c0_i32_0 = arith.constant 0 : i32
    return %arg0, %c0_i32 : i32, i32
  }
  func.func @transform_1(%arg0: i32) -> (i32, i32) {
    %c0_i32 = arith.constant 0 : i32
    %c0_i32_0 = arith.constant 0 : i32
    %c0_i32_1 = arith.constant 0 : i32
    return %c0_i32, %c0_i32_0 : i32, i32
  }
  func.func @transform_2(%arg0: i32) -> (i32, i32) {
    %c0_i32 = arith.constant 0 : i32
    %c0_i32_0 = arith.constant 0 : i32
    %c0_i32_1 = arith.constant 0 : i32
    return %c0_i32, %c0_i32_0 : i32, i32
  }
  func.func @transform_3(%arg0: i32) -> (i32, i32) {
    %c0_i32 = arith.constant 0 : i32
    %c0_i32_0 = arith.constant 0 : i32
    return %arg0, %c0_i32 : i32, i32
  }
}

module attributes {stable_mosaic.version = 11 : i64} {
  func.func @kernel(%arg0: i32, %arg1: memref<162x576xbf16, #tpu.memory_space<vmem>>, %arg2: memref<576x64xbf16, #tpu.memory_space<vmem>>, %arg3: memref<1x64xf32, #tpu.memory_space<vmem>>, %arg4: memref<162x64xbf16, #tpu.memory_space<vmem>>, %arg5: memref<162x64xbf16, #tpu.memory_space<vmem>>) attributes {dimension_semantics = [#tpu.dimension_semantics<parallel>], iteration_bounds = array<i64: 1>, scalar_prefetch = 0 : i64, scratch_operands = 0 : i64, tpu.core_type = #tpu.core_type<tc>, window_params = [{transform_indices = @transform_0, window_bounds = array<i64: 162, 576>}, {pipeline_mode = #tpu.pipeline_mode<synchronous>, transform_indices = @transform_1, window_bounds = array<i64: 576, 64>}, {pipeline_mode = #tpu.pipeline_mode<synchronous>, transform_indices = @transform_2, window_bounds = array<i64: 1, 64>}, {transform_indices = @transform_3, window_bounds = array<i64: 162, 64>}, {transform_indices = @transform_4, window_bounds = array<i64: 162, 64>}]} {
    %c0 = arith.constant 0 : index
    %c0_0 = arith.constant 0 : index
    %0 = vector.load %arg1[%c0, %c0_0] : memref<162x576xbf16, #tpu.memory_space<vmem>>, vector<162x576xbf16>
    %c0_1 = arith.constant 0 : index
    %c0_2 = arith.constant 0 : index
    %1 = vector.load %arg2[%c0_1, %c0_2] : memref<576x64xbf16, #tpu.memory_space<vmem>>, vector<576x64xbf16>
    %cst = arith.constant dense<0.000000e+00> : vector<162x64xf32>
    %2 = tpu.matmul %0, %1, %cst {dimension_numbers = #tpu.dot_dimension_numbers<[1], [0], [0], [1], [0, 0, 1, 1], [], []>} : vector<162x576xbf16>, vector<576x64xbf16>, vector<162x64xf32> -> vector<162x64xf32>
    %c0_3 = arith.constant 0 : index
    %c0_4 = arith.constant 0 : index
    %3 = vector.load %arg3[%c0_3, %c0_4] : memref<1x64xf32, #tpu.memory_space<vmem>>, vector<1x64xf32>
    %4 = vector.broadcast %3 : vector<1x64xf32> to vector<162x64xf32>
    %5 = arith.addf %2, %4 : vector<162x64xf32>
    %c0_5 = arith.constant 0 : index
    %c0_6 = arith.constant 0 : index
    %6 = vector.load %arg4[%c0_5, %c0_6] : memref<162x64xbf16, #tpu.memory_space<vmem>>, vector<162x64xbf16>
    %7 = arith.extf %6 : vector<162x64xbf16> to vector<162x64xf32>
    %8 = arith.addf %5, %7 : vector<162x64xf32>
    %cst_7 = arith.constant 0.000000e+00 : f32
    %9 = vector.broadcast %cst_7 : f32 to vector<162x64xf32>
    %10 = arith.maximumf %8, %9 : vector<162x64xf32>
    %11 = arith.truncf %10 : vector<162x64xf32> to vector<162x64xbf16>
    %c0_8 = arith.constant 0 : index
    %c0_9 = arith.constant 0 : index
    %12 = vector.load %arg5[%c0_8, %c0_9] : memref<162x64xbf16, #tpu.memory_space<vmem>>, vector<162x64xbf16>
    tpu.vector_store %arg5[%c0_8, %c0_9], %11 {strides = array<i32>} : memref<162x64xbf16, #tpu.memory_space<vmem>>, vector<162x64xbf16>,
    return
  }
  func.func @transform_0(%arg0: i32) -> (i32, i32) {
    %c0_i32 = arith.constant 0 : i32
    %c0_i32_0 = arith.constant 0 : i32
    return %arg0, %c0_i32 : i32, i32
  }
  func.func @transform_1(%arg0: i32) -> (i32, i32) {
    %c0_i32 = arith.constant 0 : i32
    %c0_i32_0 = arith.constant 0 : i32
    %c0_i32_1 = arith.constant 0 : i32
    return %c0_i32, %c0_i32_0 : i32, i32
  }
  func.func @transform_2(%arg0: i32) -> (i32, i32) {
    %c0_i32 = arith.constant 0 : i32
    %c0_i32_0 = arith.constant 0 : i32
    %c0_i32_1 = arith.constant 0 : i32
    return %c0_i32, %c0_i32_0 : i32, i32
  }
  func.func @transform_3(%arg0: i32) -> (i32, i32) {
    %c0_i32 = arith.constant 0 : i32
    %c0_i32_0 = arith.constant 0 : i32
    return %arg0, %c0_i32 : i32, i32
  }
  func.func @transform_4(%arg0: i32) -> (i32, i32) {
    %c0_i32 = arith.constant 0 : i32
    %c0_i32_0 = arith.constant 0 : i32
    return %arg0, %c0_i32 : i32, i32
  }
}

module attributes {stable_mosaic.version = 11 : i64} {
  func.func @kernel(%arg0: i32, %arg1: memref<162x576xbf16, #tpu.memory_space<vmem>>, %arg2: memref<576x64xbf16, #tpu.memory_space<vmem>>, %arg3: memref<1x64xf32, #tpu.memory_space<vmem>>, %arg4: memref<162x64xbf16, #tpu.memory_space<vmem>>, %arg5: memref<162x64xf32, #tpu.memory_space<vmem>>) attributes {dimension_semantics = [#tpu.dimension_semantics<parallel>], iteration_bounds = array<i64: 1>, scalar_prefetch = 0 : i64, scratch_operands = 0 : i64, tpu.core_type = #tpu.core_type<tc>, window_params = [{transform_indices = @transform_0, window_bounds = array<i64: 162, 576>}, {pipeline_mode = #tpu.pipeline_mode<synchronous>, transform_indices = @transform_1, window_bounds = array<i64: 576, 64>}, {pipeline_mode = #tpu.pipeline_mode<synchronous>, transform_indices = @transform_2, window_bounds = array<i64: 1, 64>}, {transform_indices = @transform_3, window_bounds = array<i64: 162, 64>}, {transform_indices = @transform_4, window_bounds = array<i64: 162, 64>}]} {
    %c0 = arith.constant 0 : index
    %c0_0 = arith.constant 0 : index
    %0 = vector.load %arg1[%c0, %c0_0] : memref<162x576xbf16, #tpu.memory_space<vmem>>, vector<162x576xbf16>
    %c0_1 = arith.constant 0 : index
    %c0_2 = arith.constant 0 : index
    %1 = vector.load %arg2[%c0_1, %c0_2] : memref<576x64xbf16, #tpu.memory_space<vmem>>, vector<576x64xbf16>
    %cst = arith.constant dense<0.000000e+00> : vector<162x64xf32>
    %2 = tpu.matmul %0, %1, %cst {dimension_numbers = #tpu.dot_dimension_numbers<[1], [0], [0], [1], [0, 0, 1, 1], [], []>} : vector<162x576xbf16>, vector<576x64xbf16>, vector<162x64xf32> -> vector<162x64xf32>
    %c0_3 = arith.constant 0 : index
    %c0_4 = arith.constant 0 : index
    %3 = vector.load %arg3[%c0_3, %c0_4] : memref<1x64xf32, #tpu.memory_space<vmem>>, vector<1x64xf32>
    %4 = vector.broadcast %3 : vector<1x64xf32> to vector<162x64xf32>
    %5 = arith.addf %2, %4 : vector<162x64xf32>
    %c0_5 = arith.constant 0 : index
    %c0_6 = arith.constant 0 : index
    %6 = vector.load %arg4[%c0_5, %c0_6] : memref<162x64xbf16, #tpu.memory_space<vmem>>, vector<162x64xbf16>
    %7 = arith.extf %6 : vector<162x64xbf16> to vector<162x64xf32>
    %8 = arith.addf %5, %7 : vector<162x64xf32>
    %cst_7 = arith.constant 0.000000e+00 : f32
    %9 = vector.broadcast %cst_7 : f32 to vector<162x64xf32>
    %10 = arith.maximumf %8, %9 : vector<162x64xf32>
    %c0_8 = arith.constant 0 : index
    %c0_9 = arith.constant 0 : index
    %11 = vector.load %arg5[%c0_8, %c0_9] : memref<162x64xf32, #tpu.memory_space<vmem>>, vector<162x64xf32>
    tpu.vector_store %arg5[%c0_8, %c0_9], %10 {strides = array<i32>} : memref<162x64xf32, #tpu.memory_space<vmem>>, vector<162x64xf32>,
    return
  }
  func.func @transform_0(%arg0: i32) -> (i32, i32) {
    %c0_i32 = arith.constant 0 : i32
    %c0_i32_0 = arith.constant 0 : i32
    return %arg0, %c0_i32 : i32, i32
  }
  func.func @transform_1(%arg0: i32) -> (i32, i32) {
    %c0_i32 = arith.constant 0 : i32
    %c0_i32_0 = arith.constant 0 : i32
    %c0_i32_1 = arith.constant 0 : i32
    return %c0_i32, %c0_i32_0 : i32, i32
  }
  func.func @transform_2(%arg0: i32) -> (i32, i32) {
    %c0_i32 = arith.constant 0 : i32
    %c0_i32_0 = arith.constant 0 : i32
    %c0_i32_1 = arith.constant 0 : i32
    return %c0_i32, %c0_i32_0 : i32, i32
  }
  func.func @transform_3(%arg0: i32) -> (i32, i32) {
    %c0_i32 = arith.constant 0 : i32
    %c0_i32_0 = arith.constant 0 : i32
    return %arg0, %c0_i32 : i32, i32
  }
  func.func @transform_4(%arg0: i32) -> (i32, i32) {
    %c0_i32 = arith.constant 0 : i32
    %c0_i32_0 = arith.constant 0 : i32
    return %arg0, %c0_i32 : i32, i32
  }
}

module attributes {stable_mosaic.version = 11 : i64} {
  func.func @kernel(%arg0: i32, %arg1: memref<32x576xbf16, #tpu.memory_space<vmem>>, %arg2: memref<576x256xbf16, #tpu.memory_space<vmem>>, %arg3: memref<1x256xf32, #tpu.memory_space<vmem>>, %arg4: memref<32x256xbf16, #tpu.memory_space<vmem>>) attributes {dimension_semantics = [#tpu.dimension_semantics<parallel>], iteration_bounds = array<i64: 1>, scalar_prefetch = 0 : i64, scratch_operands = 0 : i64, tpu.core_type = #tpu.core_type<tc>, window_params = [{transform_indices = @transform_0, window_bounds = array<i64: 32, 576>}, {pipeline_mode = #tpu.pipeline_mode<synchronous>, transform_indices = @transform_1, window_bounds = array<i64: 576, 256>}, {pipeline_mode = #tpu.pipeline_mode<synchronous>, transform_indices = @transform_2, window_bounds = array<i64: 1, 256>}, {transform_indices = @transform_3, window_bounds = array<i64: 32, 256>}]} {
    %c0 = arith.constant 0 : index
    %c0_0 = arith.constant 0 : index
    %0 = vector.load %arg1[%c0, %c0_0] : memref<32x576xbf16, #tpu.memory_space<vmem>>, vector<32x576xbf16>
    %c0_1 = arith.constant 0 : index
    %c0_2 = arith.constant 0 : index
    %1 = vector.load %arg2[%c0_1, %c0_2] : memref<576x256xbf16, #tpu.memory_space<vmem>>, vector<576x256xbf16>
    %cst = arith.constant dense<0.000000e+00> : vector<32x256xf32>
    %2 = tpu.matmul %0, %1, %cst {dimension_numbers = #tpu.dot_dimension_numbers<[1], [0], [0], [1], [0, 0, 1, 1], [], []>} : vector<32x576xbf16>, vector<576x256xbf16>, vector<32x256xf32> -> vector<32x256xf32>
    %c0_3 = arith.constant 0 : index
    %c0_4 = arith.constant 0 : index
    %3 = vector.load %arg3[%c0_3, %c0_4] : memref<1x256xf32, #tpu.memory_space<vmem>>, vector<1x256xf32>
    %4 = vector.broadcast %3 : vector<1x256xf32> to vector<32x256xf32>
    %5 = arith.addf %2, %4 : vector<32x256xf32>
    %6 = tpu.iota {dimensions = array<i32: 1>} : vector<32x256xi32>
    %c128_i32 = arith.constant 128 : i32
    %7 = vector.broadcast %c128_i32 : i32 to vector<32x256xi32>
    %8 = arith.cmpi slt, %6, %7 : vector<32x256xi32>
    %cst_5 = arith.constant 0.000000e+00 : f32
    %9 = vector.broadcast %cst_5 : f32 to vector<32x256xf32>
    %10 = arith.maximumf %5, %9 : vector<32x256xf32>
    %11 = arith.select %8, %10, %5 : vector<32x256xi1>, vector<32x256xf32>
    %12 = arith.truncf %11 : vector<32x256xf32> to vector<32x256xbf16>
    %c0_6 = arith.constant 0 : index
    %c0_7 = arith.constant 0 : index
    %13 = vector.load %arg4[%c0_6, %c0_7] : memref<32x256xbf16, #tpu.memory_space<vmem>>, vector<32x256xbf16>
    tpu.vector_store %arg4[%c0_6, %c0_7], %12 {strides = array<i32>} : memref<32x256xbf16, #tpu.memory_space<vmem>>, vector<32x256xbf16>,
    return
  }
  func.func @transform_0(%arg0: i32) -> (i32, i32) {
    %c0_i32 = arith.constant 0 : i32
    %c0_i32_0 = arith.constant 0 : i32
    return %arg0, %c0_i32 : i32, i32
  }
  func.func @transform_1(%arg0: i32) -> (i32, i32) {
    %c0_i32 = arith.constant 0 : i32
    %c0_i32_0 = arith.constant 0 : i32
    %c0_i32_1 = arith.constant 0 : i32
    return %c0_i32, %c0_i32_0 : i32, i32
  }
  func.func @transform_2(%arg0: i32) -> (i32, i32) {
    %c0_i32 = arith.constant 0 : i32
    %c0_i32_0 = arith.constant 0 : i32
    %c0_i32_1 = arith.constant 0 : i32
    return %c0_i32, %c0_i32_0 : i32, i32
  }
  func.func @transform_3(%arg0: i32) -> (i32, i32) {
    %c0_i32 = arith.constant 0 : i32
    %c0_i32_0 = arith.constant 0 : i32
    return %arg0, %c0_i32 : i32, i32
  }
}

module attributes {stable_mosaic.version = 11 : i64} {
  func.func @kernel(%arg0: i32, %arg1: memref<32x1152xbf16, #tpu.memory_space<vmem>>, %arg2: memref<1152x128xbf16, #tpu.memory_space<vmem>>, %arg3: memref<1x128xf32, #tpu.memory_space<vmem>>, %arg4: memref<32x128xbf16, #tpu.memory_space<vmem>>, %arg5: memref<32x128xbf16, #tpu.memory_space<vmem>>) attributes {dimension_semantics = [#tpu.dimension_semantics<parallel>], iteration_bounds = array<i64: 1>, scalar_prefetch = 0 : i64, scratch_operands = 0 : i64, tpu.core_type = #tpu.core_type<tc>, window_params = [{transform_indices = @transform_0, window_bounds = array<i64: 32, 1152>}, {pipeline_mode = #tpu.pipeline_mode<synchronous>, transform_indices = @transform_1, window_bounds = array<i64: 1152, 128>}, {pipeline_mode = #tpu.pipeline_mode<synchronous>, transform_indices = @transform_2, window_bounds = array<i64: 1, 128>}, {transform_indices = @transform_3, window_bounds = array<i64: 32, 128>}, {transform_indices = @transform_4, window_bounds = array<i64: 32, 128>}]} {
    %c0 = arith.constant 0 : index
    %c0_0 = arith.constant 0 : index
    %0 = vector.load %arg1[%c0, %c0_0] : memref<32x1152xbf16, #tpu.memory_space<vmem>>, vector<32x1152xbf16>
    %c0_1 = arith.constant 0 : index
    %c0_2 = arith.constant 0 : index
    %1 = vector.load %arg2[%c0_1, %c0_2] : memref<1152x128xbf16, #tpu.memory_space<vmem>>, vector<1152x128xbf16>
    %cst = arith.constant dense<0.000000e+00> : vector<32x128xf32>
    %2 = tpu.matmul %0, %1, %cst {dimension_numbers = #tpu.dot_dimension_numbers<[1], [0], [0], [1], [0, 0, 1, 1], [], []>} : vector<32x1152xbf16>, vector<1152x128xbf16>, vector<32x128xf32> -> vector<32x128xf32>
    %c0_3 = arith.constant 0 : index
    %c0_4 = arith.constant 0 : index
    %3 = vector.load %arg3[%c0_3, %c0_4] : memref<1x128xf32, #tpu.memory_space<vmem>>, vector<1x128xf32>
    %4 = vector.broadcast %3 : vector<1x128xf32> to vector<32x128xf32>
    %5 = arith.addf %2, %4 : vector<32x128xf32>
    %c0_5 = arith.constant 0 : index
    %c0_6 = arith.constant 0 : index
    %6 = vector.load %arg4[%c0_5, %c0_6] : memref<32x128xbf16, #tpu.memory_space<vmem>>, vector<32x128xbf16>
    %7 = arith.extf %6 : vector<32x128xbf16> to vector<32x128xf32>
    %8 = arith.addf %5, %7 : vector<32x128xf32>
    %cst_7 = arith.constant 0.000000e+00 : f32
    %9 = vector.broadcast %cst_7 : f32 to vector<32x128xf32>
    %10 = arith.maximumf %8, %9 : vector<32x128xf32>
    %11 = arith.truncf %10 : vector<32x128xf32> to vector<32x128xbf16>
    %c0_8 = arith.constant 0 : index
    %c0_9 = arith.constant 0 : index
    %12 = vector.load %arg5[%c0_8, %c0_9] : memref<32x128xbf16, #tpu.memory_space<vmem>>, vector<32x128xbf16>
    tpu.vector_store %arg5[%c0_8, %c0_9], %11 {strides = array<i32>} : memref<32x128xbf16, #tpu.memory_space<vmem>>, vector<32x128xbf16>,
    return
  }
  func.func @transform_0(%arg0: i32) -> (i32, i32) {
    %c0_i32 = arith.constant 0 : i32
    %c0_i32_0 = arith.constant 0 : i32
    return %arg0, %c0_i32 : i32, i32
  }
  func.func @transform_1(%arg0: i32) -> (i32, i32) {
    %c0_i32 = arith.constant 0 : i32
    %c0_i32_0 = arith.constant 0 : i32
    %c0_i32_1 = arith.constant 0 : i32
    return %c0_i32, %c0_i32_0 : i32, i32
  }
  func.func @transform_2(%arg0: i32) -> (i32, i32) {
    %c0_i32 = arith.constant 0 : i32
    %c0_i32_0 = arith.constant 0 : i32
    %c0_i32_1 = arith.constant 0 : i32
    return %c0_i32, %c0_i32_0 : i32, i32
  }
  func.func @transform_3(%arg0: i32) -> (i32, i32) {
    %c0_i32 = arith.constant 0 : i32
    %c0_i32_0 = arith.constant 0 : i32
    return %arg0, %c0_i32 : i32, i32
  }
  func.func @transform_4(%arg0: i32) -> (i32, i32) {
    %c0_i32 = arith.constant 0 : i32
    %c0_i32_0 = arith.constant 0 : i32
    return %arg0, %c0_i32 : i32, i32
  }
}

module attributes {stable_mosaic.version = 11 : i64} {
  func.func @kernel(%arg0: i32, %arg1: memref<32x1152xbf16, #tpu.memory_space<vmem>>, %arg2: memref<1152x128xbf16, #tpu.memory_space<vmem>>, %arg3: memref<1x128xf32, #tpu.memory_space<vmem>>, %arg4: memref<32x128xbf16, #tpu.memory_space<vmem>>, %arg5: memref<32x128xf32, #tpu.memory_space<vmem>>) attributes {dimension_semantics = [#tpu.dimension_semantics<parallel>], iteration_bounds = array<i64: 1>, scalar_prefetch = 0 : i64, scratch_operands = 0 : i64, tpu.core_type = #tpu.core_type<tc>, window_params = [{transform_indices = @transform_0, window_bounds = array<i64: 32, 1152>}, {pipeline_mode = #tpu.pipeline_mode<synchronous>, transform_indices = @transform_1, window_bounds = array<i64: 1152, 128>}, {pipeline_mode = #tpu.pipeline_mode<synchronous>, transform_indices = @transform_2, window_bounds = array<i64: 1, 128>}, {transform_indices = @transform_3, window_bounds = array<i64: 32, 128>}, {transform_indices = @transform_4, window_bounds = array<i64: 32, 128>}]} {
    %c0 = arith.constant 0 : index
    %c0_0 = arith.constant 0 : index
    %0 = vector.load %arg1[%c0, %c0_0] : memref<32x1152xbf16, #tpu.memory_space<vmem>>, vector<32x1152xbf16>
    %c0_1 = arith.constant 0 : index
    %c0_2 = arith.constant 0 : index
    %1 = vector.load %arg2[%c0_1, %c0_2] : memref<1152x128xbf16, #tpu.memory_space<vmem>>, vector<1152x128xbf16>
    %cst = arith.constant dense<0.000000e+00> : vector<32x128xf32>
    %2 = tpu.matmul %0, %1, %cst {dimension_numbers = #tpu.dot_dimension_numbers<[1], [0], [0], [1], [0, 0, 1, 1], [], []>} : vector<32x1152xbf16>, vector<1152x128xbf16>, vector<32x128xf32> -> vector<32x128xf32>
    %c0_3 = arith.constant 0 : index
    %c0_4 = arith.constant 0 : index
    %3 = vector.load %arg3[%c0_3, %c0_4] : memref<1x128xf32, #tpu.memory_space<vmem>>, vector<1x128xf32>
    %4 = vector.broadcast %3 : vector<1x128xf32> to vector<32x128xf32>
    %5 = arith.addf %2, %4 : vector<32x128xf32>
    %c0_5 = arith.constant 0 : index
    %c0_6 = arith.constant 0 : index
    %6 = vector.load %arg4[%c0_5, %c0_6] : memref<32x128xbf16, #tpu.memory_space<vmem>>, vector<32x128xbf16>
    %7 = arith.extf %6 : vector<32x128xbf16> to vector<32x128xf32>
    %8 = arith.addf %5, %7 : vector<32x128xf32>
    %cst_7 = arith.constant 0.000000e+00 : f32
    %9 = vector.broadcast %cst_7 : f32 to vector<32x128xf32>
    %10 = arith.maximumf %8, %9 : vector<32x128xf32>
    %c0_8 = arith.constant 0 : index
    %c0_9 = arith.constant 0 : index
    %11 = vector.load %arg5[%c0_8, %c0_9] : memref<32x128xf32, #tpu.memory_space<vmem>>, vector<32x128xf32>
    tpu.vector_store %arg5[%c0_8, %c0_9], %10 {strides = array<i32>} : memref<32x128xf32, #tpu.memory_space<vmem>>, vector<32x128xf32>,
    return
  }
  func.func @transform_0(%arg0: i32) -> (i32, i32) {
    %c0_i32 = arith.constant 0 : i32
    %c0_i32_0 = arith.constant 0 : i32
    return %arg0, %c0_i32 : i32, i32
  }
  func.func @transform_1(%arg0: i32) -> (i32, i32) {
    %c0_i32 = arith.constant 0 : i32
    %c0_i32_0 = arith.constant 0 : i32
    %c0_i32_1 = arith.constant 0 : i32
    return %c0_i32, %c0_i32_0 : i32, i32
  }
  func.func @transform_2(%arg0: i32) -> (i32, i32) {
    %c0_i32 = arith.constant 0 : i32
    %c0_i32_0 = arith.constant 0 : i32
    %c0_i32_1 = arith.constant 0 : i32
    return %c0_i32, %c0_i32_0 : i32, i32
  }
  func.func @transform_3(%arg0: i32) -> (i32, i32) {
    %c0_i32 = arith.constant 0 : i32
    %c0_i32_0 = arith.constant 0 : i32
    return %arg0, %c0_i32 : i32, i32
  }
  func.func @transform_4(%arg0: i32) -> (i32, i32) {
    %c0_i32 = arith.constant 0 : i32
    %c0_i32_0 = arith.constant 0 : i32
    return %arg0, %c0_i32 : i32, i32
  }
}

module attributes {stable_mosaic.version = 11 : i64} {
  func.func @kernel(%arg0: i32, %arg1: memref<32x1152xbf16, #tpu.memory_space<vmem>>, %arg2: memref<1152x128xbf16, #tpu.memory_space<vmem>>, %arg3: memref<1x128xf32, #tpu.memory_space<vmem>>, %arg4: memref<32x128xbf16, #tpu.memory_space<vmem>>) attributes {dimension_semantics = [#tpu.dimension_semantics<parallel>], iteration_bounds = array<i64: 1>, scalar_prefetch = 0 : i64, scratch_operands = 0 : i64, tpu.core_type = #tpu.core_type<tc>, window_params = [{transform_indices = @transform_0, window_bounds = array<i64: 32, 1152>}, {pipeline_mode = #tpu.pipeline_mode<synchronous>, transform_indices = @transform_1, window_bounds = array<i64: 1152, 128>}, {pipeline_mode = #tpu.pipeline_mode<synchronous>, transform_indices = @transform_2, window_bounds = array<i64: 1, 128>}, {transform_indices = @transform_3, window_bounds = array<i64: 32, 128>}]} {
    %c0 = arith.constant 0 : index
    %c0_0 = arith.constant 0 : index
    %0 = vector.load %arg1[%c0, %c0_0] : memref<32x1152xbf16, #tpu.memory_space<vmem>>, vector<32x1152xbf16>
    %c0_1 = arith.constant 0 : index
    %c0_2 = arith.constant 0 : index
    %1 = vector.load %arg2[%c0_1, %c0_2] : memref<1152x128xbf16, #tpu.memory_space<vmem>>, vector<1152x128xbf16>
    %cst = arith.constant dense<0.000000e+00> : vector<32x128xf32>
    %2 = tpu.matmul %0, %1, %cst {dimension_numbers = #tpu.dot_dimension_numbers<[1], [0], [0], [1], [0, 0, 1, 1], [], []>} : vector<32x1152xbf16>, vector<1152x128xbf16>, vector<32x128xf32> -> vector<32x128xf32>
    %c0_3 = arith.constant 0 : index
    %c0_4 = arith.constant 0 : index
    %3 = vector.load %arg3[%c0_3, %c0_4] : memref<1x128xf32, #tpu.memory_space<vmem>>, vector<1x128xf32>
    %4 = vector.broadcast %3 : vector<1x128xf32> to vector<32x128xf32>
    %5 = arith.addf %2, %4 : vector<32x128xf32>
    %cst_5 = arith.constant 0.000000e+00 : f32
    %6 = vector.broadcast %cst_5 : f32 to vector<32x128xf32>
    %7 = arith.maximumf %5, %6 : vector<32x128xf32>
    %8 = arith.truncf %7 : vector<32x128xf32> to vector<32x128xbf16>
    %c0_6 = arith.constant 0 : index
    %c0_7 = arith.constant 0 : index
    %9 = vector.load %arg4[%c0_6, %c0_7] : memref<32x128xbf16, #tpu.memory_space<vmem>>, vector<32x128xbf16>
    tpu.vector_store %arg4[%c0_6, %c0_7], %8 {strides = array<i32>} : memref<32x128xbf16, #tpu.memory_space<vmem>>, vector<32x128xbf16>,
    return
  }
  func.func @transform_0(%arg0: i32) -> (i32, i32) {
    %c0_i32 = arith.constant 0 : i32
    %c0_i32_0 = arith.constant 0 : i32
    return %arg0, %c0_i32 : i32, i32
  }
  func.func @transform_1(%arg0: i32) -> (i32, i32) {
    %c0_i32 = arith.constant 0 : i32
    %c0_i32_0 = arith.constant 0 : i32
    %c0_i32_1 = arith.constant 0 : i32
    return %c0_i32, %c0_i32_0 : i32, i32
  }
  func.func @transform_2(%arg0: i32) -> (i32, i32) {
    %c0_i32 = arith.constant 0 : i32
    %c0_i32_0 = arith.constant 0 : i32
    %c0_i32_1 = arith.constant 0 : i32
    return %c0_i32, %c0_i32_0 : i32, i32
  }
  func.func @transform_3(%arg0: i32) -> (i32, i32) {
    %c0_i32 = arith.constant 0 : i32
    %c0_i32_0 = arith.constant 0 : i32
    return %arg0, %c0_i32 : i32, i32
  }
}

</mosaic_0001>

<bundles_post_ra>
// kernel: resnet_forward.10
= control target key start
LH: loop header
LB: loop body
LE: loop exit
PB: predicated region body
PF: predicated region fallthrough
CT: control target
= control target key end

     0   :  { %s1051_s12 = smov 0   ;;  %s1281_s0 = inlined_call_operand.vmem [shape: bf16[592,147], index: 0, kind: input, shape index: {}]   ;;  %s1282_s1 = inlined_call_operand.vmem [shape: bf16[147,64], index: 1, kind: input, shape index: {}]   ;;  %s1283_s2 = inlined_call_operand.vmem [shape: f32[1,64], index: 2, kind: input, shape index: {}]   ;;  %s1284_s3 = inlined_call_operand.vmem [shape: f32[592,64], index: 3, kind: output, shape index: {}]  }
   0x1 LB: > { %s846_s13 = sadd.s32 4294967295, %s1027_s12   ;;  %p850_p0 = scmp.ge.s32.totalorder %s1027_s12, 1  ;;  %s1027_s12 = sphi %s1051_s12, %s13_s12  }
   0x2   : > { %p139_p1 = scmp.lt.s32.totalorder %s1027_s12, 3 }
   0x4   : > { %p140_p2 = pnand %p850_p0, %p139_p1 }
   0x5   : > { %v955_v0 = vld [vmem:[%s1282_s1] sm:$0xff] (!%p140_p2)   ;;  %v1029_v1 = vmov (!%p140_p2), 0   ;;  %v956_v2 = vld [vmem:[%s1282_s1 + $0x8] sm:$0xff] (!%p140_p2)   ;;  %v957_v3 = vld [vmem:[%s1282_s1 + $0x10] sm:$0xff] (!%p140_p2)   ;;  %s164_s20 = smul.u32 (!%p140_p2), 37, %s846_s13  ;;  %vm466_vm0 = vcmask (!%p140_p2), 154624  }
   0x6   : > { %143 = sbr.rel (%p140_p2) target bundleno = 337 (0x151), region = 32  ;;  %531 = vmatprep.subr.bf16.mxu0 (!%p140_p2), %v1029_v1  ;;  %925 = vmatprep.subr.bf16.mxu1 (!%p140_p2), %v1029_v1  ;;  %v958_v4 = vld [vmem:[%s1282_s1 + $0x18] sm:$0xff] (!%p140_p2)   ;;  %v959_v5 = vld [vmem:[%s1282_s1 + $0x20] sm:$0xff] (!%p140_p2)   ;;  %v960_v8 = vld [vmem:[%s1282_s1 + $0x28] sm:$0xff] (!%p140_p2)   ;;  %vm524_vm1 = vcmask (!%p140_p2), 1040384   ;;  %vm525_vm2 = vcmask (!%p140_p2), 1041408  }
   0x7   : > { %532 = vmatpush1.bf16.msra.mxu0 (!%p140_p2), %v955_v0  ;;  %935 = vmatpush1.bf16.msra.mxu1 (!%p140_p2), %v955_v0  ;;  %p165_p3 = scmp.lt.s32.totalorder (!%p140_p2), %s164_s20, 73  ;;  %v961_v9 = vld [vmem:[%s1282_s1 + $0x30] sm:$0xff] (!%p140_p2)   ;;  %v962_v10 = vld [vmem:[%s1282_s1 + $0x38] sm:$0xff] (!%p140_p2)   ;;  %v1030_v11 = vmov (!%p140_p2), 65535   ;;  %v963_v13 = vld [vmem:[%s1282_s1 + $0x40] sm:$0xff] (!%p140_p2)   ;;  %vm752_vm3 = vcmask (!%p140_p2), 523264  }
   0x8   : > { %533 = vmatprep.subr.bf16.mxu0 (!%p140_p2), %v1029_v1  ;;  %926 = vmatprep.subr.bf16.mxu1 (!%p140_p2), %v1029_v1  ;;  %v526_v12 = vsel (!%p140_p2), %vm524_vm1, 4294967295, %v1030_v11  ;;  %v964_v14 = vld [vmem:[%s1282_s1 + $0x48] ss:$0 sps:$4 sm:$0x33] (!%p140_p2)   ;;  %v1158_v54 = vld [vmem:[%s1283_s2] ss:$0 sm:$0xff] (!%p140_p2) }
   0x9   : > { %v527_v15 = vsel (!%p140_p2), %vm525_vm2, %v526_v12, 0 }
   0xa   : > { %v529_v16 = vand.u32 (!%p140_p2), %v964_v14, %v527_v15 }
   0xb   : > { %534 = vmatpush1.bf16.msra.mxu0 (!%p140_p2), %v956_v2  ;;  %936 = vmatpush1.bf16.msra.mxu1 (!%p140_p2), %v956_v2 }
   0xc   : > { %535 = vmatprep.subr.bf16.mxu0 (!%p140_p2), %v1029_v1  ;;  %927 = vmatprep.subr.bf16.mxu1 (!%p140_p2), %v1029_v1 }
   0xd   : > { %s1286_s20 = smov (!%p165_p3, %s164_s20), 73 }
   0xe   : > { %s924_s23 = sshll.u32 %s1286_s20, 3 }
   0xf   : > { %536 = vmatpush1.bf16.msra.mxu0 %v957_v3  ;;  %937 = vmatpush1.bf16.msra.mxu1 %v957_v3  ;;  %s1079_s26 = scalar_lea.vmem %s1281_s0, %s924_s23  ;;  %s1167_s17 = scalar_lea.vmem %s1284_s3, %s924_s23 }
  0x10   : > { %537 = vmatprep.subr.bf16.mxu0 %v1029_v1  ;;  %928 = vmatprep.subr.bf16.mxu1 %v1029_v1  ;;  %v967_v6 = vld [vmem:[%s1079_s26 + $0x4] ss:$8 sps:$4 sm:$0xff]   ;;  %v965_v17 = vld [vmem:[%s1079_s26] ss:$8 sps:$4 sm:$0xff]   ;;  %v971_v19 = vld [vmem:[%s1079_s26 + $0x14] ss:$8 sps:$4 sm:$0xff]  }
  0x11   : > { %v970_v7 = vld [vmem:[%s1079_s26 + $0xa4] ss:$8 sps:$4 sm:$0xff]   ;;  %903 = vmatprep.mubr.msk.bf16.mxu0 %vm466_vm0, %v967_v6  ;;  %v968_v18 = vld [vmem:[%s1079_s26 + $0xa0] ss:$8 sps:$4 sm:$0xff]   ;;  %v974_v20 = vld [vmem:[%s1079_s26 + $0xb4] ss:$8 sps:$4 sm:$0xff]  }
  0x12   : > { %913 = vmatprep.mubr.msk.bf16.mxu1 %vm466_vm0, %v970_v7  ;;  %v973_v21 = vld [vmem:[%s1079_s26 + $0x10] ss:$8 sps:$4 sm:$0xff]   ;;  %v976_v23 = vld [vmem:[%s1079_s26 + $0x24] ss:$8 sps:$4 sm:$0xff]   ;;  %v979_v25 = vld [vmem:[%s1079_s26 + $0x20] ss:$8 sps:$4 sm:$0xff]  }
  0x13   : > { %538 = vmatpush1.bf16.msra.mxu0 %v958_v4  ;;  %938 = vmatpush1.bf16.msra.mxu1 %v958_v4  ;;  %v978_v22 = vld [vmem:[%s1079_s26 + $0xb0] ss:$8 sps:$4 sm:$0xff]   ;;  %v980_v24 = vld [vmem:[%s1079_s26 + $0xc4] ss:$8 sps:$4 sm:$0xff]   ;;  %v984_v26 = vld [vmem:[%s1079_s26 + $0xc0] ss:$8 sps:$4 sm:$0xff]  }
  0x14   : > { %539 = vmatprep.subr.bf16.mxu0 %v1029_v1  ;;  %929 = vmatprep.subr.bf16.mxu1 %v1029_v1  ;;  %v982_v27 = vld [vmem:[%s1079_s26 + $0x34] ss:$8 sps:$4 sm:$0xff]   ;;  %v985_v29 = vld [vmem:[%s1079_s26 + $0x30] ss:$8 sps:$4 sm:$0xff]   ;;  %v988_v31 = vld [vmem:[%s1079_s26 + $0x44] ss:$8 sps:$4 sm:$0xff]  }
  0x15   : > { %v986_v28 = vld [vmem:[%s1079_s26 + $0xd4] ss:$8 sps:$4 sm:$0xff]   ;;  %v990_v30 = vld [vmem:[%s1079_s26 + $0xd0] ss:$8 sps:$4 sm:$0xff]   ;;  %v992_v32 = vld [vmem:[%s1079_s26 + $0xe4] ss:$8 sps:$4 sm:$0xff]  }
  0x16   : > { %v991_v33 = vld [vmem:[%s1079_s26 + $0x40] ss:$8 sps:$4 sm:$0xff]   ;;  %v994_v35 = vld [vmem:[%s1079_s26 + $0x54] ss:$8 sps:$4 sm:$0xff]   ;;  %v997_v37 = vld [vmem:[%s1079_s26 + $0x50] ss:$8 sps:$4 sm:$0xff]  }
  0x17   : > { %540 = vmatpush1.bf16.msra.mxu0 %v959_v5  ;;  %939 = vmatpush1.bf16.msra.mxu1 %v959_v5  ;;  %v996_v34 = vld [vmem:[%s1079_s26 + $0xe0] ss:$8 sps:$4 sm:$0xff]   ;;  %v998_v36 = vld [vmem:[%s1079_s26 + $0xf4] ss:$8 sps:$4 sm:$0xff]   ;;  %v1002_v38 = vld [vmem:[%s1079_s26 + $0xf0] ss:$8 sps:$4 sm:$0xff]  }
  0x18   : > { %541 = vmatprep.subr.bf16.mxu0 %v1029_v1  ;;  %930 = vmatprep.subr.bf16.mxu1 %v1029_v1  ;;  %v1000_v39 = vld [vmem:[%s1079_s26 + $0x64] ss:$8 sps:$4 sm:$0xff]   ;;  %v1003_v41 = vld [vmem:[%s1079_s26 + $0x60] ss:$8 sps:$4 sm:$0xff]   ;;  %v1006_v43 = vld [vmem:[%s1079_s26 + $0x74] ss:$8 sps:$4 sm:$0xff]  }
  0x19   : > { %v1004_v40 = vld [vmem:[%s1079_s26 + $0x104] ss:$8 sps:$4 sm:$0xff]   ;;  %v1008_v42 = vld [vmem:[%s1079_s26 + $0x100] ss:$8 sps:$4 sm:$0xff]   ;;  %v1010_v44 = vld [vmem:[%s1079_s26 + $0x114] ss:$8 sps:$4 sm:$0xff]  }
  0x1a   : > { %v214_v45 = vld [vmem:[%s1079_s26 + $0x120] sm:$0xff]  ;;  %v1009_v46 = vld [vmem:[%s1079_s26 + $0x70] ss:$8 sps:$4 sm:$0xff]   ;;  %v1017_v52 = vld [vmem:[%s1079_s26 + $0x94] ss:$8 sps:$4 sm:$0xff]  }
  0x1b   : > { %542 = vmatpush1.bf16.msra.mxu0 %v960_v8  ;;  %940 = vmatpush1.bf16.msra.mxu1 %v960_v8  ;;  %v1014_v47 = vld [vmem:[%s1079_s26 + $0x110] ss:$8 sps:$4 sm:$0xff]   ;;  %v1012_v48 = vld [vmem:[%s1079_s26 + $0x84] ss:$8 sps:$4 sm:$0xff]   ;;  %v892_v49 = vcombine.high %v214_v45, %v214_v45  ;;  %v1015_v50 = vld [vmem:[%s1079_s26 + $0x80] ss:$8 sps:$4 sm:$0xff]   ;;  %v891_v51 = vcombine.low %v214_v45, %v214_v45 }
  0x1c   : > { %543 = vmatprep.subr.bf16.mxu0 %v1029_v1  ;;  %931 = vmatprep.subr.bf16.mxu1 %v1029_v1  ;;  %v1020_v53 = vld [vmem:[%s1079_s26 + $0x90] ss:$8 sps:$4 sm:$0xff]  }
  0x1f   : > { %544 = vmatpush1.bf16.msra.mxu0 %v961_v9  ;;  %941 = vmatpush1.bf16.msra.mxu1 %v961_v9 }
  0x20   : > { %545 = vmatprep.subr.bf16.mxu0 %v1029_v1  ;;  %932 = vmatprep.subr.bf16.mxu1 %v1029_v1 }
  0x23   : > { %546 = vmatpush1.bf16.msra.mxu0 %v962_v10  ;;  %942 = vmatpush1.bf16.msra.mxu1 %v962_v10 }
  0x24   : > { %547 = vmatprep.subr.bf16.mxu0 %v1029_v1  ;;  %933 = vmatprep.subr.bf16.mxu1 %v1029_v1 }
  0x27   : > { %548 = vmatpush1.bf16.msra.mxu0 %v963_v13  ;;  %943 = vmatpush1.bf16.msra.mxu1 %v963_v13 }
  0x28   : > { %549 = vmatprep.subr.bf16.mxu0 %v1029_v1  ;;  %934 = vmatprep.subr.bf16.mxu1 %v1029_v1 }
  0x2b   : > { %550 = vmatpush1.bf16.msra.mxu0 %v529_v16  ;;  %944 = vmatpush1.bf16.msra.mxu1 %v529_v16 }
  0x2e   : > { %564 = vmatmul.mubr.bf16.vlgmr.msra.gmra.mrb[0].mxu0 %v965_v17  ;;  %644 = vmatmul.mubr.bf16.vlgmr.msra.gmra.mrb[0].mxu1 %v968_v18 }
  0x2f   : > { %904 = vmatprep.mubr.msk.bf16.mxu0 %vm466_vm0, %v971_v19  ;;  %914 = vmatprep.mubr.msk.bf16.mxu1 %vm466_vm0, %v974_v20 }
  0x36   : > { %572 = vmatmul.mubr.bf16.gmra.mrb[4].mxu0 %v973_v21  ;;  %652 = vmatmul.mubr.bf16.gmra.mrb[4].mxu1 %v978_v22 }
  0x37   : > { %905 = vmatprep.mubr.msk.bf16.mxu0 %vm466_vm0, %v976_v23  ;;  %915 = vmatprep.mubr.msk.bf16.mxu1 %vm466_vm0, %v980_v24 }
  0x3e   : > { %580 = vmatmul.mubr.bf16.gmra.mrb[8].mxu0 %v979_v25  ;;  %660 = vmatmul.mubr.bf16.gmra.mrb[8].mxu1 %v984_v26 }
  0x3f   : > { %906 = vmatprep.mubr.msk.bf16.mxu0 %vm466_vm0, %v982_v27  ;;  %916 = vmatprep.mubr.msk.bf16.mxu1 %vm466_vm0, %v986_v28 }
  0x46   : > { %588 = vmatmul.mubr.bf16.gmra.mrb[12].mxu0 %v985_v29  ;;  %668 = vmatmul.mubr.bf16.gmra.mrb[12].mxu1 %v990_v30 }
  0x47   : > { %907 = vmatprep.mubr.msk.bf16.mxu0 %vm466_vm0, %v988_v31  ;;  %917 = vmatprep.mubr.msk.bf16.mxu1 %vm466_vm0, %v992_v32 }
  0x4e   : > { %596 = vmatmul.mubr.bf16.gmra.mrb[16].mxu0 %v991_v33  ;;  %676 = vmatmul.mubr.bf16.gmra.mrb[16].mxu1 %v996_v34 }
  0x4f   : > { %908 = vmatprep.mubr.msk.bf16.mxu0 %vm466_vm0, %v994_v35  ;;  %918 = vmatprep.mubr.msk.bf16.mxu1 %vm466_vm0, %v998_v36 }
  0x56   : > { %604 = vmatmul.mubr.bf16.gmra.mrb[20].mxu0 %v997_v37  ;;  %684 = vmatmul.mubr.bf16.gmra.mrb[20].mxu1 %v1002_v38 }
  0x57   : > { %909 = vmatprep.mubr.msk.bf16.mxu0 %vm466_vm0, %v1000_v39  ;;  %919 = vmatprep.mubr.msk.bf16.mxu1 %vm466_vm0, %v1004_v40 }
  0x5e   : > { %612 = vmatmul.mubr.bf16.gmra.mrb[24].mxu0 %v1003_v41  ;;  %692 = vmatmul.mubr.bf16.gmra.mrb[24].mxu1 %v1008_v42 }
  0x5f   : > { %910 = vmatprep.mubr.msk.bf16.mxu0 %vm466_vm0, %v1006_v43  ;;  %920 = vmatprep.mubr.msk.bf16.mxu1 %vm466_vm0, %v1010_v44 }
  0x66   : > { %620 = vmatmul.mubr.bf16.gmra.mrb[28].mxu0 %v1009_v46  ;;  %700 = vmatmul.mubr.bf16.gmra.mrb[28].mxu1 %v1014_v47 }
  0x67   : > { %911 = vmatprep.mubr.msk.bf16.mxu0 %vm466_vm0, %v1012_v48  ;;  %921 = vmatprep.mubr.msk.bf16.mxu1 %vm466_vm0, %v892_v49 }
  0x6e   : > { %628 = vmatmul.mubr.bf16.gmra.mrb[32].mxu0 %v1015_v50  ;;  %708 = vmatmul.mubr.bf16.gmra.mrb[32].mxu1 %v891_v51 }
  0x6f   : > { %912 = vmatprep.mubr.msk.bf16.mxu0 %vm466_vm0, %v1017_v52 }
  0x76   : > { %636 = vmatmul.mubr.bf16.gmra.mrb[36].mxu0 %v1020_v53 }
 0x101   : > { %v565_v55 = vpop.f32.mrb[0].mxu0  ;;  %v645_v56 = vpop.f32.mrb[0].mxu1 }
 0x102   : > { %v566_v57 = vadd.f32 %v1158_v54, %v565_v55  ;;  %v567_v58 = vpop.f32.mrb[1].mxu0  ;;  %v646_v59 = vadd.f32 %v1158_v54, %v645_v56  ;;  %v647_v60 = vpop.f32.mrb[1].mxu1 }
 0x103   : > { %v568_v61 = vpop.f32.mrb[2].mxu0  ;;  %v648_v62 = vpop.f32.mrb[2].mxu1 }
 0x104   : > { %v715_v63 = vmax.f32 %v566_v57, 0.0  ;;  %v569_v0 = vadd.f32 %v1158_v54, %v568_v61  ;;  %v570_v1 = vpop.f32.mrb[3].mxu0  ;;  %v735_v2 = vmax.f32 %v646_v59, 0.0  ;;  %v649_v3 = vadd.f32 %v1158_v54, %v648_v62  ;;  %v650_v4 = vpop.f32.mrb[3].mxu1 }
 0x106   : > { %753 = vst.msk [vmem:[%s1167_s17] sm:$0xff] %vm752_vm3, %v715_v63  ;;  %v716_v5 = vmax.f32 %v569_v0, 0.0  ;;  %773 = vst.msk [vmem:[%s1167_s17 + $0xa0] sm:$0xff] %vm752_vm3, %v735_v2  ;;  %v736_v6 = vmax.f32 %v649_v3, 0.0 }
 0x108   : > { %754 = vst.msk [vmem:[%s1167_s17 + $0x8] sm:$0xff] %vm752_vm3, %v716_v5  ;;  %774 = vst.msk [vmem:[%s1167_s17 + $0xa8] sm:$0xff] %vm752_vm3, %v736_v6 }
 0x109   : > { %v573_v7 = vpop.f32.mrb[4].mxu0  ;;  %v653_v8 = vpop.f32.mrb[4].mxu1 }
 0x10a   : > { %v574_v9 = vadd.f32 %v1158_v54, %v573_v7  ;;  %v575_v10 = vpop.f32.mrb[5].mxu0  ;;  %v654_v11 = vadd.f32 %v1158_v54, %v653_v8  ;;  %v655_v12 = vpop.f32.mrb[5].mxu1 }
 0x10b   : > { %v576_v13 = vpop.f32.mrb[6].mxu0  ;;  %v656_v14 = vpop.f32.mrb[6].mxu1 }
 0x10c   : > { %v717_v15 = vmax.f32 %v574_v9, 0.0  ;;  %v577_v16 = vadd.f32 %v1158_v54, %v576_v13  ;;  %v578_v17 = vpop.f32.mrb[7].mxu0  ;;  %v737_v18 = vmax.f32 %v654_v11, 0.0  ;;  %v657_v19 = vadd.f32 %v1158_v54, %v656_v14  ;;  %v658_v20 = vpop.f32.mrb[7].mxu1 }
 0x10e   : > { %755 = vst.msk [vmem:[%s1167_s17 + $0x10] sm:$0xff] %vm752_vm3, %v717_v15  ;;  %v718_v21 = vmax.f32 %v577_v16, 0.0  ;;  %775 = vst.msk [vmem:[%s1167_s17 + $0xb0] sm:$0xff] %vm752_vm3, %v737_v18  ;;  %v738_v22 = vmax.f32 %v657_v19, 0.0 }
 0x110   : > { %756 = vst.msk [vmem:[%s1167_s17 + $0x18] sm:$0xff] %vm752_vm3, %v718_v21  ;;  %776 = vst.msk [vmem:[%s1167_s17 + $0xb8] sm:$0xff] %vm752_vm3, %v738_v22 }
 0x111   : > { %v581_v23 = vpop.f32.mrb[8].mxu0  ;;  %v661_v24 = vpop.f32.mrb[8].mxu1 }
 0x112   : > { %v582_v25 = vadd.f32 %v1158_v54, %v581_v23  ;;  %v583_v26 = vpop.f32.mrb[9].mxu0  ;;  %v662_v27 = vadd.f32 %v1158_v54, %v661_v24  ;;  %v663_v28 = vpop.f32.mrb[9].mxu1 }
 0x113   : > { %v584_v29 = vpop.f32.mrb[10].mxu0  ;;  %v664_v30 = vpop.f32.mrb[10].mxu1 }
 0x114   : > { %v719_v31 = vmax.f32 %v582_v25, 0.0  ;;  %v585_v32 = vadd.f32 %v1158_v54, %v584_v29  ;;  %v586_v33 = vpop.f32.mrb[11].mxu0  ;;  %v739_v34 = vmax.f32 %v662_v27, 0.0  ;;  %v665_v35 = vadd.f32 %v1158_v54, %v664_v30  ;;  %v666_v36 = vpop.f32.mrb[11].mxu1 }
 0x116   : > { %757 = vst.msk [vmem:[%s1167_s17 + $0x20] sm:$0xff] %vm752_vm3, %v719_v31  ;;  %v720_v37 = vmax.f32 %v585_v32, 0.0  ;;  %777 = vst.msk [vmem:[%s1167_s17 + $0xc0] sm:$0xff] %vm752_vm3, %v739_v34  ;;  %v740_v38 = vmax.f32 %v665_v35, 0.0 }
 0x118   : > { %758 = vst.msk [vmem:[%s1167_s17 + $0x28] sm:$0xff] %vm752_vm3, %v720_v37  ;;  %778 = vst.msk [vmem:[%s1167_s17 + $0xc8] sm:$0xff] %vm752_vm3, %v740_v38 }
 0x119   : > { %v589_v39 = vpop.f32.mrb[12].mxu0  ;;  %v669_v40 = vpop.f32.mrb[12].mxu1 }
 0x11a   : > { %v590_v41 = vadd.f32 %v1158_v54, %v589_v39  ;;  %v591_v42 = vpop.f32.mrb[13].mxu0  ;;  %v670_v43 = vadd.f32 %v1158_v54, %v669_v40  ;;  %v671_v44 = vpop.f32.mrb[13].mxu1 }
 0x11b   : > { %v592_v45 = vpop.f32.mrb[14].mxu0  ;;  %v672_v46 = vpop.f32.mrb[14].mxu1 }
 0x11c   : > { %v721_v47 = vmax.f32 %v590_v41, 0.0  ;;  %v593_v48 = vadd.f32 %v1158_v54, %v592_v45  ;;  %v594_v49 = vpop.f32.mrb[15].mxu0  ;;  %v741_v50 = vmax.f32 %v670_v43, 0.0  ;;  %v673_v51 = vadd.f32 %v1158_v54, %v672_v46  ;;  %v674_v52 = vpop.f32.mrb[15].mxu1 }
 0x11e   : > { %759 = vst.msk [vmem:[%s1167_s17 + $0x30] sm:$0xff] %vm752_vm3, %v721_v47  ;;  %v722_v53 = vmax.f32 %v593_v48, 0.0  ;;  %779 = vst.msk [vmem:[%s1167_s17 + $0xd0] sm:$0xff] %vm752_vm3, %v741_v50  ;;  %v742_v55 = vmax.f32 %v673_v51, 0.0 }
 0x120   : > { %760 = vst.msk [vmem:[%s1167_s17 + $0x38] sm:$0xff] %vm752_vm3, %v722_v53  ;;  %780 = vst.msk [vmem:[%s1167_s17 + $0xd8] sm:$0xff] %vm752_vm3, %v742_v55 }
 0x121   : > { %v597_v56 = vpop.f32.mrb[16].mxu0  ;;  %v677_v57 = vpop.f32.mrb[16].mxu1 }
 0x122   : > { %v598_v58 = vadd.f32 %v1158_v54, %v597_v56  ;;  %v599_v59 = vpop.f32.mrb[17].mxu0  ;;  %v678_v60 = vadd.f32 %v1158_v54, %v677_v57  ;;  %v679_v61 = vpop.f32.mrb[17].mxu1 }
 0x123   : > { %v600_v62 = vpop.f32.mrb[18].mxu0  ;;  %v680_v63 = vpop.f32.mrb[18].mxu1 }
 0x124   : > { %v723_v0 = vmax.f32 %v598_v58, 0.0  ;;  %v601_v1 = vadd.f32 %v1158_v54, %v600_v62  ;;  %v602_v2 = vpop.f32.mrb[19].mxu0  ;;  %v743_v3 = vmax.f32 %v678_v60, 0.0  ;;  %v681_v4 = vadd.f32 %v1158_v54, %v680_v63  ;;  %v682_v5 = vpop.f32.mrb[19].mxu1 }
 0x126   : > { %761 = vst.msk [vmem:[%s1167_s17 + $0x40] sm:$0xff] %vm752_vm3, %v723_v0  ;;  %v724_v6 = vmax.f32 %v601_v1, 0.0  ;;  %781 = vst.msk [vmem:[%s1167_s17 + $0xe0] sm:$0xff] %vm752_vm3, %v743_v3  ;;  %v744_v7 = vmax.f32 %v681_v4, 0.0 }
 0x128   : > { %762 = vst.msk [vmem:[%s1167_s17 + $0x48] sm:$0xff] %vm752_vm3, %v724_v6  ;;  %782 = vst.msk [vmem:[%s1167_s17 + $0xe8] sm:$0xff] %vm752_vm3, %v744_v7 }
 0x129   : > { %v605_v8 = vpop.f32.mrb[20].mxu0  ;;  %v685_v9 = vpop.f32.mrb[20].mxu1 }
 0x12a   : > { %v606_v10 = vadd.f32 %v1158_v54, %v605_v8  ;;  %v607_v11 = vpop.f32.mrb[21].mxu0  ;;  %v686_v12 = vadd.f32 %v1158_v54, %v685_v9  ;;  %v687_v13 = vpop.f32.mrb[21].mxu1 }
 0x12b   : > { %v608_v14 = vpop.f32.mrb[22].mxu0  ;;  %v688_v15 = vpop.f32.mrb[22].mxu1 }
 0x12c   : > { %v725_v16 = vmax.f32 %v606_v10, 0.0  ;;  %v609_v17 = vadd.f32 %v1158_v54, %v608_v14  ;;  %v610_v18 = vpop.f32.mrb[23].mxu0  ;;  %v745_v19 = vmax.f32 %v686_v12, 0.0  ;;  %v689_v20 = vadd.f32 %v1158_v54, %v688_v15  ;;  %v690_v21 = vpop.f32.mrb[23].mxu1 }
 0x12e   : > { %763 = vst.msk [vmem:[%s1167_s17 + $0x50] sm:$0xff] %vm752_vm3, %v725_v16  ;;  %v726_v22 = vmax.f32 %v609_v17, 0.0  ;;  %783 = vst.msk [vmem:[%s1167_s17 + $0xf0] sm:$0xff] %vm752_vm3, %v745_v19  ;;  %v746_v23 = vmax.f32 %v689_v20, 0.0 }
 0x130   : > { %764 = vst.msk [vmem:[%s1167_s17 + $0x58] sm:$0xff] %vm752_vm3, %v726_v22  ;;  %784 = vst.msk [vmem:[%s1167_s17 + $0xf8] sm:$0xff] %vm752_vm3, %v746_v23 }
 0x131   : > { %v613_v24 = vpop.f32.mrb[24].mxu0  ;;  %v693_v25 = vpop.f32.mrb[24].mxu1 }
 0x132   : > { %v614_v26 = vadd.f32 %v1158_v54, %v613_v24  ;;  %v615_v27 = vpop.f32.mrb[25].mxu0  ;;  %v694_v28 = vadd.f32 %v1158_v54, %v693_v25  ;;  %v695_v29 = vpop.f32.mrb[25].mxu1 }
 0x133   : > { %v616_v30 = vpop.f32.mrb[26].mxu0  ;;  %v696_v31 = vpop.f32.mrb[26].mxu1 }
 0x134   : > { %v727_v32 = vmax.f32 %v614_v26, 0.0  ;;  %v617_v33 = vadd.f32 %v1158_v54, %v616_v30  ;;  %v618_v34 = vpop.f32.mrb[27].mxu0  ;;  %v747_v35 = vmax.f32 %v694_v28, 0.0  ;;  %v697_v36 = vadd.f32 %v1158_v54, %v696_v31  ;;  %v698_v37 = vpop.f32.mrb[27].mxu1 }
 0x136   : > { %765 = vst.msk [vmem:[%s1167_s17 + $0x60] sm:$0xff] %vm752_vm3, %v727_v32  ;;  %v728_v38 = vmax.f32 %v617_v33, 0.0  ;;  %785 = vst.msk [vmem:[%s1167_s17 + $0x100] sm:$0xff] %vm752_vm3, %v747_v35  ;;  %v748_v39 = vmax.f32 %v697_v36, 0.0 }
 0x138   : > { %766 = vst.msk [vmem:[%s1167_s17 + $0x68] sm:$0xff] %vm752_vm3, %v728_v38  ;;  %786 = vst.msk [vmem:[%s1167_s17 + $0x108] sm:$0xff] %vm752_vm3, %v748_v39 }
 0x139   : > { %v621_v40 = vpop.f32.mrb[28].mxu0  ;;  %v701_v41 = vpop.f32.mrb[28].mxu1 }
 0x13a   : > { %v622_v42 = vadd.f32 %v1158_v54, %v621_v40  ;;  %v623_v43 = vpop.f32.mrb[29].mxu0  ;;  %v702_v44 = vadd.f32 %v1158_v54, %v701_v41  ;;  %v703_v45 = vpop.f32.mrb[29].mxu1 }
 0x13b   : > { %v624_v46 = vpop.f32.mrb[30].mxu0  ;;  %v704_v47 = vpop.f32.mrb[30].mxu1 }
 0x13c   : > { %v729_v48 = vmax.f32 %v622_v42, 0.0  ;;  %v625_v49 = vadd.f32 %v1158_v54, %v624_v46  ;;  %v626_v50 = vpop.f32.mrb[31].mxu0  ;;  %v749_v51 = vmax.f32 %v702_v44, 0.0  ;;  %v705_v52 = vadd.f32 %v1158_v54, %v704_v47  ;;  %v706_v53 = vpop.f32.mrb[31].mxu1 }
 0x13e   : > { %767 = vst.msk [vmem:[%s1167_s17 + $0x70] sm:$0xff] %vm752_vm3, %v729_v48  ;;  %v730_v55 = vmax.f32 %v625_v49, 0.0  ;;  %787 = vst.msk [vmem:[%s1167_s17 + $0x110] sm:$0xff] %vm752_vm3, %v749_v51  ;;  %v750_v56 = vmax.f32 %v705_v52, 0.0 }
 0x140   : > { %768 = vst.msk [vmem:[%s1167_s17 + $0x78] sm:$0xff] %vm752_vm3, %v730_v55  ;;  %788 = vst.msk [vmem:[%s1167_s17 + $0x118] sm:$0xff] %vm752_vm3, %v750_v56 }
 0x141   : > { %v629_v57 = vpop.f32.mrb[32].mxu0  ;;  %v709_v58 = vpop.f32.mrb[32].mxu1 }
 0x142   : > { %v630_v59 = vadd.f32 %v1158_v54, %v629_v57  ;;  %v631_v60 = vpop.f32.mrb[33].mxu0  ;;  %v710_v61 = vadd.f32 %v1158_v54, %v709_v58  ;;  %v711_v62 = vpop.f32.mrb[33].mxu1 }
 0x143   : > { %v632_v63 = vpop.f32.mrb[34].mxu0  ;;  %v712_v0 = vpop.f32.mrb[34].mxu1 }
 0x144   : > { %v731_v1 = vmax.f32 %v630_v59, 0.0  ;;  %v633_v2 = vadd.f32 %v1158_v54, %v632_v63  ;;  %v634_v3 = vpop.f32.mrb[35].mxu0  ;;  %v751_v4 = vmax.f32 %v710_v61, 0.0  ;;  %v713_v5 = vpop.f32.mrb[35].mxu1 }
 0x146   : > { %769 = vst.msk [vmem:[%s1167_s17 + $0x80] sm:$0xff] %vm752_vm3, %v731_v1  ;;  %v732_v6 = vmax.f32 %v633_v2, 0.0  ;;  %789 = vst.msk [vmem:[%s1167_s17 + $0x120] sm:$0xff] %vm752_vm3, %v751_v4 }
 0x148   : > { %770 = vst.msk [vmem:[%s1167_s17 + $0x88] sm:$0xff] %vm752_vm3, %v732_v6 }
 0x149   : > { %v637_v7 = vpop.f32.mrb[36].mxu0 }
 0x14a   : > { %v638_v8 = vadd.f32 %v1158_v54, %v637_v7  ;;  %v639_v9 = vpop.f32.mrb[37].mxu0 }
 0x14b   : > { %v640_v10 = vpop.f32.mrb[38].mxu0 }
 0x14c   : > { %v733_v11 = vmax.f32 %v638_v8, 0.0  ;;  %v641_v12 = vadd.f32 %v1158_v54, %v640_v10  ;;  %v642_v13 = vpop.f32.mrb[39].mxu0 }
 0x14e   : > { %771 = vst.msk [vmem:[%s1167_s17 + $0x90] sm:$0xff] %vm752_vm3, %v733_v11  ;;  %v734_v14 = vmax.f32 %v641_v12, 0.0 }
 0x150   : > { %772 = vst.msk [vmem:[%s1167_s17 + $0x98] sm:$0xff] %vm752_vm3, %v734_v14 }
 0x151 PF: > { %s13_s12 = sadd.s32 1, %s1027_s12  }
 0x152   : > { %p10_p4 = scmp.ge.s32.totalorder %s13_s12, 4  }
 0x154   :  { %12 = sbr.rel (!%p10_p4) target bundleno = 1 (0x1), region = 62 }

// kernel: resnet_forward.11
= control target key start
LH: loop header
LB: loop body
LE: loop exit
PB: predicated region body
PF: predicated region fallthrough
CT: control target
= control target key end

     0   :  { %vm458_vm0 = vcmask 519168   ;;  %vm479_vm1 = vcmask 516096   ;;  %s1355_s0 = inlined_call_operand.vmem [shape: f32[9,162,64], index: 0, kind: input, shape index: {}]   ;;  %s1356_s1 = inlined_call_operand.vmem [shape: bf16[162,64], index: 1, kind: output, shape index: {}]  }
   0x1   :  { %v8_v0 = vld [vmem:[%s1355_s0] sm:$0xff]  ;;  %v485_v1 = vld [vmem:[%s1355_s0 + $0xa8] sm:$0xff]  ;;  %v506_v2 = vld [vmem:[%s1355_s0 + $0x150] sm:$0xff] }
   0x2   :  { %v51_v3 = vmax.f32 %v8_v0, %v485_v1  ;;  %v527_v4 = vld [vmem:[%s1355_s0 + $0x1f8] sm:$0xff]  ;;  %v9_v6 = vld [vmem:[%s1355_s0 + $0x8] sm:$0xff]  ;;  %v486_v7 = vld [vmem:[%s1355_s0 + $0xb0] sm:$0xff] }
   0x3   :  { %v507_v8 = vld [vmem:[%s1355_s0 + $0x158] sm:$0xff]  ;;  %v548_v9 = vld [vmem:[%s1355_s0 + $0x2a0] sm:$0xff]  ;;  %v52_v10 = vmax.f32 %v9_v6, %v486_v7  ;;  %v569_v12 = vld [vmem:[%s1355_s0 + $0x348] sm:$0xff] }
   0x4   :  { %v94_v5 = vmax.f32 %v51_v3, %v506_v2  ;;  %v528_v13 = vld [vmem:[%s1355_s0 + $0x200] sm:$0xff]  ;;  %v10_v15 = vld [vmem:[%s1355_s0 + $0x10] sm:$0xff]  ;;  %v487_v16 = vld [vmem:[%s1355_s0 + $0xb8] sm:$0xff] }
   0x5   :  { %v95_v14 = vmax.f32 %v52_v10, %v507_v8  ;;  %v508_v17 = vld [vmem:[%s1355_s0 + $0x160] sm:$0xff]  ;;  %v549_v19 = vld [vmem:[%s1355_s0 + $0x2a8] sm:$0xff]  ;;  %v53_v20 = vmax.f32 %v10_v15, %v487_v16  ;;  %v590_v21 = vld [vmem:[%s1355_s0 + $0x3f0] sm:$0xff] }
   0x6   :  { %v137_v11 = vmax.f32 %v94_v5, %v527_v4  ;;  %v570_v23 = vld [vmem:[%s1355_s0 + $0x350] sm:$0xff]  ;;  %v529_v24 = vld [vmem:[%s1355_s0 + $0x208] sm:$0xff]  ;;  %v11_v27 = vld [vmem:[%s1355_s0 + $0x18] sm:$0xff] }
   0x7   :  { %v138_v22 = vmax.f32 %v95_v14, %v528_v13  ;;  %v96_v26 = vmax.f32 %v53_v20, %v508_v17  ;;  %v488_v28 = vld [vmem:[%s1355_s0 + $0xc0] sm:$0xff]  ;;  %v509_v29 = vld [vmem:[%s1355_s0 + $0x168] sm:$0xff]  ;;  %v611_v30 = vld [vmem:[%s1355_s0 + $0x498] sm:$0xff] }
   0x8   :  { %v180_v18 = vmax.f32 %v137_v11, %v548_v9  ;;  %v632_v31 = vld [vmem:[%s1355_s0 + $0x540] sm:$0xff]  ;;  %v550_v33 = vld [vmem:[%s1355_s0 + $0x2b0] sm:$0xff]  ;;  %v54_v34 = vmax.f32 %v11_v27, %v488_v28  ;;  %v591_v36 = vld [vmem:[%s1355_s0 + $0x3f8] sm:$0xff] }
   0x9   :  { %v181_v32 = vmax.f32 %v138_v22, %v549_v19  ;;  %v139_v37 = vmax.f32 %v96_v26, %v529_v24  ;;  %v571_v38 = vld [vmem:[%s1355_s0 + $0x358] sm:$0xff]  ;;  %v530_v39 = vld [vmem:[%s1355_s0 + $0x210] sm:$0xff]  ;;  %v12_v42 = vld [vmem:[%s1355_s0 + $0x20] sm:$0xff] }
   0xa   :  { %v223_v25 = vmax.f32 %v180_v18, %v569_v12  ;;  %v97_v41 = vmax.f32 %v54_v34, %v509_v29  ;;  %v489_v43 = vld [vmem:[%s1355_s0 + $0xc8] sm:$0xff]  ;;  %v510_v44 = vld [vmem:[%s1355_s0 + $0x170] sm:$0xff]  ;;  %v612_v46 = vld [vmem:[%s1355_s0 + $0x4a0] sm:$0xff] }
   0xb   :  { %v224_v40 = vmax.f32 %v181_v32, %v570_v23  ;;  %v633_v47 = vld [vmem:[%s1355_s0 + $0x548] sm:$0xff]  ;;  %v182_v48 = vmax.f32 %v139_v37, %v550_v33  ;;  %v551_v49 = vld [vmem:[%s1355_s0 + $0x2b8] sm:$0xff]  ;;  %v55_v50 = vmax.f32 %v12_v42, %v489_v43  ;;  %v592_v52 = vld [vmem:[%s1355_s0 + $0x400] sm:$0xff] }
   0xc   :  { %v266_v35 = vmax.f32 %v223_v25, %v590_v21  ;;  %v140_v53 = vmax.f32 %v97_v41, %v530_v39  ;;  %v572_v54 = vld [vmem:[%s1355_s0 + $0x360] sm:$0xff]  ;;  %v531_v55 = vld [vmem:[%s1355_s0 + $0x218] sm:$0xff]  ;;  %v13_v59 = vld [vmem:[%s1355_s0 + $0x28] sm:$0xff] }
   0xd   :  { %v267_v51 = vmax.f32 %v224_v40, %v591_v36  ;;  %v225_v57 = vmax.f32 %v182_v48, %v571_v38  ;;  %v98_v58 = vmax.f32 %v55_v50, %v510_v44  ;;  %v490_v60 = vld [vmem:[%s1355_s0 + $0xd0] sm:$0xff]  ;;  %v511_v61 = vld [vmem:[%s1355_s0 + $0x178] sm:$0xff]  ;;  %v613_v63 = vld [vmem:[%s1355_s0 + $0x4a8] sm:$0xff] }
   0xe   :  { %v309_v45 = vmax.f32 %v266_v35, %v611_v30  ;;  %v634_v0 = vld [vmem:[%s1355_s0 + $0x550] sm:$0xff]  ;;  %v183_v1 = vmax.f32 %v140_v53, %v551_v49  ;;  %v552_v2 = vld [vmem:[%s1355_s0 + $0x2c0] sm:$0xff]  ;;  %v56_v3 = vmax.f32 %v13_v59, %v490_v60  ;;  %v593_v6 = vld [vmem:[%s1355_s0 + $0x408] sm:$0xff] }
   0xf   :  { %v310_v62 = vmax.f32 %v267_v51, %v612_v46  ;;  %v268_v5 = vmax.f32 %v225_v57, %v592_v52  ;;  %v141_v7 = vmax.f32 %v98_v58, %v531_v55  ;;  %v573_v8 = vld [vmem:[%s1355_s0 + $0x368] sm:$0xff]  ;;  %v532_v9 = vld [vmem:[%s1355_s0 + $0x220] sm:$0xff]  ;;  %v14_v13 = vld [vmem:[%s1355_s0 + $0x30] sm:$0xff] }
  0x10   :  { %v352_v56 = vmax.f32 %v309_v45, %v632_v31  ;;  %v226_v11 = vmax.f32 %v183_v1, %v572_v54  ;;  %v99_v12 = vmax.f32 %v56_v3, %v511_v61  ;;  %v491_v14 = vld [vmem:[%s1355_s0 + $0xd8] sm:$0xff]  ;;  %v512_v15 = vld [vmem:[%s1355_s0 + $0x180] sm:$0xff]  ;;  %v614_v17 = vld [vmem:[%s1355_s0 + $0x4b0] sm:$0xff] }
  0x11   :  { %v353_v10 = vmax.f32 %v310_v62, %v633_v47  ;;  %v311_v16 = vmax.f32 %v268_v5, %v613_v63  ;;  %v635_v18 = vld [vmem:[%s1355_s0 + $0x558] sm:$0xff]  ;;  %v184_v19 = vmax.f32 %v141_v7, %v552_v2  ;;  %v553_v20 = vld [vmem:[%s1355_s0 + $0x2c8] sm:$0xff]  ;;  %v57_v21 = vmax.f32 %v14_v13, %v491_v14  ;;  %v594_v24 = vld [vmem:[%s1355_s0 + $0x410] sm:$0xff] }
  0x12   :  { %v674_v4 = vpack.c.bf16 %v352_v56, %v352_v56  ;;  %v269_v23 = vmax.f32 %v226_v11, %v593_v6  ;;  %v142_v25 = vmax.f32 %v99_v12, %v532_v9  ;;  %v574_v26 = vld [vmem:[%s1355_s0 + $0x370] sm:$0xff]  ;;  %v533_v27 = vld [vmem:[%s1355_s0 + $0x228] sm:$0xff]  ;;  %v15_v31 = vld [vmem:[%s1355_s0 + $0x38] sm:$0xff] }
  0x13   :  { %v675_v22 = vpack.c.bf16 %v353_v10, %v353_v10  ;;  %v354_v28 = vmax.f32 %v311_v16, %v634_v0  ;;  %v227_v29 = vmax.f32 %v184_v19, %v573_v8  ;;  %v100_v30 = vmax.f32 %v57_v21, %v512_v15  ;;  %v492_v32 = vld [vmem:[%s1355_s0 + $0xe0] sm:$0xff]  ;;  %v513_v33 = vld [vmem:[%s1355_s0 + $0x188] sm:$0xff]  ;;  %v615_v35 = vld [vmem:[%s1355_s0 + $0x4b8] sm:$0xff] }
  0x14   :  { %459 = vst.msk [vmem:[%s1356_s1] sm:$0xf] %vm458_vm0, %v674_v4  ;;  %v312_v34 = vmax.f32 %v269_v23, %v614_v17  ;;  %v636_v36 = vld [vmem:[%s1355_s0 + $0x560] sm:$0xff]  ;;  %v185_v37 = vmax.f32 %v142_v25, %v553_v20  ;;  %v554_v38 = vld [vmem:[%s1355_s0 + $0x2d0] sm:$0xff]  ;;  %v58_v39 = vmax.f32 %v15_v31, %v492_v32  ;;  %v595_v42 = vld [vmem:[%s1355_s0 + $0x418] sm:$0xff] }
  0x15   :  { %460 = vst.msk [vmem:[%s1356_s1 + $0x4] sm:$0xf] %vm458_vm0, %v675_v22  ;;  %v676_v40 = vpack.c.bf16 %v354_v28, %v354_v28  ;;  %v270_v41 = vmax.f32 %v227_v29, %v594_v24  ;;  %v143_v43 = vmax.f32 %v100_v30, %v533_v27  ;;  %v575_v44 = vld [vmem:[%s1355_s0 + $0x378] sm:$0xff]  ;;  %v534_v45 = vld [vmem:[%s1355_s0 + $0x230] sm:$0xff]  ;;  %v16_v49 = vld [vmem:[%s1355_s0 + $0x40] sm:$0xff] }
  0x16   :  { %v355_v46 = vmax.f32 %v312_v34, %v635_v18  ;;  %v228_v47 = vmax.f32 %v185_v37, %v574_v26  ;;  %v101_v48 = vmax.f32 %v58_v39, %v513_v33  ;;  %v493_v50 = vld [vmem:[%s1355_s0 + $0xe8] sm:$0xff]  ;;  %v514_v51 = vld [vmem:[%s1355_s0 + $0x190] sm:$0xff]  ;;  %v616_v53 = vld [vmem:[%s1355_s0 + $0x4c0] sm:$0xff] }
  0x17   :  { %461 = vst.msk [vmem:[%s1356_s1 + $0x8] sm:$0xf] %vm458_vm0, %v676_v40  ;;  %v313_v52 = vmax.f32 %v270_v41, %v615_v35  ;;  %v637_v54 = vld [vmem:[%s1355_s0 + $0x568] sm:$0xff]  ;;  %v186_v55 = vmax.f32 %v143_v43, %v554_v38  ;;  %v555_v56 = vld [vmem:[%s1355_s0 + $0x2d8] sm:$0xff]  ;;  %v59_v57 = vmax.f32 %v16_v49, %v493_v50  ;;  %v596_v60 = vld [vmem:[%s1355_s0 + $0x420] sm:$0xff] }
  0x18   :  { %v677_v58 = vpack.c.bf16 %v355_v46, %v355_v46  ;;  %v271_v59 = vmax.f32 %v228_v47, %v595_v42  ;;  %v144_v61 = vmax.f32 %v101_v48, %v534_v45  ;;  %v576_v62 = vld [vmem:[%s1355_s0 + $0x380] sm:$0xff]  ;;  %v535_v63 = vld [vmem:[%s1355_s0 + $0x238] sm:$0xff]  ;;  %v17_v3 = vld [vmem:[%s1355_s0 + $0x48] sm:$0xff] }
  0x19   :  { %v356_v0 = vmax.f32 %v313_v52, %v636_v36  ;;  %v229_v1 = vmax.f32 %v186_v55, %v575_v44  ;;  %v102_v2 = vmax.f32 %v59_v57, %v514_v51  ;;  %v494_v4 = vld [vmem:[%s1355_s0 + $0xf0] sm:$0xff]  ;;  %v515_v5 = vld [vmem:[%s1355_s0 + $0x198] sm:$0xff]  ;;  %v617_v7 = vld [vmem:[%s1355_s0 + $0x4c8] sm:$0xff] }
  0x1a   :  { %462 = vst.msk [vmem:[%s1356_s1 + $0xc] sm:$0xf] %vm458_vm0, %v677_v58  ;;  %v314_v6 = vmax.f32 %v271_v59, %v616_v53  ;;  %v638_v8 = vld [vmem:[%s1355_s0 + $0x570] sm:$0xff]  ;;  %v187_v9 = vmax.f32 %v144_v61, %v555_v56  ;;  %v556_v10 = vld [vmem:[%s1355_s0 + $0x2e0] sm:$0xff]  ;;  %v60_v11 = vmax.f32 %v17_v3, %v494_v4  ;;  %v597_v14 = vld [vmem:[%s1355_s0 + $0x428] sm:$0xff] }
  0x1b   :  { %v678_v12 = vpack.c.bf16 %v356_v0, %v356_v0  ;;  %v272_v13 = vmax.f32 %v229_v1, %v596_v60  ;;  %v145_v15 = vmax.f32 %v102_v2, %v535_v63  ;;  %v577_v16 = vld [vmem:[%s1355_s0 + $0x388] sm:$0xff]  ;;  %v536_v17 = vld [vmem:[%s1355_s0 + $0x240] sm:$0xff]  ;;  %v18_v21 = vld [vmem:[%s1355_s0 + $0x50] sm:$0xff] }
  0x1c   :  { %v357_v18 = vmax.f32 %v314_v6, %v637_v54  ;;  %v230_v19 = vmax.f32 %v187_v9, %v576_v62  ;;  %v103_v20 = vmax.f32 %v60_v11, %v515_v5  ;;  %v495_v22 = vld [vmem:[%s1355_s0 + $0xf8] sm:$0xff]  ;;  %v516_v23 = vld [vmem:[%s1355_s0 + $0x1a0] sm:$0xff]  ;;  %v618_v25 = vld [vmem:[%s1355_s0 + $0x4d0] sm:$0xff] }
  0x1d   :  { %463 = vst.msk [vmem:[%s1356_s1 + $0x10] sm:$0xf] %vm458_vm0, %v678_v12  ;;  %v315_v24 = vmax.f32 %v272_v13, %v617_v7  ;;  %v639_v26 = vld [vmem:[%s1355_s0 + $0x578] sm:$0xff]  ;;  %v188_v27 = vmax.f32 %v145_v15, %v556_v10  ;;  %v557_v28 = vld [vmem:[%s1355_s0 + $0x2e8] sm:$0xff]  ;;  %v61_v29 = vmax.f32 %v18_v21, %v495_v22  ;;  %v598_v32 = vld [vmem:[%s1355_s0 + $0x430] sm:$0xff] }
  0x1e   :  { %v679_v30 = vpack.c.bf16 %v357_v18, %v357_v18  ;;  %v273_v31 = vmax.f32 %v230_v19, %v597_v14  ;;  %v146_v33 = vmax.f32 %v103_v20, %v536_v17  ;;  %v578_v34 = vld [vmem:[%s1355_s0 + $0x390] sm:$0xff]  ;;  %v537_v35 = vld [vmem:[%s1355_s0 + $0x248] sm:$0xff]  ;;  %v19_v39 = vld [vmem:[%s1355_s0 + $0x58] sm:$0xff] }
  0x1f   :  { %v358_v36 = vmax.f32 %v315_v24, %v638_v8  ;;  %v231_v37 = vmax.f32 %v188_v27, %v577_v16  ;;  %v104_v38 = vmax.f32 %v61_v29, %v516_v23  ;;  %v496_v40 = vld [vmem:[%s1355_s0 + $0x100] sm:$0xff]  ;;  %v517_v41 = vld [vmem:[%s1355_s0 + $0x1a8] sm:$0xff]  ;;  %v619_v43 = vld [vmem:[%s1355_s0 + $0x4d8] sm:$0xff] }
  0x20   :  { %464 = vst.msk [vmem:[%s1356_s1 + $0x14] sm:$0xf] %vm458_vm0, %v679_v30  ;;  %v316_v42 = vmax.f32 %v273_v31, %v618_v25  ;;  %v640_v44 = vld [vmem:[%s1355_s0 + $0x580] sm:$0xff]  ;;  %v189_v45 = vmax.f32 %v146_v33, %v557_v28  ;;  %v558_v46 = vld [vmem:[%s1355_s0 + $0x2f0] sm:$0xff]  ;;  %v62_v47 = vmax.f32 %v19_v39, %v496_v40  ;;  %v599_v50 = vld [vmem:[%s1355_s0 + $0x438] sm:$0xff] }
  0x21   :  { %v680_v48 = vpack.c.bf16 %v358_v36, %v358_v36  ;;  %v274_v49 = vmax.f32 %v231_v37, %v598_v32  ;;  %v147_v51 = vmax.f32 %v104_v38, %v537_v35  ;;  %v579_v52 = vld [vmem:[%s1355_s0 + $0x398] sm:$0xff]  ;;  %v538_v53 = vld [vmem:[%s1355_s0 + $0x250] sm:$0xff]  ;;  %v20_v57 = vld [vmem:[%s1355_s0 + $0x60] sm:$0xff] }
  0x22   :  { %v359_v54 = vmax.f32 %v316_v42, %v639_v26  ;;  %v232_v55 = vmax.f32 %v189_v45, %v578_v34  ;;  %v105_v56 = vmax.f32 %v62_v47, %v517_v41  ;;  %v497_v58 = vld [vmem:[%s1355_s0 + $0x108] sm:$0xff]  ;;  %v518_v59 = vld [vmem:[%s1355_s0 + $0x1b0] sm:$0xff]  ;;  %v620_v61 = vld [vmem:[%s1355_s0 + $0x4e0] sm:$0xff] }
  0x23   :  { %465 = vst.msk [vmem:[%s1356_s1 + $0x18] sm:$0xf] %vm458_vm0, %v680_v48  ;;  %v317_v60 = vmax.f32 %v274_v49, %v619_v43  ;;  %v641_v62 = vld [vmem:[%s1355_s0 + $0x588] sm:$0xff]  ;;  %v190_v63 = vmax.f32 %v147_v51, %v558_v46  ;;  %v559_v0 = vld [vmem:[%s1355_s0 + $0x2f8] sm:$0xff]  ;;  %v63_v1 = vmax.f32 %v20_v57, %v497_v58  ;;  %v600_v4 = vld [vmem:[%s1355_s0 + $0x440] sm:$0xff] }
  0x24   :  { %v681_v2 = vpack.c.bf16 %v359_v54, %v359_v54  ;;  %v275_v3 = vmax.f32 %v232_v55, %v599_v50  ;;  %v148_v5 = vmax.f32 %v105_v56, %v538_v53  ;;  %v580_v6 = vld [vmem:[%s1355_s0 + $0x3a0] sm:$0xff]  ;;  %v539_v7 = vld [vmem:[%s1355_s0 + $0x258] sm:$0xff]  ;;  %v21_v11 = vld [vmem:[%s1355_s0 + $0x68] sm:$0xff] }
  0x25   :  { %v360_v8 = vmax.f32 %v317_v60, %v640_v44  ;;  %v233_v9 = vmax.f32 %v190_v63, %v579_v52  ;;  %v106_v10 = vmax.f32 %v63_v1, %v518_v59  ;;  %v498_v12 = vld [vmem:[%s1355_s0 + $0x110] sm:$0xff]  ;;  %v519_v13 = vld [vmem:[%s1355_s0 + $0x1b8] sm:$0xff]  ;;  %v621_v15 = vld [vmem:[%s1355_s0 + $0x4e8] sm:$0xff] }
  0x26   :  { %466 = vst.msk [vmem:[%s1356_s1 + $0x1c] sm:$0xf] %vm458_vm0, %v681_v2  ;;  %v318_v14 = vmax.f32 %v275_v3, %v620_v61  ;;  %v642_v16 = vld [vmem:[%s1355_s0 + $0x590] sm:$0xff]  ;;  %v191_v17 = vmax.f32 %v148_v5, %v559_v0  ;;  %v560_v18 = vld [vmem:[%s1355_s0 + $0x300] sm:$0xff]  ;;  %v64_v19 = vmax.f32 %v21_v11, %v498_v12  ;;  %v601_v22 = vld [vmem:[%s1355_s0 + $0x448] sm:$0xff] }
  0x27   :  { %v682_v20 = vpack.c.bf16 %v360_v8, %v360_v8  ;;  %v276_v21 = vmax.f32 %v233_v9, %v600_v4  ;;  %v149_v23 = vmax.f32 %v106_v10, %v539_v7  ;;  %v581_v24 = vld [vmem:[%s1355_s0 + $0x3a8] sm:$0xff]  ;;  %v540_v25 = vld [vmem:[%s1355_s0 + $0x260] sm:$0xff]  ;;  %v22_v29 = vld [vmem:[%s1355_s0 + $0x70] sm:$0xff] }
  0x28   :  { %v361_v26 = vmax.f32 %v318_v14, %v641_v62  ;;  %v234_v27 = vmax.f32 %v191_v17, %v580_v6  ;;  %v107_v28 = vmax.f32 %v64_v19, %v519_v13  ;;  %v499_v30 = vld [vmem:[%s1355_s0 + $0x118] sm:$0xff]  ;;  %v520_v31 = vld [vmem:[%s1355_s0 + $0x1c0] sm:$0xff]  ;;  %v622_v33 = vld [vmem:[%s1355_s0 + $0x4f0] sm:$0xff] }
  0x29   :  { %467 = vst.msk [vmem:[%s1356_s1 + $0x20] sm:$0xf] %vm458_vm0, %v682_v20  ;;  %v319_v32 = vmax.f32 %v276_v21, %v621_v15  ;;  %v643_v34 = vld [vmem:[%s1355_s0 + $0x598] sm:$0xff]  ;;  %v192_v35 = vmax.f32 %v149_v23, %v560_v18  ;;  %v561_v36 = vld [vmem:[%s1355_s0 + $0x308] sm:$0xff]  ;;  %v65_v37 = vmax.f32 %v22_v29, %v499_v30  ;;  %v602_v40 = vld [vmem:[%s1355_s0 + $0x450] sm:$0xff] }
  0x2a   :  { %v683_v38 = vpack.c.bf16 %v361_v26, %v361_v26  ;;  %v277_v39 = vmax.f32 %v234_v27, %v601_v22  ;;  %v150_v41 = vmax.f32 %v107_v28, %v540_v25  ;;  %v582_v42 = vld [vmem:[%s1355_s0 + $0x3b0] sm:$0xff]  ;;  %v541_v43 = vld [vmem:[%s1355_s0 + $0x268] sm:$0xff]  ;;  %v23_v47 = vld [vmem:[%s1355_s0 + $0x78] sm:$0xff] }
  0x2b   :  { %v362_v44 = vmax.f32 %v319_v32, %v642_v16  ;;  %v235_v45 = vmax.f32 %v192_v35, %v581_v24  ;;  %v108_v46 = vmax.f32 %v65_v37, %v520_v31  ;;  %v500_v48 = vld [vmem:[%s1355_s0 + $0x120] sm:$0xff]  ;;  %v521_v49 = vld [vmem:[%s1355_s0 + $0x1c8] sm:$0xff]  ;;  %v623_v51 = vld [vmem:[%s1355_s0 + $0x4f8] sm:$0xff] }
  0x2c   :  { %468 = vst.msk [vmem:[%s1356_s1 + $0x24] sm:$0xf] %vm458_vm0, %v683_v38  ;;  %v320_v50 = vmax.f32 %v277_v39, %v622_v33  ;;  %v644_v52 = vld [vmem:[%s1355_s0 + $0x5a0] sm:$0xff]  ;;  %v193_v53 = vmax.f32 %v150_v41, %v561_v36  ;;  %v562_v54 = vld [vmem:[%s1355_s0 + $0x310] sm:$0xff]  ;;  %v66_v55 = vmax.f32 %v23_v47, %v500_v48  ;;  %v603_v58 = vld [vmem:[%s1355_s0 + $0x458] sm:$0xff] }
  0x2d   :  { %v684_v56 = vpack.c.bf16 %v362_v44, %v362_v44  ;;  %v278_v57 = vmax.f32 %v235_v45, %v602_v40  ;;  %v151_v59 = vmax.f32 %v108_v46, %v541_v43  ;;  %v583_v60 = vld [vmem:[%s1355_s0 + $0x3b8] sm:$0xff]  ;;  %v542_v61 = vld [vmem:[%s1355_s0 + $0x270] sm:$0xff]  ;;  %v24_v1 = vld [vmem:[%s1355_s0 + $0x80] sm:$0xff] }
  0x2e   :  { %v363_v62 = vmax.f32 %v320_v50, %v643_v34  ;;  %v236_v63 = vmax.f32 %v193_v53, %v582_v42  ;;  %v109_v0 = vmax.f32 %v66_v55, %v521_v49  ;;  %v501_v2 = vld [vmem:[%s1355_s0 + $0x128] sm:$0xff]  ;;  %v522_v3 = vld [vmem:[%s1355_s0 + $0x1d0] sm:$0xff]  ;;  %v624_v5 = vld [vmem:[%s1355_s0 + $0x500] sm:$0xff] }
  0x2f   :  { %469 = vst.msk [vmem:[%s1356_s1 + $0x28] sm:$0xf] %vm458_vm0, %v684_v56  ;;  %v321_v4 = vmax.f32 %v278_v57, %v623_v51  ;;  %v645_v6 = vld [vmem:[%s1355_s0 + $0x5a8] sm:$0xff]  ;;  %v194_v7 = vmax.f32 %v151_v59, %v562_v54  ;;  %v563_v8 = vld [vmem:[%s1355_s0 + $0x318] sm:$0xff]  ;;  %v67_v9 = vmax.f32 %v24_v1, %v501_v2  ;;  %v604_v12 = vld [vmem:[%s1355_s0 + $0x460] sm:$0xff] }
  0x30   :  { %v685_v10 = vpack.c.bf16 %v363_v62, %v363_v62  ;;  %v279_v11 = vmax.f32 %v236_v63, %v603_v58  ;;  %v152_v13 = vmax.f32 %v109_v0, %v542_v61  ;;  %v584_v14 = vld [vmem:[%s1355_s0 + $0x3c0] sm:$0xff]  ;;  %v543_v15 = vld [vmem:[%s1355_s0 + $0x278] sm:$0xff]  ;;  %v25_v19 = vld [vmem:[%s1355_s0 + $0x88] sm:$0xff] }
  0x31   :  { %v364_v16 = vmax.f32 %v321_v4, %v644_v52  ;;  %v237_v17 = vmax.f32 %v194_v7, %v583_v60  ;;  %v110_v18 = vmax.f32 %v67_v9, %v522_v3  ;;  %v502_v20 = vld [vmem:[%s1355_s0 + $0x130] sm:$0xff]  ;;  %v523_v21 = vld [vmem:[%s1355_s0 + $0x1d8] sm:$0xff]  ;;  %v625_v23 = vld [vmem:[%s1355_s0 + $0x508] sm:$0xff] }
  0x32   :  { %470 = vst.msk [vmem:[%s1356_s1 + $0x2c] sm:$0xf] %vm458_vm0, %v685_v10  ;;  %v322_v22 = vmax.f32 %v279_v11, %v624_v5  ;;  %v646_v24 = vld [vmem:[%s1355_s0 + $0x5b0] sm:$0xff]  ;;  %v195_v25 = vmax.f32 %v152_v13, %v563_v8  ;;  %v564_v26 = vld [vmem:[%s1355_s0 + $0x320] sm:$0xff]  ;;  %v68_v27 = vmax.f32 %v25_v19, %v502_v20  ;;  %v605_v30 = vld [vmem:[%s1355_s0 + $0x468] sm:$0xff] }
  0x33   :  { %v686_v28 = vpack.c.bf16 %v364_v16, %v364_v16  ;;  %v280_v29 = vmax.f32 %v237_v17, %v604_v12  ;;  %v153_v31 = vmax.f32 %v110_v18, %v543_v15  ;;  %v585_v32 = vld [vmem:[%s1355_s0 + $0x3c8] sm:$0xff]  ;;  %v544_v33 = vld [vmem:[%s1355_s0 + $0x280] sm:$0xff]  ;;  %v26_v37 = vld [vmem:[%s1355_s0 + $0x90] sm:$0xff] }
  0x34   :  { %v365_v34 = vmax.f32 %v322_v22, %v645_v6  ;;  %v238_v35 = vmax.f32 %v195_v25, %v584_v14  ;;  %v111_v36 = vmax.f32 %v68_v27, %v523_v21  ;;  %v503_v38 = vld [vmem:[%s1355_s0 + $0x138] sm:$0xff]  ;;  %v524_v39 = vld [vmem:[%s1355_s0 + $0x1e0] sm:$0xff]  ;;  %v626_v41 = vld [vmem:[%s1355_s0 + $0x510] sm:$0xff] }
  0x35   :  { %471 = vst.msk [vmem:[%s1356_s1 + $0x30] sm:$0xf] %vm458_vm0, %v686_v28  ;;  %v323_v40 = vmax.f32 %v280_v29, %v625_v23  ;;  %v647_v42 = vld [vmem:[%s1355_s0 + $0x5b8] sm:$0xff]  ;;  %v196_v43 = vmax.f32 %v153_v31, %v564_v26  ;;  %v565_v44 = vld [vmem:[%s1355_s0 + $0x328] sm:$0xff]  ;;  %v69_v45 = vmax.f32 %v26_v37, %v503_v38  ;;  %v606_v48 = vld [vmem:[%s1355_s0 + $0x470] sm:$0xff] }
  0x36   :  { %v687_v46 = vpack.c.bf16 %v365_v34, %v365_v34  ;;  %v281_v47 = vmax.f32 %v238_v35, %v605_v30  ;;  %v154_v49 = vmax.f32 %v111_v36, %v544_v33  ;;  %v586_v50 = vld [vmem:[%s1355_s0 + $0x3d0] sm:$0xff]  ;;  %v545_v51 = vld [vmem:[%s1355_s0 + $0x288] sm:$0xff]  ;;  %v27_v55 = vld [vmem:[%s1355_s0 + $0x98] sm:$0xff] }
  0x37   :  { %v366_v52 = vmax.f32 %v323_v40, %v646_v24  ;;  %v239_v53 = vmax.f32 %v196_v43, %v585_v32  ;;  %v112_v54 = vmax.f32 %v69_v45, %v524_v39  ;;  %v504_v56 = vld [vmem:[%s1355_s0 + $0x140] sm:$0xff]  ;;  %v525_v57 = vld [vmem:[%s1355_s0 + $0x1e8] sm:$0xff]  ;;  %v627_v59 = vld [vmem:[%s1355_s0 + $0x518] sm:$0xff] }
  0x38   :  { %472 = vst.msk [vmem:[%s1356_s1 + $0x34] sm:$0xf] %vm458_vm0, %v687_v46  ;;  %v324_v58 = vmax.f32 %v281_v47, %v626_v41  ;;  %v648_v60 = vld [vmem:[%s1355_s0 + $0x5c0] sm:$0xff]  ;;  %v197_v61 = vmax.f32 %v154_v49, %v565_v44  ;;  %v566_v62 = vld [vmem:[%s1355_s0 + $0x330] sm:$0xff]  ;;  %v70_v63 = vmax.f32 %v27_v55, %v504_v56  ;;  %v607_v2 = vld [vmem:[%s1355_s0 + $0x478] sm:$0xff] }
  0x39   :  { %v688_v0 = vpack.c.bf16 %v366_v52, %v366_v52  ;;  %v282_v1 = vmax.f32 %v239_v53, %v606_v48  ;;  %v155_v3 = vmax.f32 %v112_v54, %v545_v51  ;;  %v587_v4 = vld [vmem:[%s1355_s0 + $0x3d8] sm:$0xff]  ;;  %v546_v5 = vld [vmem:[%s1355_s0 + $0x290] sm:$0xff]  ;;  %v28_v9 = vld [vmem:[%s1355_s0 + $0xa0] sm:$0x3] }
  0x3a   :  { %v367_v6 = vmax.f32 %v324_v58, %v647_v42  ;;  %v240_v7 = vmax.f32 %v197_v61, %v586_v50  ;;  %v113_v8 = vmax.f32 %v70_v63, %v525_v57  ;;  %v505_v10 = vld [vmem:[%s1355_s0 + $0x148] sm:$0x3]  ;;  %v526_v11 = vld [vmem:[%s1355_s0 + $0x1f0] sm:$0x3]  ;;  %v628_v13 = vld [vmem:[%s1355_s0 + $0x520] sm:$0xff] }
  0x3b   :  { %473 = vst.msk [vmem:[%s1356_s1 + $0x38] sm:$0xf] %vm458_vm0, %v688_v0  ;;  %v325_v12 = vmax.f32 %v282_v1, %v627_v59  ;;  %v198_v14 = vmax.f32 %v155_v3, %v566_v62  ;;  %v567_v15 = vld [vmem:[%s1355_s0 + $0x338] sm:$0xff]  ;;  %v71_v16 = vmax.f32 %v28_v9, %v505_v10  ;;  %v608_v19 = vld [vmem:[%s1355_s0 + $0x480] sm:$0xff]  ;;  %v649_v23 = vld [vmem:[%s1355_s0 + $0x5c8] sm:$0xff] }
  0x3c   :  { %v689_v17 = vpack.c.bf16 %v367_v6, %v367_v6  ;;  %v283_v18 = vmax.f32 %v240_v7, %v607_v2  ;;  %v156_v20 = vmax.f32 %v113_v8, %v546_v5  ;;  %v547_v21 = vld [vmem:[%s1355_s0 + $0x298] sm:$0x3]  ;;  %v588_v25 = vld [vmem:[%s1355_s0 + $0x3e0] sm:$0xff]  ;;  %v629_v28 = vld [vmem:[%s1355_s0 + $0x528] sm:$0xff] }
  0x3d   :  { %v368_v22 = vmax.f32 %v325_v12, %v648_v60  ;;  %v241_v24 = vmax.f32 %v198_v14, %v587_v4  ;;  %v114_v26 = vmax.f32 %v71_v16, %v526_v11  ;;  %v568_v30 = vld [vmem:[%s1355_s0 + $0x340] sm:$0x3]  ;;  %v609_v33 = vld [vmem:[%s1355_s0 + $0x488] sm:$0xff]  ;;  %v650_v36 = vld [vmem:[%s1355_s0 + $0x5d0] sm:$0xff] }
  0x3e   :  { %474 = vst.msk [vmem:[%s1356_s1 + $0x3c] sm:$0xf] %vm458_vm0, %v689_v17  ;;  %v326_v27 = vmax.f32 %v283_v18, %v628_v13  ;;  %v199_v29 = vmax.f32 %v156_v20, %v567_v15  ;;  %v589_v38 = vld [vmem:[%s1355_s0 + $0x3e8] sm:$0x3]  ;;  %v630_v40 = vld [vmem:[%s1355_s0 + $0x530] sm:$0xff]  ;;  %v651_v46 = vld [vmem:[%s1355_s0 + $0x5d8] sm:$0xff] }
  0x3f   :  { %v690_v31 = vpack.c.bf16 %v368_v22, %v368_v22  ;;  %v284_v32 = vmax.f32 %v241_v24, %v608_v19  ;;  %v157_v34 = vmax.f32 %v114_v26, %v547_v21  ;;  %v610_v44 = vld [vmem:[%s1355_s0 + $0x490] sm:$0x3]  ;;  %v631_v49 = vld [vmem:[%s1355_s0 + $0x538] sm:$0x3]  ;;  %v652_v53 = vld [vmem:[%s1355_s0 + $0x5e0] sm:$0x3] }
  0x40   :  { %v369_v35 = vmax.f32 %v326_v27, %v649_v23  ;;  %v242_v37 = vmax.f32 %v199_v29, %v588_v25 }
  0x41   :  { %475 = vst.msk [vmem:[%s1356_s1 + $0x40] sm:$0xf] %vm458_vm0, %v690_v31  ;;  %v327_v39 = vmax.f32 %v284_v32, %v629_v28  ;;  %v200_v41 = vmax.f32 %v157_v34, %v568_v30 }
  0x42   :  { %v691_v42 = vpack.c.bf16 %v369_v35, %v369_v35  ;;  %v285_v43 = vmax.f32 %v242_v37, %v609_v33 }
  0x43   :  { %v370_v45 = vmax.f32 %v327_v39, %v650_v36  ;;  %v243_v47 = vmax.f32 %v200_v41, %v589_v38 }
  0x44   :  { %476 = vst.msk [vmem:[%s1356_s1 + $0x44] sm:$0xf] %vm458_vm0, %v691_v42  ;;  %v328_v48 = vmax.f32 %v285_v43, %v630_v40 }
  0x45   :  { %v692_v50 = vpack.c.bf16 %v370_v45, %v370_v45  ;;  %v286_v51 = vmax.f32 %v243_v47, %v610_v44 }
  0x46   :  { %v371_v52 = vmax.f32 %v328_v48, %v651_v46 }
  0x47   :  { %477 = vst.msk [vmem:[%s1356_s1 + $0x48] sm:$0xf] %vm458_vm0, %v692_v50  ;;  %v329_v54 = vmax.f32 %v286_v51, %v631_v49 }
  0x48   :  { %v693_v55 = vpack.c.bf16 %v371_v52, %v371_v52 }
  0x49   :  { %v372_v56 = vmax.f32 %v329_v54, %v652_v53 }
  0x4a   :  { %478 = vst.msk [vmem:[%s1356_s1 + $0x4c] sm:$0xf] %vm458_vm0, %v693_v55 }
  0x4b   :  { %v694_v57 = vpack.c.bf16 %v372_v56, %v372_v56 }
  0x4d   :  { %480 = vst.msk [vmem:[%s1356_s1 + $0x50] sm:$0x1] %vm479_vm1, %v694_v57 }

// kernel: resnet_forward.12
= control target key start
LH: loop header
LB: loop body
LE: loop exit
PB: predicated region body
PF: predicated region fallthrough
CT: control target
= control target key end

     0   :  { %v1672_v24 = vmov 0.0   ;;  %vm1673_vm0 = vmmov 0   ;;  %vm640_vm1 = vcmask 523264   ;;  %vm1140_vm2 = vcmask 519168   ;;  %s2170_s1 = inlined_call_operand.vmem [shape: bf16[576,64], index: 1, kind: input, shape index: {}]   ;;  %s2171_s0 = inlined_call_operand.vmem [shape: bf16[162,576], index: 0, kind: input, shape index: {}]   ;;  %s2172_s2 = inlined_call_operand.vmem [shape: f32[1,64], index: 2, kind: input, shape index: {}]   ;;  %s2173_s3 = inlined_call_operand.vmem [shape: bf16[162,64], index: 3, kind: output, shape index: {}]  }
   0x1   :  { %v1561_v0 = vld [vmem:[%s2170_s1 + $0x40] sm:$0xff]   ;;  %v1563_v2 = vld [vmem:[%s2170_s1 + $0x48] sm:$0xff]   ;;  %v1565_v4 = vld [vmem:[%s2170_s1 + $0x50] sm:$0xff]   ;;  %vm1161_vm3 = vcmask 516096  }
   0x2   :  { %v1562_v1 = vld [vmem:[%s2170_s1] sm:$0xff]   ;;  %1312 = vmatprep.subr.bf16.mxu0 %v1561_v0  ;;  %1543 = vmatprep.subr.bf16.mxu1 %v1561_v0  ;;  %v1564_v3 = vld [vmem:[%s2170_s1 + $0x8] sm:$0xff]   ;;  %v1566_v5 = vld [vmem:[%s2170_s1 + $0x10] sm:$0xff]  }
   0x3   :  { %1313 = vmatpush3.bf16.msra.mxu0 %v1562_v1  ;;  %1551 = vmatpush3.bf16.msra.mxu1 %v1562_v1  ;;  %v1567_v6 = vld [vmem:[%s2170_s1 + $0x58] sm:$0xff]   ;;  %v1569_v8 = vld [vmem:[%s2170_s1 + $0x60] sm:$0xff]   ;;  %v1571_v10 = vld [vmem:[%s2170_s1 + $0x68] sm:$0xff]  }
   0x4   :  { %1314 = vmatprep.subr.bf16.mxu0 %v1563_v2  ;;  %1544 = vmatprep.subr.bf16.mxu1 %v1563_v2  ;;  %v1568_v7 = vld [vmem:[%s2170_s1 + $0x18] sm:$0xff]   ;;  %v1570_v9 = vld [vmem:[%s2170_s1 + $0x20] sm:$0xff]   ;;  %v1582_v12 = vld [vmem:[%s2171_s0 + $0xf4] ss:$20 sps:$4 sm:$0xff]  }
   0x5   :  { %v1579_v11 = vld [vmem:[%s2171_s0 + $0x4] ss:$20 sps:$4 sm:$0xff]   ;;  %v1572_v13 = vld [vmem:[%s2170_s1 + $0x28] sm:$0xff]   ;;  %v1573_v14 = vld [vmem:[%s2170_s1 + $0x70] sm:$0xff]   ;;  %754 = vmatprep.mubr.bf16.mxu1 %v1582_v12 }
   0x6   :  { %706 = vmatprep.mubr.bf16.mxu0 %v1579_v11  ;;  %v1574_v15 = vld [vmem:[%s2170_s1 + $0x30] sm:$0xff]   ;;  %v1575_v16 = vld [vmem:[%s2170_s1 + $0x78] sm:$0xff]   ;;  %v1584_v18 = vld [vmem:[%s2170_s1 + $0xc0] sm:$0xff]  }
   0x7   :  { %1315 = vmatpush3.bf16.msra.mxu0 %v1564_v3  ;;  %1552 = vmatpush3.bf16.msra.mxu1 %v1564_v3  ;;  %v1576_v17 = vld [vmem:[%s2170_s1 + $0x38] sm:$0xff]   ;;  %v1577_v19 = vld [vmem:[%s2171_s0] ss:$20 sps:$4 sm:$0xff]   ;;  %v1580_v20 = vld [vmem:[%s2171_s0 + $0xf0] ss:$20 sps:$4 sm:$0xff]  }
   0x8   :  { %1316 = vmatprep.subr.bf16.mxu0 %v1565_v4  ;;  %1545 = vmatprep.subr.bf16.mxu1 %v1565_v4  ;;  %v1583_v21 = vld [vmem:[%s2170_s1 + $0x100] sm:$0xff]   ;;  %v1588_v25 = vld [vmem:[%s2171_s0 + $0x11c] ss:$20 sps:$4 sm:$0xff]   ;;  %v1592_v26 = vld [vmem:[%s2170_s1 + $0xc8] sm:$0xff]  }
   0x9   :  { %v1585_v22 = vld [vmem:[%s2170_s1 + $0x80] sm:$0xff]   ;;  %v1593_v27 = vld [vmem:[%s2170_s1 + $0x88] sm:$0xff]   ;;  %v1594_v30 = vld [vmem:[%s2170_s1 + $0xd0] sm:$0xff]  }
   0xa   :  { %v1586_v23 = vld [vmem:[%s2171_s0 + $0x2c] ss:$20 sps:$4 sm:$0xff]   ;;  %v1590_v29 = vld [vmem:[%s2171_s0 + $0x28] ss:$20 sps:$4 sm:$0xff]   ;;  %v1596_v32 = vld [vmem:[%s2170_s1 + $0x90] sm:$0xff]  }
   0xb   :  { %1317 = vmatpush3.bf16.msra.mxu0 %v1566_v5  ;;  %1553 = vmatpush3.bf16.msra.mxu1 %v1566_v5  ;;  %v1595_v28 = vld [vmem:[%s2170_s1 + $0x108] sm:$0xff]   ;;  %v1599_v34 = vld [vmem:[%s2171_s0 + $0x144] ss:$20 sps:$4 sm:$0xff]   ;;  %v1613_v36 = vld [vmem:[%s2170_s1 + $0x110] sm:$0xff]  }
   0xc   :  { %1318 = vmatprep.subr.bf16.mxu0 %v1567_v6  ;;  %1546 = vmatprep.subr.bf16.mxu1 %v1567_v6  ;;  %v1591_v31 = vld [vmem:[%s2171_s0 + $0x118] ss:$20 sps:$4 sm:$0xff]   ;;  %v1597_v33 = vld [vmem:[%s2171_s0 + $0x54] ss:$20 sps:$4 sm:$0xff]   ;;  %v1601_v38 = vld [vmem:[%s2171_s0 + $0x50] ss:$20 sps:$4 sm:$0xff]  }
   0xd   :  { %v1603_v35 = vld [vmem:[%s2170_s1 + $0xd8] sm:$0xff]   ;;  %v1602_v39 = vld [vmem:[%s2171_s0 + $0x140] ss:$20 sps:$4 sm:$0xff]   ;;  %v1614_v45 = vld [vmem:[%s2170_s1 + $0xe8] sm:$0xff]  }
   0xe   :  { %v1604_v37 = vld [vmem:[%s2170_s1 + $0x98] sm:$0xff]   ;;  %v1609_v40 = vld [vmem:[%s2170_s1 + $0xe0] sm:$0xff]   ;;  %v1615_v46 = vld [vmem:[%s2170_s1 + $0xa8] sm:$0xff]  }
   0xf   :  { %1319 = vmatpush3.bf16.msra.mxu0 %v1568_v7  ;;  %1554 = vmatpush3.bf16.msra.mxu1 %v1568_v7  ;;  %v1605_v41 = vld [vmem:[%s2171_s0 + $0x7c] ss:$20 sps:$4 sm:$0xff]   ;;  %v1607_v42 = vld [vmem:[%s2171_s0 + $0x16c] ss:$20 sps:$4 sm:$0xff]   ;;  %v1616_v51 = vld [vmem:[%s2171_s0 + $0xa4] ss:$20 sps:$4 sm:$0xff]  }
  0x10   :  { %1320 = vmatprep.subr.bf16.mxu0 %v1569_v8  ;;  %1547 = vmatprep.subr.bf16.mxu1 %v1569_v8  ;;  %v1612_v43 = vld [vmem:[%s2170_s1 + $0xa0] sm:$0xff]   ;;  %v1625_v44 = vld [vmem:[%s2170_s1 + $0x118] sm:$0xff]   ;;  %v75_v47 = vld [vmem:[%s2171_s0 + $0x190] sm:$0x11] }
  0x11   :  { %v1621_v48 = vld [vmem:[%s2170_s1 + $0xf0] sm:$0xff]   ;;  %v1610_v49 = vld [vmem:[%s2171_s0 + $0x78] ss:$20 sps:$4 sm:$0xff]   ;;  %v1611_v50 = vld [vmem:[%s2171_s0 + $0x168] ss:$20 sps:$4 sm:$0xff]   ;;  %v1219_v52 = vcombine.high %v75_v47, %v75_v47  ;;  %v1218_v57 = vcombine.low %v75_v47, %v75_v47 }
  0x12   :  { %v1622_v53 = vld [vmem:[%s2170_s1 + $0xb0] sm:$0xff]   ;;  %v1623_v54 = vld [vmem:[%s2170_s1 + $0xf8] sm:$0xff]   ;;  %v1626_v58 = vld [vmem:[%s2171_s0 + $0xcc] ss:$20 sps:$4 sm:$0xff]  }
  0x13   :  { %1321 = vmatpush3.bf16.msra.mxu0 %v1570_v9  ;;  %1555 = vmatpush3.bf16.msra.mxu1 %v1570_v9  ;;  %v1624_v55 = vld [vmem:[%s2170_s1 + $0xb8] sm:$0xff]   ;;  %v1619_v56 = vld [vmem:[%s2171_s0 + $0xa0] ss:$20 sps:$4 sm:$0xff]   ;;  %v1634_v63 = vld [vmem:[%s2171_s0 + $0x30] ss:$20 sps:$4 sm:$0xff]  }
  0x14   :  { %1322 = vmatprep.subr.bf16.mxu0 %v1571_v10  ;;  %1548 = vmatprep.subr.bf16.mxu1 %v1571_v10  ;;  %v1630_v59 = vld [vmem:[%s2171_s0 + $0xc] ss:$20 sps:$4 sm:$0xff]   ;;  %v1628_v60 = vld [vmem:[%s2171_s0 + $0x8] ss:$20 sps:$4 sm:$0xff]   ;;  %v1635_v0 = vld [vmem:[%s2171_s0 + $0x10] ss:$20 sps:$4 sm:$0xff]  }
  0x15   :  { %v1631_v61 = vld [vmem:[%s2171_s0 + $0xc8] ss:$20 sps:$4 sm:$0xff]   ;;  %v1638_v2 = vld [vmem:[%s2171_s0 + $0x58] ss:$20 sps:$4 sm:$0xff]   ;;  %v1642_v5 = vld [vmem:[%s2171_s0 + $0x80] ss:$20 sps:$4 sm:$0xff]  }
  0x16   :  { %v1632_v62 = vld [vmem:[%s2171_s0 + $0x34] ss:$20 sps:$4 sm:$0xff]   ;;  %v1636_v1 = vld [vmem:[%s2171_s0 + $0x5c] ss:$20 sps:$4 sm:$0xff]   ;;  %v1639_v3 = vld [vmem:[%s2171_s0 + $0x38] ss:$20 sps:$4 sm:$0xff]  }
  0x17   :  { %1323 = vmatpush3.bf16.msra.mxu0 %v1572_v13  ;;  %1556 = vmatpush3.bf16.msra.mxu1 %v1572_v13  ;;  %v1640_v4 = vld [vmem:[%s2171_s0 + $0x84] ss:$20 sps:$4 sm:$0xff]   ;;  %v1643_v6 = vld [vmem:[%s2171_s0 + $0x60] ss:$20 sps:$4 sm:$0xff]   ;;  %v1646_v8 = vld [vmem:[%s2171_s0 + $0xa8] ss:$20 sps:$4 sm:$0xff]  }
  0x18   :  { %1324 = vmatprep.subr.bf16.mxu0 %v1573_v14  ;;  %1549 = vmatprep.subr.bf16.mxu1 %v1573_v14  ;;  %v1644_v7 = vld [vmem:[%s2171_s0 + $0xac] ss:$20 sps:$4 sm:$0xff]   ;;  %v1647_v9 = vld [vmem:[%s2171_s0 + $0x88] ss:$20 sps:$4 sm:$0xff]   ;;  %v1650_v11 = vld [vmem:[%s2171_s0 + $0xd0] ss:$20 sps:$4 sm:$0xff]  }
  0x19   :  { %v1648_v10 = vld [vmem:[%s2171_s0 + $0xd4] ss:$20 sps:$4 sm:$0xff]   ;;  %v1651_v12 = vld [vmem:[%s2171_s0 + $0xb0] ss:$20 sps:$4 sm:$0xff]   ;;  %v1654_v14 = vld [vmem:[%s2171_s0 + $0xf8] ss:$20 sps:$4 sm:$0xff]  }
  0x1a   :  { %v1652_v13 = vld [vmem:[%s2171_s0 + $0xfc] ss:$20 sps:$4 sm:$0xff]  }
  0x1b   :  { %1325 = vmatpush3.bf16.msra.mxu0 %v1574_v15  ;;  %1557 = vmatpush3.bf16.msra.mxu1 %v1574_v15  ;;  %v1655_v15 = vld [vmem:[%s2171_s0 + $0xd8] ss:$20 sps:$4 sm:$0xff]  }
  0x1c   :  { %1326 = vmatprep.subr.bf16.mxu0 %v1575_v16  ;;  %1550 = vmatprep.subr.bf16.mxu1 %v1575_v16  ;;  %v1656_v16 = vld [vmem:[%s2171_s0 + $0x124] ss:$20 sps:$4 sm:$0xff]  }
  0x1f   :  { %1327 = vmatpush3.bf16.msra.mxu0 %v1576_v17  ;;  %1558 = vmatpush3.bf16.msra.mxu1 %v1576_v17  ;;  %v1658_v17 = vld [vmem:[%s2171_s0 + $0x120] ss:$20 sps:$4 sm:$0xff]  }
  0x20   :  { %1491 = vmatprep.subr.bf16.mxu0 %v1672_v24  ;;  %1394 = vmatprep.subr.bf16.mxu1 %v1584_v18  ;;  %v1659_v18 = vld [vmem:[%s2171_s0 + $0x100] ss:$20 sps:$4 sm:$0xff]  }
  0x22   :  { %707 = vmatmul.mubr.bf16.vlgmr.msra.gmra.mrb[0].mxu0 %v1577_v19  ;;  %755 = vmatmul.mubr.bf16.vlgmr.msra.gmra.mrb[0].mxu1 %v1580_v20  ;;  %v1660_v19 = vld [vmem:[%s2171_s0 + $0x14c] ss:$20 sps:$4 sm:$0xff]   ;;  %v1662_v20 = vld [vmem:[%s2171_s0 + $0x148] ss:$20 sps:$4 sm:$0xff]  }
  0x23   :  { %1492 = vmatpush3.bf16.msra.mxu0 %v1583_v21  ;;  %1395 = vmatpush3.bf16.msra.mxu1 %v1585_v22  ;;  %v1663_v21 = vld [vmem:[%s2171_s0 + $0x128] ss:$20 sps:$4 sm:$0xff]  }
  0x24   :  { %714 = vmatprep.mubr.bf16.mxu0 %v1586_v23  ;;  %762 = vmatprep.mubr.bf16.mxu1 %v1588_v25  ;;  %v1664_v22 = vld [vmem:[%s2171_s0 + $0x174] ss:$20 sps:$4 sm:$0xff]   ;;  %v76_v23 = vld [vmem:[%s2171_s0 + $0x198] sm:$0x11]  ;;  %v1666_v25 = vld [vmem:[%s2171_s0 + $0x170] ss:$20 sps:$4 sm:$0xff]  }
  0x25   :  { %1396 = vmatprep.subr.bf16.mxu1 %v1592_v26  ;;  %1493 = vmatprep.subr.bf16.mxu0 %v1672_v24  ;;  %v1667_v26 = vld [vmem:[%s2171_s0 + $0x150] ss:$20 sps:$4 sm:$0xff]  }
  0x27   :  { %1397 = vmatpush3.bf16.msra.mxu1 %v1593_v27  ;;  %1494 = vmatpush3.bf16.msra.mxu0 %v1595_v28  ;;  %v1221_v27 = vcombine.high %v76_v23, %v76_v23  ;;  %v1220_v28 = vcombine.low %v76_v23, %v76_v23 }
  0x28   :  { %1398 = vmatprep.subr.bf16.mxu1 %v1594_v30  ;;  %1495 = vmatprep.subr.bf16.mxu0 %v1672_v24  ;;  %v1671_v30 = vld [vmem:[%s2171_s0 + $0x1a0] ss:$0 sps:$4 sm:$0x11]  }
  0x2a   :  { %715 = vmatmul.mubr.bf16.gmra.mrb[4].mxu0 %v1590_v29  ;;  %763 = vmatmul.mubr.bf16.gmra.mrb[4].mxu1 %v1591_v31  ;;  %v1670_v29 = vld [vmem:[%s2171_s0 + $0x178] ss:$20 sps:$4 sm:$0xff]  }
  0x2b   :  { %1399 = vmatpush3.bf16.msra.mxu1 %v1596_v32  ;;  %722 = vmatprep.mubr.bf16.mxu0 %v1597_v33 }
  0x2c   :  { %770 = vmatprep.mubr.bf16.mxu1 %v1599_v34  ;;  %1400 = vmatprep.subr.bf16.mxu1 %v1603_v35 }
  0x2d   :  { %1496 = vmatpush3.bf16.msra.mxu0 %v1613_v36 }
  0x2e   :  { %1497 = vmatprep.subr.bf16.mxu0 %v1672_v24 }
  0x2f   :  { %1401 = vmatpush3.bf16.msra.mxu1 %v1604_v37 }
  0x30   :  { %1402 = vmatprep.subr.bf16.mxu1 %v1609_v40 }
  0x31   :  { %1498 = vmatpush3.bf16.msra.mxu0 %v1625_v44 }
  0x32   :  { %723 = vmatmul.mubr.bf16.gmra.mrb[8].mxu0 %v1601_v38  ;;  %771 = vmatmul.mubr.bf16.gmra.mrb[8].mxu1 %v1602_v39 }
  0x33   :  { %730 = vmatprep.mubr.bf16.mxu0 %v1605_v41  ;;  %778 = vmatprep.mubr.bf16.mxu1 %v1607_v42 }
  0x34   :  { %1403 = vmatpush3.bf16.msra.mxu1 %v1612_v43 }
  0x35   :  { %1404 = vmatprep.subr.bf16.mxu1 %v1614_v45 }
  0x38   :  { %1405 = vmatpush3.bf16.msra.mxu1 %v1615_v46 }
  0x39   :  { %1406 = vmatprep.subr.bf16.mxu1 %v1621_v48 }
  0x3a   :  { %731 = vmatmul.mubr.bf16.gmra.mrb[12].mxu0 %v1610_v49  ;;  %779 = vmatmul.mubr.bf16.gmra.mrb[12].mxu1 %v1611_v50 }
  0x3b   :  { %738 = vmatprep.mubr.bf16.mxu0 %v1616_v51  ;;  %786 = vmatprep.mubr.bf16.mxu1 %v1219_v52 }
  0x3c   :  { %1407 = vmatpush3.bf16.msra.mxu1 %v1622_v53 }
  0x3d   :  { %1408 = vmatprep.subr.bf16.mxu1 %v1623_v54 }
  0x40   :  { %1409 = vmatpush3.bf16.msra.mxu1 %v1624_v55 }
  0x42   :  { %739 = vmatmul.mubr.bf16.gmra.mrb[16].mxu0 %v1619_v56  ;;  %787 = vmatmul.mubr.bf16.gmra.mrb[16].mxu1 %v1218_v57 }
  0x43   :  { %746 = vmatprep.mubr.bf16.mxu0 %v1626_v58  ;;  %826 = vmatprep.mubr.bf16.mxu1 %v1630_v59 }
  0x4a   :  { %747 = vmatmul.mubr.bf16.gmra.mrb[20].mxu0 %v1631_v61  ;;  %827 = vmatmul.mubr.bf16.vlgmr.msra.gmra.mrb[20].mxu1 %v1628_v60 }
  0x4b   :  { %834 = vmatprep.mubr.bf16.mxu1 %v1632_v62  ;;  %1499 = vmatprep.mubr.msk.bf16.mxu0 %vm1673_vm0, %v1672_v24  ;;  %v2019_v62 = vld [vmem:[%s2172_s2] ss:$0 sm:$0xff] }
  0x52   :  { %835 = vmatmul.mubr.bf16.gmra.mrb[24].mxu1 %v1634_v63  ;;  %1500 = vmatmul.mubr.msk.bf16.vlgmr.msra.gmra.mrb[24].mxu0 %vm640_vm1, %v1635_v0 }
  0x53   :  { %842 = vmatprep.mubr.bf16.mxu1 %v1636_v1  ;;  %1503 = vmatprep.mubr.msk.bf16.mxu0 %vm1673_vm0, %v1672_v24 }
  0x5a   :  { %843 = vmatmul.mubr.bf16.gmra.mrb[28].mxu1 %v1638_v2  ;;  %1504 = vmatmul.mubr.msk.bf16.gmra.mrb[28].mxu0 %vm640_vm1, %v1639_v3 }
  0x5b   :  { %850 = vmatprep.mubr.bf16.mxu1 %v1640_v4  ;;  %1507 = vmatprep.mubr.msk.bf16.mxu0 %vm1673_vm0, %v1672_v24 }
  0x62   :  { %851 = vmatmul.mubr.bf16.gmra.mrb[32].mxu1 %v1642_v5  ;;  %1508 = vmatmul.mubr.msk.bf16.gmra.mrb[32].mxu0 %vm640_vm1, %v1643_v6 }
  0x63   :  { %858 = vmatprep.mubr.bf16.mxu1 %v1644_v7  ;;  %1511 = vmatprep.mubr.msk.bf16.mxu0 %vm1673_vm0, %v1672_v24 }
  0x6a   :  { %859 = vmatmul.mubr.bf16.gmra.mrb[36].mxu1 %v1646_v8  ;;  %1512 = vmatmul.mubr.msk.bf16.gmra.mrb[36].mxu0 %vm640_vm1, %v1647_v9 }
  0x6b   :  { %866 = vmatprep.mubr.bf16.mxu1 %v1648_v10  ;;  %1515 = vmatprep.mubr.msk.bf16.mxu0 %vm1673_vm0, %v1672_v24 }
  0x72   :  { %867 = vmatmul.mubr.bf16.gmra.mrb[40].mxu1 %v1650_v11  ;;  %1516 = vmatmul.mubr.msk.bf16.gmra.mrb[40].mxu0 %vm640_vm1, %v1651_v12 }
  0x73   :  { %874 = vmatprep.mubr.bf16.mxu1 %v1652_v13  ;;  %1519 = vmatprep.mubr.msk.bf16.mxu0 %vm1673_vm0, %v1672_v24 }
  0x7a   :  { %875 = vmatmul.mubr.bf16.gmra.mrb[44].mxu1 %v1654_v14  ;;  %1520 = vmatmul.mubr.msk.bf16.gmra.mrb[44].mxu0 %vm640_vm1, %v1655_v15 }
  0x7b   :  { %882 = vmatprep.mubr.bf16.mxu1 %v1656_v16  ;;  %1523 = vmatprep.mubr.msk.bf16.mxu0 %vm1673_vm0, %v1672_v24 }
  0x82   :  { %883 = vmatmul.mubr.bf16.gmra.mrb[48].mxu1 %v1658_v17  ;;  %1524 = vmatmul.mubr.msk.bf16.gmra.mrb[48].mxu0 %vm640_vm1, %v1659_v18 }
  0x83   :  { %890 = vmatprep.mubr.bf16.mxu1 %v1660_v19  ;;  %1527 = vmatprep.mubr.msk.bf16.mxu0 %vm1673_vm0, %v1672_v24 }
  0x8a   :  { %891 = vmatmul.mubr.bf16.gmra.mrb[52].mxu1 %v1662_v20  ;;  %1528 = vmatmul.mubr.msk.bf16.gmra.mrb[52].mxu0 %vm640_vm1, %v1663_v21 }
  0x8b   :  { %898 = vmatprep.mubr.bf16.mxu1 %v1664_v22  ;;  %1531 = vmatprep.mubr.msk.bf16.mxu0 %vm1673_vm0, %v1672_v24 }
  0x92   :  { %899 = vmatmul.mubr.bf16.gmra.mrb[56].mxu1 %v1666_v25  ;;  %1532 = vmatmul.mubr.msk.bf16.gmra.mrb[56].mxu0 %vm640_vm1, %v1667_v26 }
  0x93   :  { %906 = vmatprep.mubr.bf16.mxu1 %v1221_v27  ;;  %1535 = vmatprep.mubr.msk.bf16.mxu0 %vm1673_vm0, %v1672_v24 }
  0x9a   :  { %907 = vmatmul.mubr.bf16.gmra.mrb[60].mxu1 %v1220_v28  ;;  %1536 = vmatmul.mubr.msk.bf16.gmra.mrb[60].mxu0 %vm640_vm1, %v1670_v29 }
  0x9b   :  { %1539 = vmatprep.mubr.msk.bf16.mxu0 %vm1673_vm0, %v1672_v24 }
  0xa2   :  { %1540 = vmatmul.mubr.msk.bf16.gmra.mrb[64].mxu0 %vm640_vm1, %v1671_v30 }
  0xf5   :  { %v1328_v31 = vpop.f32.mrb[0].mxu0  ;;  %v1364_v32 = vpop.f32.mrb[0].mxu1 }
  0xf6   :  { %v1329_v33 = vpop.f32.mrb[1].mxu0  ;;  %v1365_v34 = vpop.f32.mrb[1].mxu1 }
  0xf7   :  { %v1998_v35 = vadd.f32 %v1329_v33, %v1328_v31  ;;  %v1331_v36 = vpop.f32.mrb[2].mxu0  ;;  %v2000_v37 = vadd.f32 %v1365_v34, %v1364_v32  ;;  %v1367_v38 = vpop.f32.mrb[2].mxu1 }
  0xf8   :  { %v1332_v39 = vpop.f32.mrb[3].mxu0  ;;  %v1368_v40 = vpop.f32.mrb[3].mxu1 }
  0xf9   :  { %v2002_v41 = vadd.f32 %v1332_v39, %v1331_v36  ;;  %v2004_v24 = vadd.f32 %v1368_v40, %v1367_v38  ;;  %v709_v38 = vadd.f32 %v1998_v35, %v2019_v62 }
  0xfd   :  { %v1334_v42 = vpop.f32.mrb[4].mxu0  ;;  %v1370_v43 = vpop.f32.mrb[4].mxu1 }
  0xfe   :  { %v1335_v44 = vpop.f32.mrb[5].mxu0  ;;  %v1371_v45 = vpop.f32.mrb[5].mxu1 }
  0xff   :  { %v2006_v46 = vadd.f32 %v1335_v44, %v1334_v42  ;;  %v1337_v47 = vpop.f32.mrb[6].mxu0  ;;  %v2008_v48 = vadd.f32 %v1371_v45, %v1370_v43  ;;  %v1373_v49 = vpop.f32.mrb[6].mxu1 }
 0x100   :  { %v1338_v50 = vpop.f32.mrb[7].mxu0  ;;  %v1374_v51 = vpop.f32.mrb[7].mxu1 }
 0x101   :  { %v2010_v52 = vadd.f32 %v1338_v50, %v1337_v47  ;;  %v2012_v53 = vadd.f32 %v1374_v51, %v1373_v49  ;;  %v712_v47 = vadd.f32 %v2002_v41, %v2019_v62 }
 0x105   :  { %v1340_v54 = vpop.f32.mrb[8].mxu0  ;;  %v1376_v55 = vpop.f32.mrb[8].mxu1 }
 0x106   :  { %v1341_v56 = vpop.f32.mrb[9].mxu0  ;;  %v1377_v57 = vpop.f32.mrb[9].mxu1 }
 0x107   :  { %v2014_v58 = vadd.f32 %v1341_v56, %v1340_v54  ;;  %v1343_v59 = vpop.f32.mrb[10].mxu0  ;;  %v1378_v60 = vadd.f32 %v1377_v57, %v1376_v55  ;;  %v1379_v61 = vpop.f32.mrb[10].mxu1 }
 0x108   :  { %v1344_v63 = vpop.f32.mrb[11].mxu0  ;;  %v1380_v0 = vpop.f32.mrb[11].mxu1 }
 0x109   :  { %v2022_v1 = vadd.f32 %v1378_v60, %v2019_v62  ;;  %v2024_v2 = vadd.f32 %v1344_v63, %v1343_v59  ;;  %v1381_v3 = vadd.f32 %v1380_v0, %v1379_v61  ;;  %v717_v60 = vadd.f32 %v2006_v46, %v2019_v62 }
 0x10b   :  { %v2027_v4 = vadd.f32 %v1381_v3, %v2019_v62 }
 0x10d   :  { %v1346_v5 = vpop.f32.mrb[12].mxu0  ;;  %v1382_v6 = vpop.f32.mrb[12].mxu1 }
 0x10e   :  { %v1347_v7 = vpop.f32.mrb[13].mxu0  ;;  %v1383_v8 = vpop.f32.mrb[13].mxu1 }
 0x10f   :  { %v2029_v9 = vadd.f32 %v1347_v7, %v1346_v5  ;;  %v1349_v10 = vpop.f32.mrb[14].mxu0  ;;  %v1384_v11 = vadd.f32 %v1383_v8, %v1382_v6  ;;  %v1385_v12 = vpop.f32.mrb[14].mxu1  ;;  %v720_v7 = vadd.f32 %v2010_v52, %v2019_v62 }
 0x110   :  { %v1350_v13 = vpop.f32.mrb[15].mxu0  ;;  %v1386_v14 = vpop.f32.mrb[15].mxu1 }
 0x111   :  { %v2032_v15 = vadd.f32 %v1384_v11, %v2019_v62  ;;  %v2034_v16 = vadd.f32 %v1350_v13, %v1349_v10  ;;  %v1387_v17 = vadd.f32 %v1386_v14, %v1385_v12 }
 0x113   :  { %v2037_v18 = vadd.f32 %v1387_v17, %v2019_v62 }
 0x115   :  { %v1352_v19 = vpop.f32.mrb[16].mxu0  ;;  %v1388_v20 = vpop.f32.mrb[16].mxu1 }
 0x116   :  { %v1353_v21 = vpop.f32.mrb[17].mxu0  ;;  %v1389_v22 = vpop.f32.mrb[17].mxu1 }
 0x117   :  { %v2039_v23 = vadd.f32 %v1353_v21, %v1352_v19  ;;  %v1355_v25 = vpop.f32.mrb[18].mxu0  ;;  %v1390_v26 = vadd.f32 %v1389_v22, %v1388_v20  ;;  %v1391_v27 = vpop.f32.mrb[18].mxu1  ;;  %v725_v21 = vadd.f32 %v2014_v58, %v2019_v62 }
 0x118   :  { %v1356_v28 = vpop.f32.mrb[19].mxu0  ;;  %v1392_v29 = vpop.f32.mrb[19].mxu1 }
 0x119   :  { %v2042_v30 = vadd.f32 %v1390_v26, %v2019_v62  ;;  %v2044_v31 = vadd.f32 %v1356_v28, %v1355_v25 }
 0x11d   :  { %v1358_v32 = vpop.f32.mrb[20].mxu0  ;;  %v1410_v33 = vpop.f32.mrb[20].mxu1 }
 0x11e   :  { %v1359_v34 = vpop.f32.mrb[21].mxu0  ;;  %v1411_v36 = vpop.f32.mrb[21].mxu1 }
 0x11f   :  { %v2048_v39 = vadd.f32 %v1359_v34, %v1358_v32  ;;  %v1412_v40 = vadd.f32 %v1411_v36, %v1410_v33  ;;  %v1361_v42 = vpop.f32.mrb[22].mxu0  ;;  %v1413_v43 = vpop.f32.mrb[22].mxu1  ;;  %v728_v33 = vadd.f32 %v2024_v2, %v2019_v62 }
 0x120   :  { %v1362_v44 = vpop.f32.mrb[23].mxu0  ;;  %v1414_v45 = vpop.f32.mrb[23].mxu1 }
 0x121   :  { %v2052_v49 = vadd.f32 %v1362_v44, %v1361_v42  ;;  %v1415_v50 = vadd.f32 %v1414_v45, %v1413_v43  ;;  %v829_v51 = vadd.f32 %v1412_v40, %v709_v38 }
 0x123   :  { %v832_v54 = vadd.f32 %v1415_v50, %v712_v47  ;;  %v733_v50 = vadd.f32 %v2029_v9, %v2019_v62 }
 0x125   :  { %v1416_v55 = vpop.f32.mrb[24].mxu1  ;;  %v948_v56 = vpop.f32.mrb[24].mxu0 }
 0x126   :  { %v949_v57 = vadd.f32 %v948_v56, %v829_v51  ;;  %v1417_v59 = vpop.f32.mrb[25].mxu1  ;;  %v1501_v35 = vpop.f32.mrb[25].mxu0 }
 0x127   :  { %v1418_v61 = vadd.f32 %v1417_v59, %v1416_v55  ;;  %v1419_v63 = vpop.f32.mrb[26].mxu1  ;;  %v951_v0 = vpop.f32.mrb[26].mxu0 }
 0x128   :  { %v1034_v3 = vmax.f32 %v949_v57, 0.0  ;;  %v952_v5 = vadd.f32 %v951_v0, %v832_v54  ;;  %v1420_v6 = vpop.f32.mrb[27].mxu1  ;;  %v1502_v41 = vpop.f32.mrb[27].mxu0 }
 0x129   :  { %v1421_v8 = vadd.f32 %v1420_v6, %v1419_v63  ;;  %v837_v10 = vadd.f32 %v1418_v61, %v717_v60  ;;  %v736_v60 = vadd.f32 %v2034_v16, %v2019_v62 }
 0x12a   :  { %v1291_v11 = vpack.c.bf16 %v1034_v3, %v1034_v3  ;;  %v1035_v12 = vmax.f32 %v952_v5, 0.0 }
 0x12b   :  { %v840_v13 = vadd.f32 %v1421_v8, %v720_v7 }
 0x12c   :  { %1141 = vst.msk [vmem:[%s2173_s3] sm:$0xf] %vm1140_vm2, %v1291_v11  ;;  %v1292_v46 = vpack.c.bf16 %v1035_v12, %v1035_v12 }
 0x12d   :  { %v1422_v14 = vpop.f32.mrb[28].mxu1  ;;  %v956_v17 = vpop.f32.mrb[28].mxu0 }
 0x12e   :  { %1142 = vst.msk [vmem:[%s2173_s3 + $0x4] sm:$0xf] %vm1140_vm2, %v1292_v46  ;;  %v957_v52 = vadd.f32 %v956_v17, %v837_v10  ;;  %v1423_v19 = vpop.f32.mrb[29].mxu1  ;;  %v1505_v20 = vpop.f32.mrb[29].mxu0  ;;  %v741_v10 = vadd.f32 %v2039_v23, %v2019_v62 }
 0x12f   :  { %v1424_v22 = vadd.f32 %v1423_v19, %v1422_v14  ;;  %v1425_v25 = vpop.f32.mrb[30].mxu1  ;;  %v959_v26 = vpop.f32.mrb[30].mxu0  ;;  %v744_v19 = vadd.f32 %v2044_v31, %v2019_v62 }
 0x130   :  { %v1036_v27 = vmax.f32 %v957_v52, 0.0  ;;  %v960_v28 = vadd.f32 %v959_v26, %v840_v13  ;;  %v1426_v29 = vpop.f32.mrb[31].mxu1  ;;  %v1506_v32 = vpop.f32.mrb[31].mxu0 }
 0x131   :  { %v1427_v34 = vadd.f32 %v1426_v29, %v1425_v25  ;;  %v845_v36 = vadd.f32 %v1424_v22, %v725_v21 }
 0x132   :  { %v1293_v38 = vpack.c.bf16 %v1036_v27, %v1036_v27  ;;  %v1037_v40 = vmax.f32 %v960_v28, 0.0 }
 0x133   :  { %v848_v42 = vadd.f32 %v1427_v34, %v728_v33  ;;  %v749_v33 = vadd.f32 %v2048_v39, %v2019_v62 }
 0x134   :  { %1143 = vst.msk [vmem:[%s2173_s3 + $0x8] sm:$0xf] %vm1140_vm2, %v1293_v38  ;;  %v1294_v58 = vpack.c.bf16 %v1037_v40, %v1037_v40 }
 0x135   :  { %v1428_v43 = vpop.f32.mrb[32].mxu1  ;;  %v964_v44 = vpop.f32.mrb[32].mxu0 }
 0x136   :  { %1144 = vst.msk [vmem:[%s2173_s3 + $0xc] sm:$0xf] %vm1140_vm2, %v1294_v58  ;;  %v965_v45 = vadd.f32 %v964_v44, %v845_v36  ;;  %v1429_v2 = vpop.f32.mrb[33].mxu1  ;;  %v1509_v47 = vpop.f32.mrb[33].mxu0  ;;  %v752_v44 = vadd.f32 %v2052_v49, %v2019_v62 }
 0x137   :  { %v1430_v51 = vadd.f32 %v1429_v2, %v1428_v43  ;;  %v1431_v54 = vpop.f32.mrb[34].mxu1  ;;  %v967_v55 = vpop.f32.mrb[34].mxu0 }
 0x138   :  { %v1038_v56 = vmax.f32 %v965_v45, 0.0  ;;  %v968_v57 = vadd.f32 %v967_v55, %v848_v42  ;;  %v1432_v59 = vpop.f32.mrb[35].mxu1  ;;  %v1510_v35 = vpop.f32.mrb[35].mxu0 }
 0x139   :  { %v1433_v61 = vadd.f32 %v1432_v59, %v1431_v54  ;;  %v853_v63 = vadd.f32 %v1430_v51, %v733_v50  ;;  %v757_v59 = vadd.f32 %v2000_v37, %v2019_v62 }
 0x13a   :  { %v1295_v0 = vpack.c.bf16 %v1038_v56, %v1038_v56  ;;  %v1039_v3 = vmax.f32 %v968_v57, 0.0 }
 0x13b   :  { %v856_v5 = vadd.f32 %v1433_v61, %v736_v60 }
 0x13c   :  { %1145 = vst.msk [vmem:[%s2173_s3 + $0x10] sm:$0xf] %vm1140_vm2, %v1295_v0  ;;  %v1296_v9 = vpack.c.bf16 %v1039_v3, %v1039_v3 }
 0x13d   :  { %v1434_v6 = vpop.f32.mrb[36].mxu1  ;;  %v972_v41 = vpop.f32.mrb[36].mxu0 }
 0x13e   :  { %1146 = vst.msk [vmem:[%s2173_s3 + $0x14] sm:$0xf] %vm1140_vm2, %v1296_v9  ;;  %v973_v7 = vadd.f32 %v972_v41, %v853_v63  ;;  %v1435_v16 = vpop.f32.mrb[37].mxu1  ;;  %v1513_v8 = vpop.f32.mrb[37].mxu0  ;;  %v760_v9 = vadd.f32 %v2004_v24, %v2019_v62 }
 0x13f   :  { %v1436_v11 = vadd.f32 %v1435_v16, %v1434_v6  ;;  %v1437_v12 = vpop.f32.mrb[38].mxu1  ;;  %v975_v13 = vpop.f32.mrb[38].mxu0 }
 0x140   :  { %v1040_v46 = vmax.f32 %v973_v7, 0.0  ;;  %v976_v14 = vadd.f32 %v975_v13, %v856_v5  ;;  %v1438_v17 = vpop.f32.mrb[39].mxu1  ;;  %v1514_v52 = vpop.f32.mrb[39].mxu0 }
 0x141   :  { %v1439_v20 = vadd.f32 %v1438_v17, %v1437_v12  ;;  %v861_v21 = vadd.f32 %v1436_v11, %v741_v10 }
 0x142   :  { %v1297_v22 = vpack.c.bf16 %v1040_v46, %v1040_v46  ;;  %v1041_v25 = vmax.f32 %v976_v14, 0.0  ;;  %v765_v46 = vadd.f32 %v2008_v48, %v2019_v62 }
 0x143   :  { %v864_v26 = vadd.f32 %v1439_v20, %v744_v19 }
 0x144   :  { %1147 = vst.msk [vmem:[%s2173_s3 + $0x18] sm:$0xf] %vm1140_vm2, %v1297_v22  ;;  %v1298_v23 = vpack.c.bf16 %v1041_v25, %v1041_v25  ;;  %v768_v25 = vadd.f32 %v2012_v53, %v2019_v62 }
 0x145   :  { %v1440_v27 = vpop.f32.mrb[40].mxu1  ;;  %v980_v28 = vpop.f32.mrb[40].mxu0 }
 0x146   :  { %1148 = vst.msk [vmem:[%s2173_s3 + $0x1c] sm:$0xf] %vm1140_vm2, %v1298_v23  ;;  %v981_v29 = vadd.f32 %v980_v28, %v861_v21  ;;  %v1441_v31 = vpop.f32.mrb[41].mxu1  ;;  %v1517_v32 = vpop.f32.mrb[41].mxu0 }
 0x147   :  { %v1442_v34 = vadd.f32 %v1441_v31, %v1440_v27  ;;  %v1443_v36 = vpop.f32.mrb[42].mxu1  ;;  %v983_v38 = vpop.f32.mrb[42].mxu0 }
 0x148   :  { %v1042_v40 = vmax.f32 %v981_v29, 0.0  ;;  %v984_v42 = vadd.f32 %v983_v38, %v864_v26  ;;  %v1444_v58 = vpop.f32.mrb[43].mxu1  ;;  %v1518_v43 = vpop.f32.mrb[43].mxu0 }
 0x149   :  { %v1445_v45 = vadd.f32 %v1444_v58, %v1443_v36  ;;  %v869_v2 = vadd.f32 %v1442_v34, %v749_v33 }
 0x14a   :  { %v1299_v47 = vpack.c.bf16 %v1042_v40, %v1042_v40  ;;  %v1043_v50 = vmax.f32 %v984_v42, 0.0 }
 0x14b   :  { %v872_v51 = vadd.f32 %v1445_v45, %v752_v44 }
 0x14c   :  { %1149 = vst.msk [vmem:[%s2173_s3 + $0x20] sm:$0xf] %vm1140_vm2, %v1299_v47  ;;  %v1300_v39 = vpack.c.bf16 %v1043_v50, %v1043_v50 }
 0x14d   :  { %v1446_v54 = vpop.f32.mrb[44].mxu1  ;;  %v988_v55 = vpop.f32.mrb[44].mxu0 }
 0x14e   :  { %1150 = vst.msk [vmem:[%s2173_s3 + $0x24] sm:$0xf] %vm1140_vm2, %v1300_v39  ;;  %v989_v56 = vadd.f32 %v988_v55, %v869_v2  ;;  %v1447_v49 = vpop.f32.mrb[45].mxu1  ;;  %v1521_v57 = vpop.f32.mrb[45].mxu0 }
 0x14f   :  { %v1448_v35 = vadd.f32 %v1447_v49, %v1446_v54  ;;  %v1449_v60 = vpop.f32.mrb[46].mxu1  ;;  %v991_v61 = vpop.f32.mrb[46].mxu0 }
 0x150   :  { %v1044_v63 = vmax.f32 %v989_v56, 0.0  ;;  %v992_v0 = vadd.f32 %v991_v61, %v872_v51  ;;  %v1450_v3 = vpop.f32.mrb[47].mxu1  ;;  %v1522_v5 = vpop.f32.mrb[47].mxu0 }
 0x151   :  { %v1451_v6 = vadd.f32 %v1450_v3, %v1449_v60  ;;  %v877_v41 = vadd.f32 %v1448_v35, %v757_v59 }
 0x152   :  { %v1301_v7 = vpack.c.bf16 %v1044_v63, %v1044_v63  ;;  %v1045_v16 = vmax.f32 %v992_v0, 0.0 }
 0x153   :  { %v880_v8 = vadd.f32 %v1451_v6, %v760_v9 }
 0x154   :  { %1151 = vst.msk [vmem:[%s2173_s3 + $0x28] sm:$0xf] %vm1140_vm2, %v1301_v7  ;;  %v1302_v37 = vpack.c.bf16 %v1045_v16, %v1045_v16 }
 0x155   :  { %v1452_v10 = vpop.f32.mrb[48].mxu1  ;;  %v996_v11 = vpop.f32.mrb[48].mxu0 }
 0x156   :  { %1152 = vst.msk [vmem:[%s2173_s3 + $0x2c] sm:$0xf] %vm1140_vm2, %v1302_v37  ;;  %v997_v12 = vadd.f32 %v996_v11, %v877_v41  ;;  %v1453_v24 = vpop.f32.mrb[49].mxu1  ;;  %v1525_v13 = vpop.f32.mrb[49].mxu0 }
 0x157   :  { %v1454_v14 = vadd.f32 %v1453_v24, %v1452_v10  ;;  %v1455_v17 = vpop.f32.mrb[50].mxu1  ;;  %v999_v52 = vpop.f32.mrb[50].mxu0 }
 0x158   :  { %v1046_v19 = vmax.f32 %v997_v12, 0.0  ;;  %v1000_v20 = vadd.f32 %v999_v52, %v880_v8  ;;  %v1456_v21 = vpop.f32.mrb[51].mxu1  ;;  %v1526_v22 = vpop.f32.mrb[51].mxu0 }
 0x159   :  { %v1457_v26 = vadd.f32 %v1456_v21, %v1455_v17  ;;  %v885_v23 = vadd.f32 %v1454_v14, %v765_v46 }
 0x15a   :  { %v1303_v27 = vpack.c.bf16 %v1046_v19, %v1046_v19  ;;  %v1047_v28 = vmax.f32 %v1000_v20, 0.0 }
 0x15b   :  { %v888_v29 = vadd.f32 %v1457_v26, %v768_v25 }
 0x15c   :  { %1153 = vst.msk [vmem:[%s2173_s3 + $0x30] sm:$0xf] %vm1140_vm2, %v1303_v27  ;;  %v1304_v48 = vpack.c.bf16 %v1047_v28, %v1047_v28 }
 0x15d   :  { %v1458_v31 = vpop.f32.mrb[52].mxu1  ;;  %v1004_v32 = vpop.f32.mrb[52].mxu0 }
 0x15e   :  { %1154 = vst.msk [vmem:[%s2173_s3 + $0x34] sm:$0xf] %vm1140_vm2, %v1304_v48  ;;  %v1005_v33 = vadd.f32 %v1004_v32, %v885_v23  ;;  %v1459_v53 = vpop.f32.mrb[53].mxu1  ;;  %v1529_v62 = vpop.f32.mrb[53].mxu0 }
 0x15f   :  { %v1460_v34 = vadd.f32 %v1459_v53, %v1458_v31  ;;  %v1461_v36 = vpop.f32.mrb[54].mxu1  ;;  %v1007_v38 = vpop.f32.mrb[54].mxu0 }
 0x160   :  { %v1048_v40 = vmax.f32 %v1005_v33, 0.0  ;;  %v1008_v42 = vadd.f32 %v1007_v38, %v888_v29  ;;  %v1462_v58 = vpop.f32.mrb[55].mxu1  ;;  %v1530_v43 = vpop.f32.mrb[55].mxu0 }
 0x161   :  { %v1463_v44 = vadd.f32 %v1462_v58, %v1461_v36  ;;  %v893_v45 = vadd.f32 %v1460_v34, %v2022_v1 }
 0x162   :  { %v1305_v2 = vpack.c.bf16 %v1048_v40, %v1048_v40  ;;  %v1049_v47 = vmax.f32 %v1008_v42, 0.0 }
 0x163   :  { %v896_v50 = vadd.f32 %v1463_v44, %v2027_v4 }
 0x164   :  { %1155 = vst.msk [vmem:[%s2173_s3 + $0x38] sm:$0xf] %vm1140_vm2, %v1305_v2  ;;  %v1306_v51 = vpack.c.bf16 %v1049_v47, %v1049_v47 }
 0x165   :  { %v1464_v39 = vpop.f32.mrb[56].mxu1  ;;  %v1012_v54 = vpop.f32.mrb[56].mxu0 }
 0x166   :  { %1156 = vst.msk [vmem:[%s2173_s3 + $0x3c] sm:$0xf] %vm1140_vm2, %v1306_v51  ;;  %v1013_v55 = vadd.f32 %v1012_v54, %v893_v45  ;;  %v1465_v56 = vpop.f32.mrb[57].mxu1  ;;  %v1533_v1 = vpop.f32.mrb[57].mxu0 }
 0x167   :  { %v1466_v49 = vadd.f32 %v1465_v56, %v1464_v39  ;;  %v1467_v57 = vpop.f32.mrb[58].mxu1  ;;  %v1015_v59 = vpop.f32.mrb[58].mxu0 }
 0x168   :  { %v1050_v4 = vmax.f32 %v1013_v55, 0.0  ;;  %v1016_v35 = vadd.f32 %v1015_v59, %v896_v50  ;;  %v1468_v60 = vpop.f32.mrb[59].mxu1  ;;  %v1534_v61 = vpop.f32.mrb[59].mxu0 }
 0x169   :  { %v1469_v63 = vadd.f32 %v1468_v60, %v1467_v57  ;;  %v901_v0 = vadd.f32 %v1466_v49, %v2032_v15 }
 0x16a   :  { %v1307_v3 = vpack.c.bf16 %v1050_v4, %v1050_v4  ;;  %v1051_v5 = vmax.f32 %v1016_v35, 0.0 }
 0x16b   :  { %v904_v9 = vadd.f32 %v1469_v63, %v2037_v18 }
 0x16c   :  { %1157 = vst.msk [vmem:[%s2173_s3 + $0x40] sm:$0xf] %vm1140_vm2, %v1307_v3  ;;  %v1308_v6 = vpack.c.bf16 %v1051_v5, %v1051_v5 }
 0x16d   :  { %v1470_v41 = vpop.f32.mrb[60].mxu1  ;;  %v1020_v7 = vpop.f32.mrb[60].mxu0 }
 0x16e   :  { %1158 = vst.msk [vmem:[%s2173_s3 + $0x44] sm:$0xf] %vm1140_vm2, %v1308_v6  ;;  %v1021_v16 = vadd.f32 %v1020_v7, %v901_v0  ;;  %v1471_v8 = vpop.f32.mrb[61].mxu1  ;;  %v1537_v15 = vpop.f32.mrb[61].mxu0 }
 0x16f   :  { %v1472_v37 = vadd.f32 %v1471_v8, %v1470_v41  ;;  %v1023_v10 = vpop.f32.mrb[62].mxu0  ;;  %v1473_v11 = vpop.f32.mrb[62].mxu1 }
 0x170   :  { %v1052_v18 = vmax.f32 %v1021_v16, 0.0  ;;  %v1024_v12 = vadd.f32 %v1023_v10, %v904_v9  ;;  %v1538_v24 = vpop.f32.mrb[63].mxu0  ;;  %v1474_v13 = vpop.f32.mrb[63].mxu1 }
 0x171   :  { %v909_v46 = vadd.f32 %v1472_v37, %v2042_v30 }
 0x172   :  { %v1309_v14 = vpack.c.bf16 %v1052_v18, %v1052_v18  ;;  %v1053_v17 = vmax.f32 %v1024_v12, 0.0 }
 0x174   :  { %1159 = vst.msk [vmem:[%s2173_s3 + $0x48] sm:$0xf] %vm1140_vm2, %v1309_v14  ;;  %v1310_v52 = vpack.c.bf16 %v1053_v17, %v1053_v17 }
 0x175   :  { %v1028_v19 = vpop.f32.mrb[64].mxu0 }
 0x176   :  { %1160 = vst.msk [vmem:[%s2173_s3 + $0x4c] sm:$0xf] %vm1140_vm2, %v1310_v52  ;;  %v1029_v20 = vadd.f32 %v1028_v19, %v909_v46  ;;  %v1541_v21 = vpop.f32.mrb[65].mxu0 }
 0x177   :  { %v1031_v22 = vpop.f32.mrb[66].mxu0 }
 0x178   :  { %v1054_v25 = vmax.f32 %v1029_v20, 0.0  ;;  %v1542_v26 = vpop.f32.mrb[67].mxu0 }
 0x17a   :  { %v1311_v30 = vpack.c.bf16 %v1054_v25, %v1054_v25 }
 0x17c   :  { %1162 = vst.msk [vmem:[%s2173_s3 + $0x50] sm:$0x1] %vm1161_vm3, %v1311_v30 }

// kernel: resnet_forward.15
= control target key start
LH: loop header
LB: loop body
LE: loop exit
PB: predicated region body
PF: predicated region fallthrough
CT: control target
= control target key end

     0   :  { %v1659_v24 = vmov 0.0   ;;  %vm1660_vm0 = vmmov 0   ;;  %vm643_vm1 = vcmask 523264   ;;  %vm1141_vm2 = vcmask 517120   ;;  %s2195_s1 = inlined_call_operand.vmem [shape: bf16[576,64], index: 1, kind: input, shape index: {}]   ;;  %s2196_s0 = inlined_call_operand.vmem [shape: bf16[162,576], index: 0, kind: input, shape index: {}]   ;;  %s2197_s2 = inlined_call_operand.vmem [shape: f32[1,64], index: 2, kind: input, shape index: {}]   ;;  %s2198_s3 = inlined_call_operand.vmem [shape: bf16[162,64], index: 3, kind: input, shape index: {}]   ;;  %s2199_s4 = inlined_call_operand.vmem [shape: f32[162,64], index: 4, kind: output, shape index: {}]  }
   0x1   :  { %v1548_v0 = vld [vmem:[%s2195_s1 + $0x40] sm:$0xff]   ;;  %v1550_v2 = vld [vmem:[%s2195_s1 + $0x48] sm:$0xff]   ;;  %v1552_v4 = vld [vmem:[%s2195_s1 + $0x50] sm:$0xff]  }
   0x2   :  { %v1549_v1 = vld [vmem:[%s2195_s1] sm:$0xff]   ;;  %1299 = vmatprep.subr.bf16.mxu0 %v1548_v0  ;;  %1530 = vmatprep.subr.bf16.mxu1 %v1548_v0  ;;  %v1551_v3 = vld [vmem:[%s2195_s1 + $0x8] sm:$0xff]   ;;  %v1553_v5 = vld [vmem:[%s2195_s1 + $0x10] sm:$0xff]  }
   0x3   :  { %1300 = vmatpush3.bf16.msra.mxu0 %v1549_v1  ;;  %1538 = vmatpush3.bf16.msra.mxu1 %v1549_v1  ;;  %v1554_v6 = vld [vmem:[%s2195_s1 + $0x58] sm:$0xff]   ;;  %v1556_v8 = vld [vmem:[%s2195_s1 + $0x60] sm:$0xff]   ;;  %v1558_v10 = vld [vmem:[%s2195_s1 + $0x68] sm:$0xff]  }
   0x4   :  { %1301 = vmatprep.subr.bf16.mxu0 %v1550_v2  ;;  %1531 = vmatprep.subr.bf16.mxu1 %v1550_v2  ;;  %v1555_v7 = vld [vmem:[%s2195_s1 + $0x18] sm:$0xff]   ;;  %v1557_v9 = vld [vmem:[%s2195_s1 + $0x20] sm:$0xff]   ;;  %v1569_v12 = vld [vmem:[%s2196_s0 + $0xf4] ss:$20 sps:$4 sm:$0xff]  }
   0x5   :  { %v1566_v11 = vld [vmem:[%s2196_s0 + $0x4] ss:$20 sps:$4 sm:$0xff]   ;;  %v1559_v13 = vld [vmem:[%s2195_s1 + $0x28] sm:$0xff]   ;;  %v1560_v14 = vld [vmem:[%s2195_s1 + $0x70] sm:$0xff]   ;;  %757 = vmatprep.mubr.bf16.mxu1 %v1569_v12 }
   0x6   :  { %709 = vmatprep.mubr.bf16.mxu0 %v1566_v11  ;;  %v1561_v15 = vld [vmem:[%s2195_s1 + $0x30] sm:$0xff]   ;;  %v1562_v16 = vld [vmem:[%s2195_s1 + $0x78] sm:$0xff]   ;;  %v1571_v18 = vld [vmem:[%s2195_s1 + $0xc0] sm:$0xff]  }
   0x7   :  { %1302 = vmatpush3.bf16.msra.mxu0 %v1551_v3  ;;  %1539 = vmatpush3.bf16.msra.mxu1 %v1551_v3  ;;  %v1563_v17 = vld [vmem:[%s2195_s1 + $0x38] sm:$0xff]   ;;  %v1564_v19 = vld [vmem:[%s2196_s0] ss:$20 sps:$4 sm:$0xff]   ;;  %v1567_v20 = vld [vmem:[%s2196_s0 + $0xf0] ss:$20 sps:$4 sm:$0xff]  }
   0x8   :  { %1303 = vmatprep.subr.bf16.mxu0 %v1552_v4  ;;  %1532 = vmatprep.subr.bf16.mxu1 %v1552_v4  ;;  %v1570_v21 = vld [vmem:[%s2195_s1 + $0x100] sm:$0xff]   ;;  %v1575_v25 = vld [vmem:[%s2196_s0 + $0x11c] ss:$20 sps:$4 sm:$0xff]   ;;  %v1579_v26 = vld [vmem:[%s2195_s1 + $0xc8] sm:$0xff]  }
   0x9   :  { %v1572_v22 = vld [vmem:[%s2195_s1 + $0x80] sm:$0xff]   ;;  %v1580_v27 = vld [vmem:[%s2195_s1 + $0x88] sm:$0xff]   ;;  %v1581_v30 = vld [vmem:[%s2195_s1 + $0xd0] sm:$0xff]  }
   0xa   :  { %v1573_v23 = vld [vmem:[%s2196_s0 + $0x2c] ss:$20 sps:$4 sm:$0xff]   ;;  %v1577_v29 = vld [vmem:[%s2196_s0 + $0x28] ss:$20 sps:$4 sm:$0xff]   ;;  %v1583_v32 = vld [vmem:[%s2195_s1 + $0x90] sm:$0xff]  }
   0xb   :  { %1304 = vmatpush3.bf16.msra.mxu0 %v1553_v5  ;;  %1540 = vmatpush3.bf16.msra.mxu1 %v1553_v5  ;;  %v1582_v28 = vld [vmem:[%s2195_s1 + $0x108] sm:$0xff]   ;;  %v1586_v34 = vld [vmem:[%s2196_s0 + $0x144] ss:$20 sps:$4 sm:$0xff]   ;;  %v1600_v36 = vld [vmem:[%s2195_s1 + $0x110] sm:$0xff]  }
   0xc   :  { %1305 = vmatprep.subr.bf16.mxu0 %v1554_v6  ;;  %1533 = vmatprep.subr.bf16.mxu1 %v1554_v6  ;;  %v1578_v31 = vld [vmem:[%s2196_s0 + $0x118] ss:$20 sps:$4 sm:$0xff]   ;;  %v1584_v33 = vld [vmem:[%s2196_s0 + $0x54] ss:$20 sps:$4 sm:$0xff]   ;;  %v1588_v38 = vld [vmem:[%s2196_s0 + $0x50] ss:$20 sps:$4 sm:$0xff]  }
   0xd   :  { %v1590_v35 = vld [vmem:[%s2195_s1 + $0xd8] sm:$0xff]   ;;  %v1589_v39 = vld [vmem:[%s2196_s0 + $0x140] ss:$20 sps:$4 sm:$0xff]   ;;  %v1601_v45 = vld [vmem:[%s2195_s1 + $0xe8] sm:$0xff]  }
   0xe   :  { %v1591_v37 = vld [vmem:[%s2195_s1 + $0x98] sm:$0xff]   ;;  %v1596_v40 = vld [vmem:[%s2195_s1 + $0xe0] sm:$0xff]   ;;  %v1602_v46 = vld [vmem:[%s2195_s1 + $0xa8] sm:$0xff]  }
   0xf   :  { %1306 = vmatpush3.bf16.msra.mxu0 %v1555_v7  ;;  %1541 = vmatpush3.bf16.msra.mxu1 %v1555_v7  ;;  %v1592_v41 = vld [vmem:[%s2196_s0 + $0x7c] ss:$20 sps:$4 sm:$0xff]   ;;  %v1594_v42 = vld [vmem:[%s2196_s0 + $0x16c] ss:$20 sps:$4 sm:$0xff]   ;;  %v1603_v51 = vld [vmem:[%s2196_s0 + $0xa4] ss:$20 sps:$4 sm:$0xff]  }
  0x10   :  { %1307 = vmatprep.subr.bf16.mxu0 %v1556_v8  ;;  %1534 = vmatprep.subr.bf16.mxu1 %v1556_v8  ;;  %v1599_v43 = vld [vmem:[%s2195_s1 + $0xa0] sm:$0xff]   ;;  %v1612_v44 = vld [vmem:[%s2195_s1 + $0x118] sm:$0xff]   ;;  %v78_v47 = vld [vmem:[%s2196_s0 + $0x190] sm:$0x11] }
  0x11   :  { %v1608_v48 = vld [vmem:[%s2195_s1 + $0xf0] sm:$0xff]   ;;  %v1597_v49 = vld [vmem:[%s2196_s0 + $0x78] ss:$20 sps:$4 sm:$0xff]   ;;  %v1598_v50 = vld [vmem:[%s2196_s0 + $0x168] ss:$20 sps:$4 sm:$0xff]   ;;  %v1199_v52 = vcombine.high %v78_v47, %v78_v47  ;;  %v1198_v57 = vcombine.low %v78_v47, %v78_v47 }
  0x12   :  { %v1609_v53 = vld [vmem:[%s2195_s1 + $0xb0] sm:$0xff]   ;;  %v1610_v54 = vld [vmem:[%s2195_s1 + $0xf8] sm:$0xff]   ;;  %v1613_v58 = vld [vmem:[%s2196_s0 + $0xcc] ss:$20 sps:$4 sm:$0xff]  }
  0x13   :  { %1308 = vmatpush3.bf16.msra.mxu0 %v1557_v9  ;;  %1542 = vmatpush3.bf16.msra.mxu1 %v1557_v9  ;;  %v1611_v55 = vld [vmem:[%s2195_s1 + $0xb8] sm:$0xff]   ;;  %v1606_v56 = vld [vmem:[%s2196_s0 + $0xa0] ss:$20 sps:$4 sm:$0xff]   ;;  %v1621_v63 = vld [vmem:[%s2196_s0 + $0x30] ss:$20 sps:$4 sm:$0xff]  }
  0x14   :  { %1309 = vmatprep.subr.bf16.mxu0 %v1558_v10  ;;  %1535 = vmatprep.subr.bf16.mxu1 %v1558_v10  ;;  %v1617_v59 = vld [vmem:[%s2196_s0 + $0xc] ss:$20 sps:$4 sm:$0xff]   ;;  %v1615_v60 = vld [vmem:[%s2196_s0 + $0x8] ss:$20 sps:$4 sm:$0xff]   ;;  %v1622_v0 = vld [vmem:[%s2196_s0 + $0x10] ss:$20 sps:$4 sm:$0xff]  }
  0x15   :  { %v1618_v61 = vld [vmem:[%s2196_s0 + $0xc8] ss:$20 sps:$4 sm:$0xff]   ;;  %v1625_v2 = vld [vmem:[%s2196_s0 + $0x58] ss:$20 sps:$4 sm:$0xff]   ;;  %v1629_v5 = vld [vmem:[%s2196_s0 + $0x80] ss:$20 sps:$4 sm:$0xff]  }
  0x16   :  { %v1619_v62 = vld [vmem:[%s2196_s0 + $0x34] ss:$20 sps:$4 sm:$0xff]   ;;  %v1623_v1 = vld [vmem:[%s2196_s0 + $0x5c] ss:$20 sps:$4 sm:$0xff]   ;;  %v1626_v3 = vld [vmem:[%s2196_s0 + $0x38] ss:$20 sps:$4 sm:$0xff]  }
  0x17   :  { %1310 = vmatpush3.bf16.msra.mxu0 %v1559_v13  ;;  %1543 = vmatpush3.bf16.msra.mxu1 %v1559_v13  ;;  %v1627_v4 = vld [vmem:[%s2196_s0 + $0x84] ss:$20 sps:$4 sm:$0xff]   ;;  %v1630_v6 = vld [vmem:[%s2196_s0 + $0x60] ss:$20 sps:$4 sm:$0xff]   ;;  %v1633_v8 = vld [vmem:[%s2196_s0 + $0xa8] ss:$20 sps:$4 sm:$0xff]  }
  0x18   :  { %1311 = vmatprep.subr.bf16.mxu0 %v1560_v14  ;;  %1536 = vmatprep.subr.bf16.mxu1 %v1560_v14  ;;  %v1631_v7 = vld [vmem:[%s2196_s0 + $0xac] ss:$20 sps:$4 sm:$0xff]   ;;  %v1634_v9 = vld [vmem:[%s2196_s0 + $0x88] ss:$20 sps:$4 sm:$0xff]   ;;  %v1637_v11 = vld [vmem:[%s2196_s0 + $0xd0] ss:$20 sps:$4 sm:$0xff]  }
  0x19   :  { %v1635_v10 = vld [vmem:[%s2196_s0 + $0xd4] ss:$20 sps:$4 sm:$0xff]   ;;  %v1638_v12 = vld [vmem:[%s2196_s0 + $0xb0] ss:$20 sps:$4 sm:$0xff]   ;;  %v1641_v14 = vld [vmem:[%s2196_s0 + $0xf8] ss:$20 sps:$4 sm:$0xff]  }
  0x1a   :  { %v1639_v13 = vld [vmem:[%s2196_s0 + $0xfc] ss:$20 sps:$4 sm:$0xff]  }
  0x1b   :  { %1312 = vmatpush3.bf16.msra.mxu0 %v1561_v15  ;;  %1544 = vmatpush3.bf16.msra.mxu1 %v1561_v15  ;;  %v1642_v15 = vld [vmem:[%s2196_s0 + $0xd8] ss:$20 sps:$4 sm:$0xff]  }
  0x1c   :  { %1313 = vmatprep.subr.bf16.mxu0 %v1562_v16  ;;  %1537 = vmatprep.subr.bf16.mxu1 %v1562_v16  ;;  %v1643_v16 = vld [vmem:[%s2196_s0 + $0x124] ss:$20 sps:$4 sm:$0xff]  }
  0x1f   :  { %1314 = vmatpush3.bf16.msra.mxu0 %v1563_v17  ;;  %1545 = vmatpush3.bf16.msra.mxu1 %v1563_v17  ;;  %v1645_v17 = vld [vmem:[%s2196_s0 + $0x120] ss:$20 sps:$4 sm:$0xff]  }
  0x20   :  { %1478 = vmatprep.subr.bf16.mxu0 %v1659_v24  ;;  %1381 = vmatprep.subr.bf16.mxu1 %v1571_v18  ;;  %v1646_v18 = vld [vmem:[%s2196_s0 + $0x100] ss:$20 sps:$4 sm:$0xff]  }
  0x22   :  { %710 = vmatmul.mubr.bf16.vlgmr.msra.gmra.mrb[0].mxu0 %v1564_v19  ;;  %758 = vmatmul.mubr.bf16.vlgmr.msra.gmra.mrb[0].mxu1 %v1567_v20  ;;  %v1647_v19 = vld [vmem:[%s2196_s0 + $0x14c] ss:$20 sps:$4 sm:$0xff]   ;;  %v1649_v20 = vld [vmem:[%s2196_s0 + $0x148] ss:$20 sps:$4 sm:$0xff]  }
  0x23   :  { %1479 = vmatpush3.bf16.msra.mxu0 %v1570_v21  ;;  %1382 = vmatpush3.bf16.msra.mxu1 %v1572_v22  ;;  %v1650_v21 = vld [vmem:[%s2196_s0 + $0x128] ss:$20 sps:$4 sm:$0xff]  }
  0x24   :  { %717 = vmatprep.mubr.bf16.mxu0 %v1573_v23  ;;  %765 = vmatprep.mubr.bf16.mxu1 %v1575_v25  ;;  %v1651_v22 = vld [vmem:[%s2196_s0 + $0x174] ss:$20 sps:$4 sm:$0xff]   ;;  %v79_v23 = vld [vmem:[%s2196_s0 + $0x198] sm:$0x11]  ;;  %v1653_v25 = vld [vmem:[%s2196_s0 + $0x170] ss:$20 sps:$4 sm:$0xff]  }
  0x25   :  { %1383 = vmatprep.subr.bf16.mxu1 %v1579_v26  ;;  %1480 = vmatprep.subr.bf16.mxu0 %v1659_v24  ;;  %v1654_v26 = vld [vmem:[%s2196_s0 + $0x150] ss:$20 sps:$4 sm:$0xff]  }
  0x27   :  { %1384 = vmatpush3.bf16.msra.mxu1 %v1580_v27  ;;  %1481 = vmatpush3.bf16.msra.mxu0 %v1582_v28  ;;  %v1201_v27 = vcombine.high %v79_v23, %v79_v23  ;;  %v1200_v28 = vcombine.low %v79_v23, %v79_v23 }
  0x28   :  { %1385 = vmatprep.subr.bf16.mxu1 %v1581_v30  ;;  %1482 = vmatprep.subr.bf16.mxu0 %v1659_v24  ;;  %v1658_v30 = vld [vmem:[%s2196_s0 + $0x1a0] ss:$0 sps:$4 sm:$0x11]  }
  0x2a   :  { %718 = vmatmul.mubr.bf16.gmra.mrb[4].mxu0 %v1577_v29  ;;  %766 = vmatmul.mubr.bf16.gmra.mrb[4].mxu1 %v1578_v31  ;;  %v1657_v29 = vld [vmem:[%s2196_s0 + $0x178] ss:$20 sps:$4 sm:$0xff]  }
  0x2b   :  { %1386 = vmatpush3.bf16.msra.mxu1 %v1583_v32  ;;  %725 = vmatprep.mubr.bf16.mxu0 %v1584_v33 }
  0x2c   :  { %773 = vmatprep.mubr.bf16.mxu1 %v1586_v34  ;;  %1387 = vmatprep.subr.bf16.mxu1 %v1590_v35 }
  0x2d   :  { %1483 = vmatpush3.bf16.msra.mxu0 %v1600_v36 }
  0x2e   :  { %1484 = vmatprep.subr.bf16.mxu0 %v1659_v24 }
  0x2f   :  { %1388 = vmatpush3.bf16.msra.mxu1 %v1591_v37 }
  0x30   :  { %1389 = vmatprep.subr.bf16.mxu1 %v1596_v40 }
  0x31   :  { %1485 = vmatpush3.bf16.msra.mxu0 %v1612_v44 }
  0x32   :  { %726 = vmatmul.mubr.bf16.gmra.mrb[8].mxu0 %v1588_v38  ;;  %774 = vmatmul.mubr.bf16.gmra.mrb[8].mxu1 %v1589_v39 }
  0x33   :  { %733 = vmatprep.mubr.bf16.mxu0 %v1592_v41  ;;  %781 = vmatprep.mubr.bf16.mxu1 %v1594_v42 }
  0x34   :  { %1390 = vmatpush3.bf16.msra.mxu1 %v1599_v43 }
  0x35   :  { %1391 = vmatprep.subr.bf16.mxu1 %v1601_v45 }
  0x38   :  { %1392 = vmatpush3.bf16.msra.mxu1 %v1602_v46 }
  0x39   :  { %1393 = vmatprep.subr.bf16.mxu1 %v1608_v48 }
  0x3a   :  { %734 = vmatmul.mubr.bf16.gmra.mrb[12].mxu0 %v1597_v49  ;;  %782 = vmatmul.mubr.bf16.gmra.mrb[12].mxu1 %v1598_v50 }
  0x3b   :  { %741 = vmatprep.mubr.bf16.mxu0 %v1603_v51  ;;  %789 = vmatprep.mubr.bf16.mxu1 %v1199_v52 }
  0x3c   :  { %1394 = vmatpush3.bf16.msra.mxu1 %v1609_v53 }
  0x3d   :  { %1395 = vmatprep.subr.bf16.mxu1 %v1610_v54 }
  0x40   :  { %1396 = vmatpush3.bf16.msra.mxu1 %v1611_v55 }
  0x42   :  { %742 = vmatmul.mubr.bf16.gmra.mrb[16].mxu0 %v1606_v56  ;;  %790 = vmatmul.mubr.bf16.gmra.mrb[16].mxu1 %v1198_v57 }
  0x43   :  { %749 = vmatprep.mubr.bf16.mxu0 %v1613_v58  ;;  %829 = vmatprep.mubr.bf16.mxu1 %v1617_v59 }
  0x4a   :  { %750 = vmatmul.mubr.bf16.gmra.mrb[20].mxu0 %v1618_v61  ;;  %830 = vmatmul.mubr.bf16.vlgmr.msra.gmra.mrb[20].mxu1 %v1615_v60 }
  0x4b   :  { %837 = vmatprep.mubr.bf16.mxu1 %v1619_v62  ;;  %1486 = vmatprep.mubr.msk.bf16.mxu0 %vm1660_vm0, %v1659_v24  ;;  %v2011_v62 = vld [vmem:[%s2197_s2] ss:$0 sm:$0xff] }
  0x52   :  { %838 = vmatmul.mubr.bf16.gmra.mrb[24].mxu1 %v1621_v63  ;;  %1487 = vmatmul.mubr.msk.bf16.vlgmr.msra.gmra.mrb[24].mxu0 %vm643_vm1, %v1622_v0 }
  0x53   :  { %845 = vmatprep.mubr.bf16.mxu1 %v1623_v1  ;;  %1490 = vmatprep.mubr.msk.bf16.mxu0 %vm1660_vm0, %v1659_v24 }
  0x5a   :  { %846 = vmatmul.mubr.bf16.gmra.mrb[28].mxu1 %v1625_v2  ;;  %1491 = vmatmul.mubr.msk.bf16.gmra.mrb[28].mxu0 %vm643_vm1, %v1626_v3 }
  0x5b   :  { %853 = vmatprep.mubr.bf16.mxu1 %v1627_v4  ;;  %1494 = vmatprep.mubr.msk.bf16.mxu0 %vm1660_vm0, %v1659_v24 }
  0x62   :  { %854 = vmatmul.mubr.bf16.gmra.mrb[32].mxu1 %v1629_v5  ;;  %1495 = vmatmul.mubr.msk.bf16.gmra.mrb[32].mxu0 %vm643_vm1, %v1630_v6 }
  0x63   :  { %861 = vmatprep.mubr.bf16.mxu1 %v1631_v7  ;;  %1498 = vmatprep.mubr.msk.bf16.mxu0 %vm1660_vm0, %v1659_v24 }
  0x6a   :  { %862 = vmatmul.mubr.bf16.gmra.mrb[36].mxu1 %v1633_v8  ;;  %1499 = vmatmul.mubr.msk.bf16.gmra.mrb[36].mxu0 %vm643_vm1, %v1634_v9 }
  0x6b   :  { %869 = vmatprep.mubr.bf16.mxu1 %v1635_v10  ;;  %1502 = vmatprep.mubr.msk.bf16.mxu0 %vm1660_vm0, %v1659_v24 }
  0x72   :  { %870 = vmatmul.mubr.bf16.gmra.mrb[40].mxu1 %v1637_v11  ;;  %1503 = vmatmul.mubr.msk.bf16.gmra.mrb[40].mxu0 %vm643_vm1, %v1638_v12 }
  0x73   :  { %877 = vmatprep.mubr.bf16.mxu1 %v1639_v13  ;;  %1506 = vmatprep.mubr.msk.bf16.mxu0 %vm1660_vm0, %v1659_v24 }
  0x7a   :  { %878 = vmatmul.mubr.bf16.gmra.mrb[44].mxu1 %v1641_v14  ;;  %1507 = vmatmul.mubr.msk.bf16.gmra.mrb[44].mxu0 %vm643_vm1, %v1642_v15 }
  0x7b   :  { %885 = vmatprep.mubr.bf16.mxu1 %v1643_v16  ;;  %1510 = vmatprep.mubr.msk.bf16.mxu0 %vm1660_vm0, %v1659_v24 }
  0x82   :  { %886 = vmatmul.mubr.bf16.gmra.mrb[48].mxu1 %v1645_v17  ;;  %1511 = vmatmul.mubr.msk.bf16.gmra.mrb[48].mxu0 %vm643_vm1, %v1646_v18 }
  0x83   :  { %893 = vmatprep.mubr.bf16.mxu1 %v1647_v19  ;;  %1514 = vmatprep.mubr.msk.bf16.mxu0 %vm1660_vm0, %v1659_v24 }
  0x8a   :  { %894 = vmatmul.mubr.bf16.gmra.mrb[52].mxu1 %v1649_v20  ;;  %1515 = vmatmul.mubr.msk.bf16.gmra.mrb[52].mxu0 %vm643_vm1, %v1650_v21 }
  0x8b   :  { %901 = vmatprep.mubr.bf16.mxu1 %v1651_v22  ;;  %1518 = vmatprep.mubr.msk.bf16.mxu0 %vm1660_vm0, %v1659_v24 }
  0x92   :  { %902 = vmatmul.mubr.bf16.gmra.mrb[56].mxu1 %v1653_v25  ;;  %1519 = vmatmul.mubr.msk.bf16.gmra.mrb[56].mxu0 %vm643_vm1, %v1654_v26 }
  0x93   :  { %909 = vmatprep.mubr.bf16.mxu1 %v1201_v27  ;;  %1522 = vmatprep.mubr.msk.bf16.mxu0 %vm1660_vm0, %v1659_v24 }
  0x9a   :  { %910 = vmatmul.mubr.bf16.gmra.mrb[60].mxu1 %v1200_v28  ;;  %1523 = vmatmul.mubr.msk.bf16.gmra.mrb[60].mxu0 %vm643_vm1, %v1657_v29 }
  0x9b   :  { %1526 = vmatprep.mubr.msk.bf16.mxu0 %vm1660_vm0, %v1659_v24 }
  0xa2   :  { %1527 = vmatmul.mubr.msk.bf16.gmra.mrb[64].mxu0 %vm643_vm1, %v1658_v30 }
  0xf5   :  { %v1315_v31 = vpop.f32.mrb[0].mxu0  ;;  %v1351_v32 = vpop.f32.mrb[0].mxu1 }
  0xf6   :  { %v1316_v33 = vpop.f32.mrb[1].mxu0  ;;  %v1352_v34 = vpop.f32.mrb[1].mxu1 }
  0xf7   :  { %v1990_v35 = vadd.f32 %v1316_v33, %v1315_v31  ;;  %v1318_v36 = vpop.f32.mrb[2].mxu0  ;;  %v1992_v37 = vadd.f32 %v1352_v34, %v1351_v32  ;;  %v1354_v38 = vpop.f32.mrb[2].mxu1 }
  0xf8   :  { %v1319_v39 = vpop.f32.mrb[3].mxu0  ;;  %v1355_v40 = vpop.f32.mrb[3].mxu1 }
  0xf9   :  { %v1994_v41 = vadd.f32 %v1319_v39, %v1318_v36  ;;  %v1996_v24 = vadd.f32 %v1355_v40, %v1354_v38  ;;  %v712_v38 = vadd.f32 %v1990_v35, %v2011_v62 }
  0xfd   :  { %v1321_v42 = vpop.f32.mrb[4].mxu0  ;;  %v1357_v43 = vpop.f32.mrb[4].mxu1 }
  0xfe   :  { %v1322_v44 = vpop.f32.mrb[5].mxu0  ;;  %v1358_v45 = vpop.f32.mrb[5].mxu1 }
  0xff   :  { %v1998_v46 = vadd.f32 %v1322_v44, %v1321_v42  ;;  %v1324_v47 = vpop.f32.mrb[6].mxu0  ;;  %v2000_v48 = vadd.f32 %v1358_v45, %v1357_v43  ;;  %v1360_v49 = vpop.f32.mrb[6].mxu1 }
 0x100   :  { %v1325_v50 = vpop.f32.mrb[7].mxu0  ;;  %v1361_v51 = vpop.f32.mrb[7].mxu1 }
 0x101   :  { %v2002_v52 = vadd.f32 %v1325_v50, %v1324_v47  ;;  %v2004_v53 = vadd.f32 %v1361_v51, %v1360_v49  ;;  %v715_v47 = vadd.f32 %v1994_v41, %v2011_v62 }
 0x105   :  { %v1327_v54 = vpop.f32.mrb[8].mxu0  ;;  %v1363_v55 = vpop.f32.mrb[8].mxu1 }
 0x106   :  { %v1328_v56 = vpop.f32.mrb[9].mxu0  ;;  %v1364_v57 = vpop.f32.mrb[9].mxu1 }
 0x107   :  { %v2006_v58 = vadd.f32 %v1328_v56, %v1327_v54  ;;  %v1330_v59 = vpop.f32.mrb[10].mxu0  ;;  %v1365_v60 = vadd.f32 %v1364_v57, %v1363_v55  ;;  %v1366_v61 = vpop.f32.mrb[10].mxu1  ;;  %v1251_v54 = vld [vmem:[%s2198_s3] sm:$0xff]  }
 0x108   :  { %v1331_v63 = vpop.f32.mrb[11].mxu0  ;;  %v1367_v0 = vpop.f32.mrb[11].mxu1  ;;  %v1252_v35 = vunpack.c.l.bf16 %v1251_v54 }
 0x109   :  { %v2014_v1 = vadd.f32 %v1365_v60, %v2011_v62  ;;  %v2016_v2 = vadd.f32 %v1331_v63, %v1330_v59  ;;  %v1368_v3 = vadd.f32 %v1367_v0, %v1366_v61  ;;  %v1253_v63 = vunpack.c.h.bf16 %v1251_v54 }
 0x10a   :  { %v720_v0 = vadd.f32 %v1998_v46, %v2011_v62 }
 0x10b   :  { %v2019_v4 = vadd.f32 %v1368_v3, %v2011_v62 }
 0x10d   :  { %v1333_v5 = vpop.f32.mrb[12].mxu0  ;;  %v1369_v6 = vpop.f32.mrb[12].mxu1 }
 0x10e   :  { %v1334_v7 = vpop.f32.mrb[13].mxu0  ;;  %v1370_v8 = vpop.f32.mrb[13].mxu1 }
 0x10f   :  { %v2021_v9 = vadd.f32 %v1334_v7, %v1333_v5  ;;  %v1336_v10 = vpop.f32.mrb[14].mxu0  ;;  %v1371_v11 = vadd.f32 %v1370_v8, %v1369_v6  ;;  %v1372_v12 = vpop.f32.mrb[14].mxu1 }
 0x110   :  { %v1337_v13 = vpop.f32.mrb[15].mxu0  ;;  %v1373_v14 = vpop.f32.mrb[15].mxu1 }
 0x111   :  { %v2024_v15 = vadd.f32 %v1371_v11, %v2011_v62  ;;  %v2026_v16 = vadd.f32 %v1337_v13, %v1336_v10  ;;  %v1374_v17 = vadd.f32 %v1373_v14, %v1372_v12  ;;  %v723_v11 = vadd.f32 %v2002_v52, %v2011_v62  ;;  %v1290_v14 = vld [vmem:[%s2198_s3 + $0x8] sm:$0xff]  }
 0x113   :  { %v2029_v18 = vadd.f32 %v1374_v17, %v2011_v62 }
 0x115   :  { %v1339_v19 = vpop.f32.mrb[16].mxu0  ;;  %v1375_v20 = vpop.f32.mrb[16].mxu1 }
 0x116   :  { %v1340_v21 = vpop.f32.mrb[17].mxu0  ;;  %v1376_v22 = vpop.f32.mrb[17].mxu1 }
 0x117   :  { %v2031_v23 = vadd.f32 %v1340_v21, %v1339_v19  ;;  %v1342_v25 = vpop.f32.mrb[18].mxu0  ;;  %v1377_v26 = vadd.f32 %v1376_v22, %v1375_v20  ;;  %v1378_v27 = vpop.f32.mrb[18].mxu1  ;;  %v1256_v21 = vunpack.c.l.bf16 %v1290_v14 }
 0x118   :  { %v1343_v28 = vpop.f32.mrb[19].mxu0  ;;  %v1379_v29 = vpop.f32.mrb[19].mxu1 }
 0x119   :  { %v2034_v30 = vadd.f32 %v1377_v26, %v2011_v62  ;;  %v2036_v31 = vadd.f32 %v1343_v28, %v1342_v25  ;;  %v1257_v28 = vunpack.c.h.bf16 %v1290_v14  ;;  %v728_v29 = vadd.f32 %v2006_v58, %v2011_v62 }
 0x11d   :  { %v1345_v32 = vpop.f32.mrb[20].mxu0  ;;  %v1397_v33 = vpop.f32.mrb[20].mxu1 }
 0x11e   :  { %v1346_v34 = vpop.f32.mrb[21].mxu0  ;;  %v1398_v36 = vpop.f32.mrb[21].mxu1 }
 0x11f   :  { %v2040_v39 = vadd.f32 %v1346_v34, %v1345_v32  ;;  %v1399_v40 = vadd.f32 %v1398_v36, %v1397_v33  ;;  %v1348_v42 = vpop.f32.mrb[22].mxu0  ;;  %v1400_v43 = vpop.f32.mrb[22].mxu1 }
 0x120   :  { %v1349_v44 = vpop.f32.mrb[23].mxu0  ;;  %v1401_v45 = vpop.f32.mrb[23].mxu1 }
 0x121   :  { %v2044_v49 = vadd.f32 %v1349_v44, %v1348_v42  ;;  %v1402_v50 = vadd.f32 %v1401_v45, %v1400_v43  ;;  %v832_v51 = vadd.f32 %v1399_v40, %v712_v38  ;;  %v731_v43 = vadd.f32 %v2016_v2, %v2011_v62 }
 0x123   :  { %v835_v55 = vadd.f32 %v1402_v50, %v715_v47  ;;  %v1291_v47 = vld [vmem:[%s2198_s3 + $0x10] sm:$0xff]  }
 0x125   :  { %v1403_v56 = vpop.f32.mrb[24].mxu1  ;;  %v951_v57 = vpop.f32.mrb[24].mxu0 }
 0x126   :  { %v952_v59 = vadd.f32 %v951_v57, %v832_v51  ;;  %v1404_v60 = vpop.f32.mrb[25].mxu1  ;;  %v1488_v61 = vpop.f32.mrb[25].mxu0 }
 0x127   :  { %v1405_v41 = vadd.f32 %v1404_v60, %v1403_v56  ;;  %v1406_v3 = vpop.f32.mrb[26].mxu1  ;;  %v954_v5 = vpop.f32.mrb[26].mxu0  ;;  %v1261_v60 = vunpack.c.h.bf16 %v1291_v47  ;;  %v736_v61 = vadd.f32 %v2021_v9, %v2011_v62 }
 0x128   :  { %v1079_v6 = vadd.f32 %v1252_v35, %v952_v59  ;;  %v955_v7 = vadd.f32 %v954_v5, %v835_v55  ;;  %v1407_v8 = vpop.f32.mrb[27].mxu1  ;;  %v1489_v10 = vpop.f32.mrb[27].mxu0  ;;  %v1260_v55 = vunpack.c.l.bf16 %v1291_v47 }
 0x129   :  { %v1408_v12 = vadd.f32 %v1407_v8, %v1406_v3  ;;  %v840_v13 = vadd.f32 %v1405_v41, %v720_v0  ;;  %v739_v8 = vadd.f32 %v2026_v16, %v2011_v62 }
 0x12a   :  { %v1100_v17 = vmax.f32 %v1079_v6, 0.0  ;;  %v1080_v19 = vadd.f32 %v1253_v63, %v955_v7 }
 0x12b   :  { %v843_v20 = vadd.f32 %v1408_v12, %v723_v11  ;;  %v1292_v12 = vld [vmem:[%s2198_s3 + $0x18] sm:$0xff]  }
 0x12c   :  { %1121 = vst.msk [vmem:[%s2199_s4] sm:$0xff] %vm643_vm1, %v1100_v17  ;;  %v1101_v46 = vmax.f32 %v1080_v19, 0.0  ;;  %v1264_v19 = vunpack.c.l.bf16 %v1292_v12 }
 0x12d   :  { %v1409_v22 = vpop.f32.mrb[28].mxu1  ;;  %v959_v25 = vpop.f32.mrb[28].mxu0 }
 0x12e   :  { %1122 = vst.msk [vmem:[%s2199_s4 + $0x8] sm:$0xff] %vm643_vm1, %v1101_v46  ;;  %v960_v52 = vadd.f32 %v959_v25, %v840_v13  ;;  %v1410_v26 = vpop.f32.mrb[29].mxu1  ;;  %v1492_v27 = vpop.f32.mrb[29].mxu0  ;;  %v1265_v25 = vunpack.c.h.bf16 %v1292_v12 }
 0x12f   :  { %v1411_v32 = vadd.f32 %v1410_v26, %v1409_v22  ;;  %v1412_v33 = vpop.f32.mrb[30].mxu1  ;;  %v962_v34 = vpop.f32.mrb[30].mxu0 }
 0x130   :  { %v1081_v36 = vadd.f32 %v1256_v21, %v960_v52  ;;  %v963_v38 = vadd.f32 %v962_v34, %v843_v20  ;;  %v1413_v40 = vpop.f32.mrb[31].mxu1  ;;  %v1493_v42 = vpop.f32.mrb[31].mxu0  ;;  %v744_v52 = vadd.f32 %v2031_v23, %v2011_v62 }
 0x131   :  { %v1414_v44 = vadd.f32 %v1413_v40, %v1412_v33  ;;  %v848_v45 = vadd.f32 %v1411_v32, %v728_v29  ;;  %v1293_v42 = vld [vmem:[%s2198_s3 + $0x20] sm:$0xff]  }
 0x132   :  { %v1102_v50 = vmax.f32 %v1081_v36, 0.0  ;;  %v1082_v51 = vadd.f32 %v1257_v28, %v963_v38  ;;  %v747_v36 = vadd.f32 %v2036_v31, %v2011_v62  ;;  %v1268_v47 = vunpack.c.l.bf16 %v1293_v42 }
 0x133   :  { %v851_v54 = vadd.f32 %v1414_v44, %v731_v43 }
 0x134   :  { %1123 = vst.msk [vmem:[%s2199_s4 + $0x10] sm:$0xff] %vm643_vm1, %v1102_v50  ;;  %v1103_v58 = vmax.f32 %v1082_v51, 0.0 }
 0x135   :  { %v1415_v35 = vpop.f32.mrb[32].mxu1  ;;  %v967_v56 = vpop.f32.mrb[32].mxu0 }
 0x136   :  { %1124 = vst.msk [vmem:[%s2199_s4 + $0x18] sm:$0xff] %vm643_vm1, %v1103_v58  ;;  %v968_v2 = vadd.f32 %v967_v56, %v848_v45  ;;  %v1416_v57 = vpop.f32.mrb[33].mxu1  ;;  %v1496_v59 = vpop.f32.mrb[33].mxu0 }
 0x137   :  { %v1417_v63 = vadd.f32 %v1416_v57, %v1415_v35  ;;  %v1418_v0 = vpop.f32.mrb[34].mxu1  ;;  %v970_v41 = vpop.f32.mrb[34].mxu0  ;;  %v752_v35 = vadd.f32 %v2040_v39, %v2011_v62 }
 0x138   :  { %v1083_v3 = vadd.f32 %v1260_v55, %v968_v2  ;;  %v971_v5 = vadd.f32 %v970_v41, %v851_v54  ;;  %v1419_v6 = vpop.f32.mrb[35].mxu1  ;;  %v1497_v7 = vpop.f32.mrb[35].mxu0  ;;  %v1269_v55 = vunpack.c.h.bf16 %v1293_v42 }
 0x139   :  { %v1420_v10 = vadd.f32 %v1419_v6, %v1418_v0  ;;  %v856_v11 = vadd.f32 %v1417_v63, %v736_v61  ;;  %v755_v0 = vadd.f32 %v2044_v49, %v2011_v62 }
 0x13a   :  { %v1104_v13 = vmax.f32 %v1083_v3, 0.0  ;;  %v1084_v14 = vadd.f32 %v1261_v60, %v971_v5  ;;  %v1294_v5 = vld [vmem:[%s2198_s3 + $0x28] sm:$0xff]  }
 0x13b   :  { %v859_v17 = vadd.f32 %v1420_v10, %v739_v8  ;;  %v1272_v10 = vunpack.c.l.bf16 %v1294_v5 }
 0x13c   :  { %1125 = vst.msk [vmem:[%s2199_s4 + $0x20] sm:$0xff] %vm643_vm1, %v1104_v13  ;;  %v1105_v9 = vmax.f32 %v1084_v14, 0.0 }
 0x13d   :  { %v1421_v20 = vpop.f32.mrb[36].mxu1  ;;  %v975_v46 = vpop.f32.mrb[36].mxu0 }
 0x13e   :  { %1126 = vst.msk [vmem:[%s2199_s4 + $0x28] sm:$0xff] %vm643_vm1, %v1105_v9  ;;  %v976_v16 = vadd.f32 %v975_v46, %v856_v11  ;;  %v1422_v21 = vpop.f32.mrb[37].mxu1  ;;  %v1500_v22 = vpop.f32.mrb[37].mxu0  ;;  %v760_v9 = vadd.f32 %v1992_v37, %v2011_v62 }
 0x13f   :  { %v1423_v26 = vadd.f32 %v1422_v21, %v1421_v20  ;;  %v1424_v27 = vpop.f32.mrb[38].mxu1  ;;  %v978_v28 = vpop.f32.mrb[38].mxu0 }
 0x140   :  { %v1085_v29 = vadd.f32 %v1264_v19, %v976_v16  ;;  %v979_v32 = vadd.f32 %v978_v28, %v859_v17  ;;  %v1425_v33 = vpop.f32.mrb[39].mxu1  ;;  %v1501_v34 = vpop.f32.mrb[39].mxu0  ;;  %v1273_v17 = vunpack.c.h.bf16 %v1294_v5  ;;  %v1295_v28 = vld [vmem:[%s2198_s3 + $0x30] sm:$0xff]  }
 0x141   :  { %v1426_v38 = vadd.f32 %v1425_v33, %v1424_v27  ;;  %v864_v40 = vadd.f32 %v1423_v26, %v744_v52  ;;  %v763_v52 = vadd.f32 %v1996_v24, %v2011_v62  ;;  %v1276_v34 = vunpack.c.l.bf16 %v1295_v28 }
 0x142   :  { %v1106_v43 = vmax.f32 %v1085_v29, 0.0  ;;  %v1086_v44 = vadd.f32 %v1265_v25, %v979_v32 }
 0x143   :  { %v867_v45 = vadd.f32 %v1426_v38, %v747_v36 }
 0x144   :  { %1127 = vst.msk [vmem:[%s2199_s4 + $0x30] sm:$0xff] %vm643_vm1, %v1106_v43  ;;  %v1107_v23 = vmax.f32 %v1086_v44, 0.0  ;;  %v1277_v43 = vunpack.c.h.bf16 %v1295_v28  ;;  %v768_v44 = vadd.f32 %v2000_v48, %v2011_v62 }
 0x145   :  { %v1427_v50 = vpop.f32.mrb[40].mxu1  ;;  %v983_v51 = vpop.f32.mrb[40].mxu0 }
 0x146   :  { %1128 = vst.msk [vmem:[%s2199_s4 + $0x38] sm:$0xff] %vm643_vm1, %v1107_v23  ;;  %v984_v31 = vadd.f32 %v983_v51, %v864_v40  ;;  %v1428_v54 = vpop.f32.mrb[41].mxu1  ;;  %v1504_v58 = vpop.f32.mrb[41].mxu0 }
 0x147   :  { %v1429_v56 = vadd.f32 %v1428_v54, %v1427_v50  ;;  %v1430_v2 = vpop.f32.mrb[42].mxu1  ;;  %v986_v57 = vpop.f32.mrb[42].mxu0  ;;  %v771_v58 = vadd.f32 %v2004_v53, %v2011_v62 }
 0x148   :  { %v1087_v59 = vadd.f32 %v1268_v47, %v984_v31  ;;  %v987_v60 = vadd.f32 %v986_v57, %v867_v45  ;;  %v1431_v61 = vpop.f32.mrb[43].mxu1  ;;  %v1505_v63 = vpop.f32.mrb[43].mxu0 }
 0x149   :  { %v1432_v41 = vadd.f32 %v1431_v61, %v1430_v2  ;;  %v872_v3 = vadd.f32 %v1429_v56, %v752_v35  ;;  %v1296_v56 = vld [vmem:[%s2198_s3 + $0x38] sm:$0xff]  }
 0x14a   :  { %v1108_v6 = vmax.f32 %v1087_v59, 0.0  ;;  %v1088_v7 = vadd.f32 %v1269_v55, %v987_v60  ;;  %v1280_v60 = vunpack.c.l.bf16 %v1296_v56 }
 0x14b   :  { %v875_v8 = vadd.f32 %v1432_v41, %v755_v0  ;;  %v1281_v41 = vunpack.c.h.bf16 %v1296_v56 }
 0x14c   :  { %1129 = vst.msk [vmem:[%s2199_s4 + $0x40] sm:$0xff] %vm643_vm1, %v1108_v6  ;;  %v1109_v39 = vmax.f32 %v1088_v7, 0.0 }
 0x14d   :  { %v1433_v11 = vpop.f32.mrb[44].mxu1  ;;  %v991_v12 = vpop.f32.mrb[44].mxu0 }
 0x14e   :  { %1130 = vst.msk [vmem:[%s2199_s4 + $0x48] sm:$0xff] %vm643_vm1, %v1109_v39  ;;  %v992_v49 = vadd.f32 %v991_v12, %v872_v3  ;;  %v1434_v13 = vpop.f32.mrb[45].mxu1  ;;  %v1508_v14 = vpop.f32.mrb[45].mxu0 }
 0x14f   :  { %v1435_v19 = vadd.f32 %v1434_v13, %v1433_v11  ;;  %v1436_v20 = vpop.f32.mrb[46].mxu1  ;;  %v994_v46 = vpop.f32.mrb[46].mxu0 }
 0x150   :  { %v1089_v16 = vadd.f32 %v1272_v10, %v992_v49  ;;  %v995_v21 = vadd.f32 %v994_v46, %v875_v8  ;;  %v1437_v22 = vpop.f32.mrb[47].mxu1  ;;  %v1509_v25 = vpop.f32.mrb[47].mxu0  ;;  %v1297_v49 = vld [vmem:[%s2198_s3 + $0x40] sm:$0xff]  }
 0x151   :  { %v1438_v26 = vadd.f32 %v1437_v22, %v1436_v20  ;;  %v880_v27 = vadd.f32 %v1435_v19, %v760_v9  ;;  %v1284_v19 = vunpack.c.l.bf16 %v1297_v49  ;;  %v1285_v22 = vunpack.c.h.bf16 %v1297_v49 }
 0x152   :  { %v1110_v29 = vmax.f32 %v1089_v16, 0.0  ;;  %v1090_v32 = vadd.f32 %v1273_v17, %v995_v21 }
 0x153   :  { %v883_v33 = vadd.f32 %v1438_v26, %v763_v52 }
 0x154   :  { %1131 = vst.msk [vmem:[%s2199_s4 + $0x50] sm:$0xff] %vm643_vm1, %v1110_v29  ;;  %v1111_v37 = vmax.f32 %v1090_v32, 0.0 }
 0x155   :  { %v1439_v36 = vpop.f32.mrb[48].mxu1  ;;  %v999_v38 = vpop.f32.mrb[48].mxu0 }
 0x156   :  { %1132 = vst.msk [vmem:[%s2199_s4 + $0x58] sm:$0xff] %vm643_vm1, %v1111_v37  ;;  %v1000_v24 = vadd.f32 %v999_v38, %v880_v27  ;;  %v1440_v40 = vpop.f32.mrb[49].mxu1  ;;  %v1512_v42 = vpop.f32.mrb[49].mxu0  ;;  %v1298_v37 = vld [vmem:[%s2198_s3 + $0x48] sm:$0xff]  }
 0x157   :  { %v1441_v45 = vadd.f32 %v1440_v40, %v1439_v36  ;;  %v1442_v23 = vpop.f32.mrb[50].mxu1  ;;  %v1002_v47 = vpop.f32.mrb[50].mxu0  ;;  %v1288_v40 = vunpack.c.l.bf16 %v1298_v37 }
 0x158   :  { %v1091_v50 = vadd.f32 %v1276_v34, %v1000_v24  ;;  %v1003_v51 = vadd.f32 %v1002_v47, %v883_v33  ;;  %v1443_v31 = vpop.f32.mrb[51].mxu1  ;;  %v1513_v54 = vpop.f32.mrb[51].mxu0 }
 0x159   :  { %v1444_v55 = vadd.f32 %v1443_v31, %v1442_v23  ;;  %v888_v35 = vadd.f32 %v1441_v45, %v768_v44  ;;  %v1289_v23 = vunpack.c.h.bf16 %v1298_v37 }
 0x15a   :  { %v1112_v2 = vmax.f32 %v1091_v50, 0.0  ;;  %v1092_v57 = vadd.f32 %v1277_v43, %v1003_v51 }
 0x15b   :  { %v891_v59 = vadd.f32 %v1444_v55, %v771_v58 }
 0x15c   :  { %1133 = vst.msk [vmem:[%s2199_s4 + $0x60] sm:$0xff] %vm643_vm1, %v1112_v2  ;;  %v1113_v48 = vmax.f32 %v1092_v57, 0.0 }
 0x15d   :  { %v1445_v61 = vpop.f32.mrb[52].mxu1  ;;  %v1007_v63 = vpop.f32.mrb[52].mxu0 }
 0x15e   :  { %1134 = vst.msk [vmem:[%s2199_s4 + $0x68] sm:$0xff] %vm643_vm1, %v1113_v48  ;;  %v1008_v53 = vadd.f32 %v1007_v63, %v888_v35  ;;  %v1446_v62 = vpop.f32.mrb[53].mxu1  ;;  %v1516_v0 = vpop.f32.mrb[53].mxu0  ;;  %v1057_v35 = vld [vmem:[%s2198_s3 + $0x50] sm:$0x1] }
 0x15f   :  { %v1447_v3 = vadd.f32 %v1446_v62, %v1445_v61  ;;  %v1448_v5 = vpop.f32.mrb[54].mxu1  ;;  %v1010_v6 = vpop.f32.mrb[54].mxu0 }
 0x160   :  { %v1093_v7 = vadd.f32 %v1280_v60, %v1008_v53  ;;  %v1011_v8 = vadd.f32 %v1010_v6, %v891_v59  ;;  %v1449_v39 = vpop.f32.mrb[55].mxu1  ;;  %v1517_v10 = vpop.f32.mrb[55].mxu0  ;;  %v1078_v59 = vunpack.c.l.bf16 %v1057_v35 }
 0x161   :  { %v1450_v11 = vadd.f32 %v1449_v39, %v1448_v5  ;;  %v896_v12 = vadd.f32 %v1447_v3, %v2014_v1 }
 0x162   :  { %v1114_v13 = vmax.f32 %v1093_v7, 0.0  ;;  %v1094_v14 = vadd.f32 %v1281_v41, %v1011_v8 }
 0x163   :  { %v899_v17 = vadd.f32 %v1450_v11, %v2019_v4 }
 0x164   :  { %1135 = vst.msk [vmem:[%s2199_s4 + $0x70] sm:$0xff] %vm643_vm1, %v1114_v13  ;;  %v1115_v9 = vmax.f32 %v1094_v14, 0.0 }
 0x165   :  { %v1451_v20 = vpop.f32.mrb[56].mxu1  ;;  %v1015_v46 = vpop.f32.mrb[56].mxu0 }
 0x166   :  { %1136 = vst.msk [vmem:[%s2199_s4 + $0x78] sm:$0xff] %vm643_vm1, %v1115_v9  ;;  %v1016_v1 = vadd.f32 %v1015_v46, %v896_v12  ;;  %v1452_v16 = vpop.f32.mrb[57].mxu1  ;;  %v1520_v21 = vpop.f32.mrb[57].mxu0 }
 0x167   :  { %v1453_v25 = vadd.f32 %v1452_v16, %v1451_v20  ;;  %v1454_v4 = vpop.f32.mrb[58].mxu1  ;;  %v1018_v52 = vpop.f32.mrb[58].mxu0 }
 0x168   :  { %v1095_v26 = vadd.f32 %v1284_v19, %v1016_v1  ;;  %v1019_v27 = vadd.f32 %v1018_v52, %v899_v17  ;;  %v1455_v28 = vpop.f32.mrb[59].mxu1  ;;  %v1521_v29 = vpop.f32.mrb[59].mxu0 }
 0x169   :  { %v1456_v32 = vadd.f32 %v1455_v28, %v1454_v4  ;;  %v904_v33 = vadd.f32 %v1453_v25, %v2024_v15 }
 0x16a   :  { %v1116_v34 = vmax.f32 %v1095_v26, 0.0  ;;  %v1096_v36 = vadd.f32 %v1285_v22, %v1019_v27 }
 0x16b   :  { %v907_v38 = vadd.f32 %v1456_v32, %v2029_v18 }
 0x16c   :  { %1137 = vst.msk [vmem:[%s2199_s4 + $0x80] sm:$0xff] %vm643_vm1, %v1116_v34  ;;  %v1117_v24 = vmax.f32 %v1096_v36, 0.0 }
 0x16d   :  { %v1457_v42 = vpop.f32.mrb[60].mxu1  ;;  %v1023_v43 = vpop.f32.mrb[60].mxu0 }
 0x16e   :  { %1138 = vst.msk [vmem:[%s2199_s4 + $0x88] sm:$0xff] %vm643_vm1, %v1117_v24  ;;  %v1024_v15 = vadd.f32 %v1023_v43, %v904_v33  ;;  %v1458_v44 = vpop.f32.mrb[61].mxu1  ;;  %v1524_v45 = vpop.f32.mrb[61].mxu0 }
 0x16f   :  { %v1459_v47 = vadd.f32 %v1458_v44, %v1457_v42  ;;  %v1026_v18 = vpop.f32.mrb[62].mxu0  ;;  %v1460_v50 = vpop.f32.mrb[62].mxu1 }
 0x170   :  { %v1097_v51 = vadd.f32 %v1288_v40, %v1024_v15  ;;  %v1027_v31 = vadd.f32 %v1026_v18, %v907_v38  ;;  %v1525_v54 = vpop.f32.mrb[63].mxu0  ;;  %v1461_v58 = vpop.f32.mrb[63].mxu1 }
 0x171   :  { %v912_v55 = vadd.f32 %v1459_v47, %v2034_v30 }
 0x172   :  { %v1118_v56 = vmax.f32 %v1097_v51, 0.0  ;;  %v1098_v2 = vadd.f32 %v1289_v23, %v1027_v31 }
 0x174   :  { %1139 = vst.msk [vmem:[%s2199_s4 + $0x90] sm:$0xff] %vm643_vm1, %v1118_v56  ;;  %v1119_v57 = vmax.f32 %v1098_v2, 0.0 }
 0x175   :  { %v1031_v48 = vpop.f32.mrb[64].mxu0 }
 0x176   :  { %1140 = vst.msk [vmem:[%s2199_s4 + $0x98] sm:$0xff] %vm643_vm1, %v1119_v57  ;;  %v1032_v30 = vadd.f32 %v1031_v48, %v912_v55  ;;  %v1528_v60 = vpop.f32.mrb[65].mxu0 }
 0x177   :  { %v1034_v61 = vpop.f32.mrb[66].mxu0 }
 0x178   :  { %v1099_v63 = vadd.f32 %v1078_v59, %v1032_v30  ;;  %v1529_v53 = vpop.f32.mrb[67].mxu0 }
 0x17a   :  { %v1120_v62 = vmax.f32 %v1099_v63, 0.0 }
 0x17c   :  { %1142 = vst.msk [vmem:[%s2199_s4 + $0xa0] sm:$0x3] %vm1141_vm2, %v1120_v62 }

// kernel: resnet_forward.13
= control target key start
LH: loop header
LB: loop body
LE: loop exit
PB: predicated region body
PF: predicated region fallthrough
CT: control target
= control target key end

     0   :  { %v1787_v24 = vmov 0.0   ;;  %vm1788_vm0 = vmmov 0   ;;  %vm643_vm1 = vcmask 523264   ;;  %vm1206_vm2 = vcmask 519168   ;;  %s2323_s1 = inlined_call_operand.vmem [shape: bf16[576,64], index: 1, kind: input, shape index: {}]   ;;  %s2324_s0 = inlined_call_operand.vmem [shape: bf16[162,576], index: 0, kind: input, shape index: {}]   ;;  %s2325_s2 = inlined_call_operand.vmem [shape: f32[1,64], index: 2, kind: input, shape index: {}]   ;;  %s2326_s3 = inlined_call_operand.vmem [shape: bf16[162,64], index: 3, kind: input, shape index: {}]   ;;  %s2327_s4 = inlined_call_operand.vmem [shape: bf16[162,64], index: 4, kind: output, shape index: {}]  }
   0x1   :  { %v1676_v0 = vld [vmem:[%s2323_s1 + $0x40] sm:$0xff]   ;;  %v1678_v2 = vld [vmem:[%s2323_s1 + $0x48] sm:$0xff]   ;;  %v1680_v4 = vld [vmem:[%s2323_s1 + $0x50] sm:$0xff]   ;;  %vm1227_vm3 = vcmask 516096  }
   0x2   :  { %v1677_v1 = vld [vmem:[%s2323_s1] sm:$0xff]   ;;  %1427 = vmatprep.subr.bf16.mxu0 %v1676_v0  ;;  %1658 = vmatprep.subr.bf16.mxu1 %v1676_v0  ;;  %v1679_v3 = vld [vmem:[%s2323_s1 + $0x8] sm:$0xff]   ;;  %v1681_v5 = vld [vmem:[%s2323_s1 + $0x10] sm:$0xff]  }
   0x3   :  { %1428 = vmatpush3.bf16.msra.mxu0 %v1677_v1  ;;  %1666 = vmatpush3.bf16.msra.mxu1 %v1677_v1  ;;  %v1682_v6 = vld [vmem:[%s2323_s1 + $0x58] sm:$0xff]   ;;  %v1684_v8 = vld [vmem:[%s2323_s1 + $0x60] sm:$0xff]   ;;  %v1686_v10 = vld [vmem:[%s2323_s1 + $0x68] sm:$0xff]  }
   0x4   :  { %1429 = vmatprep.subr.bf16.mxu0 %v1678_v2  ;;  %1659 = vmatprep.subr.bf16.mxu1 %v1678_v2  ;;  %v1683_v7 = vld [vmem:[%s2323_s1 + $0x18] sm:$0xff]   ;;  %v1685_v9 = vld [vmem:[%s2323_s1 + $0x20] sm:$0xff]   ;;  %v1697_v12 = vld [vmem:[%s2324_s0 + $0xf4] ss:$20 sps:$4 sm:$0xff]  }
   0x5   :  { %v1694_v11 = vld [vmem:[%s2324_s0 + $0x4] ss:$20 sps:$4 sm:$0xff]   ;;  %v1687_v13 = vld [vmem:[%s2323_s1 + $0x28] sm:$0xff]   ;;  %v1688_v14 = vld [vmem:[%s2323_s1 + $0x70] sm:$0xff]   ;;  %757 = vmatprep.mubr.bf16.mxu1 %v1697_v12 }
   0x6   :  { %709 = vmatprep.mubr.bf16.mxu0 %v1694_v11  ;;  %v1689_v15 = vld [vmem:[%s2323_s1 + $0x30] sm:$0xff]   ;;  %v1690_v16 = vld [vmem:[%s2323_s1 + $0x78] sm:$0xff]   ;;  %v1699_v18 = vld [vmem:[%s2323_s1 + $0xc0] sm:$0xff]  }
   0x7   :  { %1430 = vmatpush3.bf16.msra.mxu0 %v1679_v3  ;;  %1667 = vmatpush3.bf16.msra.mxu1 %v1679_v3  ;;  %v1691_v17 = vld [vmem:[%s2323_s1 + $0x38] sm:$0xff]   ;;  %v1692_v19 = vld [vmem:[%s2324_s0] ss:$20 sps:$4 sm:$0xff]   ;;  %v1695_v20 = vld [vmem:[%s2324_s0 + $0xf0] ss:$20 sps:$4 sm:$0xff]  }
   0x8   :  { %1431 = vmatprep.subr.bf16.mxu0 %v1680_v4  ;;  %1660 = vmatprep.subr.bf16.mxu1 %v1680_v4  ;;  %v1698_v21 = vld [vmem:[%s2323_s1 + $0x100] sm:$0xff]   ;;  %v1703_v25 = vld [vmem:[%s2324_s0 + $0x11c] ss:$20 sps:$4 sm:$0xff]   ;;  %v1707_v26 = vld [vmem:[%s2323_s1 + $0xc8] sm:$0xff]  }
   0x9   :  { %v1700_v22 = vld [vmem:[%s2323_s1 + $0x80] sm:$0xff]   ;;  %v1708_v27 = vld [vmem:[%s2323_s1 + $0x88] sm:$0xff]   ;;  %v1709_v30 = vld [vmem:[%s2323_s1 + $0xd0] sm:$0xff]  }
   0xa   :  { %v1701_v23 = vld [vmem:[%s2324_s0 + $0x2c] ss:$20 sps:$4 sm:$0xff]   ;;  %v1705_v29 = vld [vmem:[%s2324_s0 + $0x28] ss:$20 sps:$4 sm:$0xff]   ;;  %v1711_v32 = vld [vmem:[%s2323_s1 + $0x90] sm:$0xff]  }
   0xb   :  { %1432 = vmatpush3.bf16.msra.mxu0 %v1681_v5  ;;  %1668 = vmatpush3.bf16.msra.mxu1 %v1681_v5  ;;  %v1710_v28 = vld [vmem:[%s2323_s1 + $0x108] sm:$0xff]   ;;  %v1714_v34 = vld [vmem:[%s2324_s0 + $0x144] ss:$20 sps:$4 sm:$0xff]   ;;  %v1728_v36 = vld [vmem:[%s2323_s1 + $0x110] sm:$0xff]  }
   0xc   :  { %1433 = vmatprep.subr.bf16.mxu0 %v1682_v6  ;;  %1661 = vmatprep.subr.bf16.mxu1 %v1682_v6  ;;  %v1706_v31 = vld [vmem:[%s2324_s0 + $0x118] ss:$20 sps:$4 sm:$0xff]   ;;  %v1712_v33 = vld [vmem:[%s2324_s0 + $0x54] ss:$20 sps:$4 sm:$0xff]   ;;  %v1716_v38 = vld [vmem:[%s2324_s0 + $0x50] ss:$20 sps:$4 sm:$0xff]  }
   0xd   :  { %v1718_v35 = vld [vmem:[%s2323_s1 + $0xd8] sm:$0xff]   ;;  %v1717_v39 = vld [vmem:[%s2324_s0 + $0x140] ss:$20 sps:$4 sm:$0xff]   ;;  %v1729_v45 = vld [vmem:[%s2323_s1 + $0xe8] sm:$0xff]  }
   0xe   :  { %v1719_v37 = vld [vmem:[%s2323_s1 + $0x98] sm:$0xff]   ;;  %v1724_v40 = vld [vmem:[%s2323_s1 + $0xe0] sm:$0xff]   ;;  %v1730_v46 = vld [vmem:[%s2323_s1 + $0xa8] sm:$0xff]  }
   0xf   :  { %1434 = vmatpush3.bf16.msra.mxu0 %v1683_v7  ;;  %1669 = vmatpush3.bf16.msra.mxu1 %v1683_v7  ;;  %v1720_v41 = vld [vmem:[%s2324_s0 + $0x7c] ss:$20 sps:$4 sm:$0xff]   ;;  %v1722_v42 = vld [vmem:[%s2324_s0 + $0x16c] ss:$20 sps:$4 sm:$0xff]   ;;  %v1731_v51 = vld [vmem:[%s2324_s0 + $0xa4] ss:$20 sps:$4 sm:$0xff]  }
  0x10   :  { %1435 = vmatprep.subr.bf16.mxu0 %v1684_v8  ;;  %1662 = vmatprep.subr.bf16.mxu1 %v1684_v8  ;;  %v1727_v43 = vld [vmem:[%s2323_s1 + $0xa0] sm:$0xff]   ;;  %v1740_v44 = vld [vmem:[%s2323_s1 + $0x118] sm:$0xff]   ;;  %v78_v47 = vld [vmem:[%s2324_s0 + $0x190] sm:$0x11] }
  0x11   :  { %v1736_v48 = vld [vmem:[%s2323_s1 + $0xf0] sm:$0xff]   ;;  %v1725_v49 = vld [vmem:[%s2324_s0 + $0x78] ss:$20 sps:$4 sm:$0xff]   ;;  %v1726_v50 = vld [vmem:[%s2324_s0 + $0x168] ss:$20 sps:$4 sm:$0xff]   ;;  %v1285_v52 = vcombine.high %v78_v47, %v78_v47  ;;  %v1284_v57 = vcombine.low %v78_v47, %v78_v47 }
  0x12   :  { %v1737_v53 = vld [vmem:[%s2323_s1 + $0xb0] sm:$0xff]   ;;  %v1738_v54 = vld [vmem:[%s2323_s1 + $0xf8] sm:$0xff]   ;;  %v1741_v58 = vld [vmem:[%s2324_s0 + $0xcc] ss:$20 sps:$4 sm:$0xff]  }
  0x13   :  { %1436 = vmatpush3.bf16.msra.mxu0 %v1685_v9  ;;  %1670 = vmatpush3.bf16.msra.mxu1 %v1685_v9  ;;  %v1739_v55 = vld [vmem:[%s2323_s1 + $0xb8] sm:$0xff]   ;;  %v1734_v56 = vld [vmem:[%s2324_s0 + $0xa0] ss:$20 sps:$4 sm:$0xff]   ;;  %v1749_v63 = vld [vmem:[%s2324_s0 + $0x30] ss:$20 sps:$4 sm:$0xff]  }
  0x14   :  { %1437 = vmatprep.subr.bf16.mxu0 %v1686_v10  ;;  %1663 = vmatprep.subr.bf16.mxu1 %v1686_v10  ;;  %v1745_v59 = vld [vmem:[%s2324_s0 + $0xc] ss:$20 sps:$4 sm:$0xff]   ;;  %v1743_v60 = vld [vmem:[%s2324_s0 + $0x8] ss:$20 sps:$4 sm:$0xff]   ;;  %v1750_v0 = vld [vmem:[%s2324_s0 + $0x10] ss:$20 sps:$4 sm:$0xff]  }
  0x15   :  { %v1746_v61 = vld [vmem:[%s2324_s0 + $0xc8] ss:$20 sps:$4 sm:$0xff]   ;;  %v1753_v2 = vld [vmem:[%s2324_s0 + $0x58] ss:$20 sps:$4 sm:$0xff]   ;;  %v1757_v5 = vld [vmem:[%s2324_s0 + $0x80] ss:$20 sps:$4 sm:$0xff]  }
  0x16   :  { %v1747_v62 = vld [vmem:[%s2324_s0 + $0x34] ss:$20 sps:$4 sm:$0xff]   ;;  %v1751_v1 = vld [vmem:[%s2324_s0 + $0x5c] ss:$20 sps:$4 sm:$0xff]   ;;  %v1754_v3 = vld [vmem:[%s2324_s0 + $0x38] ss:$20 sps:$4 sm:$0xff]  }
  0x17   :  { %1438 = vmatpush3.bf16.msra.mxu0 %v1687_v13  ;;  %1671 = vmatpush3.bf16.msra.mxu1 %v1687_v13  ;;  %v1755_v4 = vld [vmem:[%s2324_s0 + $0x84] ss:$20 sps:$4 sm:$0xff]   ;;  %v1758_v6 = vld [vmem:[%s2324_s0 + $0x60] ss:$20 sps:$4 sm:$0xff]   ;;  %v1761_v8 = vld [vmem:[%s2324_s0 + $0xa8] ss:$20 sps:$4 sm:$0xff]  }
  0x18   :  { %1439 = vmatprep.subr.bf16.mxu0 %v1688_v14  ;;  %1664 = vmatprep.subr.bf16.mxu1 %v1688_v14  ;;  %v1759_v7 = vld [vmem:[%s2324_s0 + $0xac] ss:$20 sps:$4 sm:$0xff]   ;;  %v1762_v9 = vld [vmem:[%s2324_s0 + $0x88] ss:$20 sps:$4 sm:$0xff]   ;;  %v1765_v11 = vld [vmem:[%s2324_s0 + $0xd0] ss:$20 sps:$4 sm:$0xff]  }
  0x19   :  { %v1763_v10 = vld [vmem:[%s2324_s0 + $0xd4] ss:$20 sps:$4 sm:$0xff]   ;;  %v1766_v12 = vld [vmem:[%s2324_s0 + $0xb0] ss:$20 sps:$4 sm:$0xff]   ;;  %v1769_v14 = vld [vmem:[%s2324_s0 + $0xf8] ss:$20 sps:$4 sm:$0xff]  }
  0x1a   :  { %v1767_v13 = vld [vmem:[%s2324_s0 + $0xfc] ss:$20 sps:$4 sm:$0xff]  }
  0x1b   :  { %1440 = vmatpush3.bf16.msra.mxu0 %v1689_v15  ;;  %1672 = vmatpush3.bf16.msra.mxu1 %v1689_v15  ;;  %v1770_v15 = vld [vmem:[%s2324_s0 + $0xd8] ss:$20 sps:$4 sm:$0xff]  }
  0x1c   :  { %1441 = vmatprep.subr.bf16.mxu0 %v1690_v16  ;;  %1665 = vmatprep.subr.bf16.mxu1 %v1690_v16  ;;  %v1771_v16 = vld [vmem:[%s2324_s0 + $0x124] ss:$20 sps:$4 sm:$0xff]  }
  0x1f   :  { %1442 = vmatpush3.bf16.msra.mxu0 %v1691_v17  ;;  %1673 = vmatpush3.bf16.msra.mxu1 %v1691_v17  ;;  %v1773_v17 = vld [vmem:[%s2324_s0 + $0x120] ss:$20 sps:$4 sm:$0xff]  }
  0x20   :  { %1606 = vmatprep.subr.bf16.mxu0 %v1787_v24  ;;  %1509 = vmatprep.subr.bf16.mxu1 %v1699_v18  ;;  %v1774_v18 = vld [vmem:[%s2324_s0 + $0x100] ss:$20 sps:$4 sm:$0xff]  }
  0x22   :  { %710 = vmatmul.mubr.bf16.vlgmr.msra.gmra.mrb[0].mxu0 %v1692_v19  ;;  %758 = vmatmul.mubr.bf16.vlgmr.msra.gmra.mrb[0].mxu1 %v1695_v20  ;;  %v1775_v19 = vld [vmem:[%s2324_s0 + $0x14c] ss:$20 sps:$4 sm:$0xff]   ;;  %v1777_v20 = vld [vmem:[%s2324_s0 + $0x148] ss:$20 sps:$4 sm:$0xff]  }
  0x23   :  { %1607 = vmatpush3.bf16.msra.mxu0 %v1698_v21  ;;  %1510 = vmatpush3.bf16.msra.mxu1 %v1700_v22  ;;  %v1778_v21 = vld [vmem:[%s2324_s0 + $0x128] ss:$20 sps:$4 sm:$0xff]  }
  0x24   :  { %717 = vmatprep.mubr.bf16.mxu0 %v1701_v23  ;;  %765 = vmatprep.mubr.bf16.mxu1 %v1703_v25  ;;  %v1779_v22 = vld [vmem:[%s2324_s0 + $0x174] ss:$20 sps:$4 sm:$0xff]   ;;  %v79_v23 = vld [vmem:[%s2324_s0 + $0x198] sm:$0x11]  ;;  %v1781_v25 = vld [vmem:[%s2324_s0 + $0x170] ss:$20 sps:$4 sm:$0xff]  }
  0x25   :  { %1511 = vmatprep.subr.bf16.mxu1 %v1707_v26  ;;  %1608 = vmatprep.subr.bf16.mxu0 %v1787_v24  ;;  %v1782_v26 = vld [vmem:[%s2324_s0 + $0x150] ss:$20 sps:$4 sm:$0xff]  }
  0x27   :  { %1512 = vmatpush3.bf16.msra.mxu1 %v1708_v27  ;;  %1609 = vmatpush3.bf16.msra.mxu0 %v1710_v28  ;;  %v1287_v27 = vcombine.high %v79_v23, %v79_v23  ;;  %v1286_v28 = vcombine.low %v79_v23, %v79_v23 }
  0x28   :  { %1513 = vmatprep.subr.bf16.mxu1 %v1709_v30  ;;  %1610 = vmatprep.subr.bf16.mxu0 %v1787_v24  ;;  %v1786_v30 = vld [vmem:[%s2324_s0 + $0x1a0] ss:$0 sps:$4 sm:$0x11]  }
  0x2a   :  { %718 = vmatmul.mubr.bf16.gmra.mrb[4].mxu0 %v1705_v29  ;;  %766 = vmatmul.mubr.bf16.gmra.mrb[4].mxu1 %v1706_v31  ;;  %v1785_v29 = vld [vmem:[%s2324_s0 + $0x178] ss:$20 sps:$4 sm:$0xff]  }
  0x2b   :  { %1514 = vmatpush3.bf16.msra.mxu1 %v1711_v32  ;;  %725 = vmatprep.mubr.bf16.mxu0 %v1712_v33 }
  0x2c   :  { %773 = vmatprep.mubr.bf16.mxu1 %v1714_v34  ;;  %1515 = vmatprep.subr.bf16.mxu1 %v1718_v35 }
  0x2d   :  { %1611 = vmatpush3.bf16.msra.mxu0 %v1728_v36 }
  0x2e   :  { %1612 = vmatprep.subr.bf16.mxu0 %v1787_v24 }
  0x2f   :  { %1516 = vmatpush3.bf16.msra.mxu1 %v1719_v37 }
  0x30   :  { %1517 = vmatprep.subr.bf16.mxu1 %v1724_v40 }
  0x31   :  { %1613 = vmatpush3.bf16.msra.mxu0 %v1740_v44 }
  0x32   :  { %726 = vmatmul.mubr.bf16.gmra.mrb[8].mxu0 %v1716_v38  ;;  %774 = vmatmul.mubr.bf16.gmra.mrb[8].mxu1 %v1717_v39 }
  0x33   :  { %733 = vmatprep.mubr.bf16.mxu0 %v1720_v41  ;;  %781 = vmatprep.mubr.bf16.mxu1 %v1722_v42 }
  0x34   :  { %1518 = vmatpush3.bf16.msra.mxu1 %v1727_v43 }
  0x35   :  { %1519 = vmatprep.subr.bf16.mxu1 %v1729_v45 }
  0x38   :  { %1520 = vmatpush3.bf16.msra.mxu1 %v1730_v46 }
  0x39   :  { %1521 = vmatprep.subr.bf16.mxu1 %v1736_v48 }
  0x3a   :  { %734 = vmatmul.mubr.bf16.gmra.mrb[12].mxu0 %v1725_v49  ;;  %782 = vmatmul.mubr.bf16.gmra.mrb[12].mxu1 %v1726_v50 }
  0x3b   :  { %741 = vmatprep.mubr.bf16.mxu0 %v1731_v51  ;;  %789 = vmatprep.mubr.bf16.mxu1 %v1285_v52 }
  0x3c   :  { %1522 = vmatpush3.bf16.msra.mxu1 %v1737_v53 }
  0x3d   :  { %1523 = vmatprep.subr.bf16.mxu1 %v1738_v54 }
  0x40   :  { %1524 = vmatpush3.bf16.msra.mxu1 %v1739_v55 }
  0x42   :  { %742 = vmatmul.mubr.bf16.gmra.mrb[16].mxu0 %v1734_v56  ;;  %790 = vmatmul.mubr.bf16.gmra.mrb[16].mxu1 %v1284_v57 }
  0x43   :  { %749 = vmatprep.mubr.bf16.mxu0 %v1741_v58  ;;  %829 = vmatprep.mubr.bf16.mxu1 %v1745_v59 }
  0x4a   :  { %750 = vmatmul.mubr.bf16.gmra.mrb[20].mxu0 %v1746_v61  ;;  %830 = vmatmul.mubr.bf16.vlgmr.msra.gmra.mrb[20].mxu1 %v1743_v60 }
  0x4b   :  { %837 = vmatprep.mubr.bf16.mxu1 %v1747_v62  ;;  %1614 = vmatprep.mubr.msk.bf16.mxu0 %vm1788_vm0, %v1787_v24  ;;  %v2139_v62 = vld [vmem:[%s2325_s2] ss:$0 sm:$0xff] }
  0x52   :  { %838 = vmatmul.mubr.bf16.gmra.mrb[24].mxu1 %v1749_v63  ;;  %1615 = vmatmul.mubr.msk.bf16.vlgmr.msra.gmra.mrb[24].mxu0 %vm643_vm1, %v1750_v0 }
  0x53   :  { %845 = vmatprep.mubr.bf16.mxu1 %v1751_v1  ;;  %1618 = vmatprep.mubr.msk.bf16.mxu0 %vm1788_vm0, %v1787_v24 }
  0x5a   :  { %846 = vmatmul.mubr.bf16.gmra.mrb[28].mxu1 %v1753_v2  ;;  %1619 = vmatmul.mubr.msk.bf16.gmra.mrb[28].mxu0 %vm643_vm1, %v1754_v3 }
  0x5b   :  { %853 = vmatprep.mubr.bf16.mxu1 %v1755_v4  ;;  %1622 = vmatprep.mubr.msk.bf16.mxu0 %vm1788_vm0, %v1787_v24 }
  0x62   :  { %854 = vmatmul.mubr.bf16.gmra.mrb[32].mxu1 %v1757_v5  ;;  %1623 = vmatmul.mubr.msk.bf16.gmra.mrb[32].mxu0 %vm643_vm1, %v1758_v6 }
  0x63   :  { %861 = vmatprep.mubr.bf16.mxu1 %v1759_v7  ;;  %1626 = vmatprep.mubr.msk.bf16.mxu0 %vm1788_vm0, %v1787_v24 }
  0x6a   :  { %862 = vmatmul.mubr.bf16.gmra.mrb[36].mxu1 %v1761_v8  ;;  %1627 = vmatmul.mubr.msk.bf16.gmra.mrb[36].mxu0 %vm643_vm1, %v1762_v9 }
  0x6b   :  { %869 = vmatprep.mubr.bf16.mxu1 %v1763_v10  ;;  %1630 = vmatprep.mubr.msk.bf16.mxu0 %vm1788_vm0, %v1787_v24 }
  0x72   :  { %870 = vmatmul.mubr.bf16.gmra.mrb[40].mxu1 %v1765_v11  ;;  %1631 = vmatmul.mubr.msk.bf16.gmra.mrb[40].mxu0 %vm643_vm1, %v1766_v12 }
  0x73   :  { %877 = vmatprep.mubr.bf16.mxu1 %v1767_v13  ;;  %1634 = vmatprep.mubr.msk.bf16.mxu0 %vm1788_vm0, %v1787_v24 }
  0x7a   :  { %878 = vmatmul.mubr.bf16.gmra.mrb[44].mxu1 %v1769_v14  ;;  %1635 = vmatmul.mubr.msk.bf16.gmra.mrb[44].mxu0 %vm643_vm1, %v1770_v15 }
  0x7b   :  { %885 = vmatprep.mubr.bf16.mxu1 %v1771_v16  ;;  %1638 = vmatprep.mubr.msk.bf16.mxu0 %vm1788_vm0, %v1787_v24 }
  0x82   :  { %886 = vmatmul.mubr.bf16.gmra.mrb[48].mxu1 %v1773_v17  ;;  %1639 = vmatmul.mubr.msk.bf16.gmra.mrb[48].mxu0 %vm643_vm1, %v1774_v18 }
  0x83   :  { %893 = vmatprep.mubr.bf16.mxu1 %v1775_v19  ;;  %1642 = vmatprep.mubr.msk.bf16.mxu0 %vm1788_vm0, %v1787_v24 }
  0x8a   :  { %894 = vmatmul.mubr.bf16.gmra.mrb[52].mxu1 %v1777_v20  ;;  %1643 = vmatmul.mubr.msk.bf16.gmra.mrb[52].mxu0 %vm643_vm1, %v1778_v21 }
  0x8b   :  { %901 = vmatprep.mubr.bf16.mxu1 %v1779_v22  ;;  %1646 = vmatprep.mubr.msk.bf16.mxu0 %vm1788_vm0, %v1787_v24 }
  0x92   :  { %902 = vmatmul.mubr.bf16.gmra.mrb[56].mxu1 %v1781_v25  ;;  %1647 = vmatmul.mubr.msk.bf16.gmra.mrb[56].mxu0 %vm643_vm1, %v1782_v26 }
  0x93   :  { %909 = vmatprep.mubr.bf16.mxu1 %v1287_v27  ;;  %1650 = vmatprep.mubr.msk.bf16.mxu0 %vm1788_vm0, %v1787_v24 }
  0x9a   :  { %910 = vmatmul.mubr.bf16.gmra.mrb[60].mxu1 %v1286_v28  ;;  %1651 = vmatmul.mubr.msk.bf16.gmra.mrb[60].mxu0 %vm643_vm1, %v1785_v29 }
  0x9b   :  { %1654 = vmatprep.mubr.msk.bf16.mxu0 %vm1788_vm0, %v1787_v24 }
  0xa2   :  { %1655 = vmatmul.mubr.msk.bf16.gmra.mrb[64].mxu0 %vm643_vm1, %v1786_v30 }
  0xf5   :  { %v1443_v31 = vpop.f32.mrb[0].mxu0  ;;  %v1479_v32 = vpop.f32.mrb[0].mxu1 }
  0xf6   :  { %v1444_v33 = vpop.f32.mrb[1].mxu0  ;;  %v1480_v34 = vpop.f32.mrb[1].mxu1 }
  0xf7   :  { %v2118_v35 = vadd.f32 %v1444_v33, %v1443_v31  ;;  %v1446_v36 = vpop.f32.mrb[2].mxu0  ;;  %v2120_v37 = vadd.f32 %v1480_v34, %v1479_v32  ;;  %v1482_v38 = vpop.f32.mrb[2].mxu1 }
  0xf8   :  { %v1447_v39 = vpop.f32.mrb[3].mxu0  ;;  %v1483_v40 = vpop.f32.mrb[3].mxu1 }
  0xf9   :  { %v2122_v41 = vadd.f32 %v1447_v39, %v1446_v36  ;;  %v2124_v24 = vadd.f32 %v1483_v40, %v1482_v38  ;;  %v712_v38 = vadd.f32 %v2118_v35, %v2139_v62 }
  0xfd   :  { %v1449_v42 = vpop.f32.mrb[4].mxu0  ;;  %v1485_v43 = vpop.f32.mrb[4].mxu1 }
  0xfe   :  { %v1450_v44 = vpop.f32.mrb[5].mxu0  ;;  %v1486_v45 = vpop.f32.mrb[5].mxu1 }
  0xff   :  { %v2126_v46 = vadd.f32 %v1450_v44, %v1449_v42  ;;  %v1452_v47 = vpop.f32.mrb[6].mxu0  ;;  %v2128_v48 = vadd.f32 %v1486_v45, %v1485_v43  ;;  %v1488_v49 = vpop.f32.mrb[6].mxu1 }
 0x100   :  { %v1453_v50 = vpop.f32.mrb[7].mxu0  ;;  %v1489_v51 = vpop.f32.mrb[7].mxu1 }
 0x101   :  { %v2130_v52 = vadd.f32 %v1453_v50, %v1452_v47  ;;  %v2132_v53 = vadd.f32 %v1489_v51, %v1488_v49  ;;  %v715_v47 = vadd.f32 %v2122_v41, %v2139_v62 }
 0x105   :  { %v1455_v54 = vpop.f32.mrb[8].mxu0  ;;  %v1491_v55 = vpop.f32.mrb[8].mxu1 }
 0x106   :  { %v1456_v56 = vpop.f32.mrb[9].mxu0  ;;  %v1492_v57 = vpop.f32.mrb[9].mxu1 }
 0x107   :  { %v2134_v58 = vadd.f32 %v1456_v56, %v1455_v54  ;;  %v1458_v59 = vpop.f32.mrb[10].mxu0  ;;  %v1493_v60 = vadd.f32 %v1492_v57, %v1491_v55  ;;  %v1494_v61 = vpop.f32.mrb[10].mxu1  ;;  %v1379_v54 = vld [vmem:[%s2326_s3] sm:$0xff]  }
 0x108   :  { %v1459_v63 = vpop.f32.mrb[11].mxu0  ;;  %v1495_v0 = vpop.f32.mrb[11].mxu1  ;;  %v1380_v35 = vunpack.c.l.bf16 %v1379_v54 }
 0x109   :  { %v2142_v1 = vadd.f32 %v1493_v60, %v2139_v62  ;;  %v2144_v2 = vadd.f32 %v1459_v63, %v1458_v59  ;;  %v1496_v3 = vadd.f32 %v1495_v0, %v1494_v61  ;;  %v1381_v63 = vunpack.c.h.bf16 %v1379_v54 }
 0x10a   :  { %v720_v0 = vadd.f32 %v2126_v46, %v2139_v62 }
 0x10b   :  { %v2147_v4 = vadd.f32 %v1496_v3, %v2139_v62 }
 0x10d   :  { %v1461_v5 = vpop.f32.mrb[12].mxu0  ;;  %v1497_v6 = vpop.f32.mrb[12].mxu1 }
 0x10e   :  { %v1462_v7 = vpop.f32.mrb[13].mxu0  ;;  %v1498_v8 = vpop.f32.mrb[13].mxu1 }
 0x10f   :  { %v2149_v9 = vadd.f32 %v1462_v7, %v1461_v5  ;;  %v1464_v10 = vpop.f32.mrb[14].mxu0  ;;  %v1499_v11 = vadd.f32 %v1498_v8, %v1497_v6  ;;  %v1500_v12 = vpop.f32.mrb[14].mxu1 }
 0x110   :  { %v1465_v13 = vpop.f32.mrb[15].mxu0  ;;  %v1501_v14 = vpop.f32.mrb[15].mxu1 }
 0x111   :  { %v2152_v15 = vadd.f32 %v1499_v11, %v2139_v62  ;;  %v2154_v16 = vadd.f32 %v1465_v13, %v1464_v10  ;;  %v1502_v17 = vadd.f32 %v1501_v14, %v1500_v12  ;;  %v723_v11 = vadd.f32 %v2130_v52, %v2139_v62  ;;  %v1418_v14 = vld [vmem:[%s2326_s3 + $0x8] sm:$0xff]  }
 0x113   :  { %v2157_v18 = vadd.f32 %v1502_v17, %v2139_v62 }
 0x115   :  { %v1467_v19 = vpop.f32.mrb[16].mxu0  ;;  %v1503_v20 = vpop.f32.mrb[16].mxu1 }
 0x116   :  { %v1468_v21 = vpop.f32.mrb[17].mxu0  ;;  %v1504_v22 = vpop.f32.mrb[17].mxu1 }
 0x117   :  { %v2159_v23 = vadd.f32 %v1468_v21, %v1467_v19  ;;  %v1470_v25 = vpop.f32.mrb[18].mxu0  ;;  %v1505_v26 = vadd.f32 %v1504_v22, %v1503_v20  ;;  %v1506_v27 = vpop.f32.mrb[18].mxu1  ;;  %v1384_v22 = vunpack.c.l.bf16 %v1418_v14 }
 0x118   :  { %v1471_v28 = vpop.f32.mrb[19].mxu0  ;;  %v1507_v29 = vpop.f32.mrb[19].mxu1 }
 0x119   :  { %v2162_v30 = vadd.f32 %v1505_v26, %v2139_v62  ;;  %v2164_v31 = vadd.f32 %v1471_v28, %v1470_v25 }
 0x11d   :  { %v1473_v32 = vpop.f32.mrb[20].mxu0  ;;  %v1525_v33 = vpop.f32.mrb[20].mxu1 }
 0x11e   :  { %v1474_v34 = vpop.f32.mrb[21].mxu0  ;;  %v1526_v36 = vpop.f32.mrb[21].mxu1 }
 0x11f   :  { %v2168_v39 = vadd.f32 %v1474_v34, %v1473_v32  ;;  %v1527_v40 = vadd.f32 %v1526_v36, %v1525_v33  ;;  %v1476_v42 = vpop.f32.mrb[22].mxu0  ;;  %v1528_v43 = vpop.f32.mrb[22].mxu1  ;;  %v1385_v32 = vunpack.c.h.bf16 %v1418_v14  ;;  %v728_v33 = vadd.f32 %v2134_v58, %v2139_v62  ;;  %v1419_v58 = vld [vmem:[%s2326_s3 + $0x10] sm:$0xff]  }
 0x120   :  { %v1477_v44 = vpop.f32.mrb[23].mxu0  ;;  %v1529_v45 = vpop.f32.mrb[23].mxu1 }
 0x121   :  { %v2172_v49 = vadd.f32 %v1477_v44, %v1476_v42  ;;  %v1530_v50 = vadd.f32 %v1529_v45, %v1528_v43  ;;  %v832_v51 = vadd.f32 %v1527_v40, %v712_v38  ;;  %v731_v45 = vadd.f32 %v2144_v2, %v2139_v62 }
 0x123   :  { %v835_v55 = vadd.f32 %v1530_v50, %v715_v47 }
 0x125   :  { %v1531_v56 = vpop.f32.mrb[24].mxu1  ;;  %v951_v57 = vpop.f32.mrb[24].mxu0 }
 0x126   :  { %v952_v59 = vadd.f32 %v951_v57, %v832_v51  ;;  %v1532_v60 = vpop.f32.mrb[25].mxu1  ;;  %v1616_v61 = vpop.f32.mrb[25].mxu0  ;;  %v1388_v57 = vunpack.c.l.bf16 %v1419_v58 }
 0x127   :  { %v1533_v41 = vadd.f32 %v1532_v60, %v1531_v56  ;;  %v1534_v3 = vpop.f32.mrb[26].mxu1  ;;  %v954_v5 = vpop.f32.mrb[26].mxu0 }
 0x128   :  { %v1079_v6 = vadd.f32 %v1380_v35, %v952_v59  ;;  %v955_v7 = vadd.f32 %v954_v5, %v835_v55  ;;  %v1535_v8 = vpop.f32.mrb[27].mxu1  ;;  %v1617_v10 = vpop.f32.mrb[27].mxu0 }
 0x129   :  { %v1536_v12 = vadd.f32 %v1535_v8, %v1534_v3  ;;  %v840_v13 = vadd.f32 %v1533_v41, %v720_v0  ;;  %v1389_v41 = vunpack.c.h.bf16 %v1419_v58  ;;  %v736_v3 = vadd.f32 %v2149_v9, %v2139_v62  ;;  %v1420_v9 = vld [vmem:[%s2326_s3 + $0x18] sm:$0xff]  }
 0x12a   :  { %v1100_v17 = vmax.f32 %v1079_v6, 0.0  ;;  %v1080_v19 = vadd.f32 %v1381_v63, %v955_v7 }
 0x12b   :  { %v843_v46 = vadd.f32 %v1536_v12, %v723_v11 }
 0x12c   :  { %v1357_v20 = vpack.c.bf16 %v1100_v17, %v1100_v17  ;;  %v1101_v21 = vmax.f32 %v1080_v19, 0.0 }
 0x12d   :  { %v1537_v25 = vpop.f32.mrb[28].mxu1  ;;  %v959_v26 = vpop.f32.mrb[28].mxu0 }
 0x12e   :  { %1207 = vst.msk [vmem:[%s2327_s4] sm:$0xf] %vm1206_vm2, %v1357_v20  ;;  %v1358_v52 = vpack.c.bf16 %v1101_v21, %v1101_v21  ;;  %v960_v27 = vadd.f32 %v959_v26, %v840_v13  ;;  %v1538_v28 = vpop.f32.mrb[29].mxu1  ;;  %v1620_v29 = vpop.f32.mrb[29].mxu0  ;;  %v739_v13 = vadd.f32 %v2154_v16, %v2139_v62 }
 0x12f   :  { %v1539_v34 = vadd.f32 %v1538_v28, %v1537_v25  ;;  %v1540_v36 = vpop.f32.mrb[30].mxu1  ;;  %v962_v38 = vpop.f32.mrb[30].mxu0  ;;  %v1392_v25 = vunpack.c.l.bf16 %v1420_v9 }
 0x130   :  { %1208 = vst.msk [vmem:[%s2327_s4 + $0x4] sm:$0xf] %vm1206_vm2, %v1358_v52  ;;  %v1081_v40 = vadd.f32 %v1384_v22, %v960_v27  ;;  %v963_v42 = vadd.f32 %v962_v38, %v843_v46  ;;  %v1541_v43 = vpop.f32.mrb[31].mxu1  ;;  %v1621_v44 = vpop.f32.mrb[31].mxu0 }
 0x131   :  { %v1542_v47 = vadd.f32 %v1541_v43, %v1540_v36  ;;  %v848_v50 = vadd.f32 %v1539_v34, %v728_v33  ;;  %v744_v33 = vadd.f32 %v2159_v23, %v2139_v62  ;;  %v1421_v23 = vld [vmem:[%s2326_s3 + $0x20] sm:$0xff]  }
 0x132   :  { %v1102_v51 = vmax.f32 %v1081_v40, 0.0  ;;  %v1082_v54 = vadd.f32 %v1385_v32, %v963_v42  ;;  %v1393_v32 = vunpack.c.h.bf16 %v1420_v9 }
 0x133   :  { %v851_v55 = vadd.f32 %v1542_v47, %v731_v45  ;;  %v747_v45 = vadd.f32 %v2164_v31, %v2139_v62 }
 0x134   :  { %v1359_v35 = vpack.c.bf16 %v1102_v51, %v1102_v51  ;;  %v1103_v56 = vmax.f32 %v1082_v54, 0.0 }
 0x135   :  { %v1543_v59 = vpop.f32.mrb[32].mxu1  ;;  %v967_v60 = vpop.f32.mrb[32].mxu0 }
 0x136   :  { %1209 = vst.msk [vmem:[%s2327_s4 + $0x8] sm:$0xf] %vm1206_vm2, %v1359_v35  ;;  %v1360_v2 = vpack.c.bf16 %v1103_v56, %v1103_v56  ;;  %v968_v61 = vadd.f32 %v967_v60, %v848_v50  ;;  %v1544_v63 = vpop.f32.mrb[33].mxu1  ;;  %v1624_v0 = vpop.f32.mrb[33].mxu0  ;;  %v1396_v56 = vunpack.c.l.bf16 %v1421_v23 }
 0x137   :  { %v1545_v5 = vadd.f32 %v1544_v63, %v1543_v59  ;;  %v1546_v6 = vpop.f32.mrb[34].mxu1  ;;  %v970_v7 = vpop.f32.mrb[34].mxu0  ;;  %v1397_v63 = vunpack.c.h.bf16 %v1421_v23  ;;  %v752_v0 = vadd.f32 %v2168_v39, %v2139_v62  ;;  %v1422_v39 = vld [vmem:[%s2326_s3 + $0x28] sm:$0xff]  }
 0x138   :  { %1210 = vst.msk [vmem:[%s2327_s4 + $0xc] sm:$0xf] %vm1206_vm2, %v1360_v2  ;;  %v1083_v8 = vadd.f32 %v1388_v57, %v968_v61  ;;  %v971_v10 = vadd.f32 %v970_v7, %v851_v55  ;;  %v1547_v11 = vpop.f32.mrb[35].mxu1  ;;  %v1625_v12 = vpop.f32.mrb[35].mxu0 }
 0x139   :  { %v1548_v14 = vadd.f32 %v1547_v11, %v1546_v6  ;;  %v856_v17 = vadd.f32 %v1545_v5, %v736_v3  ;;  %v755_v11 = vadd.f32 %v2172_v49, %v2139_v62 }
 0x13a   :  { %v1104_v19 = vmax.f32 %v1083_v8, 0.0  ;;  %v1084_v46 = vadd.f32 %v1389_v41, %v971_v10 }
 0x13b   :  { %v859_v20 = vadd.f32 %v1548_v14, %v739_v13 }
 0x13c   :  { %v1361_v21 = vpack.c.bf16 %v1104_v19, %v1104_v19  ;;  %v1105_v22 = vmax.f32 %v1084_v46, 0.0 }
 0x13d   :  { %v1549_v26 = vpop.f32.mrb[36].mxu1  ;;  %v975_v52 = vpop.f32.mrb[36].mxu0 }
 0x13e   :  { %1211 = vst.msk [vmem:[%s2327_s4 + $0x10] sm:$0xf] %vm1206_vm2, %v1361_v21  ;;  %v1362_v16 = vpack.c.bf16 %v1105_v22, %v1105_v22  ;;  %v976_v27 = vadd.f32 %v975_v52, %v856_v17  ;;  %v1550_v28 = vpop.f32.mrb[37].mxu1  ;;  %v1628_v29 = vpop.f32.mrb[37].mxu0 }
 0x13f   :  { %v1551_v34 = vadd.f32 %v1550_v28, %v1549_v26  ;;  %v1552_v36 = vpop.f32.mrb[38].mxu1  ;;  %v978_v38 = vpop.f32.mrb[38].mxu0 }
 0x140   :  { %1212 = vst.msk [vmem:[%s2327_s4 + $0x14] sm:$0xf] %vm1206_vm2, %v1362_v16  ;;  %v1085_v40 = vadd.f32 %v1392_v25, %v976_v27  ;;  %v979_v42 = vadd.f32 %v978_v38, %v859_v20  ;;  %v1553_v43 = vpop.f32.mrb[39].mxu1  ;;  %v1629_v44 = vpop.f32.mrb[39].mxu0  ;;  %v1400_v20 = vunpack.c.l.bf16 %v1422_v39  ;;  %v1401_v16 = vunpack.c.h.bf16 %v1422_v39 }
 0x141   :  { %v1554_v47 = vadd.f32 %v1553_v43, %v1552_v36  ;;  %v864_v50 = vadd.f32 %v1551_v34, %v744_v33  ;;  %v760_v27 = vadd.f32 %v2120_v37, %v2139_v62  ;;  %v1423_v37 = vld [vmem:[%s2326_s3 + $0x30] sm:$0xff]  }
 0x142   :  { %v1106_v58 = vmax.f32 %v1085_v40, 0.0  ;;  %v1086_v51 = vadd.f32 %v1393_v32, %v979_v42  ;;  %v763_v40 = vadd.f32 %v2124_v24, %v2139_v62 }
 0x143   :  { %v867_v54 = vadd.f32 %v1554_v47, %v747_v45 }
 0x144   :  { %v1363_v55 = vpack.c.bf16 %v1106_v58, %v1106_v58  ;;  %v1107_v35 = vmax.f32 %v1086_v51, 0.0  ;;  %v1404_v58 = vunpack.c.l.bf16 %v1423_v37 }
 0x145   :  { %v1555_v57 = vpop.f32.mrb[40].mxu1  ;;  %v983_v59 = vpop.f32.mrb[40].mxu0 }
 0x146   :  { %1213 = vst.msk [vmem:[%s2327_s4 + $0x18] sm:$0xf] %vm1206_vm2, %v1363_v55  ;;  %v1364_v31 = vpack.c.bf16 %v1107_v35, %v1107_v35  ;;  %v984_v60 = vadd.f32 %v983_v59, %v864_v50  ;;  %v1556_v2 = vpop.f32.mrb[41].mxu1  ;;  %v1632_v61 = vpop.f32.mrb[41].mxu0  ;;  %v768_v59 = vadd.f32 %v2128_v48, %v2139_v62  ;;  %v1424_v48 = vld [vmem:[%s2326_s3 + $0x38] sm:$0xff]  }
 0x147   :  { %v1557_v41 = vadd.f32 %v1556_v2, %v1555_v57  ;;  %v1558_v3 = vpop.f32.mrb[42].mxu1  ;;  %v986_v5 = vpop.f32.mrb[42].mxu0  ;;  %v1405_v57 = vunpack.c.h.bf16 %v1423_v37 }
 0x148   :  { %1214 = vst.msk [vmem:[%s2327_s4 + $0x1c] sm:$0xf] %vm1206_vm2, %v1364_v31  ;;  %v1087_v6 = vadd.f32 %v1396_v56, %v984_v60  ;;  %v987_v7 = vadd.f32 %v986_v5, %v867_v54  ;;  %v1559_v8 = vpop.f32.mrb[43].mxu1  ;;  %v1633_v10 = vpop.f32.mrb[43].mxu0 }
 0x149   :  { %v1560_v12 = vadd.f32 %v1559_v8, %v1558_v3  ;;  %v872_v13 = vadd.f32 %v1557_v41, %v752_v0  ;;  %v771_v3 = vadd.f32 %v2132_v53, %v2139_v62 }
 0x14a   :  { %v1108_v14 = vmax.f32 %v1087_v6, 0.0  ;;  %v1088_v17 = vadd.f32 %v1397_v63, %v987_v7 }
 0x14b   :  { %v875_v9 = vadd.f32 %v1560_v12, %v755_v11 }
 0x14c   :  { %v1365_v19 = vpack.c.bf16 %v1108_v14, %v1108_v14  ;;  %v1109_v46 = vmax.f32 %v1088_v17, 0.0 }
 0x14d   :  { %v1561_v21 = vpop.f32.mrb[44].mxu1  ;;  %v991_v22 = vpop.f32.mrb[44].mxu0 }
 0x14e   :  { %1215 = vst.msk [vmem:[%s2327_s4 + $0x20] sm:$0xf] %vm1206_vm2, %v1365_v19  ;;  %v1366_v49 = vpack.c.bf16 %v1109_v46, %v1109_v46  ;;  %v992_v25 = vadd.f32 %v991_v22, %v872_v13  ;;  %v1562_v26 = vpop.f32.mrb[45].mxu1  ;;  %v1636_v52 = vpop.f32.mrb[45].mxu0  ;;  %v1408_v13 = vunpack.c.l.bf16 %v1424_v48  ;;  %v1409_v19 = vunpack.c.h.bf16 %v1424_v48 }
 0x14f   :  { %v1563_v28 = vadd.f32 %v1562_v26, %v1561_v21  ;;  %v1564_v29 = vpop.f32.mrb[46].mxu1  ;;  %v994_v32 = vpop.f32.mrb[46].mxu0 }
 0x150   :  { %1216 = vst.msk [vmem:[%s2327_s4 + $0x24] sm:$0xf] %vm1206_vm2, %v1366_v49  ;;  %v1089_v33 = vadd.f32 %v1400_v20, %v992_v25  ;;  %v995_v34 = vadd.f32 %v994_v32, %v875_v9  ;;  %v1565_v36 = vpop.f32.mrb[47].mxu1  ;;  %v1637_v38 = vpop.f32.mrb[47].mxu0 }
 0x151   :  { %v1566_v42 = vadd.f32 %v1565_v36, %v1564_v29  ;;  %v880_v43 = vadd.f32 %v1563_v28, %v760_v27  ;;  %v1425_v27 = vld [vmem:[%s2326_s3 + $0x40] sm:$0xff]  }
 0x152   :  { %v1110_v44 = vmax.f32 %v1089_v33, 0.0  ;;  %v1090_v45 = vadd.f32 %v1401_v16, %v995_v34  ;;  %v1412_v36 = vunpack.c.l.bf16 %v1425_v27 }
 0x153   :  { %v883_v47 = vadd.f32 %v1566_v42, %v763_v40 }
 0x154   :  { %v1367_v50 = vpack.c.bf16 %v1110_v44, %v1110_v44  ;;  %v1111_v23 = vmax.f32 %v1090_v45, 0.0  ;;  %v1413_v44 = vunpack.c.h.bf16 %v1425_v27 }
 0x155   :  { %v1567_v51 = vpop.f32.mrb[48].mxu1  ;;  %v999_v54 = vpop.f32.mrb[48].mxu0 }
 0x156   :  { %1217 = vst.msk [vmem:[%s2327_s4 + $0x28] sm:$0xf] %vm1206_vm2, %v1367_v50  ;;  %v1368_v24 = vpack.c.bf16 %v1111_v23, %v1111_v23  ;;  %v1000_v55 = vadd.f32 %v999_v54, %v880_v43  ;;  %v1568_v35 = vpop.f32.mrb[49].mxu1  ;;  %v1640_v56 = vpop.f32.mrb[49].mxu0 }
 0x157   :  { %v1569_v31 = vadd.f32 %v1568_v35, %v1567_v51  ;;  %v1570_v60 = vpop.f32.mrb[50].mxu1  ;;  %v1002_v2 = vpop.f32.mrb[50].mxu0 }
 0x158   :  { %1218 = vst.msk [vmem:[%s2327_s4 + $0x2c] sm:$0xf] %vm1206_vm2, %v1368_v24  ;;  %v1091_v61 = vadd.f32 %v1404_v58, %v1000_v55  ;;  %v1003_v63 = vadd.f32 %v1002_v2, %v883_v47  ;;  %v1571_v0 = vpop.f32.mrb[51].mxu1  ;;  %v1641_v41 = vpop.f32.mrb[51].mxu0  ;;  %v1426_v55 = vld [vmem:[%s2326_s3 + $0x48] sm:$0xff]  }
 0x159   :  { %v1572_v5 = vadd.f32 %v1571_v0, %v1570_v60  ;;  %v888_v6 = vadd.f32 %v1569_v31, %v768_v59  ;;  %v1416_v60 = vunpack.c.l.bf16 %v1426_v55 }
 0x15a   :  { %v1112_v7 = vmax.f32 %v1091_v61, 0.0  ;;  %v1092_v8 = vadd.f32 %v1405_v57, %v1003_v63 }
 0x15b   :  { %v891_v10 = vadd.f32 %v1572_v5, %v771_v3  ;;  %v1417_v3 = vunpack.c.h.bf16 %v1426_v55 }
 0x15c   :  { %v1369_v11 = vpack.c.bf16 %v1112_v7, %v1112_v7  ;;  %v1113_v12 = vmax.f32 %v1092_v8, 0.0 }
 0x15d   :  { %v1573_v39 = vpop.f32.mrb[52].mxu1  ;;  %v1007_v14 = vpop.f32.mrb[52].mxu0 }
 0x15e   :  { %1219 = vst.msk [vmem:[%s2327_s4 + $0x30] sm:$0xf] %vm1206_vm2, %v1369_v11  ;;  %v1370_v53 = vpack.c.bf16 %v1113_v12, %v1113_v12  ;;  %v1008_v62 = vadd.f32 %v1007_v14, %v888_v6  ;;  %v1574_v17 = vpop.f32.mrb[53].mxu1  ;;  %v1644_v9 = vpop.f32.mrb[53].mxu0  ;;  %v1057_v12 = vld [vmem:[%s2326_s3 + $0x50] sm:$0x1] }
 0x15f   :  { %v1575_v46 = vadd.f32 %v1574_v17, %v1573_v39  ;;  %v1576_v20 = vpop.f32.mrb[54].mxu1  ;;  %v1010_v21 = vpop.f32.mrb[54].mxu0 }
 0x160   :  { %1220 = vst.msk [vmem:[%s2327_s4 + $0x34] sm:$0xf] %vm1206_vm2, %v1370_v53  ;;  %v1093_v22 = vadd.f32 %v1408_v13, %v1008_v62  ;;  %v1011_v49 = vadd.f32 %v1010_v21, %v891_v10  ;;  %v1577_v25 = vpop.f32.mrb[55].mxu1  ;;  %v1645_v26 = vpop.f32.mrb[55].mxu0  ;;  %v1078_v62 = vunpack.c.l.bf16 %v1057_v12 }
 0x161   :  { %v1578_v52 = vadd.f32 %v1577_v25, %v1576_v20  ;;  %v896_v16 = vadd.f32 %v1575_v46, %v2142_v1 }
 0x162   :  { %v1114_v28 = vmax.f32 %v1093_v22, 0.0  ;;  %v1094_v29 = vadd.f32 %v1409_v19, %v1011_v49 }
 0x163   :  { %v899_v32 = vadd.f32 %v1578_v52, %v2147_v4 }
 0x164   :  { %v1371_v33 = vpack.c.bf16 %v1114_v28, %v1114_v28  ;;  %v1115_v34 = vmax.f32 %v1094_v29, 0.0 }
 0x165   :  { %v1579_v38 = vpop.f32.mrb[56].mxu1  ;;  %v1015_v40 = vpop.f32.mrb[56].mxu0 }
 0x166   :  { %1221 = vst.msk [vmem:[%s2327_s4 + $0x38] sm:$0xf] %vm1206_vm2, %v1371_v33  ;;  %v1372_v42 = vpack.c.bf16 %v1115_v34, %v1115_v34  ;;  %v1016_v1 = vadd.f32 %v1015_v40, %v896_v16  ;;  %v1580_v43 = vpop.f32.mrb[57].mxu1  ;;  %v1648_v37 = vpop.f32.mrb[57].mxu0 }
 0x167   :  { %v1581_v45 = vadd.f32 %v1580_v43, %v1579_v38  ;;  %v1582_v47 = vpop.f32.mrb[58].mxu1  ;;  %v1018_v50 = vpop.f32.mrb[58].mxu0 }
 0x168   :  { %1222 = vst.msk [vmem:[%s2327_s4 + $0x3c] sm:$0xf] %vm1206_vm2, %v1372_v42  ;;  %v1095_v4 = vadd.f32 %v1412_v36, %v1016_v1  ;;  %v1019_v23 = vadd.f32 %v1018_v50, %v899_v32  ;;  %v1583_v58 = vpop.f32.mrb[59].mxu1  ;;  %v1649_v51 = vpop.f32.mrb[59].mxu0 }
 0x169   :  { %v1584_v54 = vadd.f32 %v1583_v58, %v1582_v47  ;;  %v904_v24 = vadd.f32 %v1581_v45, %v2152_v15 }
 0x16a   :  { %v1116_v35 = vmax.f32 %v1095_v4, 0.0  ;;  %v1096_v56 = vadd.f32 %v1413_v44, %v1019_v23 }
 0x16b   :  { %v907_v57 = vadd.f32 %v1584_v54, %v2157_v18 }
 0x16c   :  { %v1373_v59 = vpack.c.bf16 %v1116_v35, %v1116_v35  ;;  %v1117_v31 = vmax.f32 %v1096_v56, 0.0 }
 0x16d   :  { %v1585_v2 = vpop.f32.mrb[60].mxu1  ;;  %v1023_v61 = vpop.f32.mrb[60].mxu0 }
 0x16e   :  { %1223 = vst.msk [vmem:[%s2327_s4 + $0x40] sm:$0xf] %vm1206_vm2, %v1373_v59  ;;  %v1374_v63 = vpack.c.bf16 %v1117_v31, %v1117_v31  ;;  %v1024_v15 = vadd.f32 %v1023_v61, %v904_v24  ;;  %v1586_v0 = vpop.f32.mrb[61].mxu1  ;;  %v1652_v41 = vpop.f32.mrb[61].mxu0 }
 0x16f   :  { %v1587_v5 = vadd.f32 %v1586_v0, %v1585_v2  ;;  %v1026_v6 = vpop.f32.mrb[62].mxu0  ;;  %v1588_v48 = vpop.f32.mrb[62].mxu1 }
 0x170   :  { %1224 = vst.msk [vmem:[%s2327_s4 + $0x44] sm:$0xf] %vm1206_vm2, %v1374_v63  ;;  %v1097_v18 = vadd.f32 %v1416_v60, %v1024_v15  ;;  %v1027_v7 = vadd.f32 %v1026_v6, %v907_v57  ;;  %v1653_v8 = vpop.f32.mrb[63].mxu0  ;;  %v1589_v10 = vpop.f32.mrb[63].mxu1 }
 0x171   :  { %v912_v11 = vadd.f32 %v1587_v5, %v2162_v30 }
 0x172   :  { %v1118_v13 = vmax.f32 %v1097_v18, 0.0  ;;  %v1098_v39 = vadd.f32 %v1417_v3, %v1027_v7 }
 0x174   :  { %v1375_v14 = vpack.c.bf16 %v1118_v13, %v1118_v13  ;;  %v1119_v53 = vmax.f32 %v1098_v39, 0.0 }
 0x175   :  { %v1031_v17 = vpop.f32.mrb[64].mxu0 }
 0x176   :  { %1225 = vst.msk [vmem:[%s2327_s4 + $0x48] sm:$0xf] %vm1206_vm2, %v1375_v14  ;;  %v1376_v9 = vpack.c.bf16 %v1119_v53, %v1119_v53  ;;  %v1032_v19 = vadd.f32 %v1031_v17, %v912_v11  ;;  %v1656_v46 = vpop.f32.mrb[65].mxu0 }
 0x177   :  { %v1034_v20 = vpop.f32.mrb[66].mxu0 }
 0x178   :  { %1226 = vst.msk [vmem:[%s2327_s4 + $0x4c] sm:$0xf] %vm1206_vm2, %v1376_v9  ;;  %v1099_v30 = vadd.f32 %v1078_v62, %v1032_v19  ;;  %v1657_v21 = vpop.f32.mrb[67].mxu0 }
 0x17a   :  { %v1120_v22 = vmax.f32 %v1099_v30, 0.0 }
 0x17c   :  { %v1377_v49 = vpack.c.bf16 %v1120_v22, %v1120_v22 }
 0x17e   :  { %1228 = vst.msk [vmem:[%s2327_s4 + $0x50] sm:$0x1] %vm1227_vm3, %v1377_v49 }

// kernel: resnet_forward.16
= control target key start
LH: loop header
LB: loop body
LE: loop exit
PB: predicated region body
PF: predicated region fallthrough
CT: control target
= control target key end

     0   :  { %vm521_vm0 = vcmask 523264   ;;  %s1269_s1 = inlined_call_operand.vmem [shape: bf16[576,256], index: 1, kind: input, shape index: {}]   ;;  %s1270_s0 = inlined_call_operand.vmem [shape: bf16[32,576], index: 0, kind: input, shape index: {}]   ;;  %s1271_s2 = inlined_call_operand.vmem [shape: f32[1,256], index: 2, kind: input, shape index: {}]   ;;  %s1272_s3 = inlined_call_operand.vmem [shape: bf16[32,256], index: 3, kind: output, shape index: {}]  }
   0x1   :  { %v865_v0 = vld [vmem:[%s1269_s1 + $0x4] ss:$8 sps:$4 sm:$0xff]   ;;  %v869_v2 = vld [vmem:[%s1269_s1] ss:$8 sps:$4 sm:$0xff]   ;;  %v871_v4 = vld [vmem:[%s1269_s1 + $0x14] ss:$8 sps:$4 sm:$0xff]  }
   0x2   :  { %v867_v1 = vld [vmem:[%s1269_s1 + $0x104] ss:$8 sps:$4 sm:$0xff]   ;;  %528 = vmatprep.subr.bf16.mxu1 %v865_v0  ;;  %v870_v3 = vld [vmem:[%s1269_s1 + $0x100] ss:$8 sps:$4 sm:$0xff]   ;;  %v873_v5 = vld [vmem:[%s1269_s1 + $0x114] ss:$8 sps:$4 sm:$0xff]  }
   0x3   :  { %581 = vmatprep.subr.bf16.mxu0 %v867_v1  ;;  %529 = vmatpush1.bf16.msra.mxu1 %v869_v2  ;;  %v875_v6 = vld [vmem:[%s1269_s1 + $0x10] ss:$8 sps:$4 sm:$0xff]   ;;  %v877_v8 = vld [vmem:[%s1269_s1 + $0x24] ss:$8 sps:$4 sm:$0xff]   ;;  %v881_v10 = vld [vmem:[%s1269_s1 + $0x20] ss:$8 sps:$4 sm:$0xff]  }
   0x4   :  { %582 = vmatpush1.bf16.msra.mxu0 %v870_v3  ;;  %530 = vmatprep.subr.bf16.mxu1 %v871_v4  ;;  %v876_v7 = vld [vmem:[%s1269_s1 + $0x110] ss:$8 sps:$4 sm:$0xff]   ;;  %v879_v9 = vld [vmem:[%s1269_s1 + $0x124] ss:$8 sps:$4 sm:$0xff]   ;;  %v882_v11 = vld [vmem:[%s1269_s1 + $0x120] ss:$8 sps:$4 sm:$0xff]  }
   0x5   :  { %583 = vmatprep.subr.bf16.mxu0 %v873_v5  ;;  %v883_v12 = vld [vmem:[%s1269_s1 + $0x34] ss:$8 sps:$4 sm:$0xff]   ;;  %v887_v14 = vld [vmem:[%s1269_s1 + $0x30] ss:$8 sps:$4 sm:$0xff]   ;;  %v889_v16 = vld [vmem:[%s1269_s1 + $0x44] ss:$8 sps:$4 sm:$0xff]  }
   0x6   :  { %v885_v13 = vld [vmem:[%s1269_s1 + $0x134] ss:$8 sps:$4 sm:$0xff]   ;;  %v888_v15 = vld [vmem:[%s1269_s1 + $0x130] ss:$8 sps:$4 sm:$0xff]   ;;  %v891_v17 = vld [vmem:[%s1269_s1 + $0x144] ss:$8 sps:$4 sm:$0xff]  }
   0x7   :  { %531 = vmatpush1.bf16.msra.mxu1 %v875_v6  ;;  %v893_v18 = vld [vmem:[%s1269_s1 + $0x40] ss:$8 sps:$4 sm:$0xff]   ;;  %v895_v20 = vld [vmem:[%s1269_s1 + $0x54] ss:$8 sps:$4 sm:$0xff]   ;;  %v899_v22 = vld [vmem:[%s1269_s1 + $0x50] ss:$8 sps:$4 sm:$0xff]  }
   0x8   :  { %584 = vmatpush1.bf16.msra.mxu0 %v876_v7  ;;  %532 = vmatprep.subr.bf16.mxu1 %v877_v8  ;;  %v894_v19 = vld [vmem:[%s1269_s1 + $0x140] ss:$8 sps:$4 sm:$0xff]   ;;  %v897_v21 = vld [vmem:[%s1269_s1 + $0x154] ss:$8 sps:$4 sm:$0xff]   ;;  %v900_v23 = vld [vmem:[%s1269_s1 + $0x150] ss:$8 sps:$4 sm:$0xff]  }
   0x9   :  { %585 = vmatprep.subr.bf16.mxu0 %v879_v9  ;;  %v901_v24 = vld [vmem:[%s1269_s1 + $0x64] ss:$8 sps:$4 sm:$0xff]   ;;  %v905_v26 = vld [vmem:[%s1269_s1 + $0x60] ss:$8 sps:$4 sm:$0xff]   ;;  %v907_v28 = vld [vmem:[%s1269_s1 + $0x74] ss:$8 sps:$4 sm:$0xff]  }
   0xa   :  { %v903_v25 = vld [vmem:[%s1269_s1 + $0x164] ss:$8 sps:$4 sm:$0xff]   ;;  %v906_v27 = vld [vmem:[%s1269_s1 + $0x160] ss:$8 sps:$4 sm:$0xff]   ;;  %v909_v29 = vld [vmem:[%s1269_s1 + $0x174] ss:$8 sps:$4 sm:$0xff]  }
   0xb   :  { %533 = vmatpush1.bf16.msra.mxu1 %v881_v10  ;;  %v911_v30 = vld [vmem:[%s1269_s1 + $0x70] ss:$8 sps:$4 sm:$0xff]   ;;  %v913_v32 = vld [vmem:[%s1269_s1 + $0x84] ss:$8 sps:$4 sm:$0xff]   ;;  %v917_v34 = vld [vmem:[%s1269_s1 + $0x80] ss:$8 sps:$4 sm:$0xff]  }
   0xc   :  { %586 = vmatpush1.bf16.msra.mxu0 %v882_v11  ;;  %534 = vmatprep.subr.bf16.mxu1 %v883_v12  ;;  %v912_v31 = vld [vmem:[%s1269_s1 + $0x170] ss:$8 sps:$4 sm:$0xff]   ;;  %v915_v33 = vld [vmem:[%s1269_s1 + $0x184] ss:$8 sps:$4 sm:$0xff]   ;;  %v918_v35 = vld [vmem:[%s1269_s1 + $0x180] ss:$8 sps:$4 sm:$0xff]  }
   0xd   :  { %587 = vmatprep.subr.bf16.mxu0 %v885_v13  ;;  %v919_v36 = vld [vmem:[%s1269_s1 + $0x94] ss:$8 sps:$4 sm:$0xff]   ;;  %v923_v38 = vld [vmem:[%s1269_s1 + $0x90] ss:$8 sps:$4 sm:$0xff]   ;;  %v925_v40 = vld [vmem:[%s1269_s1 + $0xa4] ss:$8 sps:$4 sm:$0xff]  }
   0xe   :  { %v921_v37 = vld [vmem:[%s1269_s1 + $0x194] ss:$8 sps:$4 sm:$0xff]   ;;  %v924_v39 = vld [vmem:[%s1269_s1 + $0x190] ss:$8 sps:$4 sm:$0xff]   ;;  %v927_v41 = vld [vmem:[%s1269_s1 + $0x1a4] ss:$8 sps:$4 sm:$0xff]  }
   0xf   :  { %535 = vmatpush1.bf16.msra.mxu1 %v887_v14  ;;  %v929_v42 = vld [vmem:[%s1269_s1 + $0xa0] ss:$8 sps:$4 sm:$0xff]   ;;  %v931_v44 = vld [vmem:[%s1269_s1 + $0xb4] ss:$8 sps:$4 sm:$0xff]   ;;  %v935_v46 = vld [vmem:[%s1269_s1 + $0xb0] ss:$8 sps:$4 sm:$0xff]  }
  0x10   :  { %588 = vmatpush1.bf16.msra.mxu0 %v888_v15  ;;  %536 = vmatprep.subr.bf16.mxu1 %v889_v16  ;;  %v930_v43 = vld [vmem:[%s1269_s1 + $0x1a0] ss:$8 sps:$4 sm:$0xff]   ;;  %v933_v45 = vld [vmem:[%s1269_s1 + $0x1b4] ss:$8 sps:$4 sm:$0xff]   ;;  %v936_v47 = vld [vmem:[%s1269_s1 + $0x1b0] ss:$8 sps:$4 sm:$0xff]  }
  0x11   :  { %589 = vmatprep.subr.bf16.mxu0 %v891_v17  ;;  %v937_v48 = vld [vmem:[%s1269_s1 + $0xc4] ss:$8 sps:$4 sm:$0xff]   ;;  %v941_v52 = vld [vmem:[%s1269_s1 + $0xc0] ss:$8 sps:$4 sm:$0xff]   ;;  %v943_v54 = vld [vmem:[%s1269_s1 + $0xd4] ss:$8 sps:$4 sm:$0xff]  }
  0x12   :  { %v963_v49 = vld [vmem:[%s1270_s0 + $0x4] ss:$20 sps:$4 sm:$0xff]   ;;  %v966_v51 = vld [vmem:[%s1270_s0 + $0xc] ss:$20 sps:$4 sm:$0xff]   ;;  %v945_v55 = vld [vmem:[%s1269_s1 + $0x1d4] ss:$8 sps:$4 sm:$0xff]  }
  0x13   :  { %537 = vmatpush1.bf16.msra.mxu1 %v893_v18  ;;  %v939_v50 = vld [vmem:[%s1269_s1 + $0x1c4] ss:$8 sps:$4 sm:$0xff]   ;;  %560 = vmatprep.mubr.bf16.mxu1 %v963_v49  ;;  %v942_v53 = vld [vmem:[%s1269_s1 + $0x1c0] ss:$8 sps:$4 sm:$0xff]   ;;  %v947_v56 = vld [vmem:[%s1269_s1 + $0xd0] ss:$8 sps:$4 sm:$0xff]  }
  0x14   :  { %590 = vmatpush1.bf16.msra.mxu0 %v894_v19  ;;  %538 = vmatprep.subr.bf16.mxu1 %v895_v20  ;;  %v948_v57 = vld [vmem:[%s1269_s1 + $0x1d0] ss:$8 sps:$4 sm:$0xff]   ;;  %v949_v58 = vld [vmem:[%s1269_s1 + $0xe4] ss:$8 sps:$4 sm:$0xff]   ;;  %v953_v60 = vld [vmem:[%s1269_s1 + $0xe0] ss:$8 sps:$4 sm:$0xff]   ;;  %v101_v19 = vlaneseq }
  0x15   :  { %591 = vmatprep.subr.bf16.mxu0 %v897_v21  ;;  %613 = vmatprep.mubr.bf16.mxu0 %v966_v51  ;;  %v951_v59 = vld [vmem:[%s1269_s1 + $0x1e4] ss:$8 sps:$4 sm:$0xff]   ;;  %v954_v61 = vld [vmem:[%s1269_s1 + $0x1e0] ss:$8 sps:$4 sm:$0xff]   ;;  %v955_v62 = vld [vmem:[%s1269_s1 + $0xf4] ss:$8 sps:$4 sm:$0xff]  }
  0x16   :  { %v957_v63 = vld [vmem:[%s1269_s1 + $0x1f4] ss:$8 sps:$4 sm:$0xff]   ;;  %v959_v0 = vld [vmem:[%s1269_s1 + $0xf0] ss:$8 sps:$4 sm:$0xff]   ;;  %v969_v2 = vld [vmem:[%s1269_s1 + $0x204] ss:$8 sps:$4 sm:$0xff]  }
  0x17   :  { %539 = vmatpush1.bf16.msra.mxu1 %v899_v22  ;;  %v960_v1 = vld [vmem:[%s1269_s1 + $0x1f0] ss:$8 sps:$4 sm:$0xff]   ;;  %v961_v3 = vld [vmem:[%s1270_s0] ss:$20 sps:$4 sm:$0xff]   ;;  %v964_v4 = vld [vmem:[%s1270_s0 + $0x8] ss:$20 sps:$4 sm:$0xff]  }
  0x18   :  { %592 = vmatpush1.bf16.msra.mxu0 %v900_v23  ;;  %540 = vmatprep.subr.bf16.mxu1 %v901_v24  ;;  %v967_v5 = vld [vmem:[%s1269_s1 + $0x200] ss:$8 sps:$4 sm:$0xff]   ;;  %v972_v6 = vld [vmem:[%s1269_s1 + $0x214] ss:$8 sps:$4 sm:$0xff]   ;;  %v970_v9 = vld [vmem:[%s1269_s1 + $0x210] ss:$8 sps:$4 sm:$0xff]  }
  0x19   :  { %593 = vmatprep.subr.bf16.mxu0 %v903_v25  ;;  %v973_v7 = vld [vmem:[%s1270_s0 + $0x2c] ss:$20 sps:$4 sm:$0xff]   ;;  %v975_v8 = vld [vmem:[%s1270_s0 + $0x34] ss:$20 sps:$4 sm:$0xff]   ;;  %v978_v12 = vld [vmem:[%s1270_s0 + $0x30] ss:$20 sps:$4 sm:$0xff]  }
  0x1a   :  { %v981_v10 = vld [vmem:[%s1269_s1 + $0x224] ss:$8 sps:$4 sm:$0xff]   ;;  %v977_v11 = vld [vmem:[%s1270_s0 + $0x28] ss:$20 sps:$4 sm:$0xff]   ;;  %v982_v15 = vld [vmem:[%s1269_s1 + $0x230] ss:$8 sps:$4 sm:$0xff]  }
  0x1b   :  { %541 = vmatpush1.bf16.msra.mxu1 %v905_v26  ;;  %v979_v13 = vld [vmem:[%s1269_s1 + $0x220] ss:$8 sps:$4 sm:$0xff]   ;;  %v984_v14 = vld [vmem:[%s1269_s1 + $0x234] ss:$8 sps:$4 sm:$0xff]   ;;  %v987_v16 = vmov 0   ;;  %v102_v20 = vshrl.u32 %v101_v19, 7 }
  0x1c   :  { %594 = vmatpush1.bf16.msra.mxu0 %v906_v27  ;;  %542 = vmatprep.subr.bf16.mxu1 %v907_v28  ;;  %v985_v17 = vld [vmem:[%s1270_s0 + $0x10] ss:$20 sps:$4 sm:$0xff]   ;;  %v986_v18 = vld [vmem:[%s1270_s0 + $0x38] ss:$20 sps:$4 sm:$0xff]   ;;  %v99_v26 = vld [vmem:[%s1271_s2] sm:$0x3] }
  0x1d   :  { %595 = vmatprep.subr.bf16.mxu0 %v909_v29  ;;  %v103_v24 = vsub.s32 0, %v102_v20  ;;  %v107_v27 = vsub.s32 1, %v102_v20 }
  0x1f   :  { %543 = vmatpush1.bf16.msra.mxu1 %v911_v30  ;;  %v104_v28 = vrot.slane %v99_v26, %v103_v24  ;;  %v108_v29 = vrot.slane %v99_v26, %v107_v27 }
  0x20   :  { %596 = vmatpush1.bf16.msra.mxu0 %v912_v31  ;;  %544 = vmatprep.subr.bf16.mxu1 %v913_v32 }
  0x21   :  { %597 = vmatprep.subr.bf16.mxu0 %v915_v33 }
  0x23   :  { %545 = vmatpush1.bf16.msra.mxu1 %v917_v34 }
  0x24   :  { %598 = vmatpush1.bf16.msra.mxu0 %v918_v35  ;;  %546 = vmatprep.subr.bf16.mxu1 %v919_v36 }
  0x25   :  { %599 = vmatprep.subr.bf16.mxu0 %v921_v37 }
  0x27   :  { %547 = vmatpush1.bf16.msra.mxu1 %v923_v38 }
  0x28   :  { %600 = vmatpush1.bf16.msra.mxu0 %v924_v39  ;;  %548 = vmatprep.subr.bf16.mxu1 %v925_v40 }
  0x29   :  { %601 = vmatprep.subr.bf16.mxu0 %v927_v41 }
  0x2b   :  { %549 = vmatpush1.bf16.msra.mxu1 %v929_v42 }
  0x2c   :  { %602 = vmatpush1.bf16.msra.mxu0 %v930_v43  ;;  %550 = vmatprep.subr.bf16.mxu1 %v931_v44 }
  0x2d   :  { %603 = vmatprep.subr.bf16.mxu0 %v933_v45 }
  0x2f   :  { %551 = vmatpush1.bf16.msra.mxu1 %v935_v46 }
  0x30   :  { %604 = vmatpush1.bf16.msra.mxu0 %v936_v47  ;;  %552 = vmatprep.subr.bf16.mxu1 %v937_v48 }
  0x31   :  { %605 = vmatprep.subr.bf16.mxu0 %v939_v50 }
  0x33   :  { %553 = vmatpush1.bf16.msra.mxu1 %v941_v52 }
  0x34   :  { %606 = vmatpush1.bf16.msra.mxu0 %v942_v53  ;;  %554 = vmatprep.subr.bf16.mxu1 %v943_v54 }
  0x35   :  { %607 = vmatprep.subr.bf16.mxu0 %v945_v55 }
  0x37   :  { %555 = vmatpush1.bf16.msra.mxu1 %v947_v56 }
  0x38   :  { %608 = vmatpush1.bf16.msra.mxu0 %v948_v57  ;;  %556 = vmatprep.subr.bf16.mxu1 %v949_v58 }
  0x39   :  { %609 = vmatprep.subr.bf16.mxu0 %v951_v59 }
  0x3b   :  { %557 = vmatpush1.bf16.msra.mxu1 %v953_v60 }
  0x3c   :  { %610 = vmatpush1.bf16.msra.mxu0 %v954_v61  ;;  %558 = vmatprep.subr.bf16.mxu1 %v955_v62 }
  0x3d   :  { %611 = vmatprep.subr.bf16.mxu0 %v957_v63 }
  0x3f   :  { %559 = vmatpush1.bf16.msra.mxu1 %v959_v0 }
  0x40   :  { %612 = vmatpush1.bf16.msra.mxu0 %v960_v1  ;;  %832 = vmatprep.subr.bf16.mxu1 %v969_v2 }
  0x41   :  { %634 = vmatprep.subr.bf16.mxu0 %v969_v2 }
  0x42   :  { %561 = vmatmul.mubr.bf16.vlgmr.msra.gmra.mrb[0].mxu1 %v961_v3 }
  0x43   :  { %614 = vmatmul.mubr.bf16.vlgmr.msra.gmra.mrb[0].mxu0 %v964_v4  ;;  %836 = vmatpush1.bf16.msra.mxu1 %v967_v5 }
  0x44   :  { %635 = vmatpush1.bf16.msra.mxu0 %v967_v5  ;;  %833 = vmatprep.subr.bf16.mxu1 %v972_v6 }
  0x45   :  { %636 = vmatprep.subr.bf16.mxu0 %v972_v6  ;;  %570 = vmatprep.mubr.bf16.mxu1 %v973_v7 }
  0x46   :  { %623 = vmatprep.mubr.bf16.mxu0 %v975_v8 }
  0x47   :  { %837 = vmatpush1.bf16.msra.mxu1 %v970_v9 }
  0x48   :  { %637 = vmatpush1.bf16.msra.mxu0 %v970_v9  ;;  %834 = vmatprep.subr.bf16.mxu1 %v981_v10 }
  0x49   :  { %638 = vmatprep.subr.bf16.mxu0 %v981_v10 }
  0x4a   :  { %571 = vmatmul.mubr.bf16.gmra.mrb[4].mxu1 %v977_v11 }
  0x4b   :  { %624 = vmatmul.mubr.bf16.gmra.mrb[4].mxu0 %v978_v12  ;;  %838 = vmatpush1.bf16.msra.mxu1 %v979_v13 }
  0x4c   :  { %639 = vmatpush1.bf16.msra.mxu0 %v979_v13  ;;  %835 = vmatprep.subr.bf16.mxu1 %v984_v14 }
  0x4d   :  { %640 = vmatprep.subr.bf16.mxu0 %v984_v14  ;;  %666 = vmatprep.mubr.bf16.mxu0 %v987_v16 }
  0x4e   :  { %676 = vmatprep.mubr.bf16.mxu1 %v987_v16 }
  0x4f   :  { %839 = vmatpush1.bf16.msra.mxu1 %v982_v15 }
  0x50   :  { %641 = vmatpush1.bf16.msra.mxu0 %v982_v15 }
  0x52   :  { %823 = vmatmul.mubr.msk.bf16.vlgmr.msra.gmra.mrb[8].mxu1 %vm521_vm0, %v986_v18 }
  0x53   :  { %822 = vmatmul.mubr.msk.bf16.vlgmr.msra.gmra.mrb[0].mxu0 %vm521_vm0, %v985_v17 }
 0x115   :  { %v562_v21 = vpop.f32.mrb[0].mxu1 }
 0x116   :  { %v564_v22 = vpop.f32.mrb[1].mxu1  ;;  %v563_v46 = vadd.f32 %v562_v21, %v104_v28 }
 0x117   :  { %v566_v23 = vpop.f32.mrb[2].mxu1  ;;  %v565_v47 = vadd.f32 %v564_v22, %v108_v29 }
 0x118   :  { %v568_v25 = vpop.f32.mrb[3].mxu1  ;;  %v567_v50 = vadd.f32 %v566_v23, %v104_v28 }
 0x119   :  { %v569_v55 = vadd.f32 %v568_v25, %v108_v29 }
 0x11d   :  { %v572_v30 = vpop.f32.mrb[4].mxu1 }
 0x11e   :  { %v625_v31 = vpop.f32.mrb[4].mxu0  ;;  %v573_v32 = vadd.f32 %v572_v30, %v104_v28  ;;  %v574_v33 = vpop.f32.mrb[5].mxu1 }
 0x11f   :  { %v627_v34 = vpop.f32.mrb[5].mxu0  ;;  %v575_v35 = vadd.f32 %v574_v33, %v108_v29  ;;  %v576_v36 = vpop.f32.mrb[6].mxu1 }
 0x120   :  { %v629_v37 = vpop.f32.mrb[6].mxu0  ;;  %v626_v38 = vadd.f32 %v625_v31, %v573_v32  ;;  %v577_v39 = vadd.f32 %v576_v36, %v104_v28  ;;  %v578_v40 = vpop.f32.mrb[7].mxu1 }
 0x121   :  { %v631_v41 = vpop.f32.mrb[7].mxu0  ;;  %v628_v42 = vadd.f32 %v627_v34, %v575_v35  ;;  %v579_v43 = vadd.f32 %v578_v40, %v108_v29 }
 0x122   :  { %v630_v44 = vadd.f32 %v629_v37, %v577_v39 }
 0x123   :  { %v632_v45 = vadd.f32 %v631_v41, %v579_v43 }
 0x125   :  { %v678_v49 = vpop.f32.mrb[8].mxu1 }
 0x126   :  { %v668_v48 = vpop.f32.mrb[0].mxu0  ;;  %v679_v52 = vadd.f32 %v678_v49, %v626_v38  ;;  %v680_v54 = vpop.f32.mrb[9].mxu1 }
 0x127   :  { %v841_v51 = vadd.f32 %v668_v48, %v563_v46  ;;  %v670_v53 = vpop.f32.mrb[1].mxu0  ;;  %v681_v57 = vadd.f32 %v680_v54, %v628_v42  ;;  %v682_v59 = vpop.f32.mrb[10].mxu1 }
 0x128   :  { %v843_v56 = vadd.f32 %v670_v53, %v565_v47  ;;  %v672_v58 = vpop.f32.mrb[2].mxu0  ;;  %v696_v61 = vmax.f32 %v679_v52, 0.0  ;;  %v683_v63 = vadd.f32 %v682_v59, %v630_v44  ;;  %v684_v1 = vpop.f32.mrb[11].mxu1 }
 0x129   :  { %v692_v60 = vmax.f32 %v841_v51, 0.0  ;;  %v845_v62 = vadd.f32 %v672_v58, %v567_v50  ;;  %v674_v0 = vpop.f32.mrb[3].mxu0  ;;  %v685_v3 = vadd.f32 %v684_v1, %v632_v45 }
 0x12a   :  { %v847_v2 = vadd.f32 %v674_v0, %v569_v55  ;;  %v830_v5 = vpack.c.bf16 %v681_v57, %v696_v61  ;;  %v698_v7 = vmax.f32 %v683_v63, 0.0 }
 0x12b   :  { %v828_v4 = vpack.c.bf16 %v843_v56, %v692_v60  ;;  %v694_v6 = vmax.f32 %v845_v62, 0.0 }
 0x12c   :  { %734 = vst [vmem:[%s1272_s3 + $0x10] sm:$0xff] %v830_v5  ;;  %v831_v9 = vpack.c.bf16 %v685_v3, %v698_v7 }
 0x12d   :  { %732 = vst [vmem:[%s1272_s3] sm:$0xff] %v828_v4  ;;  %v829_v8 = vpack.c.bf16 %v847_v2, %v694_v6 }
 0x12e   :  { %735 = vst [vmem:[%s1272_s3 + $0x18] sm:$0xff] %v831_v9 }
 0x12f   :  { %733 = vst [vmem:[%s1272_s3 + $0x8] sm:$0xff] %v829_v8 }

// kernel: resnet_forward.19
= control target key start
LH: loop header
LB: loop body
LE: loop exit
PB: predicated region body
PF: predicated region fallthrough
CT: control target
= control target key end

     0   :  { %s1638_s1 = inlined_call_operand.vmem [shape: bf16[1152,128], index: 1, kind: input, shape index: {}]   ;;  %s1639_s0 = inlined_call_operand.vmem [shape: bf16[32,1152], index: 0, kind: input, shape index: {}]   ;;  %s1640_s2 = inlined_call_operand.vmem [shape: f32[1,128], index: 2, kind: input, shape index: {}]   ;;  %s1641_s3 = inlined_call_operand.vmem [shape: bf16[32,128], index: 3, kind: input, shape index: {}]   ;;  %s1642_s4 = inlined_call_operand.vmem [shape: f32[32,128], index: 4, kind: output, shape index: {}]  }
   0x1   :  { %v1224_v0 = vld [vmem:[%s1638_s1 + $0x40] sm:$0xff]   ;;  %v1228_v4 = vld [vmem:[%s1638_s1 + $0x48] sm:$0xff]   ;;  %v1232_v8 = vld [vmem:[%s1638_s1 + $0x50] sm:$0xff]  }
   0x2   :  { %v1225_v1 = vld [vmem:[%s1638_s1] sm:$0xff]   ;;  %1082 = vmatprep.subr.bf16.mxu0 %v1224_v0  ;;  %v1229_v5 = vld [vmem:[%s1638_s1 + $0x8] sm:$0xff]   ;;  %v1233_v9 = vld [vmem:[%s1638_s1 + $0x10] sm:$0xff]  }
   0x3   :  { %v1226_v2 = vld [vmem:[%s1638_s1 + $0xc0] sm:$0xff]   ;;  %1083 = vmatpush3.bf16.msra.mxu0 %v1225_v1  ;;  %v1230_v6 = vld [vmem:[%s1638_s1 + $0xc8] sm:$0xff]   ;;  %v1234_v10 = vld [vmem:[%s1638_s1 + $0xd0] sm:$0xff]  }
   0x4   :  { %v1227_v3 = vld [vmem:[%s1638_s1 + $0x80] sm:$0xff]   ;;  %1110 = vmatprep.subr.bf16.mxu1 %v1226_v2  ;;  %1084 = vmatprep.subr.bf16.mxu0 %v1228_v4  ;;  %v1231_v7 = vld [vmem:[%s1638_s1 + $0x88] sm:$0xff]   ;;  %v1235_v11 = vld [vmem:[%s1638_s1 + $0x90] sm:$0xff]  }
   0x5   :  { %1111 = vmatpush3.bf16.msra.mxu1 %v1227_v3  ;;  %v1236_v12 = vld [vmem:[%s1638_s1 + $0x58] sm:$0xff]   ;;  %v1240_v16 = vld [vmem:[%s1638_s1 + $0x60] sm:$0xff]   ;;  %v1244_v20 = vld [vmem:[%s1638_s1 + $0x68] sm:$0xff]  }
   0x6   :  { %1112 = vmatprep.subr.bf16.mxu1 %v1230_v6  ;;  %v1237_v13 = vld [vmem:[%s1638_s1 + $0x18] sm:$0xff]   ;;  %v1241_v17 = vld [vmem:[%s1638_s1 + $0x20] sm:$0xff]   ;;  %v1245_v21 = vld [vmem:[%s1638_s1 + $0x28] sm:$0xff]  }
   0x7   :  { %1085 = vmatpush3.bf16.msra.mxu0 %v1229_v5  ;;  %v1238_v14 = vld [vmem:[%s1638_s1 + $0xd8] sm:$0xff]   ;;  %v1242_v18 = vld [vmem:[%s1638_s1 + $0xe0] sm:$0xff]   ;;  %v1246_v22 = vld [vmem:[%s1638_s1 + $0xe8] sm:$0xff]  }
   0x8   :  { %1086 = vmatprep.subr.bf16.mxu0 %v1232_v8  ;;  %v1239_v15 = vld [vmem:[%s1638_s1 + $0x98] sm:$0xff]   ;;  %v1243_v19 = vld [vmem:[%s1638_s1 + $0xa0] sm:$0xff]   ;;  %v1247_v23 = vld [vmem:[%s1638_s1 + $0xa8] sm:$0xff]  }
   0x9   :  { %1113 = vmatpush3.bf16.msra.mxu1 %v1231_v7  ;;  %v1248_v24 = vld [vmem:[%s1638_s1 + $0x70] sm:$0xff]   ;;  %v1252_v28 = vld [vmem:[%s1638_s1 + $0x78] sm:$0xff]   ;;  %v1255_v31 = vld [vmem:[%s1639_s0] ss:$36 sps:$4 sm:$0xff]  }
   0xa   :  { %1114 = vmatprep.subr.bf16.mxu1 %v1234_v10  ;;  %v1249_v25 = vld [vmem:[%s1638_s1 + $0x30] sm:$0xff]   ;;  %v1253_v29 = vld [vmem:[%s1638_s1 + $0x38] sm:$0xff]   ;;  %v1257_v32 = vld [vmem:[%s1639_s0 + $0x4] ss:$36 sps:$4 sm:$0xff]  }
   0xb   :  { %1087 = vmatpush3.bf16.msra.mxu0 %v1233_v9  ;;  %v1250_v26 = vld [vmem:[%s1638_s1 + $0xf0] sm:$0xff]   ;;  %v1254_v30 = vld [vmem:[%s1638_s1 + $0xf8] sm:$0xff]   ;;  %745 = vmatprep.mubr.bf16.mxu0 %v1257_v32  ;;  %v1259_v34 = vld [vmem:[%s1638_s1 + $0x140] sm:$0xff]  }
   0xc   :  { %1088 = vmatprep.subr.bf16.mxu0 %v1236_v12  ;;  %v1251_v27 = vld [vmem:[%s1638_s1 + $0xb0] sm:$0xff]   ;;  %v1258_v33 = vld [vmem:[%s1638_s1 + $0xb8] sm:$0xff]   ;;  %v1260_v35 = vld [vmem:[%s1639_s0 + $0x8] ss:$36 sps:$4 sm:$0xff]  }
   0xd   :  { %1115 = vmatpush3.bf16.msra.mxu1 %v1235_v11  ;;  %v1262_v36 = vld [vmem:[%s1639_s0 + $0xc] ss:$36 sps:$4 sm:$0xff]   ;;  %v1263_v37 = vld [vmem:[%s1638_s1 + $0x100] sm:$0xff]   ;;  %v1274_v48 = vld [vmem:[%s1638_s1 + $0x158] sm:$0xff]  }
   0xe   :  { %1116 = vmatprep.subr.bf16.mxu1 %v1238_v14  ;;  %794 = vmatprep.mubr.bf16.mxu1 %v1262_v36  ;;  %v1264_v38 = vld [vmem:[%s1638_s1 + $0x1c0] sm:$0xff]   ;;  %v1266_v40 = vld [vmem:[%s1638_s1 + $0x148] sm:$0xff]   ;;  %v1270_v44 = vld [vmem:[%s1638_s1 + $0x150] sm:$0xff]  }
   0xf   :  { %1089 = vmatpush3.bf16.msra.mxu0 %v1237_v13  ;;  %v1265_v39 = vld [vmem:[%s1638_s1 + $0x180] sm:$0xff]   ;;  %v1267_v41 = vld [vmem:[%s1638_s1 + $0x108] sm:$0xff]   ;;  %v1271_v45 = vld [vmem:[%s1638_s1 + $0x110] sm:$0xff]  }
  0x10   :  { %1090 = vmatprep.subr.bf16.mxu0 %v1240_v16  ;;  %v1268_v42 = vld [vmem:[%s1638_s1 + $0x1c8] sm:$0xff]   ;;  %v1272_v46 = vld [vmem:[%s1638_s1 + $0x1d0] sm:$0xff]   ;;  %v1275_v49 = vld [vmem:[%s1638_s1 + $0x118] sm:$0xff]  }
  0x11   :  { %1117 = vmatpush3.bf16.msra.mxu1 %v1239_v15  ;;  %v1269_v43 = vld [vmem:[%s1638_s1 + $0x188] sm:$0xff]   ;;  %v1273_v47 = vld [vmem:[%s1638_s1 + $0x190] sm:$0xff]   ;;  %v1276_v50 = vld [vmem:[%s1638_s1 + $0x1d8] sm:$0xff]  }
  0x12   :  { %1118 = vmatprep.subr.bf16.mxu1 %v1242_v18  ;;  %v1277_v51 = vld [vmem:[%s1638_s1 + $0x198] sm:$0xff]   ;;  %v1278_v52 = vld [vmem:[%s1638_s1 + $0x160] sm:$0xff]   ;;  %v1282_v56 = vld [vmem:[%s1638_s1 + $0x168] sm:$0xff]  }
  0x13   :  { %1091 = vmatpush3.bf16.msra.mxu0 %v1241_v17  ;;  %v1279_v53 = vld [vmem:[%s1638_s1 + $0x120] sm:$0xff]   ;;  %v1283_v57 = vld [vmem:[%s1639_s0 + $0x4c] ss:$36 sps:$4 sm:$0xff]   ;;  %v1288_v61 = vld [vmem:[%s1639_s0 + $0x54] ss:$36 sps:$4 sm:$0xff]  }
  0x14   :  { %1092 = vmatprep.subr.bf16.mxu0 %v1244_v20  ;;  %v1280_v54 = vld [vmem:[%s1638_s1 + $0x1e0] sm:$0xff]   ;;  %v1285_v58 = vld [vmem:[%s1638_s1 + $0x128] sm:$0xff]   ;;  %v1291_v63 = vld [vmem:[%s1639_s0 + $0x50] ss:$36 sps:$4 sm:$0xff]  }
  0x15   :  { %1119 = vmatpush3.bf16.msra.mxu1 %v1243_v19  ;;  %v1281_v55 = vld [vmem:[%s1638_s1 + $0x1a0] sm:$0xff]   ;;  %v1286_v59 = vld [vmem:[%s1639_s0 + $0x48] ss:$36 sps:$4 sm:$0xff]   ;;  %v1292_v0 = vld [vmem:[%s1638_s1 + $0x170] sm:$0xff]  }
  0x16   :  { %1120 = vmatprep.subr.bf16.mxu1 %v1246_v22  ;;  %v1287_v60 = vld [vmem:[%s1638_s1 + $0x1e8] sm:$0xff]   ;;  %v1293_v1 = vld [vmem:[%s1638_s1 + $0x130] sm:$0xff]   ;;  %v1296_v4 = vld [vmem:[%s1638_s1 + $0x178] sm:$0xff]  }
  0x17   :  { %1093 = vmatpush3.bf16.msra.mxu0 %v1245_v21  ;;  %v1290_v62 = vld [vmem:[%s1638_s1 + $0x1a8] sm:$0xff]   ;;  %v1294_v2 = vld [vmem:[%s1638_s1 + $0x1f0] sm:$0xff]   ;;  %v1297_v5 = vld [vmem:[%s1638_s1 + $0x138] sm:$0xff]  }
  0x18   :  { %1094 = vmatprep.subr.bf16.mxu0 %v1248_v24  ;;  %v1295_v3 = vld [vmem:[%s1638_s1 + $0x1b0] sm:$0xff]   ;;  %v1298_v6 = vld [vmem:[%s1638_s1 + $0x1f8] sm:$0xff]   ;;  %v1303_v10 = vld [vmem:[%s1638_s1 + $0x200] sm:$0xff]  }
  0x19   :  { %1121 = vmatpush3.bf16.msra.mxu1 %v1247_v23  ;;  %v1299_v7 = vld [vmem:[%s1639_s0 + $0x10] ss:$36 sps:$4 sm:$0xff]   ;;  %v1302_v9 = vld [vmem:[%s1638_s1 + $0x1b8] sm:$0xff]   ;;  %v1307_v13 = vld [vmem:[%s1638_s1 + $0x208] sm:$0xff]  }
  0x1a   :  { %1122 = vmatprep.subr.bf16.mxu1 %v1250_v26  ;;  %v1301_v8 = vld [vmem:[%s1639_s0 + $0x14] ss:$36 sps:$4 sm:$0xff]   ;;  %v1306_v12 = vld [vmem:[%s1639_s0 + $0x1c] ss:$36 sps:$4 sm:$0xff]   ;;  %v1312_v17 = vld [vmem:[%s1639_s0 + $0x64] ss:$36 sps:$4 sm:$0xff]  }
  0x1b   :  { %1095 = vmatpush3.bf16.msra.mxu0 %v1249_v25  ;;  %v1304_v11 = vld [vmem:[%s1639_s0 + $0x18] ss:$36 sps:$4 sm:$0xff]   ;;  %v1311_v16 = vld [vmem:[%s1638_s1 + $0x210] sm:$0xff]   ;;  %v1314_v18 = vld [vmem:[%s1639_s0 + $0x60] ss:$36 sps:$4 sm:$0xff]  }
  0x1c   :  { %1096 = vmatprep.subr.bf16.mxu0 %v1252_v28  ;;  %v1308_v14 = vld [vmem:[%s1639_s0 + $0x5c] ss:$36 sps:$4 sm:$0xff]   ;;  %v1317_v22 = vld [vmem:[%s1638_s1 + $0x228] sm:$0xff]   ;;  %v1318_v23 = vld [vmem:[%s1638_s1 + $0x230] sm:$0xff]  }
  0x1d   :  { %1123 = vmatpush3.bf16.msra.mxu1 %v1251_v27  ;;  %v1310_v15 = vld [vmem:[%s1639_s0 + $0x58] ss:$36 sps:$4 sm:$0xff]   ;;  %v1316_v20 = vld [vmem:[%s1638_s1 + $0x220] sm:$0xff]   ;;  %v1321_v25 = vld [vmem:[%s1639_s0 + $0x68] ss:$36 sps:$4 sm:$0xff]  }
  0x1e   :  { %1124 = vmatprep.subr.bf16.mxu1 %v1254_v30  ;;  %v1315_v19 = vld [vmem:[%s1638_s1 + $0x218] sm:$0xff]   ;;  %v1320_v21 = vld [vmem:[%s1639_s0 + $0x20] ss:$36 sps:$4 sm:$0xff]  }
  0x1f   :  { %1097 = vmatpush3.bf16.msra.mxu0 %v1253_v29  ;;  %v1319_v24 = vld [vmem:[%s1638_s1 + $0x238] sm:$0xff]   ;;  %v982_v27 = vld [vmem:[%s1640_s2] ss:$0 sm:$0xff] }
  0x20   :  { %1138 = vmatprep.subr.bf16.mxu0 %v1259_v34 }
  0x21   :  { %1125 = vmatpush3.bf16.msra.mxu1 %v1258_v33 }
  0x22   :  { %746 = vmatmul.mubr.bf16.vlgmr.msra.gmra.mrb[0].mxu0 %v1255_v31  ;;  %1166 = vmatprep.subr.bf16.mxu1 %v1264_v38 }
  0x23   :  { %1139 = vmatpush3.bf16.msra.mxu0 %v1263_v37  ;;  %753 = vmatprep.mubr.bf16.mxu0 %v1283_v57 }
  0x24   :  { %795 = vmatmul.mubr.bf16.vlgmr.msra.gmra.mrb[0].mxu1 %v1260_v35  ;;  %1140 = vmatprep.subr.bf16.mxu0 %v1266_v40 }
  0x25   :  { %1167 = vmatpush3.bf16.msra.mxu1 %v1265_v39  ;;  %802 = vmatprep.mubr.bf16.mxu1 %v1288_v61 }
  0x26   :  { %1168 = vmatprep.subr.bf16.mxu1 %v1268_v42 }
  0x27   :  { %1141 = vmatpush3.bf16.msra.mxu0 %v1267_v41 }
  0x28   :  { %1142 = vmatprep.subr.bf16.mxu0 %v1270_v44 }
  0x29   :  { %1169 = vmatpush3.bf16.msra.mxu1 %v1269_v43 }
  0x2a   :  { %1170 = vmatprep.subr.bf16.mxu1 %v1272_v46  ;;  %754 = vmatmul.mubr.bf16.gmra.mrb[4].mxu0 %v1286_v59 }
  0x2b   :  { %1143 = vmatpush3.bf16.msra.mxu0 %v1271_v45  ;;  %843 = vmatprep.mubr.bf16.mxu0 %v1301_v8 }
  0x2c   :  { %1144 = vmatprep.subr.bf16.mxu0 %v1274_v48  ;;  %803 = vmatmul.mubr.bf16.gmra.mrb[4].mxu1 %v1291_v63 }
  0x2d   :  { %1171 = vmatpush3.bf16.msra.mxu1 %v1273_v47  ;;  %892 = vmatprep.mubr.bf16.mxu1 %v1306_v12 }
  0x2e   :  { %1172 = vmatprep.subr.bf16.mxu1 %v1276_v50 }
  0x2f   :  { %1145 = vmatpush3.bf16.msra.mxu0 %v1275_v49 }
  0x30   :  { %1146 = vmatprep.subr.bf16.mxu0 %v1278_v52 }
  0x31   :  { %1173 = vmatpush3.bf16.msra.mxu1 %v1277_v51 }
  0x32   :  { %1174 = vmatprep.subr.bf16.mxu1 %v1280_v54 }
  0x33   :  { %1147 = vmatpush3.bf16.msra.mxu0 %v1279_v53 }
  0x34   :  { %1148 = vmatprep.subr.bf16.mxu0 %v1282_v56 }
  0x35   :  { %1175 = vmatpush3.bf16.msra.mxu1 %v1281_v55 }
  0x36   :  { %1176 = vmatprep.subr.bf16.mxu1 %v1287_v60 }
  0x37   :  { %1149 = vmatpush3.bf16.msra.mxu0 %v1285_v58 }
  0x38   :  { %1150 = vmatprep.subr.bf16.mxu0 %v1292_v0 }
  0x39   :  { %1177 = vmatpush3.bf16.msra.mxu1 %v1290_v62 }
  0x3a   :  { %1178 = vmatprep.subr.bf16.mxu1 %v1294_v2 }
  0x3b   :  { %1151 = vmatpush3.bf16.msra.mxu0 %v1293_v1 }
  0x3c   :  { %1152 = vmatprep.subr.bf16.mxu0 %v1296_v4 }
  0x3d   :  { %1179 = vmatpush3.bf16.msra.mxu1 %v1295_v3 }
  0x3e   :  { %1180 = vmatprep.subr.bf16.mxu1 %v1298_v6 }
  0x3f   :  { %1153 = vmatpush3.bf16.msra.mxu0 %v1297_v5 }
  0x40   :  { %1204 = vmatprep.subr.bf16.mxu0 %v1303_v10 }
  0x41   :  { %1181 = vmatpush3.bf16.msra.mxu1 %v1302_v9 }
  0x42   :  { %844 = vmatmul.mubr.bf16.vlgmr.msra.gmra.mrb[8].mxu0 %v1299_v7 }
  0x43   :  { %1205 = vmatpush3.bf16.msra.mxu0 %v1303_v10  ;;  %851 = vmatprep.mubr.bf16.mxu0 %v1308_v14 }
  0x44   :  { %893 = vmatmul.mubr.bf16.vlgmr.msra.gmra.mrb[8].mxu1 %v1304_v11  ;;  %1206 = vmatprep.subr.bf16.mxu0 %v1307_v13 }
  0x45   :  { %900 = vmatprep.mubr.bf16.mxu1 %v1312_v17 }
  0x47   :  { %1207 = vmatpush3.bf16.msra.mxu0 %v1307_v13 }
  0x48   :  { %1208 = vmatprep.subr.bf16.mxu0 %v1311_v16 }
  0x4a   :  { %852 = vmatmul.mubr.bf16.gmra.mrb[12].mxu0 %v1310_v15 }
  0x4b   :  { %1209 = vmatpush3.bf16.msra.mxu0 %v1311_v16  ;;  %1220 = vmatprep.mubr.bf16.mxu0 %v1320_v21 }
  0x4c   :  { %901 = vmatmul.mubr.bf16.gmra.mrb[12].mxu1 %v1314_v18  ;;  %1210 = vmatprep.subr.bf16.mxu0 %v1315_v19 }
  0x4f   :  { %1211 = vmatpush3.bf16.msra.mxu0 %v1315_v19 }
  0x50   :  { %1212 = vmatprep.subr.bf16.mxu0 %v1316_v20 }
  0x53   :  { %1213 = vmatpush3.bf16.msra.mxu0 %v1316_v20 }
  0x54   :  { %1214 = vmatprep.subr.bf16.mxu0 %v1317_v22 }
  0x57   :  { %1215 = vmatpush3.bf16.msra.mxu0 %v1317_v22 }
  0x58   :  { %1216 = vmatprep.subr.bf16.mxu0 %v1318_v23 }
  0x5b   :  { %1217 = vmatpush3.bf16.msra.mxu0 %v1318_v23 }
  0x5c   :  { %1218 = vmatprep.subr.bf16.mxu0 %v1319_v24 }
  0x5f   :  { %1219 = vmatpush3.bf16.msra.mxu0 %v1319_v24 }
  0x62   :  { %1221 = vmatmul.mubr.bf16.vlgmr.msra.gmra.mrb[16].mxu0 %v1321_v25 }
  0xf5   :  { %v1098_v26 = vpop.f32.mrb[0].mxu0 }
  0xf6   :  { %v1099_v28 = vpop.f32.mrb[1].mxu0 }
  0xf7   :  { %v1100_v29 = vadd.f32 %v1099_v28, %v1098_v26  ;;  %v1101_v30 = vpop.f32.mrb[2].mxu0  ;;  %v1126_v31 = vpop.f32.mrb[0].mxu1  ;;  %v1074_v28 = vld [vmem:[%s1641_s3] sm:$0xff]  }
  0xf8   :  { %v1102_v32 = vpop.f32.mrb[3].mxu0  ;;  %v1127_v35 = vpop.f32.mrb[1].mxu1 }
  0xf9   :  { %v748_v33 = vadd.f32 %v1100_v29, %v982_v27  ;;  %v1103_v34 = vadd.f32 %v1102_v32, %v1101_v30  ;;  %v1128_v36 = vadd.f32 %v1127_v35, %v1126_v31  ;;  %v1129_v37 = vpop.f32.mrb[2].mxu1  ;;  %v1075_v31 = vunpack.c.l.bf16 %v1074_v28 }
  0xfa   :  { %v1130_v39 = vpop.f32.mrb[3].mxu1 }
  0xfb   :  { %v751_v38 = vadd.f32 %v1103_v34, %v982_v27  ;;  %v797_v40 = vadd.f32 %v1128_v36, %v748_v33  ;;  %v1131_v41 = vadd.f32 %v1130_v39, %v1129_v37  ;;  %v1076_v37 = vunpack.c.h.bf16 %v1074_v28 }
  0xfd   :  { %v800_v42 = vadd.f32 %v1131_v41, %v751_v38  ;;  %v1104_v43 = vpop.f32.mrb[4].mxu0 }
  0xfe   :  { %v1105_v44 = vpop.f32.mrb[5].mxu0 }
  0xff   :  { %v1106_v45 = vadd.f32 %v1105_v44, %v1104_v43  ;;  %v1107_v46 = vpop.f32.mrb[6].mxu0  ;;  %v1132_v47 = vpop.f32.mrb[4].mxu1 }
 0x100   :  { %v1108_v48 = vpop.f32.mrb[7].mxu0  ;;  %v1133_v51 = vpop.f32.mrb[5].mxu1 }
 0x101   :  { %v756_v49 = vadd.f32 %v1106_v45, %v982_v27  ;;  %v1109_v50 = vadd.f32 %v1108_v48, %v1107_v46  ;;  %v1134_v52 = vadd.f32 %v1133_v51, %v1132_v47  ;;  %v1135_v53 = vpop.f32.mrb[6].mxu1 }
 0x102   :  { %v1136_v55 = vpop.f32.mrb[7].mxu1 }
 0x103   :  { %v759_v54 = vadd.f32 %v1109_v50, %v982_v27  ;;  %v805_v56 = vadd.f32 %v1134_v52, %v756_v49  ;;  %v1137_v57 = vadd.f32 %v1136_v55, %v1135_v53  ;;  %v1081_v27 = vld [vmem:[%s1641_s3 + $0x8] sm:$0xff]  }
 0x104   :  { %v1079_v29 = vunpack.c.l.bf16 %v1081_v27  ;;  %v1080_v34 = vunpack.c.h.bf16 %v1081_v27 }
 0x105   :  { %v808_v58 = vadd.f32 %v1137_v57, %v759_v54 }
 0x115   :  { %v1154_v59 = vpop.f32.mrb[8].mxu0 }
 0x116   :  { %v1155_v60 = vpop.f32.mrb[9].mxu0 }
 0x117   :  { %v1156_v61 = vadd.f32 %v1155_v60, %v1154_v59  ;;  %v1157_v62 = vpop.f32.mrb[10].mxu0  ;;  %v1182_v63 = vpop.f32.mrb[8].mxu1 }
 0x118   :  { %v1158_v0 = vpop.f32.mrb[11].mxu0  ;;  %v1183_v3 = vpop.f32.mrb[9].mxu1 }
 0x119   :  { %v846_v1 = vadd.f32 %v1156_v61, %v797_v40  ;;  %v1159_v2 = vadd.f32 %v1158_v0, %v1157_v62  ;;  %v1184_v4 = vadd.f32 %v1183_v3, %v1182_v63  ;;  %v1185_v5 = vpop.f32.mrb[10].mxu1 }
 0x11a   :  { %v1186_v7 = vpop.f32.mrb[11].mxu1 }
 0x11b   :  { %v849_v6 = vadd.f32 %v1159_v2, %v800_v42  ;;  %v1187_v8 = vadd.f32 %v1186_v7, %v1185_v5  ;;  %v895_v9 = vadd.f32 %v1184_v4, %v846_v1 }
 0x11d   :  { %v1160_v10 = vpop.f32.mrb[12].mxu0  ;;  %v898_v12 = vadd.f32 %v1187_v8, %v849_v6 }
 0x11e   :  { %v1161_v11 = vpop.f32.mrb[13].mxu0 }
 0x11f   :  { %v1162_v13 = vadd.f32 %v1161_v11, %v1160_v10  ;;  %v1163_v14 = vpop.f32.mrb[14].mxu0  ;;  %v1188_v15 = vpop.f32.mrb[12].mxu1 }
 0x120   :  { %v1164_v16 = vpop.f32.mrb[15].mxu0  ;;  %v1189_v19 = vpop.f32.mrb[13].mxu1 }
 0x121   :  { %v854_v17 = vadd.f32 %v1162_v13, %v805_v56  ;;  %v1165_v18 = vadd.f32 %v1164_v16, %v1163_v14  ;;  %v1190_v20 = vadd.f32 %v1189_v19, %v1188_v15  ;;  %v1191_v21 = vpop.f32.mrb[14].mxu1 }
 0x122   :  { %v1192_v23 = vpop.f32.mrb[15].mxu1 }
 0x123   :  { %v857_v22 = vadd.f32 %v1165_v18, %v808_v58  ;;  %v1193_v24 = vadd.f32 %v1192_v23, %v1191_v21  ;;  %v903_v25 = vadd.f32 %v1190_v20, %v854_v17 }
 0x125   :  { %v906_v26 = vadd.f32 %v1193_v24, %v857_v22 }
 0x135   :  { %v1222_v30 = vpop.f32.mrb[16].mxu0 }
 0x136   :  { %v952_v32 = vadd.f32 %v1222_v30, %v903_v25  ;;  %v943_v33 = vpop.f32.mrb[17].mxu0 }
 0x137   :  { %v944_v35 = vadd.f32 %v943_v33, %v895_v9  ;;  %v1223_v36 = vpop.f32.mrb[18].mxu0 }
 0x138   :  { %v968_v38 = vadd.f32 %v1079_v29, %v952_v32  ;;  %v955_v39 = vadd.f32 %v1223_v36, %v906_v26  ;;  %v946_v40 = vpop.f32.mrb[19].mxu0 }
 0x139   :  { %v966_v41 = vadd.f32 %v1075_v31, %v944_v35  ;;  %v947_v42 = vadd.f32 %v946_v40, %v898_v12 }
 0x13a   :  { %v972_v43 = vmax.f32 %v968_v38, 0.0  ;;  %v969_v44 = vadd.f32 %v1080_v34, %v955_v39 }
 0x13b   :  { %v970_v45 = vmax.f32 %v966_v41, 0.0  ;;  %v967_v46 = vadd.f32 %v1076_v37, %v947_v42 }
 0x13c   :  { %976 = vst [vmem:[%s1642_s4 + $0x10] sm:$0xff] %v972_v43  ;;  %v973_v47 = vmax.f32 %v969_v44, 0.0 }
 0x13d   :  { %974 = vst [vmem:[%s1642_s4] sm:$0xff] %v970_v45  ;;  %v971_v48 = vmax.f32 %v967_v46, 0.0 }
 0x13e   :  { %977 = vst [vmem:[%s1642_s4 + $0x18] sm:$0xff] %v973_v47 }
 0x13f   :  { %975 = vst [vmem:[%s1642_s4 + $0x8] sm:$0xff] %v971_v48 }

// kernel: resnet_forward.17
= control target key start
LH: loop header
LB: loop body
LE: loop exit
PB: predicated region body
PF: predicated region fallthrough
CT: control target
= control target key end

     0   :  { %s1667_s1 = inlined_call_operand.vmem [shape: bf16[1152,128], index: 1, kind: input, shape index: {}]   ;;  %s1668_s0 = inlined_call_operand.vmem [shape: bf16[32,1152], index: 0, kind: input, shape index: {}]   ;;  %s1669_s2 = inlined_call_operand.vmem [shape: f32[1,128], index: 2, kind: input, shape index: {}]   ;;  %s1670_s3 = inlined_call_operand.vmem [shape: bf16[32,128], index: 3, kind: input, shape index: {}]   ;;  %s1671_s4 = inlined_call_operand.vmem [shape: bf16[32,128], index: 4, kind: output, shape index: {}]  }
   0x1   :  { %v1259_v0 = vld [vmem:[%s1667_s1 + $0x40] sm:$0xff]   ;;  %v1263_v4 = vld [vmem:[%s1667_s1 + $0x48] sm:$0xff]   ;;  %v1267_v8 = vld [vmem:[%s1667_s1 + $0x50] sm:$0xff]  }
   0x2   :  { %v1260_v1 = vld [vmem:[%s1667_s1] sm:$0xff]   ;;  %1117 = vmatprep.subr.bf16.mxu0 %v1259_v0  ;;  %v1264_v5 = vld [vmem:[%s1667_s1 + $0x8] sm:$0xff]   ;;  %v1268_v9 = vld [vmem:[%s1667_s1 + $0x10] sm:$0xff]  }
   0x3   :  { %v1261_v2 = vld [vmem:[%s1667_s1 + $0xc0] sm:$0xff]   ;;  %1118 = vmatpush3.bf16.msra.mxu0 %v1260_v1  ;;  %v1265_v6 = vld [vmem:[%s1667_s1 + $0xc8] sm:$0xff]   ;;  %v1269_v10 = vld [vmem:[%s1667_s1 + $0xd0] sm:$0xff]  }
   0x4   :  { %v1262_v3 = vld [vmem:[%s1667_s1 + $0x80] sm:$0xff]   ;;  %1145 = vmatprep.subr.bf16.mxu1 %v1261_v2  ;;  %1119 = vmatprep.subr.bf16.mxu0 %v1263_v4  ;;  %v1266_v7 = vld [vmem:[%s1667_s1 + $0x88] sm:$0xff]   ;;  %v1270_v11 = vld [vmem:[%s1667_s1 + $0x90] sm:$0xff]  }
   0x5   :  { %1146 = vmatpush3.bf16.msra.mxu1 %v1262_v3  ;;  %v1271_v12 = vld [vmem:[%s1667_s1 + $0x58] sm:$0xff]   ;;  %v1275_v16 = vld [vmem:[%s1667_s1 + $0x60] sm:$0xff]   ;;  %v1279_v20 = vld [vmem:[%s1667_s1 + $0x68] sm:$0xff]  }
   0x6   :  { %1147 = vmatprep.subr.bf16.mxu1 %v1265_v6  ;;  %v1272_v13 = vld [vmem:[%s1667_s1 + $0x18] sm:$0xff]   ;;  %v1276_v17 = vld [vmem:[%s1667_s1 + $0x20] sm:$0xff]   ;;  %v1280_v21 = vld [vmem:[%s1667_s1 + $0x28] sm:$0xff]  }
   0x7   :  { %1120 = vmatpush3.bf16.msra.mxu0 %v1264_v5  ;;  %v1273_v14 = vld [vmem:[%s1667_s1 + $0xd8] sm:$0xff]   ;;  %v1277_v18 = vld [vmem:[%s1667_s1 + $0xe0] sm:$0xff]   ;;  %v1281_v22 = vld [vmem:[%s1667_s1 + $0xe8] sm:$0xff]  }
   0x8   :  { %1121 = vmatprep.subr.bf16.mxu0 %v1267_v8  ;;  %v1274_v15 = vld [vmem:[%s1667_s1 + $0x98] sm:$0xff]   ;;  %v1278_v19 = vld [vmem:[%s1667_s1 + $0xa0] sm:$0xff]   ;;  %v1282_v23 = vld [vmem:[%s1667_s1 + $0xa8] sm:$0xff]  }
   0x9   :  { %1148 = vmatpush3.bf16.msra.mxu1 %v1266_v7  ;;  %v1283_v24 = vld [vmem:[%s1667_s1 + $0x70] sm:$0xff]   ;;  %v1287_v28 = vld [vmem:[%s1667_s1 + $0x78] sm:$0xff]   ;;  %v1290_v31 = vld [vmem:[%s1668_s0] ss:$36 sps:$4 sm:$0xff]  }
   0xa   :  { %1149 = vmatprep.subr.bf16.mxu1 %v1269_v10  ;;  %v1284_v25 = vld [vmem:[%s1667_s1 + $0x30] sm:$0xff]   ;;  %v1288_v29 = vld [vmem:[%s1667_s1 + $0x38] sm:$0xff]   ;;  %v1292_v32 = vld [vmem:[%s1668_s0 + $0x4] ss:$36 sps:$4 sm:$0xff]  }
   0xb   :  { %1122 = vmatpush3.bf16.msra.mxu0 %v1268_v9  ;;  %v1285_v26 = vld [vmem:[%s1667_s1 + $0xf0] sm:$0xff]   ;;  %v1289_v30 = vld [vmem:[%s1667_s1 + $0xf8] sm:$0xff]   ;;  %745 = vmatprep.mubr.bf16.mxu0 %v1292_v32  ;;  %v1294_v34 = vld [vmem:[%s1667_s1 + $0x140] sm:$0xff]  }
   0xc   :  { %1123 = vmatprep.subr.bf16.mxu0 %v1271_v12  ;;  %v1286_v27 = vld [vmem:[%s1667_s1 + $0xb0] sm:$0xff]   ;;  %v1293_v33 = vld [vmem:[%s1667_s1 + $0xb8] sm:$0xff]   ;;  %v1295_v35 = vld [vmem:[%s1668_s0 + $0x8] ss:$36 sps:$4 sm:$0xff]  }
   0xd   :  { %1150 = vmatpush3.bf16.msra.mxu1 %v1270_v11  ;;  %v1297_v36 = vld [vmem:[%s1668_s0 + $0xc] ss:$36 sps:$4 sm:$0xff]   ;;  %v1298_v37 = vld [vmem:[%s1667_s1 + $0x100] sm:$0xff]   ;;  %v1309_v48 = vld [vmem:[%s1667_s1 + $0x158] sm:$0xff]  }
   0xe   :  { %1151 = vmatprep.subr.bf16.mxu1 %v1273_v14  ;;  %794 = vmatprep.mubr.bf16.mxu1 %v1297_v36  ;;  %v1299_v38 = vld [vmem:[%s1667_s1 + $0x1c0] sm:$0xff]   ;;  %v1301_v40 = vld [vmem:[%s1667_s1 + $0x148] sm:$0xff]   ;;  %v1305_v44 = vld [vmem:[%s1667_s1 + $0x150] sm:$0xff]  }
   0xf   :  { %1124 = vmatpush3.bf16.msra.mxu0 %v1272_v13  ;;  %v1300_v39 = vld [vmem:[%s1667_s1 + $0x180] sm:$0xff]   ;;  %v1302_v41 = vld [vmem:[%s1667_s1 + $0x108] sm:$0xff]   ;;  %v1306_v45 = vld [vmem:[%s1667_s1 + $0x110] sm:$0xff]  }
  0x10   :  { %1125 = vmatprep.subr.bf16.mxu0 %v1275_v16  ;;  %v1303_v42 = vld [vmem:[%s1667_s1 + $0x1c8] sm:$0xff]   ;;  %v1307_v46 = vld [vmem:[%s1667_s1 + $0x1d0] sm:$0xff]   ;;  %v1310_v49 = vld [vmem:[%s1667_s1 + $0x118] sm:$0xff]  }
  0x11   :  { %1152 = vmatpush3.bf16.msra.mxu1 %v1274_v15  ;;  %v1304_v43 = vld [vmem:[%s1667_s1 + $0x188] sm:$0xff]   ;;  %v1308_v47 = vld [vmem:[%s1667_s1 + $0x190] sm:$0xff]   ;;  %v1311_v50 = vld [vmem:[%s1667_s1 + $0x1d8] sm:$0xff]  }
  0x12   :  { %1153 = vmatprep.subr.bf16.mxu1 %v1277_v18  ;;  %v1312_v51 = vld [vmem:[%s1667_s1 + $0x198] sm:$0xff]   ;;  %v1313_v52 = vld [vmem:[%s1667_s1 + $0x160] sm:$0xff]   ;;  %v1317_v56 = vld [vmem:[%s1667_s1 + $0x168] sm:$0xff]  }
  0x13   :  { %1126 = vmatpush3.bf16.msra.mxu0 %v1276_v17  ;;  %v1314_v53 = vld [vmem:[%s1667_s1 + $0x120] sm:$0xff]   ;;  %v1318_v57 = vld [vmem:[%s1668_s0 + $0x4c] ss:$36 sps:$4 sm:$0xff]   ;;  %v1323_v61 = vld [vmem:[%s1668_s0 + $0x54] ss:$36 sps:$4 sm:$0xff]  }
  0x14   :  { %1127 = vmatprep.subr.bf16.mxu0 %v1279_v20  ;;  %v1315_v54 = vld [vmem:[%s1667_s1 + $0x1e0] sm:$0xff]   ;;  %v1320_v58 = vld [vmem:[%s1667_s1 + $0x128] sm:$0xff]   ;;  %v1326_v63 = vld [vmem:[%s1668_s0 + $0x50] ss:$36 sps:$4 sm:$0xff]  }
  0x15   :  { %1154 = vmatpush3.bf16.msra.mxu1 %v1278_v19  ;;  %v1316_v55 = vld [vmem:[%s1667_s1 + $0x1a0] sm:$0xff]   ;;  %v1321_v59 = vld [vmem:[%s1668_s0 + $0x48] ss:$36 sps:$4 sm:$0xff]   ;;  %v1327_v0 = vld [vmem:[%s1667_s1 + $0x170] sm:$0xff]  }
  0x16   :  { %1155 = vmatprep.subr.bf16.mxu1 %v1281_v22  ;;  %v1322_v60 = vld [vmem:[%s1667_s1 + $0x1e8] sm:$0xff]   ;;  %v1328_v1 = vld [vmem:[%s1667_s1 + $0x130] sm:$0xff]   ;;  %v1331_v4 = vld [vmem:[%s1667_s1 + $0x178] sm:$0xff]  }
  0x17   :  { %1128 = vmatpush3.bf16.msra.mxu0 %v1280_v21  ;;  %v1325_v62 = vld [vmem:[%s1667_s1 + $0x1a8] sm:$0xff]   ;;  %v1329_v2 = vld [vmem:[%s1667_s1 + $0x1f0] sm:$0xff]   ;;  %v1332_v5 = vld [vmem:[%s1667_s1 + $0x138] sm:$0xff]  }
  0x18   :  { %1129 = vmatprep.subr.bf16.mxu0 %v1283_v24  ;;  %v1330_v3 = vld [vmem:[%s1667_s1 + $0x1b0] sm:$0xff]   ;;  %v1333_v6 = vld [vmem:[%s1667_s1 + $0x1f8] sm:$0xff]   ;;  %v1338_v10 = vld [vmem:[%s1667_s1 + $0x200] sm:$0xff]  }
  0x19   :  { %1156 = vmatpush3.bf16.msra.mxu1 %v1282_v23  ;;  %v1334_v7 = vld [vmem:[%s1668_s0 + $0x10] ss:$36 sps:$4 sm:$0xff]   ;;  %v1337_v9 = vld [vmem:[%s1667_s1 + $0x1b8] sm:$0xff]   ;;  %v1342_v13 = vld [vmem:[%s1667_s1 + $0x208] sm:$0xff]  }
  0x1a   :  { %1157 = vmatprep.subr.bf16.mxu1 %v1285_v26  ;;  %v1336_v8 = vld [vmem:[%s1668_s0 + $0x14] ss:$36 sps:$4 sm:$0xff]   ;;  %v1341_v12 = vld [vmem:[%s1668_s0 + $0x1c] ss:$36 sps:$4 sm:$0xff]   ;;  %v1347_v17 = vld [vmem:[%s1668_s0 + $0x64] ss:$36 sps:$4 sm:$0xff]  }
  0x1b   :  { %1130 = vmatpush3.bf16.msra.mxu0 %v1284_v25  ;;  %v1339_v11 = vld [vmem:[%s1668_s0 + $0x18] ss:$36 sps:$4 sm:$0xff]   ;;  %v1346_v16 = vld [vmem:[%s1667_s1 + $0x210] sm:$0xff]   ;;  %v1349_v18 = vld [vmem:[%s1668_s0 + $0x60] ss:$36 sps:$4 sm:$0xff]  }
  0x1c   :  { %1131 = vmatprep.subr.bf16.mxu0 %v1287_v28  ;;  %v1343_v14 = vld [vmem:[%s1668_s0 + $0x5c] ss:$36 sps:$4 sm:$0xff]   ;;  %v1352_v22 = vld [vmem:[%s1667_s1 + $0x228] sm:$0xff]   ;;  %v1353_v23 = vld [vmem:[%s1667_s1 + $0x230] sm:$0xff]  }
  0x1d   :  { %1158 = vmatpush3.bf16.msra.mxu1 %v1286_v27  ;;  %v1345_v15 = vld [vmem:[%s1668_s0 + $0x58] ss:$36 sps:$4 sm:$0xff]   ;;  %v1351_v20 = vld [vmem:[%s1667_s1 + $0x220] sm:$0xff]   ;;  %v1356_v25 = vld [vmem:[%s1668_s0 + $0x68] ss:$36 sps:$4 sm:$0xff]  }
  0x1e   :  { %1159 = vmatprep.subr.bf16.mxu1 %v1289_v30  ;;  %v1350_v19 = vld [vmem:[%s1667_s1 + $0x218] sm:$0xff]   ;;  %v1355_v21 = vld [vmem:[%s1668_s0 + $0x20] ss:$36 sps:$4 sm:$0xff]  }
  0x1f   :  { %1132 = vmatpush3.bf16.msra.mxu0 %v1288_v29  ;;  %v1354_v24 = vld [vmem:[%s1667_s1 + $0x238] sm:$0xff]   ;;  %v998_v27 = vld [vmem:[%s1669_s2] ss:$0 sm:$0xff] }
  0x20   :  { %1173 = vmatprep.subr.bf16.mxu0 %v1294_v34 }
  0x21   :  { %1160 = vmatpush3.bf16.msra.mxu1 %v1293_v33 }
  0x22   :  { %746 = vmatmul.mubr.bf16.vlgmr.msra.gmra.mrb[0].mxu0 %v1290_v31  ;;  %1201 = vmatprep.subr.bf16.mxu1 %v1299_v38 }
  0x23   :  { %1174 = vmatpush3.bf16.msra.mxu0 %v1298_v37  ;;  %753 = vmatprep.mubr.bf16.mxu0 %v1318_v57 }
  0x24   :  { %795 = vmatmul.mubr.bf16.vlgmr.msra.gmra.mrb[0].mxu1 %v1295_v35  ;;  %1175 = vmatprep.subr.bf16.mxu0 %v1301_v40 }
  0x25   :  { %1202 = vmatpush3.bf16.msra.mxu1 %v1300_v39  ;;  %802 = vmatprep.mubr.bf16.mxu1 %v1323_v61 }
  0x26   :  { %1203 = vmatprep.subr.bf16.mxu1 %v1303_v42 }
  0x27   :  { %1176 = vmatpush3.bf16.msra.mxu0 %v1302_v41 }
  0x28   :  { %1177 = vmatprep.subr.bf16.mxu0 %v1305_v44 }
  0x29   :  { %1204 = vmatpush3.bf16.msra.mxu1 %v1304_v43 }
  0x2a   :  { %1205 = vmatprep.subr.bf16.mxu1 %v1307_v46  ;;  %754 = vmatmul.mubr.bf16.gmra.mrb[4].mxu0 %v1321_v59 }
  0x2b   :  { %1178 = vmatpush3.bf16.msra.mxu0 %v1306_v45  ;;  %843 = vmatprep.mubr.bf16.mxu0 %v1336_v8 }
  0x2c   :  { %1179 = vmatprep.subr.bf16.mxu0 %v1309_v48  ;;  %803 = vmatmul.mubr.bf16.gmra.mrb[4].mxu1 %v1326_v63 }
  0x2d   :  { %1206 = vmatpush3.bf16.msra.mxu1 %v1308_v47  ;;  %892 = vmatprep.mubr.bf16.mxu1 %v1341_v12 }
  0x2e   :  { %1207 = vmatprep.subr.bf16.mxu1 %v1311_v50 }
  0x2f   :  { %1180 = vmatpush3.bf16.msra.mxu0 %v1310_v49 }
  0x30   :  { %1181 = vmatprep.subr.bf16.mxu0 %v1313_v52 }
  0x31   :  { %1208 = vmatpush3.bf16.msra.mxu1 %v1312_v51 }
  0x32   :  { %1209 = vmatprep.subr.bf16.mxu1 %v1315_v54 }
  0x33   :  { %1182 = vmatpush3.bf16.msra.mxu0 %v1314_v53 }
  0x34   :  { %1183 = vmatprep.subr.bf16.mxu0 %v1317_v56 }
  0x35   :  { %1210 = vmatpush3.bf16.msra.mxu1 %v1316_v55 }
  0x36   :  { %1211 = vmatprep.subr.bf16.mxu1 %v1322_v60 }
  0x37   :  { %1184 = vmatpush3.bf16.msra.mxu0 %v1320_v58 }
  0x38   :  { %1185 = vmatprep.subr.bf16.mxu0 %v1327_v0 }
  0x39   :  { %1212 = vmatpush3.bf16.msra.mxu1 %v1325_v62 }
  0x3a   :  { %1213 = vmatprep.subr.bf16.mxu1 %v1329_v2 }
  0x3b   :  { %1186 = vmatpush3.bf16.msra.mxu0 %v1328_v1 }
  0x3c   :  { %1187 = vmatprep.subr.bf16.mxu0 %v1331_v4 }
  0x3d   :  { %1214 = vmatpush3.bf16.msra.mxu1 %v1330_v3 }
  0x3e   :  { %1215 = vmatprep.subr.bf16.mxu1 %v1333_v6 }
  0x3f   :  { %1188 = vmatpush3.bf16.msra.mxu0 %v1332_v5 }
  0x40   :  { %1239 = vmatprep.subr.bf16.mxu0 %v1338_v10 }
  0x41   :  { %1216 = vmatpush3.bf16.msra.mxu1 %v1337_v9 }
  0x42   :  { %844 = vmatmul.mubr.bf16.vlgmr.msra.gmra.mrb[8].mxu0 %v1334_v7 }
  0x43   :  { %1240 = vmatpush3.bf16.msra.mxu0 %v1338_v10  ;;  %851 = vmatprep.mubr.bf16.mxu0 %v1343_v14 }
  0x44   :  { %893 = vmatmul.mubr.bf16.vlgmr.msra.gmra.mrb[8].mxu1 %v1339_v11  ;;  %1241 = vmatprep.subr.bf16.mxu0 %v1342_v13 }
  0x45   :  { %900 = vmatprep.mubr.bf16.mxu1 %v1347_v17 }
  0x47   :  { %1242 = vmatpush3.bf16.msra.mxu0 %v1342_v13 }
  0x48   :  { %1243 = vmatprep.subr.bf16.mxu0 %v1346_v16 }
  0x4a   :  { %852 = vmatmul.mubr.bf16.gmra.mrb[12].mxu0 %v1345_v15 }
  0x4b   :  { %1244 = vmatpush3.bf16.msra.mxu0 %v1346_v16  ;;  %1255 = vmatprep.mubr.bf16.mxu0 %v1355_v21 }
  0x4c   :  { %901 = vmatmul.mubr.bf16.gmra.mrb[12].mxu1 %v1349_v18  ;;  %1245 = vmatprep.subr.bf16.mxu0 %v1350_v19 }
  0x4f   :  { %1246 = vmatpush3.bf16.msra.mxu0 %v1350_v19 }
  0x50   :  { %1247 = vmatprep.subr.bf16.mxu0 %v1351_v20 }
  0x53   :  { %1248 = vmatpush3.bf16.msra.mxu0 %v1351_v20 }
  0x54   :  { %1249 = vmatprep.subr.bf16.mxu0 %v1352_v22 }
  0x57   :  { %1250 = vmatpush3.bf16.msra.mxu0 %v1352_v22 }
  0x58   :  { %1251 = vmatprep.subr.bf16.mxu0 %v1353_v23 }
  0x5b   :  { %1252 = vmatpush3.bf16.msra.mxu0 %v1353_v23 }
  0x5c   :  { %1253 = vmatprep.subr.bf16.mxu0 %v1354_v24 }
  0x5f   :  { %1254 = vmatpush3.bf16.msra.mxu0 %v1354_v24 }
  0x62   :  { %1256 = vmatmul.mubr.bf16.vlgmr.msra.gmra.mrb[16].mxu0 %v1356_v25 }
  0xf5   :  { %v1133_v26 = vpop.f32.mrb[0].mxu0 }
  0xf6   :  { %v1134_v28 = vpop.f32.mrb[1].mxu0 }
  0xf7   :  { %v1135_v29 = vadd.f32 %v1134_v28, %v1133_v26  ;;  %v1136_v30 = vpop.f32.mrb[2].mxu0  ;;  %v1161_v31 = vpop.f32.mrb[0].mxu1  ;;  %v1098_v28 = vld [vmem:[%s1670_s3] sm:$0xff]  }
  0xf8   :  { %v1137_v32 = vpop.f32.mrb[3].mxu0  ;;  %v1162_v35 = vpop.f32.mrb[1].mxu1 }
  0xf9   :  { %v748_v33 = vadd.f32 %v1135_v29, %v998_v27  ;;  %v1138_v34 = vadd.f32 %v1137_v32, %v1136_v30  ;;  %v1163_v36 = vadd.f32 %v1162_v35, %v1161_v31  ;;  %v1164_v37 = vpop.f32.mrb[2].mxu1  ;;  %v1099_v31 = vunpack.c.l.bf16 %v1098_v28 }
  0xfa   :  { %v1165_v39 = vpop.f32.mrb[3].mxu1 }
  0xfb   :  { %v751_v38 = vadd.f32 %v1138_v34, %v998_v27  ;;  %v797_v40 = vadd.f32 %v1163_v36, %v748_v33  ;;  %v1166_v41 = vadd.f32 %v1165_v39, %v1164_v37  ;;  %v1100_v37 = vunpack.c.h.bf16 %v1098_v28 }
  0xfd   :  { %v800_v42 = vadd.f32 %v1166_v41, %v751_v38  ;;  %v1139_v43 = vpop.f32.mrb[4].mxu0 }
  0xfe   :  { %v1140_v44 = vpop.f32.mrb[5].mxu0 }
  0xff   :  { %v1141_v45 = vadd.f32 %v1140_v44, %v1139_v43  ;;  %v1142_v46 = vpop.f32.mrb[6].mxu0  ;;  %v1167_v47 = vpop.f32.mrb[4].mxu1 }
 0x100   :  { %v1143_v48 = vpop.f32.mrb[7].mxu0  ;;  %v1168_v51 = vpop.f32.mrb[5].mxu1 }
 0x101   :  { %v756_v49 = vadd.f32 %v1141_v45, %v998_v27  ;;  %v1144_v50 = vadd.f32 %v1143_v48, %v1142_v46  ;;  %v1169_v52 = vadd.f32 %v1168_v51, %v1167_v47  ;;  %v1170_v53 = vpop.f32.mrb[6].mxu1 }
 0x102   :  { %v1171_v55 = vpop.f32.mrb[7].mxu1 }
 0x103   :  { %v759_v54 = vadd.f32 %v1144_v50, %v998_v27  ;;  %v805_v56 = vadd.f32 %v1169_v52, %v756_v49  ;;  %v1172_v57 = vadd.f32 %v1171_v55, %v1170_v53  ;;  %v1115_v27 = vld [vmem:[%s1670_s3 + $0x8] sm:$0xff]  }
 0x104   :  { %v1103_v29 = vunpack.c.l.bf16 %v1115_v27  ;;  %v1104_v34 = vunpack.c.h.bf16 %v1115_v27 }
 0x105   :  { %v808_v58 = vadd.f32 %v1172_v57, %v759_v54 }
 0x115   :  { %v1189_v59 = vpop.f32.mrb[8].mxu0 }
 0x116   :  { %v1190_v60 = vpop.f32.mrb[9].mxu0 }
 0x117   :  { %v1191_v61 = vadd.f32 %v1190_v60, %v1189_v59  ;;  %v1192_v62 = vpop.f32.mrb[10].mxu0  ;;  %v1217_v63 = vpop.f32.mrb[8].mxu1 }
 0x118   :  { %v1193_v0 = vpop.f32.mrb[11].mxu0  ;;  %v1218_v3 = vpop.f32.mrb[9].mxu1 }
 0x119   :  { %v846_v1 = vadd.f32 %v1191_v61, %v797_v40  ;;  %v1194_v2 = vadd.f32 %v1193_v0, %v1192_v62  ;;  %v1219_v4 = vadd.f32 %v1218_v3, %v1217_v63  ;;  %v1220_v5 = vpop.f32.mrb[10].mxu1 }
 0x11a   :  { %v1221_v7 = vpop.f32.mrb[11].mxu1 }
 0x11b   :  { %v849_v6 = vadd.f32 %v1194_v2, %v800_v42  ;;  %v1222_v8 = vadd.f32 %v1221_v7, %v1220_v5  ;;  %v895_v9 = vadd.f32 %v1219_v4, %v846_v1 }
 0x11d   :  { %v1195_v10 = vpop.f32.mrb[12].mxu0  ;;  %v898_v12 = vadd.f32 %v1222_v8, %v849_v6 }
 0x11e   :  { %v1196_v11 = vpop.f32.mrb[13].mxu0 }
 0x11f   :  { %v1197_v13 = vadd.f32 %v1196_v11, %v1195_v10  ;;  %v1198_v14 = vpop.f32.mrb[14].mxu0  ;;  %v1223_v15 = vpop.f32.mrb[12].mxu1 }
 0x120   :  { %v1199_v16 = vpop.f32.mrb[15].mxu0  ;;  %v1224_v19 = vpop.f32.mrb[13].mxu1 }
 0x121   :  { %v854_v17 = vadd.f32 %v1197_v13, %v805_v56  ;;  %v1200_v18 = vadd.f32 %v1199_v16, %v1198_v14  ;;  %v1225_v20 = vadd.f32 %v1224_v19, %v1223_v15  ;;  %v1226_v21 = vpop.f32.mrb[14].mxu1 }
 0x122   :  { %v1227_v23 = vpop.f32.mrb[15].mxu1 }
 0x123   :  { %v857_v22 = vadd.f32 %v1200_v18, %v808_v58  ;;  %v1228_v24 = vadd.f32 %v1227_v23, %v1226_v21  ;;  %v903_v25 = vadd.f32 %v1225_v20, %v854_v17 }
 0x125   :  { %v906_v26 = vadd.f32 %v1228_v24, %v857_v22 }
 0x135   :  { %v1257_v30 = vpop.f32.mrb[16].mxu0 }
 0x136   :  { %v952_v32 = vadd.f32 %v1257_v30, %v903_v25  ;;  %v943_v33 = vpop.f32.mrb[17].mxu0 }
 0x137   :  { %v944_v35 = vadd.f32 %v943_v33, %v895_v9  ;;  %v1258_v36 = vpop.f32.mrb[18].mxu0 }
 0x138   :  { %v968_v38 = vadd.f32 %v1103_v29, %v952_v32  ;;  %v955_v39 = vadd.f32 %v1258_v36, %v906_v26  ;;  %v946_v40 = vpop.f32.mrb[19].mxu0 }
 0x139   :  { %v966_v41 = vadd.f32 %v1099_v31, %v944_v35  ;;  %v947_v42 = vadd.f32 %v946_v40, %v898_v12 }
 0x13a   :  { %v969_v43 = vadd.f32 %v1104_v34, %v955_v39  ;;  %v972_v45 = vmax.f32 %v968_v38, 0.0 }
 0x13b   :  { %v967_v44 = vadd.f32 %v1100_v37, %v947_v42  ;;  %v970_v47 = vmax.f32 %v966_v41, 0.0 }
 0x13c   :  { %v973_v46 = vmax.f32 %v969_v43, 0.0 }
 0x13d   :  { %v971_v48 = vmax.f32 %v967_v44, 0.0 }
 0x13e   :  { %v1113_v49 = vpack.c.bf16 %v973_v46, %v972_v45 }
 0x13f   :  { %v1108_v50 = vpack.c.bf16 %v971_v48, %v970_v47 }
 0x140   :  { %1116 = vst [vmem:[%s1671_s4 + $0x8] sm:$0xff] %v1113_v49  }
 0x141   :  { %1109 = vst [vmem:[%s1671_s4] sm:$0xff] %v1108_v50  }

// kernel: resnet_forward.18
= control target key start
LH: loop header
LB: loop body
LE: loop exit
PB: predicated region body
PF: predicated region fallthrough
CT: control target
= control target key end

     0   :  { %s1632_s1 = inlined_call_operand.vmem [shape: bf16[1152,128], index: 1, kind: input, shape index: {}]   ;;  %s1633_s0 = inlined_call_operand.vmem [shape: bf16[32,1152], index: 0, kind: input, shape index: {}]   ;;  %s1634_s2 = inlined_call_operand.vmem [shape: f32[1,128], index: 2, kind: input, shape index: {}]   ;;  %s1635_s3 = inlined_call_operand.vmem [shape: bf16[32,128], index: 3, kind: output, shape index: {}]  }
   0x1   :  { %v1235_v0 = vld [vmem:[%s1632_s1 + $0x40] sm:$0xff]   ;;  %v1239_v4 = vld [vmem:[%s1632_s1 + $0x48] sm:$0xff]   ;;  %v1243_v8 = vld [vmem:[%s1632_s1 + $0x50] sm:$0xff]  }
   0x2   :  { %v1236_v1 = vld [vmem:[%s1632_s1] sm:$0xff]   ;;  %1093 = vmatprep.subr.bf16.mxu0 %v1235_v0  ;;  %v1240_v5 = vld [vmem:[%s1632_s1 + $0x8] sm:$0xff]   ;;  %v1244_v9 = vld [vmem:[%s1632_s1 + $0x10] sm:$0xff]  }
   0x3   :  { %v1237_v2 = vld [vmem:[%s1632_s1 + $0xc0] sm:$0xff]   ;;  %1094 = vmatpush3.bf16.msra.mxu0 %v1236_v1  ;;  %v1241_v6 = vld [vmem:[%s1632_s1 + $0xc8] sm:$0xff]   ;;  %v1245_v10 = vld [vmem:[%s1632_s1 + $0xd0] sm:$0xff]  }
   0x4   :  { %v1238_v3 = vld [vmem:[%s1632_s1 + $0x80] sm:$0xff]   ;;  %1121 = vmatprep.subr.bf16.mxu1 %v1237_v2  ;;  %1095 = vmatprep.subr.bf16.mxu0 %v1239_v4  ;;  %v1242_v7 = vld [vmem:[%s1632_s1 + $0x88] sm:$0xff]   ;;  %v1246_v11 = vld [vmem:[%s1632_s1 + $0x90] sm:$0xff]  }
   0x5   :  { %1122 = vmatpush3.bf16.msra.mxu1 %v1238_v3  ;;  %v1247_v12 = vld [vmem:[%s1632_s1 + $0x58] sm:$0xff]   ;;  %v1251_v16 = vld [vmem:[%s1632_s1 + $0x60] sm:$0xff]   ;;  %v1255_v20 = vld [vmem:[%s1632_s1 + $0x68] sm:$0xff]  }
   0x6   :  { %1123 = vmatprep.subr.bf16.mxu1 %v1241_v6  ;;  %v1248_v13 = vld [vmem:[%s1632_s1 + $0x18] sm:$0xff]   ;;  %v1252_v17 = vld [vmem:[%s1632_s1 + $0x20] sm:$0xff]   ;;  %v1256_v21 = vld [vmem:[%s1632_s1 + $0x28] sm:$0xff]  }
   0x7   :  { %1096 = vmatpush3.bf16.msra.mxu0 %v1240_v5  ;;  %v1249_v14 = vld [vmem:[%s1632_s1 + $0xd8] sm:$0xff]   ;;  %v1253_v18 = vld [vmem:[%s1632_s1 + $0xe0] sm:$0xff]   ;;  %v1257_v22 = vld [vmem:[%s1632_s1 + $0xe8] sm:$0xff]  }
   0x8   :  { %1097 = vmatprep.subr.bf16.mxu0 %v1243_v8  ;;  %v1250_v15 = vld [vmem:[%s1632_s1 + $0x98] sm:$0xff]   ;;  %v1254_v19 = vld [vmem:[%s1632_s1 + $0xa0] sm:$0xff]   ;;  %v1258_v23 = vld [vmem:[%s1632_s1 + $0xa8] sm:$0xff]  }
   0x9   :  { %1124 = vmatpush3.bf16.msra.mxu1 %v1242_v7  ;;  %v1259_v24 = vld [vmem:[%s1632_s1 + $0x70] sm:$0xff]   ;;  %v1263_v28 = vld [vmem:[%s1632_s1 + $0x78] sm:$0xff]   ;;  %v1266_v31 = vld [vmem:[%s1633_s0] ss:$36 sps:$4 sm:$0xff]  }
   0xa   :  { %1125 = vmatprep.subr.bf16.mxu1 %v1245_v10  ;;  %v1260_v25 = vld [vmem:[%s1632_s1 + $0x30] sm:$0xff]   ;;  %v1264_v29 = vld [vmem:[%s1632_s1 + $0x38] sm:$0xff]   ;;  %v1268_v32 = vld [vmem:[%s1633_s0 + $0x4] ss:$36 sps:$4 sm:$0xff]  }
   0xb   :  { %1098 = vmatpush3.bf16.msra.mxu0 %v1244_v9  ;;  %v1261_v26 = vld [vmem:[%s1632_s1 + $0xf0] sm:$0xff]   ;;  %v1265_v30 = vld [vmem:[%s1632_s1 + $0xf8] sm:$0xff]   ;;  %742 = vmatprep.mubr.bf16.mxu0 %v1268_v32  ;;  %v1270_v34 = vld [vmem:[%s1632_s1 + $0x140] sm:$0xff]  }
   0xc   :  { %1099 = vmatprep.subr.bf16.mxu0 %v1247_v12  ;;  %v1262_v27 = vld [vmem:[%s1632_s1 + $0xb0] sm:$0xff]   ;;  %v1269_v33 = vld [vmem:[%s1632_s1 + $0xb8] sm:$0xff]   ;;  %v1271_v35 = vld [vmem:[%s1633_s0 + $0x8] ss:$36 sps:$4 sm:$0xff]  }
   0xd   :  { %1126 = vmatpush3.bf16.msra.mxu1 %v1246_v11  ;;  %v1273_v36 = vld [vmem:[%s1633_s0 + $0xc] ss:$36 sps:$4 sm:$0xff]   ;;  %v1274_v37 = vld [vmem:[%s1632_s1 + $0x100] sm:$0xff]   ;;  %v1285_v48 = vld [vmem:[%s1632_s1 + $0x158] sm:$0xff]  }
   0xe   :  { %1127 = vmatprep.subr.bf16.mxu1 %v1249_v14  ;;  %791 = vmatprep.mubr.bf16.mxu1 %v1273_v36  ;;  %v1275_v38 = vld [vmem:[%s1632_s1 + $0x1c0] sm:$0xff]   ;;  %v1277_v40 = vld [vmem:[%s1632_s1 + $0x148] sm:$0xff]   ;;  %v1281_v44 = vld [vmem:[%s1632_s1 + $0x150] sm:$0xff]  }
   0xf   :  { %1100 = vmatpush3.bf16.msra.mxu0 %v1248_v13  ;;  %v1276_v39 = vld [vmem:[%s1632_s1 + $0x180] sm:$0xff]   ;;  %v1278_v41 = vld [vmem:[%s1632_s1 + $0x108] sm:$0xff]   ;;  %v1282_v45 = vld [vmem:[%s1632_s1 + $0x110] sm:$0xff]  }
  0x10   :  { %1101 = vmatprep.subr.bf16.mxu0 %v1251_v16  ;;  %v1279_v42 = vld [vmem:[%s1632_s1 + $0x1c8] sm:$0xff]   ;;  %v1283_v46 = vld [vmem:[%s1632_s1 + $0x1d0] sm:$0xff]   ;;  %v1286_v49 = vld [vmem:[%s1632_s1 + $0x118] sm:$0xff]  }
  0x11   :  { %1128 = vmatpush3.bf16.msra.mxu1 %v1250_v15  ;;  %v1280_v43 = vld [vmem:[%s1632_s1 + $0x188] sm:$0xff]   ;;  %v1284_v47 = vld [vmem:[%s1632_s1 + $0x190] sm:$0xff]   ;;  %v1287_v50 = vld [vmem:[%s1632_s1 + $0x1d8] sm:$0xff]  }
  0x12   :  { %1129 = vmatprep.subr.bf16.mxu1 %v1253_v18  ;;  %v1288_v51 = vld [vmem:[%s1632_s1 + $0x198] sm:$0xff]   ;;  %v1289_v52 = vld [vmem:[%s1632_s1 + $0x160] sm:$0xff]   ;;  %v1293_v56 = vld [vmem:[%s1632_s1 + $0x168] sm:$0xff]  }
  0x13   :  { %1102 = vmatpush3.bf16.msra.mxu0 %v1252_v17  ;;  %v1290_v53 = vld [vmem:[%s1632_s1 + $0x120] sm:$0xff]   ;;  %v1294_v57 = vld [vmem:[%s1633_s0 + $0x4c] ss:$36 sps:$4 sm:$0xff]   ;;  %v1299_v61 = vld [vmem:[%s1633_s0 + $0x54] ss:$36 sps:$4 sm:$0xff]  }
  0x14   :  { %1103 = vmatprep.subr.bf16.mxu0 %v1255_v20  ;;  %v1291_v54 = vld [vmem:[%s1632_s1 + $0x1e0] sm:$0xff]   ;;  %v1296_v58 = vld [vmem:[%s1632_s1 + $0x128] sm:$0xff]   ;;  %v1302_v63 = vld [vmem:[%s1633_s0 + $0x50] ss:$36 sps:$4 sm:$0xff]  }
  0x15   :  { %1130 = vmatpush3.bf16.msra.mxu1 %v1254_v19  ;;  %v1292_v55 = vld [vmem:[%s1632_s1 + $0x1a0] sm:$0xff]   ;;  %v1297_v59 = vld [vmem:[%s1633_s0 + $0x48] ss:$36 sps:$4 sm:$0xff]   ;;  %v1303_v0 = vld [vmem:[%s1632_s1 + $0x170] sm:$0xff]  }
  0x16   :  { %1131 = vmatprep.subr.bf16.mxu1 %v1257_v22  ;;  %v1298_v60 = vld [vmem:[%s1632_s1 + $0x1e8] sm:$0xff]   ;;  %v1304_v1 = vld [vmem:[%s1632_s1 + $0x130] sm:$0xff]   ;;  %v1307_v4 = vld [vmem:[%s1632_s1 + $0x178] sm:$0xff]  }
  0x17   :  { %1104 = vmatpush3.bf16.msra.mxu0 %v1256_v21  ;;  %v1301_v62 = vld [vmem:[%s1632_s1 + $0x1a8] sm:$0xff]   ;;  %v1305_v2 = vld [vmem:[%s1632_s1 + $0x1f0] sm:$0xff]   ;;  %v1308_v5 = vld [vmem:[%s1632_s1 + $0x138] sm:$0xff]  }
  0x18   :  { %1105 = vmatprep.subr.bf16.mxu0 %v1259_v24  ;;  %v1306_v3 = vld [vmem:[%s1632_s1 + $0x1b0] sm:$0xff]   ;;  %v1309_v6 = vld [vmem:[%s1632_s1 + $0x1f8] sm:$0xff]   ;;  %v1314_v10 = vld [vmem:[%s1632_s1 + $0x200] sm:$0xff]  }
  0x19   :  { %1132 = vmatpush3.bf16.msra.mxu1 %v1258_v23  ;;  %v1310_v7 = vld [vmem:[%s1633_s0 + $0x10] ss:$36 sps:$4 sm:$0xff]   ;;  %v1313_v9 = vld [vmem:[%s1632_s1 + $0x1b8] sm:$0xff]   ;;  %v1318_v13 = vld [vmem:[%s1632_s1 + $0x208] sm:$0xff]  }
  0x1a   :  { %1133 = vmatprep.subr.bf16.mxu1 %v1261_v26  ;;  %v1312_v8 = vld [vmem:[%s1633_s0 + $0x14] ss:$36 sps:$4 sm:$0xff]   ;;  %v1317_v12 = vld [vmem:[%s1633_s0 + $0x1c] ss:$36 sps:$4 sm:$0xff]   ;;  %v1323_v17 = vld [vmem:[%s1633_s0 + $0x64] ss:$36 sps:$4 sm:$0xff]  }
  0x1b   :  { %1106 = vmatpush3.bf16.msra.mxu0 %v1260_v25  ;;  %v1315_v11 = vld [vmem:[%s1633_s0 + $0x18] ss:$36 sps:$4 sm:$0xff]   ;;  %v1322_v16 = vld [vmem:[%s1632_s1 + $0x210] sm:$0xff]   ;;  %v1325_v18 = vld [vmem:[%s1633_s0 + $0x60] ss:$36 sps:$4 sm:$0xff]  }
  0x1c   :  { %1107 = vmatprep.subr.bf16.mxu0 %v1263_v28  ;;  %v1319_v14 = vld [vmem:[%s1633_s0 + $0x5c] ss:$36 sps:$4 sm:$0xff]   ;;  %v1328_v22 = vld [vmem:[%s1632_s1 + $0x228] sm:$0xff]   ;;  %v1329_v23 = vld [vmem:[%s1632_s1 + $0x230] sm:$0xff]  }
  0x1d   :  { %1134 = vmatpush3.bf16.msra.mxu1 %v1262_v27  ;;  %v1321_v15 = vld [vmem:[%s1633_s0 + $0x58] ss:$36 sps:$4 sm:$0xff]   ;;  %v1327_v20 = vld [vmem:[%s1632_s1 + $0x220] sm:$0xff]   ;;  %v1332_v25 = vld [vmem:[%s1633_s0 + $0x68] ss:$36 sps:$4 sm:$0xff]  }
  0x1e   :  { %1135 = vmatprep.subr.bf16.mxu1 %v1265_v30  ;;  %v1326_v19 = vld [vmem:[%s1632_s1 + $0x218] sm:$0xff]   ;;  %v1331_v21 = vld [vmem:[%s1633_s0 + $0x20] ss:$36 sps:$4 sm:$0xff]  }
  0x1f   :  { %1108 = vmatpush3.bf16.msra.mxu0 %v1264_v29  ;;  %v1330_v24 = vld [vmem:[%s1632_s1 + $0x238] sm:$0xff]   ;;  %v983_v27 = vld [vmem:[%s1634_s2] ss:$0 sm:$0xff] }
  0x20   :  { %1149 = vmatprep.subr.bf16.mxu0 %v1270_v34 }
  0x21   :  { %1136 = vmatpush3.bf16.msra.mxu1 %v1269_v33 }
  0x22   :  { %743 = vmatmul.mubr.bf16.vlgmr.msra.gmra.mrb[0].mxu0 %v1266_v31  ;;  %1177 = vmatprep.subr.bf16.mxu1 %v1275_v38 }
  0x23   :  { %1150 = vmatpush3.bf16.msra.mxu0 %v1274_v37  ;;  %750 = vmatprep.mubr.bf16.mxu0 %v1294_v57 }
  0x24   :  { %792 = vmatmul.mubr.bf16.vlgmr.msra.gmra.mrb[0].mxu1 %v1271_v35  ;;  %1151 = vmatprep.subr.bf16.mxu0 %v1277_v40 }
  0x25   :  { %1178 = vmatpush3.bf16.msra.mxu1 %v1276_v39  ;;  %799 = vmatprep.mubr.bf16.mxu1 %v1299_v61 }
  0x26   :  { %1179 = vmatprep.subr.bf16.mxu1 %v1279_v42 }
  0x27   :  { %1152 = vmatpush3.bf16.msra.mxu0 %v1278_v41 }
  0x28   :  { %1153 = vmatprep.subr.bf16.mxu0 %v1281_v44 }
  0x29   :  { %1180 = vmatpush3.bf16.msra.mxu1 %v1280_v43 }
  0x2a   :  { %1181 = vmatprep.subr.bf16.mxu1 %v1283_v46  ;;  %751 = vmatmul.mubr.bf16.gmra.mrb[4].mxu0 %v1297_v59 }
  0x2b   :  { %1154 = vmatpush3.bf16.msra.mxu0 %v1282_v45  ;;  %840 = vmatprep.mubr.bf16.mxu0 %v1312_v8 }
  0x2c   :  { %1155 = vmatprep.subr.bf16.mxu0 %v1285_v48  ;;  %800 = vmatmul.mubr.bf16.gmra.mrb[4].mxu1 %v1302_v63 }
  0x2d   :  { %1182 = vmatpush3.bf16.msra.mxu1 %v1284_v47  ;;  %889 = vmatprep.mubr.bf16.mxu1 %v1317_v12 }
  0x2e   :  { %1183 = vmatprep.subr.bf16.mxu1 %v1287_v50 }
  0x2f   :  { %1156 = vmatpush3.bf16.msra.mxu0 %v1286_v49 }
  0x30   :  { %1157 = vmatprep.subr.bf16.mxu0 %v1289_v52 }
  0x31   :  { %1184 = vmatpush3.bf16.msra.mxu1 %v1288_v51 }
  0x32   :  { %1185 = vmatprep.subr.bf16.mxu1 %v1291_v54 }
  0x33   :  { %1158 = vmatpush3.bf16.msra.mxu0 %v1290_v53 }
  0x34   :  { %1159 = vmatprep.subr.bf16.mxu0 %v1293_v56 }
  0x35   :  { %1186 = vmatpush3.bf16.msra.mxu1 %v1292_v55 }
  0x36   :  { %1187 = vmatprep.subr.bf16.mxu1 %v1298_v60 }
  0x37   :  { %1160 = vmatpush3.bf16.msra.mxu0 %v1296_v58 }
  0x38   :  { %1161 = vmatprep.subr.bf16.mxu0 %v1303_v0 }
  0x39   :  { %1188 = vmatpush3.bf16.msra.mxu1 %v1301_v62 }
  0x3a   :  { %1189 = vmatprep.subr.bf16.mxu1 %v1305_v2 }
  0x3b   :  { %1162 = vmatpush3.bf16.msra.mxu0 %v1304_v1 }
  0x3c   :  { %1163 = vmatprep.subr.bf16.mxu0 %v1307_v4 }
  0x3d   :  { %1190 = vmatpush3.bf16.msra.mxu1 %v1306_v3 }
  0x3e   :  { %1191 = vmatprep.subr.bf16.mxu1 %v1309_v6 }
  0x3f   :  { %1164 = vmatpush3.bf16.msra.mxu0 %v1308_v5 }
  0x40   :  { %1215 = vmatprep.subr.bf16.mxu0 %v1314_v10 }
  0x41   :  { %1192 = vmatpush3.bf16.msra.mxu1 %v1313_v9 }
  0x42   :  { %841 = vmatmul.mubr.bf16.vlgmr.msra.gmra.mrb[8].mxu0 %v1310_v7 }
  0x43   :  { %1216 = vmatpush3.bf16.msra.mxu0 %v1314_v10  ;;  %848 = vmatprep.mubr.bf16.mxu0 %v1319_v14 }
  0x44   :  { %890 = vmatmul.mubr.bf16.vlgmr.msra.gmra.mrb[8].mxu1 %v1315_v11  ;;  %1217 = vmatprep.subr.bf16.mxu0 %v1318_v13 }
  0x45   :  { %897 = vmatprep.mubr.bf16.mxu1 %v1323_v17 }
  0x47   :  { %1218 = vmatpush3.bf16.msra.mxu0 %v1318_v13 }
  0x48   :  { %1219 = vmatprep.subr.bf16.mxu0 %v1322_v16 }
  0x4a   :  { %849 = vmatmul.mubr.bf16.gmra.mrb[12].mxu0 %v1321_v15 }
  0x4b   :  { %1220 = vmatpush3.bf16.msra.mxu0 %v1322_v16  ;;  %1231 = vmatprep.mubr.bf16.mxu0 %v1331_v21 }
  0x4c   :  { %898 = vmatmul.mubr.bf16.gmra.mrb[12].mxu1 %v1325_v18  ;;  %1221 = vmatprep.subr.bf16.mxu0 %v1326_v19 }
  0x4f   :  { %1222 = vmatpush3.bf16.msra.mxu0 %v1326_v19 }
  0x50   :  { %1223 = vmatprep.subr.bf16.mxu0 %v1327_v20 }
  0x53   :  { %1224 = vmatpush3.bf16.msra.mxu0 %v1327_v20 }
  0x54   :  { %1225 = vmatprep.subr.bf16.mxu0 %v1328_v22 }
  0x57   :  { %1226 = vmatpush3.bf16.msra.mxu0 %v1328_v22 }
  0x58   :  { %1227 = vmatprep.subr.bf16.mxu0 %v1329_v23 }
  0x5b   :  { %1228 = vmatpush3.bf16.msra.mxu0 %v1329_v23 }
  0x5c   :  { %1229 = vmatprep.subr.bf16.mxu0 %v1330_v24 }
  0x5f   :  { %1230 = vmatpush3.bf16.msra.mxu0 %v1330_v24 }
  0x62   :  { %1232 = vmatmul.mubr.bf16.vlgmr.msra.gmra.mrb[16].mxu0 %v1332_v25 }
  0xf5   :  { %v1109_v26 = vpop.f32.mrb[0].mxu0 }
  0xf6   :  { %v1110_v28 = vpop.f32.mrb[1].mxu0 }
  0xf7   :  { %v1111_v29 = vadd.f32 %v1110_v28, %v1109_v26  ;;  %v1112_v30 = vpop.f32.mrb[2].mxu0  ;;  %v1137_v31 = vpop.f32.mrb[0].mxu1 }
  0xf8   :  { %v1113_v32 = vpop.f32.mrb[3].mxu0  ;;  %v1138_v35 = vpop.f32.mrb[1].mxu1 }
  0xf9   :  { %v745_v33 = vadd.f32 %v1111_v29, %v983_v27  ;;  %v1114_v34 = vadd.f32 %v1113_v32, %v1112_v30  ;;  %v1139_v36 = vadd.f32 %v1138_v35, %v1137_v31  ;;  %v1140_v37 = vpop.f32.mrb[2].mxu1 }
  0xfa   :  { %v1141_v39 = vpop.f32.mrb[3].mxu1 }
  0xfb   :  { %v748_v38 = vadd.f32 %v1114_v34, %v983_v27  ;;  %v794_v40 = vadd.f32 %v1139_v36, %v745_v33  ;;  %v1142_v41 = vadd.f32 %v1141_v39, %v1140_v37 }
  0xfd   :  { %v797_v42 = vadd.f32 %v1142_v41, %v748_v38  ;;  %v1115_v43 = vpop.f32.mrb[4].mxu0 }
  0xfe   :  { %v1116_v44 = vpop.f32.mrb[5].mxu0 }
  0xff   :  { %v1117_v45 = vadd.f32 %v1116_v44, %v1115_v43  ;;  %v1118_v46 = vpop.f32.mrb[6].mxu0  ;;  %v1143_v47 = vpop.f32.mrb[4].mxu1 }
 0x100   :  { %v1119_v48 = vpop.f32.mrb[7].mxu0  ;;  %v1144_v51 = vpop.f32.mrb[5].mxu1 }
 0x101   :  { %v753_v49 = vadd.f32 %v1117_v45, %v983_v27  ;;  %v1120_v50 = vadd.f32 %v1119_v48, %v1118_v46  ;;  %v1145_v52 = vadd.f32 %v1144_v51, %v1143_v47  ;;  %v1146_v53 = vpop.f32.mrb[6].mxu1 }
 0x102   :  { %v1147_v55 = vpop.f32.mrb[7].mxu1 }
 0x103   :  { %v756_v54 = vadd.f32 %v1120_v50, %v983_v27  ;;  %v802_v56 = vadd.f32 %v1145_v52, %v753_v49  ;;  %v1148_v57 = vadd.f32 %v1147_v55, %v1146_v53 }
 0x105   :  { %v805_v58 = vadd.f32 %v1148_v57, %v756_v54 }
 0x115   :  { %v1165_v59 = vpop.f32.mrb[8].mxu0 }
 0x116   :  { %v1166_v60 = vpop.f32.mrb[9].mxu0 }
 0x117   :  { %v1167_v61 = vadd.f32 %v1166_v60, %v1165_v59  ;;  %v1168_v62 = vpop.f32.mrb[10].mxu0  ;;  %v1193_v63 = vpop.f32.mrb[8].mxu1 }
 0x118   :  { %v1169_v0 = vpop.f32.mrb[11].mxu0  ;;  %v1194_v3 = vpop.f32.mrb[9].mxu1 }
 0x119   :  { %v843_v1 = vadd.f32 %v1167_v61, %v794_v40  ;;  %v1170_v2 = vadd.f32 %v1169_v0, %v1168_v62  ;;  %v1195_v4 = vadd.f32 %v1194_v3, %v1193_v63  ;;  %v1196_v5 = vpop.f32.mrb[10].mxu1 }
 0x11a   :  { %v1197_v7 = vpop.f32.mrb[11].mxu1 }
 0x11b   :  { %v846_v6 = vadd.f32 %v1170_v2, %v797_v42  ;;  %v1198_v8 = vadd.f32 %v1197_v7, %v1196_v5  ;;  %v892_v9 = vadd.f32 %v1195_v4, %v843_v1 }
 0x11d   :  { %v1171_v10 = vpop.f32.mrb[12].mxu0  ;;  %v895_v12 = vadd.f32 %v1198_v8, %v846_v6 }
 0x11e   :  { %v1172_v11 = vpop.f32.mrb[13].mxu0 }
 0x11f   :  { %v1173_v13 = vadd.f32 %v1172_v11, %v1171_v10  ;;  %v1174_v14 = vpop.f32.mrb[14].mxu0  ;;  %v1199_v15 = vpop.f32.mrb[12].mxu1 }
 0x120   :  { %v1175_v16 = vpop.f32.mrb[15].mxu0  ;;  %v1200_v19 = vpop.f32.mrb[13].mxu1 }
 0x121   :  { %v851_v17 = vadd.f32 %v1173_v13, %v802_v56  ;;  %v1176_v18 = vadd.f32 %v1175_v16, %v1174_v14  ;;  %v1201_v20 = vadd.f32 %v1200_v19, %v1199_v15  ;;  %v1202_v21 = vpop.f32.mrb[14].mxu1 }
 0x122   :  { %v1203_v23 = vpop.f32.mrb[15].mxu1 }
 0x123   :  { %v854_v22 = vadd.f32 %v1176_v18, %v805_v58  ;;  %v1204_v24 = vadd.f32 %v1203_v23, %v1202_v21  ;;  %v900_v25 = vadd.f32 %v1201_v20, %v851_v17 }
 0x125   :  { %v903_v26 = vadd.f32 %v1204_v24, %v854_v22 }
 0x135   :  { %v1233_v27 = vpop.f32.mrb[16].mxu0 }
 0x136   :  { %v949_v28 = vadd.f32 %v1233_v27, %v900_v25  ;;  %v940_v29 = vpop.f32.mrb[17].mxu0 }
 0x137   :  { %v941_v30 = vadd.f32 %v940_v29, %v892_v9  ;;  %v1234_v31 = vpop.f32.mrb[18].mxu0 }
 0x138   :  { %v952_v32 = vadd.f32 %v1234_v31, %v903_v26  ;;  %v943_v33 = vpop.f32.mrb[19].mxu0  ;;  %v957_v35 = vmax.f32 %v949_v28, 0.0 }
 0x139   :  { %v944_v34 = vadd.f32 %v943_v33, %v895_v12  ;;  %v955_v37 = vmax.f32 %v941_v30, 0.0 }
 0x13a   :  { %v958_v36 = vmax.f32 %v952_v32, 0.0 }
 0x13b   :  { %v956_v38 = vmax.f32 %v944_v34, 0.0 }
 0x13c   :  { %v1090_v39 = vpack.c.bf16 %v958_v36, %v957_v35 }
 0x13d   :  { %v1085_v40 = vpack.c.bf16 %v956_v38, %v955_v37 }
 0x13e   :  { %1092 = vst [vmem:[%s1635_s3 + $0x8] sm:$0xff] %v1090_v39  }
 0x13f   :  { %1086 = vst [vmem:[%s1635_s3] sm:$0xff] %v1085_v40  }

</bundles_post_ra>
